<compile_context>
chip_gen: v6e
topology: v6e:2x2x1
jax: 0.10.0
libtpu: 0.0.40
codegen_flags: <defaults>
</compile_context>

<pallas_src>
import functools

import jax
import jax.numpy as jnp
import numpy as np
from jax.experimental import pallas as pl
from jax.experimental.pallas import tpu as pltpu

STRIDE = 2
PADDING = 1
KSIZE = 3
MIN_VALUE = -1.0
DIVISOR = 2.0


def _convt_kernel(x_ref, w_ref, b_ref, o_ref, *, KD, min_value, inv_divisor):
    """One batch per grid step.

    x_ref : (Dp, KH*KW*Cin, Ho*Wo)  bf16  (kh,kw,cin)-folded padded input slab
    w_ref : (KD, Cout, KH*KW*Cin)   bf16  flipped / refolded conv weights
    b_ref : (Cout, 1)               f32
    o_ref : (Do, Cout, Ho*Wo)       f32   all output depth planes for this batch
    """
    Do, Cout, HW = o_ref.shape

    # Hoisted above the od loop: weight planes and bias broadcast
    # (broadcast_in_dim is not CSE'd by JAX -> materialize once).
    w = [w_ref[kd] for kd in range(KD)]
    bias = jnp.broadcast_to(b_ref[...], (Cout, HW))

    for od in range(Do):  # static unroll (Do is small and compile-time known)
        acc = jnp.dot(w[0], x_ref[od], preferred_element_type=jnp.float32)
        for kd in range(1, KD):
            acc = acc + jnp.dot(w[kd], x_ref[od + kd],
                                preferred_element_type=jnp.float32)
        out = jnp.maximum(acc + bias, min_value) * inv_divisor
        o_ref[od] = out.astype(o_ref.dtype)


@functools.partial(jax.jit,
                   static_argnames=("stride", "padding", "min_value", "divisor"))
def conv_transpose3d_clamp_div(x, weight, bias, stride=STRIDE, padding=PADDING,
                               min_value=MIN_VALUE, divisor=DIVISOR):
    """x: (N, Cin, D, H, W); weight: (Cin, Cout, KD, KH, KW); bias: (Cout,)."""
    N, Cin, D, H, W = x.shape
    _, Cout, KD, KH, KW = weight.shape
    Do = (D - 1) * stride - 2 * padding + KD
    Ho = (H - 1) * stride - 2 * padding + KH
    Wo = (W - 1) * stride - 2 * padding + KW

    # --- JAX glue: transposed conv == stride-1 conv of the zero-inserted
    # (lhs-dilated) + (K-1-P)-padded input with a spatially flipped,
    # channel-swapped kernel.  Fold (kh, kw, cin) into one contraction axis.
    # Transpose the *small* input first so no large transpose is needed after
    # the 9-tap stack, and do everything in bf16. ---
    xt = x.astype(jnp.bfloat16).transpose(0, 2, 1, 3, 4)      # (N, D, Cin, H, W)
    Du, Hu, Wu = (D - 1) * stride + 1, (H - 1) * stride + 1, (W - 1) * stride + 1
    xu = jnp.zeros((N, Du, Cin, Hu, Wu), jnp.bfloat16)
    xu = xu.at[:, ::stride, :, ::stride, ::stride].set(xt)
    pd, ph, pw = KD - 1 - padding, KH - 1 - padding, KW - 1 - padding
    xp = jnp.pad(xu, ((0, 0), (pd, pd), (0, 0), (ph, ph), (pw, pw)))
    Dp = xp.shape[1]                                           # (N, Dp, Cin, Hp, Wp)

    KF = KH * KW * Cin                            # folded contraction size (288)
    HW = Ho * Wo                                  # lane-dense plane size (225)

    # pat[n, dp, (kh*KW+kw)*Cin + c, oh*Wo + ow] = xp[n, dp, c, oh+kh, ow+kw]
    slabs = [xp[:, :, :, kh:kh + Ho, kw:kw + Wo]
             for kh in range(KH) for kw in range(KW)]          # (N,Dp,Cin,Ho,Wo) each
    pat = jnp.stack(slabs, axis=2)                             # (N, Dp, 9, Cin, Ho, Wo)
    pat = pat.reshape(N, Dp, KF, HW)                           # (N, Dp, 288, 225)

    # flipped weights refolded to (KD, Cout, KH*KW*Cin) with matching ordering
    wf = jnp.flip(weight, axis=(2, 3, 4))                      # (Cin, Cout, KD, KH, KW)
    wt = wf.transpose(2, 1, 3, 4, 0).reshape(KD, Cout, KF).astype(jnp.bfloat16)
    b2 = bias.reshape(Cout, 1).astype(jnp.float32)

    kernel = functools.partial(_convt_kernel, KD=KD,
                               min_value=float(min_value),
                               inv_divisor=1.0 / float(divisor))

    out = pl.pallas_call(
        kernel,
        out_shape=jax.ShapeDtypeStruct((N, Do, Cout, HW), jnp.float32),
        grid_spec=pltpu.PrefetchScalarGridSpec(
            num_scalar_prefetch=0,
            grid=(N,),
            in_specs=[
                # full per-batch folded slab (~2.1 MiB bf16)
                pl.BlockSpec((None, Dp, KF, HW), lambda n: (n, 0, 0, 0)),
                # full (tiny) weight tensor
                pl.BlockSpec((KD, Cout, KF), lambda n: (0, 0, 0)),
                # bias
                pl.BlockSpec((Cout, 1), lambda n: (0, 0)),
            ],
            out_specs=pl.BlockSpec((None, Do, Cout, HW), lambda n: (n, 0, 0, 0)),
        ),
        compiler_params=pltpu.CompilerParams(
            dimension_semantics=("parallel",)),
    )(pat, wt, b2)

    # (N, Do, Cout, Ho*Wo) -> (N, Cout, Do, Ho, Wo)
    out = out.reshape(N, Do, Cout, Ho, Wo).transpose(0, 2, 1, 3, 4)
    return out


def _reference_numpy(x, w, b, stride, padding, min_value, divisor):
    """Direct scatter-form conv_transpose3d reference (PyTorch semantics)."""
    N, Cin, D, H, W = x.shape
    _, Cout, KD, KH, KW = w.shape
    Do = (D - 1) * stride - 2 * padding + KD
    Ho = (H - 1) * stride - 2 * padding + KH
    Wo = (W - 1) * stride - 2 * padding + KW
    out = np.zeros((N, Cout, Do, Ho, Wo), np.float32)
    nidx, cidx = np.arange(N), np.arange(Cout)
    for kd in range(KD):
        od = np.arange(D) * stride - padding + kd
        md = (od >= 0) & (od < Do)
        for kh in range(KH):
            oh = np.arange(H) * stride - padding + kh
            mh = (oh >= 0) & (oh < Ho)
            for kw in range(KW):
                ow = np.arange(W) * stride - padding + kw
                mw = (ow >= 0) & (ow < Wo)
                term = np.einsum('ncdhw,cf->nfdhw', x, w[:, :, kd, kh, kw])
                out[np.ix_(nidx, cidx, od[md], oh[mh], ow[mw])] += term[
                    np.ix_(nidx, cidx, np.arange(D)[md],
                           np.arange(H)[mh], np.arange(W)[mw])]
    out = out + b[None, :, None, None, None]
    return np.maximum(out, min_value) / divisor


if __name__ == "__main__":
    key = jax.random.PRNGKey(0)
    k1, k2, k3 = jax.random.split(key, 3)

    # small shapes consistent with the module (in=32, out=16, k=3, s=2, p=1)
    N, Cin, Cout, D, H, W, K = 2, 32, 16, 8, 8, 8, KSIZE

    x = jax.random.normal(k1, (N, Cin, D, H, W), dtype=jnp.float32)
    bound = 1.0 / np.sqrt(Cout * K * K * K)          # PyTorch-style init scale
    weight = jax.random.uniform(k2, (Cin, Cout, K, K, K), jnp.float32,
                                -bound, bound)
    bias = jax.random.uniform(k3, (Cout,), jnp.float32, -bound, bound)

    out = conv_transpose3d_clamp_div(x, weight, bias)
    out = jax.block_until_ready(out)

    ref = _reference_numpy(np.asarray(x), np.asarray(weight), np.asarray(bias),
                           STRIDE, PADDING, MIN_VALUE, DIVISOR)
    assert out.shape == ref.shape, (out.shape, ref.shape)
    # bf16 MXU inputs (f32 accumulation) -> slightly loosened tolerance
    np.testing.assert_allclose(np.asarray(out), ref, atol=2e-2, rtol=2e-2)

    print("KERNEL_OK")
</pallas_src>

<mosaic_0001>
module attributes {stable_mosaic.version = 11 : i64} {
  func.func @_convt_kernel(%arg0: i32, %arg1: memref<1x17x288x225xbf16, #tpu.memory_space<vmem>>, %arg2: memref<3x16x288xbf16, #tpu.memory_space<vmem>>, %arg3: memref<16x1xf32, #tpu.memory_space<vmem>>, %arg4: memref<1x15x16x225xf32, #tpu.memory_space<vmem>>) attributes {dimension_semantics = [#tpu.dimension_semantics<parallel>], iteration_bounds = array<i64: 2>, scalar_prefetch = 0 : i64, scratch_operands = 0 : i64, tpu.core_type = #tpu.core_type<tc>, window_params = [{transform_indices = @transform_0, window_bounds = array<i64: 1, 17, 288, 225>}, {pipeline_mode = #tpu.pipeline_mode<synchronous>, transform_indices = @transform_1, window_bounds = array<i64: 3, 16, 288>}, {pipeline_mode = #tpu.pipeline_mode<synchronous>, transform_indices = @transform_2, window_bounds = array<i64: 16, 1>}, {transform_indices = @transform_3, window_bounds = array<i64: 1, 15, 16, 225>}]} {
    %c0 = arith.constant 0 : index
    %c0_0 = arith.constant 0 : index
    %c0_1 = arith.constant 0 : index
    %0 = vector.load %arg2[%c0, %c0_0, %c0_1] : memref<3x16x288xbf16, #tpu.memory_space<vmem>>, vector<1x16x288xbf16>
    %1 = vector.shape_cast %0 : vector<1x16x288xbf16> to vector<16x288xbf16>
    %c1 = arith.constant 1 : index
    %c0_2 = arith.constant 0 : index
    %c0_3 = arith.constant 0 : index
    %2 = vector.load %arg2[%c1, %c0_2, %c0_3] : memref<3x16x288xbf16, #tpu.memory_space<vmem>>, vector<1x16x288xbf16>
    %3 = vector.shape_cast %2 : vector<1x16x288xbf16> to vector<16x288xbf16>
    %c2 = arith.constant 2 : index
    %c0_4 = arith.constant 0 : index
    %c0_5 = arith.constant 0 : index
    %4 = vector.load %arg2[%c2, %c0_4, %c0_5] : memref<3x16x288xbf16, #tpu.memory_space<vmem>>, vector<1x16x288xbf16>
    %5 = vector.shape_cast %4 : vector<1x16x288xbf16> to vector<16x288xbf16>
    %c0_6 = arith.constant 0 : index
    %c0_7 = arith.constant 0 : index
    %6 = vector.load %arg3[%c0_6, %c0_7] : memref<16x1xf32, #tpu.memory_space<vmem>>, vector<16x1xf32>
    %7 = vector.shape_cast %6 : vector<16x1xf32> to vector<16x1xf32>
    %8 = vector.broadcast %7 : vector<16x1xf32> to vector<16x225xf32>
    %c0_8 = arith.constant 0 : index
    %c0_9 = arith.constant 0 : index
    %c0_10 = arith.constant 0 : index
    %c0_11 = arith.constant 0 : index
    %9 = vector.load %arg1[%c0_8, %c0_9, %c0_10, %c0_11] : memref<1x17x288x225xbf16, #tpu.memory_space<vmem>>, vector<1x1x288x225xbf16>
    %10 = vector.shape_cast %9 : vector<1x1x288x225xbf16> to vector<288x225xbf16>
    %cst = arith.constant dense<0.000000e+00> : vector<16x225xf32>
    %11 = tpu.matmul %1, %10, %cst {dimension_numbers = #tpu.dot_dimension_numbers<[1], [0], [0], [1], [0, 0, 1, 1], [], []>} : vector<16x288xbf16>, vector<288x225xbf16>, vector<16x225xf32> -> vector<16x225xf32>
    %c0_12 = arith.constant 0 : index
    %c1_13 = arith.constant 1 : index
    %c0_14 = arith.constant 0 : index
    %c0_15 = arith.constant 0 : index
    %12 = vector.load %arg1[%c0_12, %c1_13, %c0_14, %c0_15] : memref<1x17x288x225xbf16, #tpu.memory_space<vmem>>, vector<1x1x288x225xbf16>
    %13 = vector.shape_cast %12 : vector<1x1x288x225xbf16> to vector<288x225xbf16>
    %cst_16 = arith.constant dense<0.000000e+00> : vector<16x225xf32>
    %14 = tpu.matmul %3, %13, %cst_16 {dimension_numbers = #tpu.dot_dimension_numbers<[1], [0], [0], [1], [0, 0, 1, 1], [], []>} : vector<16x288xbf16>, vector<288x225xbf16>, vector<16x225xf32> -> vector<16x225xf32>
    %15 = arith.addf %11, %14 : vector<16x225xf32>
    %c0_17 = arith.constant 0 : index
    %c2_18 = arith.constant 2 : index
    %c0_19 = arith.constant 0 : index
    %c0_20 = arith.constant 0 : index
    %16 = vector.load %arg1[%c0_17, %c2_18, %c0_19, %c0_20] : memref<1x17x288x225xbf16, #tpu.memory_space<vmem>>, vector<1x1x288x225xbf16>
    %17 = vector.shape_cast %16 : vector<1x1x288x225xbf16> to vector<288x225xbf16>
    %cst_21 = arith.constant dense<0.000000e+00> : vector<16x225xf32>
    %18 = tpu.matmul %5, %17, %cst_21 {dimension_numbers = #tpu.dot_dimension_numbers<[1], [0], [0], [1], [0, 0, 1, 1], [], []>} : vector<16x288xbf16>, vector<288x225xbf16>, vector<16x225xf32> -> vector<16x225xf32>
    %19 = arith.addf %15, %18 : vector<16x225xf32>
    %20 = arith.addf %19, %8 : vector<16x225xf32>
    %cst_22 = arith.constant -1.000000e+00 : f32
    %21 = vector.broadcast %cst_22 : f32 to vector<16x225xf32>
    %22 = arith.maximumf %20, %21 : vector<16x225xf32>
    %cst_23 = arith.constant 5.000000e-01 : f32
    %23 = vector.broadcast %cst_23 : f32 to vector<16x225xf32>
    %24 = arith.mulf %22, %23 : vector<16x225xf32>
    %c0_24 = arith.constant 0 : index
    %c0_25 = arith.constant 0 : index
    %c0_26 = arith.constant 0 : index
    %c0_27 = arith.constant 0 : index
    %25 = vector.load %arg4[%c0_24, %c0_25, %c0_26, %c0_27] : memref<1x15x16x225xf32, #tpu.memory_space<vmem>>, vector<1x1x16x225xf32>
    %26 = vector.shape_cast %25 : vector<1x1x16x225xf32> to vector<16x225xf32>
    %27 = vector.shape_cast %24 : vector<16x225xf32> to vector<1x1x16x225xf32>
    tpu.vector_store %arg4[%c0_24, %c0_25, %c0_26, %c0_27], %27 {strides = array<i32>} : memref<1x15x16x225xf32, #tpu.memory_space<vmem>>, vector<1x1x16x225xf32>,
    %c0_28 = arith.constant 0 : index
    %c1_29 = arith.constant 1 : index
    %c0_30 = arith.constant 0 : index
    %c0_31 = arith.constant 0 : index
    %28 = vector.load %arg1[%c0_28, %c1_29, %c0_30, %c0_31] : memref<1x17x288x225xbf16, #tpu.memory_space<vmem>>, vector<1x1x288x225xbf16>
    %29 = vector.shape_cast %28 : vector<1x1x288x225xbf16> to vector<288x225xbf16>
    %cst_32 = arith.constant dense<0.000000e+00> : vector<16x225xf32>
    %30 = tpu.matmul %1, %29, %cst_32 {dimension_numbers = #tpu.dot_dimension_numbers<[1], [0], [0], [1], [0, 0, 1, 1], [], []>} : vector<16x288xbf16>, vector<288x225xbf16>, vector<16x225xf32> -> vector<16x225xf32>
    %c0_33 = arith.constant 0 : index
    %c2_34 = arith.constant 2 : index
    %c0_35 = arith.constant 0 : index
    %c0_36 = arith.constant 0 : index
    %31 = vector.load %arg1[%c0_33, %c2_34, %c0_35, %c0_36] : memref<1x17x288x225xbf16, #tpu.memory_space<vmem>>, vector<1x1x288x225xbf16>
    %32 = vector.shape_cast %31 : vector<1x1x288x225xbf16> to vector<288x225xbf16>
    %cst_37 = arith.constant dense<0.000000e+00> : vector<16x225xf32>
    %33 = tpu.matmul %3, %32, %cst_37 {dimension_numbers = #tpu.dot_dimension_numbers<[1], [0], [0], [1], [0, 0, 1, 1], [], []>} : vector<16x288xbf16>, vector<288x225xbf16>, vector<16x225xf32> -> vector<16x225xf32>
    %34 = arith.addf %30, %33 : vector<16x225xf32>
    %c0_38 = arith.constant 0 : index
    %c3 = arith.constant 3 : index
    %c0_39 = arith.constant 0 : index
    %c0_40 = arith.constant 0 : index
    %35 = vector.load %arg1[%c0_38, %c3, %c0_39, %c0_40] : memref<1x17x288x225xbf16, #tpu.memory_space<vmem>>, vector<1x1x288x225xbf16>
    %36 = vector.shape_cast %35 : vector<1x1x288x225xbf16> to vector<288x225xbf16>
    %cst_41 = arith.constant dense<0.000000e+00> : vector<16x225xf32>
    %37 = tpu.matmul %5, %36, %cst_41 {dimension_numbers = #tpu.dot_dimension_numbers<[1], [0], [0], [1], [0, 0, 1, 1], [], []>} : vector<16x288xbf16>, vector<288x225xbf16>, vector<16x225xf32> -> vector<16x225xf32>
    %38 = arith.addf %34, %37 : vector<16x225xf32>
    %39 = arith.addf %38, %8 : vector<16x225xf32>
    %cst_42 = arith.constant -1.000000e+00 : f32
    %40 = vector.broadcast %cst_42 : f32 to vector<16x225xf32>
    %41 = arith.maximumf %39, %40 : vector<16x225xf32>
    %cst_43 = arith.constant 5.000000e-01 : f32
    %42 = vector.broadcast %cst_43 : f32 to vector<16x225xf32>
    %43 = arith.mulf %41, %42 : vector<16x225xf32>
    %c0_44 = arith.constant 0 : index
    %c1_45 = arith.constant 1 : index
    %c0_46 = arith.constant 0 : index
    %c0_47 = arith.constant 0 : index
    %44 = vector.load %arg4[%c0_44, %c1_45, %c0_46, %c0_47] : memref<1x15x16x225xf32, #tpu.memory_space<vmem>>, vector<1x1x16x225xf32>
    %45 = vector.shape_cast %44 : vector<1x1x16x225xf32> to vector<16x225xf32>
    %46 = vector.shape_cast %43 : vector<16x225xf32> to vector<1x1x16x225xf32>
    tpu.vector_store %arg4[%c0_44, %c1_45, %c0_46, %c0_47], %46 {strides = array<i32>} : memref<1x15x16x225xf32, #tpu.memory_space<vmem>>, vector<1x1x16x225xf32>,
    %c0_48 = arith.constant 0 : index
    %c2_49 = arith.constant 2 : index
    %c0_50 = arith.constant 0 : index
    %c0_51 = arith.constant 0 : index
    %47 = vector.load %arg1[%c0_48, %c2_49, %c0_50, %c0_51] : memref<1x17x288x225xbf16, #tpu.memory_space<vmem>>, vector<1x1x288x225xbf16>
    %48 = vector.shape_cast %47 : vector<1x1x288x225xbf16> to vector<288x225xbf16>
    %cst_52 = arith.constant dense<0.000000e+00> : vector<16x225xf32>
    %49 = tpu.matmul %1, %48, %cst_52 {dimension_numbers = #tpu.dot_dimension_numbers<[1], [0], [0], [1], [0, 0, 1, 1], [], []>} : vector<16x288xbf16>, vector<288x225xbf16>, vector<16x225xf32> -> vector<16x225xf32>
    %c0_53 = arith.constant 0 : index
    %c3_54 = arith.constant 3 : index
    %c0_55 = arith.constant 0 : index
    %c0_56 = arith.constant 0 : index
    %50 = vector.load %arg1[%c0_53, %c3_54, %c0_55, %c0_56] : memref<1x17x288x225xbf16, #tpu.memory_space<vmem>>, vector<1x1x288x225xbf16>
    %51 = vector.shape_cast %50 : vector<1x1x288x225xbf16> to vector<288x225xbf16>
    %cst_57 = arith.constant dense<0.000000e+00> : vector<16x225xf32>
    %52 = tpu.matmul %3, %51, %cst_57 {dimension_numbers = #tpu.dot_dimension_numbers<[1], [0], [0], [1], [0, 0, 1, 1], [], []>} : vector<16x288xbf16>, vector<288x225xbf16>, vector<16x225xf32> -> vector<16x225xf32>
    %53 = arith.addf %49, %52 : vector<16x225xf32>
    %c0_58 = arith.constant 0 : index
    %c4 = arith.constant 4 : index
    %c0_59 = arith.constant 0 : index
    %c0_60 = arith.constant 0 : index
    %54 = vector.load %arg1[%c0_58, %c4, %c0_59, %c0_60] : memref<1x17x288x225xbf16, #tpu.memory_space<vmem>>, vector<1x1x288x225xbf16>
    %55 = vector.shape_cast %54 : vector<1x1x288x225xbf16> to vector<288x225xbf16>
    %cst_61 = arith.constant dense<0.000000e+00> : vector<16x225xf32>
    %56 = tpu.matmul %5, %55, %cst_61 {dimension_numbers = #tpu.dot_dimension_numbers<[1], [0], [0], [1], [0, 0, 1, 1], [], []>} : vector<16x288xbf16>, vector<288x225xbf16>, vector<16x225xf32> -> vector<16x225xf32>
    %57 = arith.addf %53, %56 : vector<16x225xf32>
    %58 = arith.addf %57, %8 : vector<16x225xf32>
    %cst_62 = arith.constant -1.000000e+00 : f32
    %59 = vector.broadcast %cst_62 : f32 to vector<16x225xf32>
    %60 = arith.maximumf %58, %59 : vector<16x225xf32>
    %cst_63 = arith.constant 5.000000e-01 : f32
    %61 = vector.broadcast %cst_63 : f32 to vector<16x225xf32>
    %62 = arith.mulf %60, %61 : vector<16x225xf32>
    %c0_64 = arith.constant 0 : index
    %c2_65 = arith.constant 2 : index
    %c0_66 = arith.constant 0 : index
    %c0_67 = arith.constant 0 : index
    %63 = vector.load %arg4[%c0_64, %c2_65, %c0_66, %c0_67] : memref<1x15x16x225xf32, #tpu.memory_space<vmem>>, vector<1x1x16x225xf32>
    %64 = vector.shape_cast %63 : vector<1x1x16x225xf32> to vector<16x225xf32>
    %65 = vector.shape_cast %62 : vector<16x225xf32> to vector<1x1x16x225xf32>
    tpu.vector_store %arg4[%c0_64, %c2_65, %c0_66, %c0_67], %65 {strides = array<i32>} : memref<1x15x16x225xf32, #tpu.memory_space<vmem>>, vector<1x1x16x225xf32>,
    %c0_68 = arith.constant 0 : index
    %c3_69 = arith.constant 3 : index
    %c0_70 = arith.constant 0 : index
    %c0_71 = arith.constant 0 : index
    %66 = vector.load %arg1[%c0_68, %c3_69, %c0_70, %c0_71] : memref<1x17x288x225xbf16, #tpu.memory_space<vmem>>, vector<1x1x288x225xbf16>
    %67 = vector.shape_cast %66 : vector<1x1x288x225xbf16> to vector<288x225xbf16>
    %cst_72 = arith.constant dense<0.000000e+00> : vector<16x225xf32>
    %68 = tpu.matmul %1, %67, %cst_72 {dimension_numbers = #tpu.dot_dimension_numbers<[1], [0], [0], [1], [0, 0, 1, 1], [], []>} : vector<16x288xbf16>, vector<288x225xbf16>, vector<16x225xf32> -> vector<16x225xf32>
    %c0_73 = arith.constant 0 : index
    %c4_74 = arith.constant 4 : index
    %c0_75 = arith.constant 0 : index
    %c0_76 = arith.constant 0 : index
    %69 = vector.load %arg1[%c0_73, %c4_74, %c0_75, %c0_76] : memref<1x17x288x225xbf16, #tpu.memory_space<vmem>>, vector<1x1x288x225xbf16>
    %70 = vector.shape_cast %69 : vector<1x1x288x225xbf16> to vector<288x225xbf16>
    %cst_77 = arith.constant dense<0.000000e+00> : vector<16x225xf32>
    %71 = tpu.matmul %3, %70, %cst_77 {dimension_numbers = #tpu.dot_dimension_numbers<[1], [0], [0], [1], [0, 0, 1, 1], [], []>} : vector<16x288xbf16>, vector<288x225xbf16>, vector<16x225xf32> -> vector<16x225xf32>
    %72 = arith.addf %68, %71 : vector<16x225xf32>
    %c0_78 = arith.constant 0 : index
    %c5 = arith.constant 5 : index
    %c0_79 = arith.constant 0 : index
    %c0_80 = arith.constant 0 : index
    %73 = vector.load %arg1[%c0_78, %c5, %c0_79, %c0_80] : memref<1x17x288x225xbf16, #tpu.memory_space<vmem>>, vector<1x1x288x225xbf16>
    %74 = vector.shape_cast %73 : vector<1x1x288x225xbf16> to vector<288x225xbf16>
    %cst_81 = arith.constant dense<0.000000e+00> : vector<16x225xf32>
    %75 = tpu.matmul %5, %74, %cst_81 {dimension_numbers = #tpu.dot_dimension_numbers<[1], [0], [0], [1], [0, 0, 1, 1], [], []>} : vector<16x288xbf16>, vector<288x225xbf16>, vector<16x225xf32> -> vector<16x225xf32>
    %76 = arith.addf %72, %75 : vector<16x225xf32>
    %77 = arith.addf %76, %8 : vector<16x225xf32>
    %cst_82 = arith.constant -1.000000e+00 : f32
    %78 = vector.broadcast %cst_82 : f32 to vector<16x225xf32>
    %79 = arith.maximumf %77, %78 : vector<16x225xf32>
    %cst_83 = arith.constant 5.000000e-01 : f32
    %80 = vector.broadcast %cst_83 : f32 to vector<16x225xf32>
    %81 = arith.mulf %79, %80 : vector<16x225xf32>
    %c0_84 = arith.constant 0 : index
    %c3_85 = arith.constant 3 : index
    %c0_86 = arith.constant 0 : index
    %c0_87 = arith.constant 0 : index
    %82 = vector.load %arg4[%c0_84, %c3_85, %c0_86, %c0_87] : memref<1x15x16x225xf32, #tpu.memory_space<vmem>>, vector<1x1x16x225xf32>
    %83 = vector.shape_cast %82 : vector<1x1x16x225xf32> to vector<16x225xf32>
    %84 = vector.shape_cast %81 : vector<16x225xf32> to vector<1x1x16x225xf32>
    tpu.vector_store %arg4[%c0_84, %c3_85, %c0_86, %c0_87], %84 {strides = array<i32>} : memref<1x15x16x225xf32, #tpu.memory_space<vmem>>, vector<1x1x16x225xf32>,
    %c0_88 = arith.constant 0 : index
    %c4_89 = arith.constant 4 : index
    %c0_90 = arith.constant 0 : index
    %c0_91 = arith.constant 0 : index
    %85 = vector.load %arg1[%c0_88, %c4_89, %c0_90, %c0_91] : memref<1x17x288x225xbf16, #tpu.memory_space<vmem>>, vector<1x1x288x225xbf16>
    %86 = vector.shape_cast %85 : vector<1x1x288x225xbf16> to vector<288x225xbf16>
    %cst_92 = arith.constant dense<0.000000e+00> : vector<16x225xf32>
    %87 = tpu.matmul %1, %86, %cst_92 {dimension_numbers = #tpu.dot_dimension_numbers<[1], [0], [0], [1], [0, 0, 1, 1], [], []>} : vector<16x288xbf16>, vector<288x225xbf16>, vector<16x225xf32> -> vector<16x225xf32>
    %c0_93 = arith.constant 0 : index
    %c5_94 = arith.constant 5 : index
    %c0_95 = arith.constant 0 : index
    %c0_96 = arith.constant 0 : index
    %88 = vector.load %arg1[%c0_93, %c5_94, %c0_95, %c0_96] : memref<1x17x288x225xbf16, #tpu.memory_space<vmem>>, vector<1x1x288x225xbf16>
    %89 = vector.shape_cast %88 : vector<1x1x288x225xbf16> to vector<288x225xbf16>
    %cst_97 = arith.constant dense<0.000000e+00> : vector<16x225xf32>
    %90 = tpu.matmul %3, %89, %cst_97 {dimension_numbers = #tpu.dot_dimension_numbers<[1], [0], [0], [1], [0, 0, 1, 1], [], []>} : vector<16x288xbf16>, vector<288x225xbf16>, vector<16x225xf32> -> vector<16x225xf32>
    %91 = arith.addf %87, %90 : vector<16x225xf32>
    %c0_98 = arith.constant 0 : index
    %c6 = arith.constant 6 : index
    %c0_99 = arith.constant 0 : index
    %c0_100 = arith.constant 0 : index
    %92 = vector.load %arg1[%c0_98, %c6, %c0_99, %c0_100] : memref<1x17x288x225xbf16, #tpu.memory_space<vmem>>, vector<1x1x288x225xbf16>
    %93 = vector.shape_cast %92 : vector<1x1x288x225xbf16> to vector<288x225xbf16>
    %cst_101 = arith.constant dense<0.000000e+00> : vector<16x225xf32>
    %94 = tpu.matmul %5, %93, %cst_101 {dimension_numbers = #tpu.dot_dimension_numbers<[1], [0], [0], [1], [0, 0, 1, 1], [], []>} : vector<16x288xbf16>, vector<288x225xbf16>, vector<16x225xf32> -> vector<16x225xf32>
    %95 = arith.addf %91, %94 : vector<16x225xf32>
    %96 = arith.addf %95, %8 : vector<16x225xf32>
    %cst_102 = arith.constant -1.000000e+00 : f32
    %97 = vector.broadcast %cst_102 : f32 to vector<16x225xf32>
    %98 = arith.maximumf %96, %97 : vector<16x225xf32>
    %cst_103 = arith.constant 5.000000e-01 : f32
    %99 = vector.broadcast %cst_103 : f32 to vector<16x225xf32>
    %100 = arith.mulf %98, %99 : vector<16x225xf32>
    %c0_104 = arith.constant 0 : index
    %c4_105 = arith.constant 4 : index
    %c0_106 = arith.constant 0 : index
    %c0_107 = arith.constant 0 : index
    %101 = vector.load %arg4[%c0_104, %c4_105, %c0_106, %c0_107] : memref<1x15x16x225xf32, #tpu.memory_space<vmem>>, vector<1x1x16x225xf32>
    %102 = vector.shape_cast %101 : vector<1x1x16x225xf32> to vector<16x225xf32>
    %103 = vector.shape_cast %100 : vector<16x225xf32> to vector<1x1x16x225xf32>
    tpu.vector_store %arg4[%c0_104, %c4_105, %c0_106, %c0_107], %103 {strides = array<i32>} : memref<1x15x16x225xf32, #tpu.memory_space<vmem>>, vector<1x1x16x225xf32>,
    %c0_108 = arith.constant 0 : index
    %c5_109 = arith.constant 5 : index
    %c0_110 = arith.constant 0 : index
    %c0_111 = arith.constant 0 : index
    %104 = vector.load %arg1[%c0_108, %c5_109, %c0_110, %c0_111] : memref<1x17x288x225xbf16, #tpu.memory_space<vmem>>, vector<1x1x288x225xbf16>
    %105 = vector.shape_cast %104 : vector<1x1x288x225xbf16> to vector<288x225xbf16>
    %cst_112 = arith.constant dense<0.000000e+00> : vector<16x225xf32>
    %106 = tpu.matmul %1, %105, %cst_112 {dimension_numbers = #tpu.dot_dimension_numbers<[1], [0], [0], [1], [0, 0, 1, 1], [], []>} : vector<16x288xbf16>, vector<288x225xbf16>, vector<16x225xf32> -> vector<16x225xf32>
    %c0_113 = arith.constant 0 : index
    %c6_114 = arith.constant 6 : index
    %c0_115 = arith.constant 0 : index
    %c0_116 = arith.constant 0 : index
    %107 = vector.load %arg1[%c0_113, %c6_114, %c0_115, %c0_116] : memref<1x17x288x225xbf16, #tpu.memory_space<vmem>>, vector<1x1x288x225xbf16>
    %108 = vector.shape_cast %107 : vector<1x1x288x225xbf16> to vector<288x225xbf16>
    %cst_117 = arith.constant dense<0.000000e+00> : vector<16x225xf32>
    %109 = tpu.matmul %3, %108, %cst_117 {dimension_numbers = #tpu.dot_dimension_numbers<[1], [0], [0], [1], [0, 0, 1, 1], [], []>} : vector<16x288xbf16>, vector<288x225xbf16>, vector<16x225xf32> -> vector<16x225xf32>
    %110 = arith.addf %106, %109 : vector<16x225xf32>
    %c0_118 = arith.constant 0 : index
    %c7 = arith.constant 7 : index
    %c0_119 = arith.constant 0 : index
    %c0_120 = arith.constant 0 : index
    %111 = vector.load %arg1[%c0_118, %c7, %c0_119, %c0_120] : memref<1x17x288x225xbf16, #tpu.memory_space<vmem>>, vector<1x1x288x225xbf16>
    %112 = vector.shape_cast %111 : vector<1x1x288x225xbf16> to vector<288x225xbf16>
    %cst_121 = arith.constant dense<0.000000e+00> : vector<16x225xf32>
    %113 = tpu.matmul %5, %112, %cst_121 {dimension_numbers = #tpu.dot_dimension_numbers<[1], [0], [0], [1], [0, 0, 1, 1], [], []>} : vector<16x288xbf16>, vector<288x225xbf16>, vector<16x225xf32> -> vector<16x225xf32>
    %114 = arith.addf %110, %113 : vector<16x225xf32>
    %115 = arith.addf %114, %8 : vector<16x225xf32>
    %cst_122 = arith.constant -1.000000e+00 : f32
    %116 = vector.broadcast %cst_122 : f32 to vector<16x225xf32>
    %117 = arith.maximumf %115, %116 : vector<16x225xf32>
    %cst_123 = arith.constant 5.000000e-01 : f32
    %118 = vector.broadcast %cst_123 : f32 to vector<16x225xf32>
    %119 = arith.mulf %117, %118 : vector<16x225xf32>
    %c0_124 = arith.constant 0 : index
    %c5_125 = arith.constant 5 : index
    %c0_126 = arith.constant 0 : index
    %c0_127 = arith.constant 0 : index
    %120 = vector.load %arg4[%c0_124, %c5_125, %c0_126, %c0_127] : memref<1x15x16x225xf32, #tpu.memory_space<vmem>>, vector<1x1x16x225xf32>
    %121 = vector.shape_cast %120 : vector<1x1x16x225xf32> to vector<16x225xf32>
    %122 = vector.shape_cast %119 : vector<16x225xf32> to vector<1x1x16x225xf32>
    tpu.vector_store %arg4[%c0_124, %c5_125, %c0_126, %c0_127], %122 {strides = array<i32>} : memref<1x15x16x225xf32, #tpu.memory_space<vmem>>, vector<1x1x16x225xf32>,
    %c0_128 = arith.constant 0 : index
    %c6_129 = arith.constant 6 : index
    %c0_130 = arith.constant 0 : index
    %c0_131 = arith.constant 0 : index
    %123 = vector.load %arg1[%c0_128, %c6_129, %c0_130, %c0_131] : memref<1x17x288x225xbf16, #tpu.memory_space<vmem>>, vector<1x1x288x225xbf16>
    %124 = vector.shape_cast %123 : vector<1x1x288x225xbf16> to vector<288x225xbf16>
    %cst_132 = arith.constant dense<0.000000e+00> : vector<16x225xf32>
    %125 = tpu.matmul %1, %124, %cst_132 {dimension_numbers = #tpu.dot_dimension_numbers<[1], [0], [0], [1], [0, 0, 1, 1], [], []>} : vector<16x288xbf16>, vector<288x225xbf16>, vector<16x225xf32> -> vector<16x225xf32>
    %c0_133 = arith.constant 0 : index
    %c7_134 = arith.constant 7 : index
    %c0_135 = arith.constant 0 : index
    %c0_136 = arith.constant 0 : index
    %126 = vector.load %arg1[%c0_133, %c7_134, %c0_135, %c0_136] : memref<1x17x288x225xbf16, #tpu.memory_space<vmem>>, vector<1x1x288x225xbf16>
    %127 = vector.shape_cast %126 : vector<1x1x288x225xbf16> to vector<288x225xbf16>
    %cst_137 = arith.constant dense<0.000000e+00> : vector<16x225xf32>
    %128 = tpu.matmul %3, %127, %cst_137 {dimension_numbers = #tpu.dot_dimension_numbers<[1], [0], [0], [1], [0, 0, 1, 1], [], []>} : vector<16x288xbf16>, vector<288x225xbf16>, vector<16x225xf32> -> vector<16x225xf32>
    %129 = arith.addf %125, %128 : vector<16x225xf32>
    %c0_138 = arith.constant 0 : index
    %c8 = arith.constant 8 : index
    %c0_139 = arith.constant 0 : index
    %c0_140 = arith.constant 0 : index
    %130 = vector.load %arg1[%c0_138, %c8, %c0_139, %c0_140] : memref<1x17x288x225xbf16, #tpu.memory_space<vmem>>, vector<1x1x288x225xbf16>
    %131 = vector.shape_cast %130 : vector<1x1x288x225xbf16> to vector<288x225xbf16>
    %cst_141 = arith.constant dense<0.000000e+00> : vector<16x225xf32>
    %132 = tpu.matmul %5, %131, %cst_141 {dimension_numbers = #tpu.dot_dimension_numbers<[1], [0], [0], [1], [0, 0, 1, 1], [], []>} : vector<16x288xbf16>, vector<288x225xbf16>, vector<16x225xf32> -> vector<16x225xf32>
    %133 = arith.addf %129, %132 : vector<16x225xf32>
    %134 = arith.addf %133, %8 : vector<16x225xf32>
    %cst_142 = arith.constant -1.000000e+00 : f32
    %135 = vector.broadcast %cst_142 : f32 to vector<16x225xf32>
    %136 = arith.maximumf %134, %135 : vector<16x225xf32>
    %cst_143 = arith.constant 5.000000e-01 : f32
    %137 = vector.broadcast %cst_143 : f32 to vector<16x225xf32>
    %138 = arith.mulf %136, %137 : vector<16x225xf32>
    %c0_144 = arith.constant 0 : index
    %c6_145 = arith.constant 6 : index
    %c0_146 = arith.constant 0 : index
    %c0_147 = arith.constant 0 : index
    %139 = vector.load %arg4[%c0_144, %c6_145, %c0_146, %c0_147] : memref<1x15x16x225xf32, #tpu.memory_space<vmem>>, vector<1x1x16x225xf32>
    %140 = vector.shape_cast %139 : vector<1x1x16x225xf32> to vector<16x225xf32>
    %141 = vector.shape_cast %138 : vector<16x225xf32> to vector<1x1x16x225xf32>
    tpu.vector_store %arg4[%c0_144, %c6_145, %c0_146, %c0_147], %141 {strides = array<i32>} : memref<1x15x16x225xf32, #tpu.memory_space<vmem>>, vector<1x1x16x225xf32>,
    %c0_148 = arith.constant 0 : index
    %c7_149 = arith.constant 7 : index
    %c0_150 = arith.constant 0 : index
    %c0_151 = arith.constant 0 : index
    %142 = vector.load %arg1[%c0_148, %c7_149, %c0_150, %c0_151] : memref<1x17x288x225xbf16, #tpu.memory_space<vmem>>, vector<1x1x288x225xbf16>
    %143 = vector.shape_cast %142 : vector<1x1x288x225xbf16> to vector<288x225xbf16>
    %cst_152 = arith.constant dense<0.000000e+00> : vector<16x225xf32>
    %144 = tpu.matmul %1, %143, %cst_152 {dimension_numbers = #tpu.dot_dimension_numbers<[1], [0], [0], [1], [0, 0, 1, 1], [], []>} : vector<16x288xbf16>, vector<288x225xbf16>, vector<16x225xf32> -> vector<16x225xf32>
    %c0_153 = arith.constant 0 : index
    %c8_154 = arith.constant 8 : index
    %c0_155 = arith.constant 0 : index
    %c0_156 = arith.constant 0 : index
    %145 = vector.load %arg1[%c0_153, %c8_154, %c0_155, %c0_156] : memref<1x17x288x225xbf16, #tpu.memory_space<vmem>>, vector<1x1x288x225xbf16>
    %146 = vector.shape_cast %145 : vector<1x1x288x225xbf16> to vector<288x225xbf16>
    %cst_157 = arith.constant dense<0.000000e+00> : vector<16x225xf32>
    %147 = tpu.matmul %3, %146, %cst_157 {dimension_numbers = #tpu.dot_dimension_numbers<[1], [0], [0], [1], [0, 0, 1, 1], [], []>} : vector<16x288xbf16>, vector<288x225xbf16>, vector<16x225xf32> -> vector<16x225xf32>
    %148 = arith.addf %144, %147 : vector<16x225xf32>
    %c0_158 = arith.constant 0 : index
    %c9 = arith.constant 9 : index
    %c0_159 = arith.constant 0 : index
    %c0_160 = arith.constant 0 : index
    %149 = vector.load %arg1[%c0_158, %c9, %c0_159, %c0_160] : memref<1x17x288x225xbf16, #tpu.memory_space<vmem>>, vector<1x1x288x225xbf16>
    %150 = vector.shape_cast %149 : vector<1x1x288x225xbf16> to vector<288x225xbf16>
    %cst_161 = arith.constant dense<0.000000e+00> : vector<16x225xf32>
    %151 = tpu.matmul %5, %150, %cst_161 {dimension_numbers = #tpu.dot_dimension_numbers<[1], [0], [0], [1], [0, 0, 1, 1], [], []>} : vector<16x288xbf16>, vector<288x225xbf16>, vector<16x225xf32> -> vector<16x225xf32>
    %152 = arith.addf %148, %151 : vector<16x225xf32>
    %153 = arith.addf %152, %8 : vector<16x225xf32>
    %cst_162 = arith.constant -1.000000e+00 : f32
    %154 = vector.broadcast %cst_162 : f32 to vector<16x225xf32>
    %155 = arith.maximumf %153, %154 : vector<16x225xf32>
    %cst_163 = arith.constant 5.000000e-01 : f32
    %156 = vector.broadcast %cst_163 : f32 to vector<16x225xf32>
    %157 = arith.mulf %155, %156 : vector<16x225xf32>
    %c0_164 = arith.constant 0 : index
    %c7_165 = arith.constant 7 : index
    %c0_166 = arith.constant 0 : index
    %c0_167 = arith.constant 0 : index
    %158 = vector.load %arg4[%c0_164, %c7_165, %c0_166, %c0_167] : memref<1x15x16x225xf32, #tpu.memory_space<vmem>>, vector<1x1x16x225xf32>
    %159 = vector.shape_cast %158 : vector<1x1x16x225xf32> to vector<16x225xf32>
    %160 = vector.shape_cast %157 : vector<16x225xf32> to vector<1x1x16x225xf32>
    tpu.vector_store %arg4[%c0_164, %c7_165, %c0_166, %c0_167], %160 {strides = array<i32>} : memref<1x15x16x225xf32, #tpu.memory_space<vmem>>, vector<1x1x16x225xf32>,
    %c0_168 = arith.constant 0 : index
    %c8_169 = arith.constant 8 : index
    %c0_170 = arith.constant 0 : index
    %c0_171 = arith.constant 0 : index
    %161 = vector.load %arg1[%c0_168, %c8_169, %c0_170, %c0_171] : memref<1x17x288x225xbf16, #tpu.memory_space<vmem>>, vector<1x1x288x225xbf16>
    %162 = vector.shape_cast %161 : vector<1x1x288x225xbf16> to vector<288x225xbf16>
    %cst_172 = arith.constant dense<0.000000e+00> : vector<16x225xf32>
    %163 = tpu.matmul %1, %162, %cst_172 {dimension_numbers = #tpu.dot_dimension_numbers<[1], [0], [0], [1], [0, 0, 1, 1], [], []>} : vector<16x288xbf16>, vector<288x225xbf16>, vector<16x225xf32> -> vector<16x225xf32>
    %c0_173 = arith.constant 0 : index
    %c9_174 = arith.constant 9 : index
    %c0_175 = arith.constant 0 : index
    %c0_176 = arith.constant 0 : index
    %164 = vector.load %arg1[%c0_173, %c9_174, %c0_175, %c0_176] : memref<1x17x288x225xbf16, #tpu.memory_space<vmem>>, vector<1x1x288x225xbf16>
    %165 = vector.shape_cast %164 : vector<1x1x288x225xbf16> to vector<288x225xbf16>
    %cst_177 = arith.constant dense<0.000000e+00> : vector<16x225xf32>
    %166 = tpu.matmul %3, %165, %cst_177 {dimension_numbers = #tpu.dot_dimension_numbers<[1], [0], [0], [1], [0, 0, 1, 1], [], []>} : vector<16x288xbf16>, vector<288x225xbf16>, vector<16x225xf32> -> vector<16x225xf32>
    %167 = arith.addf %163, %166 : vector<16x225xf32>
    %c0_178 = arith.constant 0 : index
    %c10 = arith.constant 10 : index
    %c0_179 = arith.constant 0 : index
    %c0_180 = arith.constant 0 : index
    %168 = vector.load %arg1[%c0_178, %c10, %c0_179, %c0_180] : memref<1x17x288x225xbf16, #tpu.memory_space<vmem>>, vector<1x1x288x225xbf16>
    %169 = vector.shape_cast %168 : vector<1x1x288x225xbf16> to vector<288x225xbf16>
    %cst_181 = arith.constant dense<0.000000e+00> : vector<16x225xf32>
    %170 = tpu.matmul %5, %169, %cst_181 {dimension_numbers = #tpu.dot_dimension_numbers<[1], [0], [0], [1], [0, 0, 1, 1], [], []>} : vector<16x288xbf16>, vector<288x225xbf16>, vector<16x225xf32> -> vector<16x225xf32>
    %171 = arith.addf %167, %170 : vector<16x225xf32>
    %172 = arith.addf %171, %8 : vector<16x225xf32>
    %cst_182 = arith.constant -1.000000e+00 : f32
    %173 = vector.broadcast %cst_182 : f32 to vector<16x225xf32>
    %174 = arith.maximumf %172, %173 : vector<16x225xf32>
    %cst_183 = arith.constant 5.000000e-01 : f32
    %175 = vector.broadcast %cst_183 : f32 to vector<16x225xf32>
    %176 = arith.mulf %174, %175 : vector<16x225xf32>
    %c0_184 = arith.constant 0 : index
    %c8_185 = arith.constant 8 : index
    %c0_186 = arith.constant 0 : index
    %c0_187 = arith.constant 0 : index
    %177 = vector.load %arg4[%c0_184, %c8_185, %c0_186, %c0_187] : memref<1x15x16x225xf32, #tpu.memory_space<vmem>>, vector<1x1x16x225xf32>
    %178 = vector.shape_cast %177 : vector<1x1x16x225xf32> to vector<16x225xf32>
    %179 = vector.shape_cast %176 : vector<16x225xf32> to vector<1x1x16x225xf32>
    tpu.vector_store %arg4[%c0_184, %c8_185, %c0_186, %c0_187], %179 {strides = array<i32>} : memref<1x15x16x225xf32, #tpu.memory_space<vmem>>, vector<1x1x16x225xf32>,
    %c0_188 = arith.constant 0 : index
    %c9_189 = arith.constant 9 : index
    %c0_190 = arith.constant 0 : index
    %c0_191 = arith.constant 0 : index
    %180 = vector.load %arg1[%c0_188, %c9_189, %c0_190, %c0_191] : memref<1x17x288x225xbf16, #tpu.memory_space<vmem>>, vector<1x1x288x225xbf16>
    %181 = vector.shape_cast %180 : vector<1x1x288x225xbf16> to vector<288x225xbf16>
    %cst_192 = arith.constant dense<0.000000e+00> : vector<16x225xf32>
    %182 = tpu.matmul %1, %181, %cst_192 {dimension_numbers = #tpu.dot_dimension_numbers<[1], [0], [0], [1], [0, 0, 1, 1], [], []>} : vector<16x288xbf16>, vector<288x225xbf16>, vector<16x225xf32> -> vector<16x225xf32>
    %c0_193 = arith.constant 0 : index
    %c10_194 = arith.constant 10 : index
    %c0_195 = arith.constant 0 : index
    %c0_196 = arith.constant 0 : index
    %183 = vector.load %arg1[%c0_193, %c10_194, %c0_195, %c0_196] : memref<1x17x288x225xbf16, #tpu.memory_space<vmem>>, vector<1x1x288x225xbf16>
    %184 = vector.shape_cast %183 : vector<1x1x288x225xbf16> to vector<288x225xbf16>
    %cst_197 = arith.constant dense<0.000000e+00> : vector<16x225xf32>
    %185 = tpu.matmul %3, %184, %cst_197 {dimension_numbers = #tpu.dot_dimension_numbers<[1], [0], [0], [1], [0, 0, 1, 1], [], []>} : vector<16x288xbf16>, vector<288x225xbf16>, vector<16x225xf32> -> vector<16x225xf32>
    %186 = arith.addf %182, %185 : vector<16x225xf32>
    %c0_198 = arith.constant 0 : index
    %c11 = arith.constant 11 : index
    %c0_199 = arith.constant 0 : index
    %c0_200 = arith.constant 0 : index
    %187 = vector.load %arg1[%c0_198, %c11, %c0_199, %c0_200] : memref<1x17x288x225xbf16, #tpu.memory_space<vmem>>, vector<1x1x288x225xbf16>
    %188 = vector.shape_cast %187 : vector<1x1x288x225xbf16> to vector<288x225xbf16>
    %cst_201 = arith.constant dense<0.000000e+00> : vector<16x225xf32>
    %189 = tpu.matmul %5, %188, %cst_201 {dimension_numbers = #tpu.dot_dimension_numbers<[1], [0], [0], [1], [0, 0, 1, 1], [], []>} : vector<16x288xbf16>, vector<288x225xbf16>, vector<16x225xf32> -> vector<16x225xf32>
    %190 = arith.addf %186, %189 : vector<16x225xf32>
    %191 = arith.addf %190, %8 : vector<16x225xf32>
    %cst_202 = arith.constant -1.000000e+00 : f32
    %192 = vector.broadcast %cst_202 : f32 to vector<16x225xf32>
    %193 = arith.maximumf %191, %192 : vector<16x225xf32>
    %cst_203 = arith.constant 5.000000e-01 : f32
    %194 = vector.broadcast %cst_203 : f32 to vector<16x225xf32>
    %195 = arith.mulf %193, %194 : vector<16x225xf32>
    %c0_204 = arith.constant 0 : index
    %c9_205 = arith.constant 9 : index
    %c0_206 = arith.constant 0 : index
    %c0_207 = arith.constant 0 : index
    %196 = vector.load %arg4[%c0_204, %c9_205, %c0_206, %c0_207] : memref<1x15x16x225xf32, #tpu.memory_space<vmem>>, vector<1x1x16x225xf32>
    %197 = vector.shape_cast %196 : vector<1x1x16x225xf32> to vector<16x225xf32>
    %198 = vector.shape_cast %195 : vector<16x225xf32> to vector<1x1x16x225xf32>
    tpu.vector_store %arg4[%c0_204, %c9_205, %c0_206, %c0_207], %198 {strides = array<i32>} : memref<1x15x16x225xf32, #tpu.memory_space<vmem>>, vector<1x1x16x225xf32>,
    %c0_208 = arith.constant 0 : index
    %c10_209 = arith.constant 10 : index
    %c0_210 = arith.constant 0 : index
    %c0_211 = arith.constant 0 : index
    %199 = vector.load %arg1[%c0_208, %c10_209, %c0_210, %c0_211] : memref<1x17x288x225xbf16, #tpu.memory_space<vmem>>, vector<1x1x288x225xbf16>
    %200 = vector.shape_cast %199 : vector<1x1x288x225xbf16> to vector<288x225xbf16>
    %cst_212 = arith.constant dense<0.000000e+00> : vector<16x225xf32>
    %201 = tpu.matmul %1, %200, %cst_212 {dimension_numbers = #tpu.dot_dimension_numbers<[1], [0], [0], [1], [0, 0, 1, 1], [], []>} : vector<16x288xbf16>, vector<288x225xbf16>, vector<16x225xf32> -> vector<16x225xf32>
    %c0_213 = arith.constant 0 : index
    %c11_214 = arith.constant 11 : index
    %c0_215 = arith.constant 0 : index
    %c0_216 = arith.constant 0 : index
    %202 = vector.load %arg1[%c0_213, %c11_214, %c0_215, %c0_216] : memref<1x17x288x225xbf16, #tpu.memory_space<vmem>>, vector<1x1x288x225xbf16>
    %203 = vector.shape_cast %202 : vector<1x1x288x225xbf16> to vector<288x225xbf16>
    %cst_217 = arith.constant dense<0.000000e+00> : vector<16x225xf32>
    %204 = tpu.matmul %3, %203, %cst_217 {dimension_numbers = #tpu.dot_dimension_numbers<[1], [0], [0], [1], [0, 0, 1, 1], [], []>} : vector<16x288xbf16>, vector<288x225xbf16>, vector<16x225xf32> -> vector<16x225xf32>
    %205 = arith.addf %201, %204 : vector<16x225xf32>
    %c0_218 = arith.constant 0 : index
    %c12 = arith.constant 12 : index
    %c0_219 = arith.constant 0 : index
    %c0_220 = arith.constant 0 : index
    %206 = vector.load %arg1[%c0_218, %c12, %c0_219, %c0_220] : memref<1x17x288x225xbf16, #tpu.memory_space<vmem>>, vector<1x1x288x225xbf16>
    %207 = vector.shape_cast %206 : vector<1x1x288x225xbf16> to vector<288x225xbf16>
    %cst_221 = arith.constant dense<0.000000e+00> : vector<16x225xf32>
    %208 = tpu.matmul %5, %207, %cst_221 {dimension_numbers = #tpu.dot_dimension_numbers<[1], [0], [0], [1], [0, 0, 1, 1], [], []>} : vector<16x288xbf16>, vector<288x225xbf16>, vector<16x225xf32> -> vector<16x225xf32>
    %209 = arith.addf %205, %208 : vector<16x225xf32>
    %210 = arith.addf %209, %8 : vector<16x225xf32>
    %cst_222 = arith.constant -1.000000e+00 : f32
    %211 = vector.broadcast %cst_222 : f32 to vector<16x225xf32>
    %212 = arith.maximumf %210, %211 : vector<16x225xf32>
    %cst_223 = arith.constant 5.000000e-01 : f32
    %213 = vector.broadcast %cst_223 : f32 to vector<16x225xf32>
    %214 = arith.mulf %212, %213 : vector<16x225xf32>
    %c0_224 = arith.constant 0 : index
    %c10_225 = arith.constant 10 : index
    %c0_226 = arith.constant 0 : index
    %c0_227 = arith.constant 0 : index
    %215 = vector.load %arg4[%c0_224, %c10_225, %c0_226, %c0_227] : memref<1x15x16x225xf32, #tpu.memory_space<vmem>>, vector<1x1x16x225xf32>
    %216 = vector.shape_cast %215 : vector<1x1x16x225xf32> to vector<16x225xf32>
    %217 = vector.shape_cast %214 : vector<16x225xf32> to vector<1x1x16x225xf32>
    tpu.vector_store %arg4[%c0_224, %c10_225, %c0_226, %c0_227], %217 {strides = array<i32>} : memref<1x15x16x225xf32, #tpu.memory_space<vmem>>, vector<1x1x16x225xf32>,
    %c0_228 = arith.constant 0 : index
    %c11_229 = arith.constant 11 : index
    %c0_230 = arith.constant 0 : index
    %c0_231 = arith.constant 0 : index
    %218 = vector.load %arg1[%c0_228, %c11_229, %c0_230, %c0_231] : memref<1x17x288x225xbf16, #tpu.memory_space<vmem>>, vector<1x1x288x225xbf16>
    %219 = vector.shape_cast %218 : vector<1x1x288x225xbf16> to vector<288x225xbf16>
    %cst_232 = arith.constant dense<0.000000e+00> : vector<16x225xf32>
    %220 = tpu.matmul %1, %219, %cst_232 {dimension_numbers = #tpu.dot_dimension_numbers<[1], [0], [0], [1], [0, 0, 1, 1], [], []>} : vector<16x288xbf16>, vector<288x225xbf16>, vector<16x225xf32> -> vector<16x225xf32>
    %c0_233 = arith.constant 0 : index
    %c12_234 = arith.constant 12 : index
    %c0_235 = arith.constant 0 : index
    %c0_236 = arith.constant 0 : index
    %221 = vector.load %arg1[%c0_233, %c12_234, %c0_235, %c0_236] : memref<1x17x288x225xbf16, #tpu.memory_space<vmem>>, vector<1x1x288x225xbf16>
    %222 = vector.shape_cast %221 : vector<1x1x288x225xbf16> to vector<288x225xbf16>
    %cst_237 = arith.constant dense<0.000000e+00> : vector<16x225xf32>
    %223 = tpu.matmul %3, %222, %cst_237 {dimension_numbers = #tpu.dot_dimension_numbers<[1], [0], [0], [1], [0, 0, 1, 1], [], []>} : vector<16x288xbf16>, vector<288x225xbf16>, vector<16x225xf32> -> vector<16x225xf32>
    %224 = arith.addf %220, %223 : vector<16x225xf32>
    %c0_238 = arith.constant 0 : index
    %c13 = arith.constant 13 : index
    %c0_239 = arith.constant 0 : index
    %c0_240 = arith.constant 0 : index
    %225 = vector.load %arg1[%c0_238, %c13, %c0_239, %c0_240] : memref<1x17x288x225xbf16, #tpu.memory_space<vmem>>, vector<1x1x288x225xbf16>
    %226 = vector.shape_cast %225 : vector<1x1x288x225xbf16> to vector<288x225xbf16>
    %cst_241 = arith.constant dense<0.000000e+00> : vector<16x225xf32>
    %227 = tpu.matmul %5, %226, %cst_241 {dimension_numbers = #tpu.dot_dimension_numbers<[1], [0], [0], [1], [0, 0, 1, 1], [], []>} : vector<16x288xbf16>, vector<288x225xbf16>, vector<16x225xf32> -> vector<16x225xf32>
    %228 = arith.addf %224, %227 : vector<16x225xf32>
    %229 = arith.addf %228, %8 : vector<16x225xf32>
    %cst_242 = arith.constant -1.000000e+00 : f32
    %230 = vector.broadcast %cst_242 : f32 to vector<16x225xf32>
    %231 = arith.maximumf %229, %230 : vector<16x225xf32>
    %cst_243 = arith.constant 5.000000e-01 : f32
    %232 = vector.broadcast %cst_243 : f32 to vector<16x225xf32>
    %233 = arith.mulf %231, %232 : vector<16x225xf32>
    %c0_244 = arith.constant 0 : index
    %c11_245 = arith.constant 11 : index
    %c0_246 = arith.constant 0 : index
    %c0_247 = arith.constant 0 : index
    %234 = vector.load %arg4[%c0_244, %c11_245, %c0_246, %c0_247] : memref<1x15x16x225xf32, #tpu.memory_space<vmem>>, vector<1x1x16x225xf32>
    %235 = vector.shape_cast %234 : vector<1x1x16x225xf32> to vector<16x225xf32>
    %236 = vector.shape_cast %233 : vector<16x225xf32> to vector<1x1x16x225xf32>
    tpu.vector_store %arg4[%c0_244, %c11_245, %c0_246, %c0_247], %236 {strides = array<i32>} : memref<1x15x16x225xf32, #tpu.memory_space<vmem>>, vector<1x1x16x225xf32>,
    %c0_248 = arith.constant 0 : index
    %c12_249 = arith.constant 12 : index
    %c0_250 = arith.constant 0 : index
    %c0_251 = arith.constant 0 : index
    %237 = vector.load %arg1[%c0_248, %c12_249, %c0_250, %c0_251] : memref<1x17x288x225xbf16, #tpu.memory_space<vmem>>, vector<1x1x288x225xbf16>
    %238 = vector.shape_cast %237 : vector<1x1x288x225xbf16> to vector<288x225xbf16>
    %cst_252 = arith.constant dense<0.000000e+00> : vector<16x225xf32>
    %239 = tpu.matmul %1, %238, %cst_252 {dimension_numbers = #tpu.dot_dimension_numbers<[1], [0], [0], [1], [0, 0, 1, 1], [], []>} : vector<16x288xbf16>, vector<288x225xbf16>, vector<16x225xf32> -> vector<16x225xf32>
    %c0_253 = arith.constant 0 : index
    %c13_254 = arith.constant 13 : index
    %c0_255 = arith.constant 0 : index
    %c0_256 = arith.constant 0 : index
    %240 = vector.load %arg1[%c0_253, %c13_254, %c0_255, %c0_256] : memref<1x17x288x225xbf16, #tpu.memory_space<vmem>>, vector<1x1x288x225xbf16>
    %241 = vector.shape_cast %240 : vector<1x1x288x225xbf16> to vector<288x225xbf16>
    %cst_257 = arith.constant dense<0.000000e+00> : vector<16x225xf32>
    %242 = tpu.matmul %3, %241, %cst_257 {dimension_numbers = #tpu.dot_dimension_numbers<[1], [0], [0], [1], [0, 0, 1, 1], [], []>} : vector<16x288xbf16>, vector<288x225xbf16>, vector<16x225xf32> -> vector<16x225xf32>
    %243 = arith.addf %239, %242 : vector<16x225xf32>
    %c0_258 = arith.constant 0 : index
    %c14 = arith.constant 14 : index
    %c0_259 = arith.constant 0 : index
    %c0_260 = arith.constant 0 : index
    %244 = vector.load %arg1[%c0_258, %c14, %c0_259, %c0_260] : memref<1x17x288x225xbf16, #tpu.memory_space<vmem>>, vector<1x1x288x225xbf16>
    %245 = vector.shape_cast %244 : vector<1x1x288x225xbf16> to vector<288x225xbf16>
    %cst_261 = arith.constant dense<0.000000e+00> : vector<16x225xf32>
    %246 = tpu.matmul %5, %245, %cst_261 {dimension_numbers = #tpu.dot_dimension_numbers<[1], [0], [0], [1], [0, 0, 1, 1], [], []>} : vector<16x288xbf16>, vector<288x225xbf16>, vector<16x225xf32> -> vector<16x225xf32>
    %247 = arith.addf %243, %246 : vector<16x225xf32>
    %248 = arith.addf %247, %8 : vector<16x225xf32>
    %cst_262 = arith.constant -1.000000e+00 : f32
    %249 = vector.broadcast %cst_262 : f32 to vector<16x225xf32>
    %250 = arith.maximumf %248, %249 : vector<16x225xf32>
    %cst_263 = arith.constant 5.000000e-01 : f32
    %251 = vector.broadcast %cst_263 : f32 to vector<16x225xf32>
    %252 = arith.mulf %250, %251 : vector<16x225xf32>
    %c0_264 = arith.constant 0 : index
    %c12_265 = arith.constant 12 : index
    %c0_266 = arith.constant 0 : index
    %c0_267 = arith.constant 0 : index
    %253 = vector.load %arg4[%c0_264, %c12_265, %c0_266, %c0_267] : memref<1x15x16x225xf32, #tpu.memory_space<vmem>>, vector<1x1x16x225xf32>
    %254 = vector.shape_cast %253 : vector<1x1x16x225xf32> to vector<16x225xf32>
    %255 = vector.shape_cast %252 : vector<16x225xf32> to vector<1x1x16x225xf32>
    tpu.vector_store %arg4[%c0_264, %c12_265, %c0_266, %c0_267], %255 {strides = array<i32>} : memref<1x15x16x225xf32, #tpu.memory_space<vmem>>, vector<1x1x16x225xf32>,
    %c0_268 = arith.constant 0 : index
    %c13_269 = arith.constant 13 : index
    %c0_270 = arith.constant 0 : index
    %c0_271 = arith.constant 0 : index
    %256 = vector.load %arg1[%c0_268, %c13_269, %c0_270, %c0_271] : memref<1x17x288x225xbf16, #tpu.memory_space<vmem>>, vector<1x1x288x225xbf16>
    %257 = vector.shape_cast %256 : vector<1x1x288x225xbf16> to vector<288x225xbf16>
    %cst_272 = arith.constant dense<0.000000e+00> : vector<16x225xf32>
    %258 = tpu.matmul %1, %257, %cst_272 {dimension_numbers = #tpu.dot_dimension_numbers<[1], [0], [0], [1], [0, 0, 1, 1], [], []>} : vector<16x288xbf16>, vector<288x225xbf16>, vector<16x225xf32> -> vector<16x225xf32>
    %c0_273 = arith.constant 0 : index
    %c14_274 = arith.constant 14 : index
    %c0_275 = arith.constant 0 : index
    %c0_276 = arith.constant 0 : index
    %259 = vector.load %arg1[%c0_273, %c14_274, %c0_275, %c0_276] : memref<1x17x288x225xbf16, #tpu.memory_space<vmem>>, vector<1x1x288x225xbf16>
    %260 = vector.shape_cast %259 : vector<1x1x288x225xbf16> to vector<288x225xbf16>
    %cst_277 = arith.constant dense<0.000000e+00> : vector<16x225xf32>
    %261 = tpu.matmul %3, %260, %cst_277 {dimension_numbers = #tpu.dot_dimension_numbers<[1], [0], [0], [1], [0, 0, 1, 1], [], []>} : vector<16x288xbf16>, vector<288x225xbf16>, vector<16x225xf32> -> vector<16x225xf32>
    %262 = arith.addf %258, %261 : vector<16x225xf32>
    %c0_278 = arith.constant 0 : index
    %c15 = arith.constant 15 : index
    %c0_279 = arith.constant 0 : index
    %c0_280 = arith.constant 0 : index
    %263 = vector.load %arg1[%c0_278, %c15, %c0_279, %c0_280] : memref<1x17x288x225xbf16, #tpu.memory_space<vmem>>, vector<1x1x288x225xbf16>
    %264 = vector.shape_cast %263 : vector<1x1x288x225xbf16> to vector<288x225xbf16>
    %cst_281 = arith.constant dense<0.000000e+00> : vector<16x225xf32>
    %265 = tpu.matmul %5, %264, %cst_281 {dimension_numbers = #tpu.dot_dimension_numbers<[1], [0], [0], [1], [0, 0, 1, 1], [], []>} : vector<16x288xbf16>, vector<288x225xbf16>, vector<16x225xf32> -> vector<16x225xf32>
    %266 = arith.addf %262, %265 : vector<16x225xf32>
    %267 = arith.addf %266, %8 : vector<16x225xf32>
    %cst_282 = arith.constant -1.000000e+00 : f32
    %268 = vector.broadcast %cst_282 : f32 to vector<16x225xf32>
    %269 = arith.maximumf %267, %268 : vector<16x225xf32>
    %cst_283 = arith.constant 5.000000e-01 : f32
    %270 = vector.broadcast %cst_283 : f32 to vector<16x225xf32>
    %271 = arith.mulf %269, %270 : vector<16x225xf32>
    %c0_284 = arith.constant 0 : index
    %c13_285 = arith.constant 13 : index
    %c0_286 = arith.constant 0 : index
    %c0_287 = arith.constant 0 : index
    %272 = vector.load %arg4[%c0_284, %c13_285, %c0_286, %c0_287] : memref<1x15x16x225xf32, #tpu.memory_space<vmem>>, vector<1x1x16x225xf32>
    %273 = vector.shape_cast %272 : vector<1x1x16x225xf32> to vector<16x225xf32>
    %274 = vector.shape_cast %271 : vector<16x225xf32> to vector<1x1x16x225xf32>
    tpu.vector_store %arg4[%c0_284, %c13_285, %c0_286, %c0_287], %274 {strides = array<i32>} : memref<1x15x16x225xf32, #tpu.memory_space<vmem>>, vector<1x1x16x225xf32>,
    %c0_288 = arith.constant 0 : index
    %c14_289 = arith.constant 14 : index
    %c0_290 = arith.constant 0 : index
    %c0_291 = arith.constant 0 : index
    %275 = vector.load %arg1[%c0_288, %c14_289, %c0_290, %c0_291] : memref<1x17x288x225xbf16, #tpu.memory_space<vmem>>, vector<1x1x288x225xbf16>
    %276 = vector.shape_cast %275 : vector<1x1x288x225xbf16> to vector<288x225xbf16>
    %cst_292 = arith.constant dense<0.000000e+00> : vector<16x225xf32>
    %277 = tpu.matmul %1, %276, %cst_292 {dimension_numbers = #tpu.dot_dimension_numbers<[1], [0], [0], [1], [0, 0, 1, 1], [], []>} : vector<16x288xbf16>, vector<288x225xbf16>, vector<16x225xf32> -> vector<16x225xf32>
    %c0_293 = arith.constant 0 : index
    %c15_294 = arith.constant 15 : index
    %c0_295 = arith.constant 0 : index
    %c0_296 = arith.constant 0 : index
    %278 = vector.load %arg1[%c0_293, %c15_294, %c0_295, %c0_296] : memref<1x17x288x225xbf16, #tpu.memory_space<vmem>>, vector<1x1x288x225xbf16>
    %279 = vector.shape_cast %278 : vector<1x1x288x225xbf16> to vector<288x225xbf16>
    %cst_297 = arith.constant dense<0.000000e+00> : vector<16x225xf32>
    %280 = tpu.matmul %3, %279, %cst_297 {dimension_numbers = #tpu.dot_dimension_numbers<[1], [0], [0], [1], [0, 0, 1, 1], [], []>} : vector<16x288xbf16>, vector<288x225xbf16>, vector<16x225xf32> -> vector<16x225xf32>
    %281 = arith.addf %277, %280 : vector<16x225xf32>
    %c0_298 = arith.constant 0 : index
    %c16 = arith.constant 16 : index
    %c0_299 = arith.constant 0 : index
    %c0_300 = arith.constant 0 : index
    %282 = vector.load %arg1[%c0_298, %c16, %c0_299, %c0_300] : memref<1x17x288x225xbf16, #tpu.memory_space<vmem>>, vector<1x1x288x225xbf16>
    %283 = vector.shape_cast %282 : vector<1x1x288x225xbf16> to vector<288x225xbf16>
    %cst_301 = arith.constant dense<0.000000e+00> : vector<16x225xf32>
    %284 = tpu.matmul %5, %283, %cst_301 {dimension_numbers = #tpu.dot_dimension_numbers<[1], [0], [0], [1], [0, 0, 1, 1], [], []>} : vector<16x288xbf16>, vector<288x225xbf16>, vector<16x225xf32> -> vector<16x225xf32>
    %285 = arith.addf %281, %284 : vector<16x225xf32>
    %286 = arith.addf %285, %8 : vector<16x225xf32>
    %cst_302 = arith.constant -1.000000e+00 : f32
    %287 = vector.broadcast %cst_302 : f32 to vector<16x225xf32>
    %288 = arith.maximumf %286, %287 : vector<16x225xf32>
    %cst_303 = arith.constant 5.000000e-01 : f32
    %289 = vector.broadcast %cst_303 : f32 to vector<16x225xf32>
    %290 = arith.mulf %288, %289 : vector<16x225xf32>
    %c0_304 = arith.constant 0 : index
    %c14_305 = arith.constant 14 : index
    %c0_306 = arith.constant 0 : index
    %c0_307 = arith.constant 0 : index
    %291 = vector.load %arg4[%c0_304, %c14_305, %c0_306, %c0_307] : memref<1x15x16x225xf32, #tpu.memory_space<vmem>>, vector<1x1x16x225xf32>
    %292 = vector.shape_cast %291 : vector<1x1x16x225xf32> to vector<16x225xf32>
    %293 = vector.shape_cast %290 : vector<16x225xf32> to vector<1x1x16x225xf32>
    tpu.vector_store %arg4[%c0_304, %c14_305, %c0_306, %c0_307], %293 {strides = array<i32>} : memref<1x15x16x225xf32, #tpu.memory_space<vmem>>, vector<1x1x16x225xf32>,
    return
  }
  func.func @transform_0(%arg0: i32) -> (i32, i32, i32, i32) {
    %c0_i32 = arith.constant 0 : i32
    %c0_i32_0 = arith.constant 0 : i32
    %c0_i32_1 = arith.constant 0 : i32
    %c0_i32_2 = arith.constant 0 : i32
    return %arg0, %c0_i32, %c0_i32_0, %c0_i32_1 : i32, i32, i32, i32
  }
  func.func @transform_1(%arg0: i32) -> (i32, i32, i32) {
    %c0_i32 = arith.constant 0 : i32
    %c0_i32_0 = arith.constant 0 : i32
    %c0_i32_1 = arith.constant 0 : i32
    %c0_i32_2 = arith.constant 0 : i32
    return %c0_i32, %c0_i32_0, %c0_i32_1 : i32, i32, i32
  }
  func.func @transform_2(%arg0: i32) -> (i32, i32) {
    %c0_i32 = arith.constant 0 : i32
    %c0_i32_0 = arith.constant 0 : i32
    %c0_i32_1 = arith.constant 0 : i32
    return %c0_i32, %c0_i32_0 : i32, i32
  }
  func.func @transform_3(%arg0: i32) -> (i32, i32, i32, i32) {
    %c0_i32 = arith.constant 0 : i32
    %c0_i32_0 = arith.constant 0 : i32
    %c0_i32_1 = arith.constant 0 : i32
    %c0_i32_2 = arith.constant 0 : i32
    return %arg0, %c0_i32, %c0_i32_0, %c0_i32_1 : i32, i32, i32, i32
  }
}

</mosaic_0001>

<bundles_post_ra>
// kernel: conv_transpose3d_clamp_div.1
= control target key start
LH: loop header
LB: loop body
LE: loop exit
PB: predicated region body
PF: predicated region fallthrough
CT: control target
= control target key end

     0   :  { %s19291_s12 = smov 0   ;;  %s22358_s0 = inlined_call_operand.vmem [shape: bf16[2,17,288,225], index: 0, kind: input, shape index: {}]   ;;  %s22359_s1 = inlined_call_operand.vmem [shape: bf16[3,16,288], index: 1, kind: input, shape index: {}]   ;;  %s22360_s2 = inlined_call_operand.vmem [shape: f32[16,1], index: 2, kind: input, shape index: {}]   ;;  %s22361_s3 = inlined_call_operand.vmem [shape: f32[2,15,16,225], index: 3, kind: output, shape index: {}]  }
   0x1 LB: > { %s14229_s13 = sadd.s32 4294967295, %s19268_s12   ;;  %p14233_p0 = scmp.ge.s32.totalorder %s19268_s12, 1  ;;  %s19268_s12 = sphi %s19291_s12, %s13_s12  }
   0x2   : > { %p137_p1 = scmp.lt.s32.totalorder %s19268_s12, 3 }
   0x4   : > { %p138_p2 = pnand %p14233_p0, %p137_p1 }
   0x5   : > { %p161_p3 = scmp.lt.s32.totalorder (!%p138_p2), %s14229_s13, 1 }
   0x6   : > { %141 = sbr.rel (%p138_p2) target bundleno = 1850 (0x73a), region = 32 }
   0xb   : > { %v19270_v0 = vmov 0   ;;  %s22363_s13 = smov (!%p161_p3, %s14229_s13), 1  ;;  %v19306_v1 = vld [vmem:[%s22359_s1 + $0x1c] ss:$12 sps:$4 sm:$0xff]   ;;  %v17590_v13 = vld [vmem:[%s22359_s1 + $0x20] ss:$12 sps:$4 sm:$0xff]  }
   0xc   : > { %545 = vmatprep.mubr.bf16.mxu1 %v19270_v0  ;;  %17571 = vset.pattern.permute.xlu0 %v19270_v0  ;;  %s17560_s16 = smul.u32 4896, %s22363_s13  ;;  %vm466_vm0 = vcmask 261120   ;;  %v19354_v17 = vld [vmem:[%s22359_s1 + $0x4] ss:$12 sps:$4 sm:$0xff]   ;;  %vm1178_vm1 = vcmask 793600  }
   0xd   : > { %502 = vmatprep.mubr.bf16.mxu0 %v19306_v1  ;;  %s17561_s7 = smul.u32 480, %s22363_s13 }
   0xe   : > { %s19313_s19 = scalar_lea.vmem %s22358_s0, %s17560_s16 }
   0xf   : > { %v19316_v2 = vld [vmem:[%s19313_s19 + $0x194] ss:$8 sps:$4 sm:$0xff]   ;;  %v19321_v4 = vld [vmem:[%s19313_s19 + $0x190] ss:$8 sps:$4 sm:$0xff]   ;;  %v19325_v6 = vld [vmem:[%s19313_s19 + $0x184] ss:$8 sps:$4 sm:$0xff]   ;;  %s19963_s9 = scalar_lea.vmem %s22361_s3, %s17561_s7 }
  0x10   : > { %v17574_v3 = vld [vmem:[%s19313_s19 + $0x234] ss:$8 sps:$4 sm:$0xff]   ;;  %470 = vmatprep.subr.bf16.mxu0 %v19316_v2  ;;  %v17577_v5 = vld [vmem:[%s19313_s19 + $0x230] ss:$8 sps:$4 sm:$0xff]   ;;  %v17580_v7 = vld [vmem:[%s19313_s19 + $0x224] ss:$8 sps:$4 sm:$0xff]  }
  0x11   : > { %525 = vmatprep.subr.bf16.mxu1 %v17574_v3  ;;  %471 = vmatpush1.bf16.msra.mxu0 %v19321_v4  ;;  %v19330_v8 = vld [vmem:[%s19313_s19 + $0x180] ss:$8 sps:$4 sm:$0xff]   ;;  %v19335_v10 = vld [vmem:[%s19313_s19 + $0x174] ss:$8 sps:$4 sm:$0xff]   ;;  %v17586_v11 = vld [vmem:[%s19313_s19 + $0x70] ss:$8 sps:$4 sm:$0xff]  }
  0x12   : > { %526 = vmatpush1.bf16.msra.mxu1 %v17577_v5  ;;  %472 = vmatprep.subr.bf16.mxu0 %v19325_v6  ;;  %v17583_v9 = vld [vmem:[%s19313_s19 + $0x220] ss:$8 sps:$4 sm:$0xff]   ;;  %v17588_v12 = vld [vmem:[%s19313_s19 + $0x74] ss:$8 sps:$4 sm:$0xff]   ;;  %v19344_v14 = vld [vmem:[%s19313_s19 + $0x170] ss:$8 sps:$4 sm:$0xff]  }
  0x13   : > { %527 = vmatprep.subr.bf16.mxu1 %v17580_v7  ;;  %v19348_v15 = vld [vmem:[%s19313_s19 + $0x164] ss:$8 sps:$4 sm:$0xff]   ;;  %v17593_v18 = vld [vmem:[%s19313_s19 + $0x60] ss:$8 sps:$4 sm:$0xff]   ;;  %v19363_v20 = vld [vmem:[%s19313_s19 + $0x154] ss:$8 sps:$4 sm:$0xff]  }
  0x14   : > { %v17595_v16 = vld [vmem:[%s19313_s19 + $0x64] ss:$8 sps:$4 sm:$0xff]   ;;  %v19360_v19 = vld [vmem:[%s19313_s19 + $0x160] ss:$8 sps:$4 sm:$0xff]   ;;  %v17601_v21 = vld [vmem:[%s19313_s19 + $0x54] ss:$8 sps:$4 sm:$0xff]  }
  0x15   : > { %473 = vmatpush1.bf16.msra.mxu0 %v19330_v8  ;;  %v17599_v22 = vld [vmem:[%s19313_s19 + $0x50] ss:$8 sps:$4 sm:$0xff]   ;;  %v19374_v24 = vld [vmem:[%s19313_s19 + $0x144] ss:$8 sps:$4 sm:$0xff]   ;;  %v17605_v26 = vld [vmem:[%s19313_s19 + $0x40] ss:$8 sps:$4 sm:$0xff]  }
  0x16   : > { %528 = vmatpush1.bf16.msra.mxu1 %v17583_v9  ;;  %474 = vmatprep.subr.bf16.mxu0 %v19335_v10  ;;  %v19370_v23 = vld [vmem:[%s19313_s19 + $0x150] ss:$8 sps:$4 sm:$0xff]   ;;  %v17607_v25 = vld [vmem:[%s19313_s19 + $0x44] ss:$8 sps:$4 sm:$0xff]   ;;  %v19381_v27 = vld [vmem:[%s19313_s19 + $0x140] ss:$8 sps:$4 sm:$0xff]  }
  0x17   : > { %754 = vmatprep.subr.bf16.mxu1 %v17588_v12  ;;  %v19384_v28 = vld [vmem:[%s19313_s19 + $0x134] ss:$8 sps:$4 sm:$0xff]   ;;  %v17611_v30 = vld [vmem:[%s19313_s19 + $0x30] ss:$8 sps:$4 sm:$0xff]   ;;  %v19394_v32 = vld [vmem:[%s19313_s19 + $0x124] ss:$8 sps:$4 sm:$0xff]  }
  0x18   : > { %v17613_v29 = vld [vmem:[%s19313_s19 + $0x34] ss:$8 sps:$4 sm:$0xff]   ;;  %v19390_v31 = vld [vmem:[%s19313_s19 + $0x130] ss:$8 sps:$4 sm:$0xff]   ;;  %v17619_v33 = vld [vmem:[%s19313_s19 + $0x24] ss:$8 sps:$4 sm:$0xff]  }
  0x19   : > { %14319 = vmatmul.mubr.msk.bf16.vlgmr.msra.gmra.mxu1 %vm466_vm0, %v17590_v13  ;;  %475 = vmatpush1.bf16.msra.mxu0 %v19344_v14  ;;  %v17617_v34 = vld [vmem:[%s19313_s19 + $0x20] ss:$8 sps:$4 sm:$0xff]   ;;  %v19404_v36 = vld [vmem:[%s19313_s19 + $0x214] ss:$8 sps:$4 sm:$0xff]   ;;  %v17623_v38 = vld [vmem:[%s19313_s19 + $0x10] ss:$8 sps:$4 sm:$0xff]  }
  0x1a   : > { %755 = vmatpush1.bf16.msra.mxu1 %v17586_v11  ;;  %476 = vmatprep.subr.bf16.mxu0 %v19348_v15  ;;  %v19401_v35 = vld [vmem:[%s19313_s19 + $0x120] ss:$8 sps:$4 sm:$0xff]   ;;  %v17625_v37 = vld [vmem:[%s19313_s19 + $0x14] ss:$8 sps:$4 sm:$0xff]   ;;  %v19410_v39 = vld [vmem:[%s19313_s19 + $0x210] ss:$8 sps:$4 sm:$0xff]  }
  0x1b   : > { %756 = vmatprep.subr.bf16.mxu1 %v17595_v16  ;;  %786 = vmatprep.mubr.bf16.mxu1 %v19354_v17  ;;  %v19414_v40 = vld [vmem:[%s19313_s19 + $0x204] ss:$8 sps:$4 sm:$0xff]   ;;  %v17629_v42 = vld [vmem:[%s19313_s19] ss:$8 sps:$4 sm:$0xff]   ;;  %v19424_v44 = vld [vmem:[%s19313_s19 + $0x1f4] ss:$8 sps:$4 sm:$0xff]  }
  0x1c   : > { %v17631_v41 = vld [vmem:[%s19313_s19 + $0x4] ss:$8 sps:$4 sm:$0xff]   ;;  %v19421_v43 = vld [vmem:[%s19313_s19 + $0x200] ss:$8 sps:$4 sm:$0xff]   ;;  %v17637_v45 = vld [vmem:[%s19313_s19 + $0xf4] ss:$8 sps:$4 sm:$0xff]  }
  0x1d   : > { %477 = vmatpush1.bf16.msra.mxu0 %v19360_v19  ;;  %v17635_v46 = vld [vmem:[%s19313_s19 + $0xf0] ss:$8 sps:$4 sm:$0xff]   ;;  %v19434_v48 = vld [vmem:[%s19313_s19 + $0x1e4] ss:$8 sps:$4 sm:$0xff]   ;;  %v17641_v50 = vld [vmem:[%s19313_s19 + $0xe0] ss:$8 sps:$4 sm:$0xff]  }
  0x1e   : > { %757 = vmatpush1.bf16.msra.mxu1 %v17593_v18  ;;  %478 = vmatprep.subr.bf16.mxu0 %v19363_v20  ;;  %v19430_v47 = vld [vmem:[%s19313_s19 + $0x1f0] ss:$8 sps:$4 sm:$0xff]   ;;  %v17643_v49 = vld [vmem:[%s19313_s19 + $0xe4] ss:$8 sps:$4 sm:$0xff]   ;;  %v19440_v51 = vld [vmem:[%s19313_s19 + $0x1e0] ss:$8 sps:$4 sm:$0xff]  }
  0x1f   : > { %758 = vmatprep.subr.bf16.mxu1 %v17601_v21  ;;  %v19444_v52 = vld [vmem:[%s19313_s19 + $0x1d4] ss:$8 sps:$4 sm:$0xff]   ;;  %v17647_v54 = vld [vmem:[%s19313_s19 + $0xd0] ss:$8 sps:$4 sm:$0xff]   ;;  %v19454_v56 = vld [vmem:[%s19313_s19 + $0x1c4] ss:$8 sps:$4 sm:$0xff]  }
  0x20   : > { %v17649_v53 = vld [vmem:[%s19313_s19 + $0xd4] ss:$8 sps:$4 sm:$0xff]   ;;  %v19450_v55 = vld [vmem:[%s19313_s19 + $0x1d0] ss:$8 sps:$4 sm:$0xff]   ;;  %v17655_v57 = vld [vmem:[%s19313_s19 + $0xc4] ss:$8 sps:$4 sm:$0xff]  }
  0x21   : > { %479 = vmatpush1.bf16.msra.mxu0 %v19370_v23  ;;  %v17653_v58 = vld [vmem:[%s19313_s19 + $0xc0] ss:$8 sps:$4 sm:$0xff]   ;;  %v19464_v60 = vld [vmem:[%s19313_s19 + $0x1b4] ss:$8 sps:$4 sm:$0xff]   ;;  %v17659_v62 = vld [vmem:[%s19313_s19 + $0xb0] ss:$8 sps:$4 sm:$0xff]  }
  0x22   : > { %759 = vmatpush1.bf16.msra.mxu1 %v17599_v22  ;;  %480 = vmatprep.subr.bf16.mxu0 %v19374_v24  ;;  %v19460_v59 = vld [vmem:[%s19313_s19 + $0x1c0] ss:$8 sps:$4 sm:$0xff]   ;;  %v17661_v61 = vld [vmem:[%s19313_s19 + $0xb4] ss:$8 sps:$4 sm:$0xff]   ;;  %v19470_v63 = vld [vmem:[%s19313_s19 + $0x1b0] ss:$8 sps:$4 sm:$0xff]  }
  0x23   : > { %760 = vmatprep.subr.bf16.mxu1 %v17607_v25  ;;  %v19474_v3 = vld [vmem:[%s19313_s19 + $0x1a4] ss:$8 sps:$4 sm:$0xff]   ;;  %v17665_v7 = vld [vmem:[%s19313_s19 + $0xa0] ss:$8 sps:$4 sm:$0xff]   ;;  %v17674_v11 = vld [vmem:[%s19313_s19 + $0x94] ss:$8 sps:$4 sm:$0xff]  }
  0x24   : > { %v17667_v5 = vld [vmem:[%s19313_s19 + $0xa4] ss:$8 sps:$4 sm:$0xff]   ;;  %v19480_v9 = vld [vmem:[%s19313_s19 + $0x1a0] ss:$8 sps:$4 sm:$0xff]   ;;  %v19486_v12 = vld [vmem:[%s19313_s19 + $0x2b4] ss:$8 sps:$4 sm:$0xff]  }
  0x25   : > { %481 = vmatpush1.bf16.msra.mxu0 %v19381_v27  ;;  %v19491_v13 = vld [vmem:[%s22359_s1 + $0x18] ss:$12 sps:$4 sm:$0xff]   ;;  %v17678_v25 = vld [vmem:[%s19313_s19 + $0x80] ss:$8 sps:$4 sm:$0xff]  }
  0x26   : > { %761 = vmatpush1.bf16.msra.mxu1 %v17605_v26  ;;  %482 = vmatprep.subr.bf16.mxu0 %v19384_v28  ;;  %v17672_v16 = vld [vmem:[%s19313_s19 + $0x90] ss:$8 sps:$4 sm:$0xff]   ;;  %v17680_v21 = vld [vmem:[%s19313_s19 + $0x84] ss:$8 sps:$4 sm:$0xff]   ;;  %v19506_v26 = vld [vmem:[%s19313_s19 + $0x2a0] ss:$8 sps:$4 sm:$0xff]  }
  0x27   : > { %762 = vmatprep.subr.bf16.mxu1 %v17613_v29  ;;  %v19495_v18 = vld [vmem:[%s19313_s19 + $0x2b0] ss:$8 sps:$4 sm:$0xff]   ;;  %v19501_v22 = vld [vmem:[%s19313_s19 + $0x2a4] ss:$8 sps:$4 sm:$0xff]   ;;  %v17689_v29 = vld [vmem:[%s19313_s19 + $0x114] ss:$8 sps:$4 sm:$0xff]  }
  0x29   : > { %483 = vmatpush1.bf16.msra.mxu0 %v19390_v31 }
  0x2a   : > { %763 = vmatpush1.bf16.msra.mxu1 %v17611_v30  ;;  %484 = vmatprep.subr.bf16.mxu0 %v19394_v32  ;;  %v19512_v30 = vld [vmem:[%s19313_s19 + $0x294] ss:$8 sps:$4 sm:$0xff]  }
  0x2b   : > { %764 = vmatprep.subr.bf16.mxu1 %v17619_v33  ;;  %v19517_v33 = vld [vmem:[%s22359_s1] ss:$12 sps:$4 sm:$0xff]  }
  0x2d   : > { %485 = vmatpush1.bf16.msra.mxu0 %v19401_v35 }
  0x2e   : > { %765 = vmatpush1.bf16.msra.mxu1 %v17617_v34  ;;  %486 = vmatprep.subr.bf16.mxu0 %v19404_v36  ;;  %v17687_v34 = vld [vmem:[%s19313_s19 + $0x110] ss:$8 sps:$4 sm:$0xff]  }
  0x2f   : > { %766 = vmatprep.subr.bf16.mxu1 %v17625_v37  ;;  %v17690_v37 = vld [vmem:[%s19313_s19 + $0x290] ss:$8 sps:$4 sm:$0xff]  }
  0x31   : > { %487 = vmatpush2.bf16.msra.mxu0 %v19410_v39 }
  0x32   : > { %767 = vmatpush1.bf16.msra.mxu1 %v17623_v38  ;;  %488 = vmatprep.subr.bf16.mxu0 %v19414_v40  ;;  %v19525_v38 = vld [vmem:[%s22359_s1 + $0x34] ss:$12 sps:$4 sm:$0xff]  }
  0x33   : > { %768 = vmatprep.subr.bf16.mxu1 %v17631_v41  ;;  %v17695_v41 = vld [vmem:[%s19313_s19 + $0x104] ss:$8 sps:$4 sm:$0xff]  }
  0x35   : > { %489 = vmatpush2.bf16.msra.mxu0 %v19421_v43 }
  0x36   : > { %769 = vmatpush1.bf16.msra.mxu1 %v17629_v42  ;;  %490 = vmatprep.subr.bf16.mxu0 %v19424_v44  ;;  %v17698_v42 = vld [vmem:[%s19313_s19 + $0x284] ss:$8 sps:$4 sm:$0xff]  }
  0x37   : > { %770 = vmatprep.subr.bf16.mxu1 %v17637_v45  ;;  %v17693_v45 = vld [vmem:[%s19313_s19 + $0x100] ss:$8 sps:$4 sm:$0xff]  }
  0x39   : > { %491 = vmatpush2.bf16.msra.mxu0 %v19430_v47 }
  0x3a   : > { %771 = vmatpush2.bf16.msra.mxu1 %v17635_v46  ;;  %492 = vmatprep.subr.bf16.mxu0 %v19434_v48  ;;  %v17696_v46 = vld [vmem:[%s19313_s19 + $0x280] ss:$8 sps:$4 sm:$0xff]  }
  0x3b   : > { %772 = vmatprep.subr.bf16.mxu1 %v17643_v49  ;;  %v17702_v49 = vld [vmem:[%s19313_s19 + $0x274] ss:$8 sps:$4 sm:$0xff]  }
  0x3d   : > { %493 = vmatpush2.bf16.msra.mxu0 %v19440_v51 }
  0x3e   : > { %773 = vmatpush2.bf16.msra.mxu1 %v17641_v50  ;;  %494 = vmatprep.subr.bf16.mxu0 %v19444_v52  ;;  %v19536_v50 = vld [vmem:[%s19313_s19 + $0x354] ss:$8 sps:$4 sm:$0xff]  }
  0x3f   : > { %774 = vmatprep.subr.bf16.mxu1 %v17649_v53  ;;  %v19542_v53 = vld [vmem:[%s22359_s1 + $0x8] ss:$12 sps:$4 sm:$0xff]  }
  0x41   : > { %495 = vmatpush2.bf16.msra.mxu0 %v19450_v55 }
  0x42   : > { %775 = vmatpush2.bf16.msra.mxu1 %v17647_v54  ;;  %496 = vmatprep.subr.bf16.mxu0 %v19454_v56  ;;  %v17700_v54 = vld [vmem:[%s19313_s19 + $0x270] ss:$8 sps:$4 sm:$0xff]  }
  0x43   : > { %776 = vmatprep.subr.bf16.mxu1 %v17655_v57  ;;  %v19546_v57 = vld [vmem:[%s19313_s19 + $0x350] ss:$8 sps:$4 sm:$0xff]  }
  0x45   : > { %497 = vmatpush2.bf16.msra.mxu0 %v19460_v59 }
  0x46   : > { %777 = vmatpush2.bf16.msra.mxu1 %v17653_v58  ;;  %498 = vmatprep.subr.bf16.mxu0 %v19464_v60  ;;  %v17708_v58 = vld [vmem:[%s19313_s19 + $0x264] ss:$8 sps:$4 sm:$0xff]  }
  0x47   : > { %778 = vmatprep.subr.bf16.mxu1 %v17661_v61  ;;  %v19551_v61 = vld [vmem:[%s19313_s19 + $0x344] ss:$8 sps:$4 sm:$0xff]  }
  0x49   : > { %499 = vmatpush2.bf16.msra.mxu0 %v19470_v63 }
  0x4a   : > { %779 = vmatpush2.bf16.msra.mxu1 %v17659_v62  ;;  %500 = vmatprep.subr.bf16.mxu0 %v19474_v3  ;;  %v17706_v62 = vld [vmem:[%s19313_s19 + $0x260] ss:$8 sps:$4 sm:$0xff]  }
  0x4b   : > { %780 = vmatprep.subr.bf16.mxu1 %v17667_v5  ;;  %v19558_v5 = vld [vmem:[%s19313_s19 + $0x340] ss:$8 sps:$4 sm:$0xff]  }
  0x4d   : > { %501 = vmatpush2.bf16.msra.mxu0 %v19480_v9 }
  0x4e   : > { %781 = vmatpush2.bf16.msra.mxu1 %v17665_v7  ;;  %1075 = vmatprep.subr.bf16.mxu0 %v19486_v12  ;;  %v17714_v7 = vld [vmem:[%s19313_s19 + $0x254] ss:$8 sps:$4 sm:$0xff]  }
  0x4f   : > { %782 = vmatprep.subr.bf16.mxu1 %v17674_v11  ;;  %v17715_v11 = vld [vmem:[%s22359_s1 + $0x38] ss:$12 sps:$4 sm:$0xff]  }
  0x50   : > { %503 = vmatmul.mubr.bf16.vlgmr.msra.gmra.mxu0 %v19491_v13 }
  0x51   : > { %1076 = vmatpush1.bf16.msra.mxu0 %v19495_v18  ;;  %1107 = vmatprep.mubr.bf16.mxu0 %v19525_v38 }
  0x52   : > { %783 = vmatpush2.bf16.msra.mxu1 %v17672_v16  ;;  %1077 = vmatprep.subr.bf16.mxu0 %v19501_v22  ;;  %v186_v16 = vld [vmem:[%s22360_s2] sm:$0xff] }
  0x53   : > { %784 = vmatprep.subr.bf16.mxu1 %v17680_v21  ;;  %v17712_v21 = vld [vmem:[%s19313_s19 + $0x250] ss:$8 sps:$4 sm:$0xff]   ;;  %190 = vperm.xlu0 %17571, %v186_v16   ;;  %v17736_v16 = vld [vmem:[%s19313_s19 + $0x2e4] ss:$8 sps:$4 sm:$0xff]  }
  0x55   : > { %1078 = vmatpush1.bf16.msra.mxu0 %v19506_v26 }
  0x56   : > { %785 = vmatpush2.bf16.msra.mxu1 %v17678_v25  ;;  %1079 = vmatprep.subr.bf16.mxu0 %v19512_v30  ;;  %v17718_v25 = vld [vmem:[%s19313_s19 + $0x244] ss:$8 sps:$4 sm:$0xff]  }
  0x57   : > { %809 = vmatprep.subr.bf16.mxu1 %v17689_v29  ;;  %v187_v29 = vld [vmem:[%s22360_s2 + $0x8] sm:$0xff] }
  0x58   : > { %195 = vperm.xlu0 %17571, %v187_v29   ;;  %v17806_v29 = vld [vmem:[%s19313_s19 + $0x2b0] ss:$8 sps:$4 sm:$0xff]  }
  0x59   : > { %787 = vmatmul.mubr.bf16.vlgmr.msra.gmra.mxu1 %v19517_v33  ;;  %1080 = vmatpush1.bf16.msra.mxu0 %v17690_v37 }
  0x5a   : > { %810 = vmatpush1.bf16.msra.mxu1 %v17687_v34  ;;  %1081 = vmatprep.subr.bf16.mxu0 %v17698_v42  ;;  %v17716_v34 = vld [vmem:[%s19313_s19 + $0x240] ss:$8 sps:$4 sm:$0xff]  }
  0x5b   : > { %811 = vmatprep.subr.bf16.mxu1 %v17695_v41  ;;  %829 = vmatprep.mubr.bf16.mxu1 %v19270_v0  ;;  %v17719_v41 = vld [vmem:[%s19313_s19 + $0x330] ss:$8 sps:$4 sm:$0xff]  }
  0x5d   : > { %1082 = vmatpush1.bf16.msra.mxu0 %v17696_v46 }
  0x5e   : > { %812 = vmatpush1.bf16.msra.mxu1 %v17693_v45  ;;  %1083 = vmatprep.subr.bf16.mxu0 %v17702_v49  ;;  %v17724_v45 = vld [vmem:[%s19313_s19 + $0x324] ss:$8 sps:$4 sm:$0xff]  }
  0x5f   : > { %1130 = vmatprep.subr.bf16.mxu1 %v19536_v50 }
  0x61   : > { %14359 = vmatmul.mubr.msk.bf16.vlgmr.msra.gmra.mxu1 %vm466_vm0, %v19542_v53  ;;  %1084 = vmatpush1.bf16.msra.mxu0 %v17700_v54 }
  0x62   : > { %1131 = vmatpush1.bf16.msra.mxu1 %v19546_v57  ;;  %1085 = vmatprep.subr.bf16.mxu0 %v17708_v58 }
  0x63   : > { %1132 = vmatprep.subr.bf16.mxu1 %v19551_v61  ;;  %1150 = vmatprep.mubr.bf16.mxu1 %v19270_v0 }
  0x65   : > { %1086 = vmatpush1.bf16.msra.mxu0 %v17706_v62 }
  0x66   : > { %1133 = vmatpush1.bf16.msra.mxu1 %v19558_v5  ;;  %1087 = vmatprep.subr.bf16.mxu0 %v17714_v7 }
  0x67   : > { %1434 = vmatprep.subr.bf16.mxu1 %v19486_v12  ;;  %v17721_v12 = vld [vmem:[%s19313_s19 + $0x334] ss:$8 sps:$4 sm:$0xff]  }
  0x69   : > { %14435 = vmatmul.mubr.msk.bf16.vlgmr.msra.gmra.mxu1 %vm466_vm0, %v17715_v11  ;;  %1088 = vmatpush1.bf16.msra.mxu0 %v17712_v21  ;;  %v17733_v11 = vld [vmem:[%s19313_s19 + $0x2f4] ss:$8 sps:$4 sm:$0xff]  }
  0x6a   : > { %1435 = vmatpush1.bf16.msra.mxu1 %v19495_v18  ;;  %1089 = vmatprep.subr.bf16.mxu0 %v17718_v25  ;;  %v17722_v18 = vld [vmem:[%s19313_s19 + $0x320] ss:$8 sps:$4 sm:$0xff]  }
  0x6b   : > { %1436 = vmatprep.subr.bf16.mxu1 %v19501_v22  ;;  %1466 = vmatprep.mubr.bf16.mxu1 %v19306_v1  ;;  %v17727_v22 = vld [vmem:[%s19313_s19 + $0x314] ss:$8 sps:$4 sm:$0xff]   ;;  %v17725_v1 = vld [vmem:[%s19313_s19 + $0x310] ss:$8 sps:$4 sm:$0xff]  }
  0x6d   : > { %1090 = vmatpush1.bf16.msra.mxu0 %v17716_v34 }
  0x6e   : > { %1437 = vmatpush1.bf16.msra.mxu1 %v19506_v26  ;;  %1091 = vmatprep.subr.bf16.mxu0 %v17721_v12  ;;  %v17730_v26 = vld [vmem:[%s19313_s19 + $0x304] ss:$8 sps:$4 sm:$0xff]  }
  0x6f   : > { %1438 = vmatprep.subr.bf16.mxu1 %v19512_v30  ;;  %v17728_v30 = vld [vmem:[%s19313_s19 + $0x300] ss:$8 sps:$4 sm:$0xff]  }
  0x71   : > { %1092 = vmatpush2.bf16.msra.mxu0 %v17719_v41 }
  0x72   : > { %1439 = vmatpush1.bf16.msra.mxu1 %v17690_v37  ;;  %1093 = vmatprep.subr.bf16.mxu0 %v17724_v45  ;;  %v17731_v37 = vld [vmem:[%s19313_s19 + $0x2f0] ss:$8 sps:$4 sm:$0xff]  }
  0x73   : > { %1440 = vmatprep.subr.bf16.mxu1 %v17698_v42  ;;  %v17734_v42 = vld [vmem:[%s19313_s19 + $0x2e0] ss:$8 sps:$4 sm:$0xff]  }
  0x75   : > { %1094 = vmatpush2.bf16.msra.mxu0 %v17722_v18 }
  0x76   : > { %1441 = vmatpush1.bf16.msra.mxu1 %v17696_v46  ;;  %1095 = vmatprep.subr.bf16.mxu0 %v17727_v22  ;;  %v17739_v46 = vld [vmem:[%s19313_s19 + $0x2d4] ss:$8 sps:$4 sm:$0xff]  }
  0x77   : > { %1442 = vmatprep.subr.bf16.mxu1 %v17702_v49  ;;  %v17737_v49 = vld [vmem:[%s19313_s19 + $0x2d0] ss:$8 sps:$4 sm:$0xff]  }
  0x79   : > { %1096 = vmatpush2.bf16.msra.mxu0 %v17725_v1 }
  0x7a   : > { %1443 = vmatpush1.bf16.msra.mxu1 %v17700_v54  ;;  %1097 = vmatprep.subr.bf16.mxu0 %v17730_v26  ;;  %v17742_v54 = vld [vmem:[%s19313_s19 + $0x2c4] ss:$8 sps:$4 sm:$0xff]  }
  0x7b   : > { %1444 = vmatprep.subr.bf16.mxu1 %v17708_v58  ;;  %v17740_v58 = vld [vmem:[%s19313_s19 + $0x2c0] ss:$8 sps:$4 sm:$0xff]  }
  0x7d   : > { %1098 = vmatpush2.bf16.msra.mxu0 %v17728_v30 }
  0x7e   : > { %1445 = vmatpush1.bf16.msra.mxu1 %v17706_v62  ;;  %1099 = vmatprep.subr.bf16.mxu0 %v17733_v11  ;;  %v19602_v62 = vld [vmem:[%s22359_s1 + $0x30] ss:$12 sps:$4 sm:$0xff]  }
  0x7f   : > { %1446 = vmatprep.subr.bf16.mxu1 %v17714_v7  ;;  %v17803_v7 = vld [vmem:[%s19313_s19 + $0x460] ss:$8 sps:$4 sm:$0xff]  }
  0x81   : > { %1100 = vmatpush2.bf16.msra.mxu0 %v17731_v37 }
  0x82   : > { %1447 = vmatpush1.bf16.msra.mxu1 %v17712_v21  ;;  %1101 = vmatprep.subr.bf16.mxu0 %v17736_v16  ;;  %v19704_v21 = vld [vmem:[%s22359_s1 + $0x38] ss:$12 sps:$4 sm:$0xff]  }
  0x83   : > { %1448 = vmatprep.subr.bf16.mxu1 %v17718_v25  ;;  %v17808_v25 = vld [vmem:[%s19313_s19 + $0x2b4] ss:$8 sps:$4 sm:$0xff]  }
  0x85   : > { %1102 = vmatpush2.bf16.msra.mxu0 %v17734_v42 }
  0x86   : > { %1449 = vmatpush1.bf16.msra.mxu1 %v17716_v34  ;;  %1103 = vmatprep.subr.bf16.mxu0 %v17739_v46  ;;  %v17811_v34 = vld [vmem:[%s19313_s19 + $0x2a4] ss:$8 sps:$4 sm:$0xff]  }
  0x87   : > { %1450 = vmatprep.subr.bf16.mxu1 %v17721_v12  ;;  %v17809_v12 = vld [vmem:[%s19313_s19 + $0x2a0] ss:$8 sps:$4 sm:$0xff]  }
  0x89   : > { %1104 = vmatpush2.bf16.msra.mxu0 %v17737_v49 }
  0x8a   : > { %1451 = vmatpush2.bf16.msra.mxu1 %v17719_v41  ;;  %1105 = vmatprep.subr.bf16.mxu0 %v17742_v54  ;;  %v17814_v41 = vld [vmem:[%s19313_s19 + $0x294] ss:$8 sps:$4 sm:$0xff]  }
  0x8b   : > { %1452 = vmatprep.subr.bf16.mxu1 %v17724_v45  ;;  %v17817_v45 = vld [vmem:[%s19313_s19 + $0x354] ss:$8 sps:$4 sm:$0xff]  }
  0x8d   : > { %1106 = vmatpush2.bf16.msra.mxu0 %v17740_v58 }
  0x8e   : > { %1453 = vmatpush2.bf16.msra.mxu1 %v17722_v18  ;;  %1700 = vmatprep.subr.bf16.mxu0 %v19316_v2  ;;  %v17748_v2 = vld [vmem:[%s19313_s19 + $0x234] ss:$8 sps:$4 sm:$0xff]   ;;  %v17812_v18 = vld [vmem:[%s19313_s19 + $0x290] ss:$8 sps:$4 sm:$0xff]  }
  0x8f   : > { %1454 = vmatprep.subr.bf16.mxu1 %v17727_v22  ;;  %v17815_v22 = vld [vmem:[%s19313_s19 + $0x350] ss:$8 sps:$4 sm:$0xff]  }
  0x90   : > { %1108 = vmatmul.mubr.bf16.vlgmr.msra.gmra.mxu0 %v19602_v62 }
  0x91   : > { %1701 = vmatpush1.bf16.msra.mxu0 %v19321_v4  ;;  %1732 = vmatprep.mubr.bf16.mxu0 %v19354_v17  ;;  %v17746_v4 = vld [vmem:[%s19313_s19 + $0x230] ss:$8 sps:$4 sm:$0xff]   ;;  %v17757_v17 = vld [vmem:[%s19313_s19 + $0x3c4] ss:$8 sps:$4 sm:$0xff]  }
  0x92   : > { %1455 = vmatpush2.bf16.msra.mxu1 %v17725_v1  ;;  %1702 = vmatprep.subr.bf16.mxu0 %v19325_v6  ;;  %v17751_v6 = vld [vmem:[%s19313_s19 + $0x224] ss:$8 sps:$4 sm:$0xff]  }
  0x93   : > { %1456 = vmatprep.subr.bf16.mxu1 %v17730_v26  ;;  %v19722_v1 = vld [vmem:[%s22359_s1 + $0x4] ss:$12 sps:$4 sm:$0xff]  }
  0x94   : > { %v17820_v26 = vld [vmem:[%s19313_s19 + $0x284] ss:$8 sps:$4 sm:$0xff]  }
  0x95   : > { %1703 = vmatpush1.bf16.msra.mxu0 %v19330_v8  ;;  %v19635_v8 = vld [vmem:[%s22359_s1 + $0x20] ss:$12 sps:$4 sm:$0xff]  }
  0x96   : > { %1457 = vmatpush2.bf16.msra.mxu1 %v17728_v30  ;;  %1704 = vmatprep.subr.bf16.mxu0 %v19335_v10  ;;  %v17749_v10 = vld [vmem:[%s19313_s19 + $0x220] ss:$8 sps:$4 sm:$0xff]   ;;  %v17823_v30 = vld [vmem:[%s19313_s19 + $0x344] ss:$8 sps:$4 sm:$0xff]  }
  0x97   : > { %1458 = vmatprep.subr.bf16.mxu1 %v17733_v11  ;;  %v17818_v11 = vld [vmem:[%s19313_s19 + $0x280] ss:$8 sps:$4 sm:$0xff]  }
  0x99   : > { %1705 = vmatpush1.bf16.msra.mxu0 %v19344_v14  ;;  %v17754_v14 = vld [vmem:[%s19313_s19 + $0x3d4] ss:$8 sps:$4 sm:$0xff]  }
  0x9a   : > { %1459 = vmatpush2.bf16.msra.mxu1 %v17731_v37  ;;  %1706 = vmatprep.subr.bf16.mxu0 %v19348_v15  ;;  %v17752_v15 = vld [vmem:[%s19313_s19 + $0x3d0] ss:$8 sps:$4 sm:$0xff]   ;;  %v17821_v37 = vld [vmem:[%s19313_s19 + $0x340] ss:$8 sps:$4 sm:$0xff]  }
  0x9b   : > { %1460 = vmatprep.subr.bf16.mxu1 %v17736_v16  ;;  %v19214_v16 = vld [vmem:[%s22359_s1 + $0x18] ss:$12 sps:$4 sm:$0xff]  }
  0x9d   : > { %1707 = vmatpush1.bf16.msra.mxu0 %v19360_v19  ;;  %v17755_v19 = vld [vmem:[%s19313_s19 + $0x3c0] ss:$8 sps:$4 sm:$0xff]  }
  0x9e   : > { %1461 = vmatpush2.bf16.msra.mxu1 %v17734_v42  ;;  %1708 = vmatprep.subr.bf16.mxu0 %v19363_v20  ;;  %v17760_v20 = vld [vmem:[%s19313_s19 + $0x3b4] ss:$8 sps:$4 sm:$0xff]  }
  0x9f   : > { %1462 = vmatprep.subr.bf16.mxu1 %v17739_v46  ;;  %v17826_v42 = vld [vmem:[%s19313_s19 + $0x274] ss:$8 sps:$4 sm:$0xff]  }
  0xa0   : > { %v19734_v46 = vld [vmem:[%s19313_s19 + $0x4f4] ss:$8 sps:$4 sm:$0xff]  }
  0xa1   : > { %1709 = vmatpush1.bf16.msra.mxu0 %v19370_v23  ;;  %v17758_v23 = vld [vmem:[%s19313_s19 + $0x3b0] ss:$8 sps:$4 sm:$0xff]  }
  0xa2   : > { %1463 = vmatpush2.bf16.msra.mxu1 %v17737_v49  ;;  %1710 = vmatprep.subr.bf16.mxu0 %v19374_v24  ;;  %v17763_v24 = vld [vmem:[%s19313_s19 + $0x3a4] ss:$8 sps:$4 sm:$0xff]   ;;  %v17824_v49 = vld [vmem:[%s19313_s19 + $0x270] ss:$8 sps:$4 sm:$0xff]  }
  0xa3   : > { %1464 = vmatprep.subr.bf16.mxu1 %v17742_v54  ;;  %v19739_v54 = vld [vmem:[%s19313_s19 + $0x4f0] ss:$8 sps:$4 sm:$0xff]  }
  0xa5   : > { %1711 = vmatpush1.bf16.msra.mxu0 %v19381_v27  ;;  %v17761_v27 = vld [vmem:[%s19313_s19 + $0x3a0] ss:$8 sps:$4 sm:$0xff]  }
  0xa6   : > { %1465 = vmatpush2.bf16.msra.mxu1 %v17740_v58  ;;  %1712 = vmatprep.subr.bf16.mxu0 %v19384_v28  ;;  %v17766_v28 = vld [vmem:[%s19313_s19 + $0x394] ss:$8 sps:$4 sm:$0xff]   ;;  %v17832_v58 = vld [vmem:[%s19313_s19 + $0x264] ss:$8 sps:$4 sm:$0xff]  }
  0xa7   : > { %1489 = vmatprep.subr.bf16.mxu1 %v19536_v50  ;;  %v17799_v50 = vld [vmem:[%s19313_s19 + $0x3e4] ss:$8 sps:$4 sm:$0xff]  }
  0xa9   : > { %1467 = vmatmul.mubr.bf16.vlgmr.msra.gmra.mxu1 %v19491_v13  ;;  %1713 = vmatpush1.bf16.msra.mxu0 %v19390_v31  ;;  %v17764_v31 = vld [vmem:[%s19313_s19 + $0x390] ss:$8 sps:$4 sm:$0xff]   ;;  %v17791_v13 = vld [vmem:[%s19313_s19 + $0x400] ss:$8 sps:$4 sm:$0xff]  }
  0xaa   : > { %1490 = vmatpush1.bf16.msra.mxu1 %v19546_v57  ;;  %1714 = vmatprep.subr.bf16.mxu0 %v19394_v32  ;;  %v17769_v32 = vld [vmem:[%s19313_s19 + $0x384] ss:$8 sps:$4 sm:$0xff]   ;;  %v17802_v57 = vld [vmem:[%s19313_s19 + $0x474] ss:$8 sps:$4 sm:$0xff]  }
  0xab   : > { %1491 = vmatprep.subr.bf16.mxu1 %v19551_v61  ;;  %1509 = vmatprep.mubr.bf16.mxu1 %v19270_v0  ;;  %v17800_v61 = vld [vmem:[%s19313_s19 + $0x470] ss:$8 sps:$4 sm:$0xff]  }
  0xad   : > { %1715 = vmatpush1.bf16.msra.mxu0 %v19401_v35  ;;  %v17767_v35 = vld [vmem:[%s19313_s19 + $0x380] ss:$8 sps:$4 sm:$0xff]  }
  0xae   : > { %1492 = vmatpush1.bf16.msra.mxu1 %v19558_v5  ;;  %1716 = vmatprep.subr.bf16.mxu0 %v19404_v36  ;;  %v17772_v36 = vld [vmem:[%s19313_s19 + $0x374] ss:$8 sps:$4 sm:$0xff]   ;;  %v17805_v5 = vld [vmem:[%s19313_s19 + $0x464] ss:$8 sps:$4 sm:$0xff]  }
  0xaf   : > { %1755 = vmatprep.subr.bf16.mxu1 %v17748_v2  ;;  %v19215_v2 = vld [vmem:[%s22359_s1 + $0x8] ss:$12 sps:$4 sm:$0xff]  }
  0xb1   : > { %14544 = vmatmul.mubr.msk.bf16.vlgmr.msra.gmra.mxu1 %vm466_vm0, %v19635_v8  ;;  %1717 = vmatpush2.bf16.msra.mxu0 %v19410_v39  ;;  %v17770_v39 = vld [vmem:[%s19313_s19 + $0x370] ss:$8 sps:$4 sm:$0xff]  }
  0xb2   : > { %1756 = vmatpush1.bf16.msra.mxu1 %v17746_v4  ;;  %1718 = vmatprep.subr.bf16.mxu0 %v19414_v40  ;;  %v17775_v40 = vld [vmem:[%s19313_s19 + $0x364] ss:$8 sps:$4 sm:$0xff]   ;;  %v17830_v4 = vld [vmem:[%s19313_s19 + $0x260] ss:$8 sps:$4 sm:$0xff]  }
  0xb3   : > { %1757 = vmatprep.subr.bf16.mxu1 %v17751_v6  ;;  %1775 = vmatprep.mubr.bf16.mxu1 %v19270_v0  ;;  %v19753_v6 = vld [vmem:[%s19313_s19 + $0x4e0] ss:$8 sps:$4 sm:$0xff]  }
  0xb5   : > { %1719 = vmatpush2.bf16.msra.mxu0 %v19421_v43  ;;  %v17773_v43 = vld [vmem:[%s19313_s19 + $0x360] ss:$8 sps:$4 sm:$0xff]  }
  0xb6   : > { %1758 = vmatpush1.bf16.msra.mxu1 %v17749_v10  ;;  %1720 = vmatprep.subr.bf16.mxu0 %v19424_v44  ;;  %v17778_v44 = vld [vmem:[%s19313_s19 + $0x454] ss:$8 sps:$4 sm:$0xff]  }
  0xb7   : > { %2003 = vmatprep.subr.bf16.mxu1 %v17754_v14  ;;  %v19758_v10 = vld [vmem:[%s19313_s19 + $0x4d4] ss:$8 sps:$4 sm:$0xff]  }
  0xb9   : > { %14581 = vmatmul.mubr.msk.bf16.vlgmr.msra.gmra.mxu1 %vm466_vm0, %v19542_v53  ;;  %1721 = vmatpush2.bf16.msra.mxu0 %v19430_v47  ;;  %v17776_v47 = vld [vmem:[%s19313_s19 + $0x450] ss:$8 sps:$4 sm:$0xff]   ;;  %v17797_v53 = vld [vmem:[%s19313_s19 + $0x3e0] ss:$8 sps:$4 sm:$0xff]  }
  0xba   : > { %2004 = vmatpush1.bf16.msra.mxu1 %v17752_v15  ;;  %1722 = vmatprep.subr.bf16.mxu0 %v19434_v48  ;;  %v19211_v48 = vld [vmem:[%s22359_s1 + $0x1c] ss:$12 sps:$4 sm:$0xff]  }
  0xbb   : > { %2005 = vmatprep.subr.bf16.mxu1 %v17757_v17  ;;  %2035 = vmatprep.mubr.bf16.mxu1 %v19525_v38  ;;  %v17794_v38 = vld [vmem:[%s19313_s19 + $0x3f0] ss:$8 sps:$4 sm:$0xff]  }
  0xbd   : > { %1723 = vmatpush2.bf16.msra.mxu0 %v19440_v51  ;;  %v17781_v51 = vld [vmem:[%s19313_s19 + $0x444] ss:$8 sps:$4 sm:$0xff]  }
  0xbe   : > { %2006 = vmatpush1.bf16.msra.mxu1 %v17755_v19  ;;  %1724 = vmatprep.subr.bf16.mxu0 %v19444_v52  ;;  %v17779_v52 = vld [vmem:[%s19313_s19 + $0x440] ss:$8 sps:$4 sm:$0xff]  }
  0xbf   : > { %2007 = vmatprep.subr.bf16.mxu1 %v17760_v20 }
  0xc1   : > { %1725 = vmatpush2.bf16.msra.mxu0 %v19450_v55  ;;  %v17784_v55 = vld [vmem:[%s19313_s19 + $0x434] ss:$8 sps:$4 sm:$0xff]  }
  0xc2   : > { %2008 = vmatpush1.bf16.msra.mxu1 %v17758_v23  ;;  %1726 = vmatprep.subr.bf16.mxu0 %v19454_v56  ;;  %v17782_v56 = vld [vmem:[%s19313_s19 + $0x430] ss:$8 sps:$4 sm:$0xff]  }
  0xc3   : > { %2009 = vmatprep.subr.bf16.mxu1 %v17763_v24 }
  0xc5   : > { %1727 = vmatpush2.bf16.msra.mxu0 %v19460_v59  ;;  %v17787_v59 = vld [vmem:[%s19313_s19 + $0x424] ss:$8 sps:$4 sm:$0xff]  }
  0xc6   : > { %2010 = vmatpush1.bf16.msra.mxu1 %v17761_v27  ;;  %1728 = vmatprep.subr.bf16.mxu0 %v19464_v60  ;;  %v17785_v60 = vld [vmem:[%s19313_s19 + $0x420] ss:$8 sps:$4 sm:$0xff]  }
  0xc7   : > { %2011 = vmatprep.subr.bf16.mxu1 %v17766_v28 }
  0xc9   : > { %1729 = vmatpush2.bf16.msra.mxu0 %v19470_v63  ;;  %v17790_v63 = vld [vmem:[%s19313_s19 + $0x414] ss:$8 sps:$4 sm:$0xff]  }
  0xca   : > { %2012 = vmatpush1.bf16.msra.mxu1 %v17764_v31  ;;  %1730 = vmatprep.subr.bf16.mxu0 %v19474_v3  ;;  %v17788_v3 = vld [vmem:[%s19313_s19 + $0x410] ss:$8 sps:$4 sm:$0xff]  }
  0xcb   : > { %2013 = vmatprep.subr.bf16.mxu1 %v17769_v32 }
  0xcd   : > { %1731 = vmatpush2.bf16.msra.mxu0 %v19480_v9  ;;  %v17793_v9 = vld [vmem:[%s19313_s19 + $0x404] ss:$8 sps:$4 sm:$0xff]  }
  0xce   : > { %2014 = vmatpush1.bf16.msra.mxu1 %v17767_v35  ;;  %2362 = vmatprep.subr.bf16.mxu0 %v17754_v14  ;;  %v17836_v14 = vld [vmem:[%s19313_s19 + $0x250] ss:$8 sps:$4 sm:$0xff]  }
  0xcf   : > { %2015 = vmatprep.subr.bf16.mxu1 %v17772_v36 }
  0xd0   : > { %1733 = vmatmul.mubr.bf16.vlgmr.msra.gmra.mxu0 %v19517_v33  ;;  %v17796_v33 = vld [vmem:[%s19313_s19 + $0x3f4] ss:$8 sps:$4 sm:$0xff]  }
  0xd1   : > { %2363 = vmatpush1.bf16.msra.mxu0 %v17752_v15  ;;  %2394 = vmatprep.mubr.bf16.mxu0 %v19211_v48  ;;  %v19762_v15 = vld [vmem:[%s19313_s19 + $0x4d0] ss:$8 sps:$4 sm:$0xff]   ;;  %v17862_v48 = vld [vmem:[%s19313_s19 + $0x314] ss:$8 sps:$4 sm:$0xff]  }
  0xd2   : > { %2016 = vmatpush1.bf16.msra.mxu1 %v17770_v39  ;;  %2364 = vmatprep.subr.bf16.mxu0 %v17757_v17  ;;  %v19216_v17 = vld [vmem:[%s22359_s1 + $0x34] ss:$12 sps:$4 sm:$0xff]  }
  0xd3   : > { %2017 = vmatprep.subr.bf16.mxu1 %v17775_v40 }
  0xd5   : > { %2365 = vmatpush1.bf16.msra.mxu0 %v17755_v19 }
  0xd6   : > { %2018 = vmatpush1.bf16.msra.mxu1 %v17773_v43  ;;  %2366 = vmatprep.subr.bf16.mxu0 %v17760_v20  ;;  %v17844_v20 = vld [vmem:[%s19313_s19 + $0x244] ss:$8 sps:$4 sm:$0xff]  }
  0xd7   : > { %2019 = vmatprep.subr.bf16.mxu1 %v17778_v44 }
  0xd9   : > { %2367 = vmatpush1.bf16.msra.mxu0 %v17758_v23  ;;  %v19768_v19 = vpop.f32.mrf.mxu1  ;;  %v19773_v23 = vld [vmem:[%s19313_s19 + $0x4c4] ss:$8 sps:$4 sm:$0xff]  }
  0xda   : > { %2020 = vmatpush2.bf16.msra.mxu1 %v17776_v47  ;;  %2368 = vmatprep.subr.bf16.mxu0 %v17763_v24  ;;  %v17842_v24 = vld [vmem:[%s19313_s19 + $0x240] ss:$8 sps:$4 sm:$0xff]  }
  0xdb   : > { %2021 = vmatprep.subr.bf16.mxu1 %v17781_v51 }
  0xdd   : > { %2369 = vmatpush1.bf16.msra.mxu0 %v17761_v27  ;;  %v19778_v27 = vld [vmem:[%s19313_s19 + $0x4c0] ss:$8 sps:$4 sm:$0xff]  }
  0xde   : > { %2022 = vmatpush2.bf16.msra.mxu1 %v17779_v52  ;;  %2370 = vmatprep.subr.bf16.mxu0 %v17766_v28  ;;  %v19780_v28 = vpop.f32.mrf.mxu1 }
  0xdf   : > { %2023 = vmatprep.subr.bf16.mxu1 %v17784_v55 }
  0xe1   : > { %2371 = vmatpush1.bf16.msra.mxu0 %v17764_v31  ;;  %v17850_v31 = vld [vmem:[%s19313_s19 + $0x334] ss:$8 sps:$4 sm:$0xff]  }
  0xe2   : > { %2024 = vmatpush2.bf16.msra.mxu1 %v17782_v56  ;;  %2372 = vmatprep.subr.bf16.mxu0 %v17769_v32  ;;  %v19785_v32 = vld [vmem:[%s19313_s19 + $0x4b4] ss:$8 sps:$4 sm:$0xff]  }
  0xe3   : > { %2025 = vmatprep.subr.bf16.mxu1 %v17787_v59 }
  0xe5   : > { %2373 = vmatpush1.bf16.msra.mxu0 %v17767_v35  ;;  %v17848_v35 = vld [vmem:[%s19313_s19 + $0x330] ss:$8 sps:$4 sm:$0xff]  }
  0xe6   : > { %2026 = vmatpush2.bf16.msra.mxu1 %v17785_v60  ;;  %2374 = vmatprep.subr.bf16.mxu0 %v17772_v36  ;;  %v19789_v36 = vld [vmem:[%s19313_s19 + $0x4b0] ss:$8 sps:$4 sm:$0xff]  }
  0xe7   : > { %2027 = vmatprep.subr.bf16.mxu1 %v17790_v63 }
  0xe9   : > { %2375 = vmatpush1.bf16.msra.mxu0 %v17770_v39  ;;  %v17856_v39 = vld [vmem:[%s19313_s19 + $0x324] ss:$8 sps:$4 sm:$0xff]  }
  0xea   : > { %2028 = vmatpush2.bf16.msra.mxu1 %v17788_v3  ;;  %2376 = vmatprep.subr.bf16.mxu0 %v17775_v40  ;;  %v19794_v40 = vld [vmem:[%s19313_s19 + $0x4a4] ss:$8 sps:$4 sm:$0xff]  }
  0xeb   : > { %2029 = vmatprep.subr.bf16.mxu1 %v17793_v9 }
  0xed   : > { %2377 = vmatpush1.bf16.msra.mxu0 %v17773_v43  ;;  %v19796_v43 = vpop.f32.mrf.mxu1 }
  0xee   : > { %2030 = vmatpush2.bf16.msra.mxu1 %v17791_v13  ;;  %2378 = vmatprep.subr.bf16.mxu0 %v17778_v44  ;;  %v17854_v44 = vld [vmem:[%s19313_s19 + $0x320] ss:$8 sps:$4 sm:$0xff]  }
  0xef   : > { %2031 = vmatprep.subr.bf16.mxu1 %v17796_v33 }
  0xf1   : > { %2379 = vmatpush2.bf16.msra.mxu0 %v17776_v47  ;;  %v19801_v47 = vld [vmem:[%s19313_s19 + $0x4a0] ss:$8 sps:$4 sm:$0xff]  }
  0xf2   : > { %2032 = vmatpush2.bf16.msra.mxu1 %v17794_v38  ;;  %2380 = vmatprep.subr.bf16.mxu0 %v17781_v51  ;;  %v19806_v51 = vld [vmem:[%s19313_s19 + $0x494] ss:$8 sps:$4 sm:$0xff]  }
  0xf3   : > { %2033 = vmatprep.subr.bf16.mxu1 %v17799_v50 }
  0xf5   : > { %2381 = vmatpush2.bf16.msra.mxu0 %v17779_v52  ;;  %v19808_v52 = vpop.f32.mrf.mxu1 }
  0xf6   : > { %2034 = vmatpush2.bf16.msra.mxu1 %v17797_v53  ;;  %2382 = vmatprep.subr.bf16.mxu0 %v17784_v55  ;;  %v17860_v55 = vld [vmem:[%s19313_s19 + $0x310] ss:$8 sps:$4 sm:$0xff]  }
  0xf7   : > { %2058 = vmatprep.subr.bf16.mxu1 %v17802_v57 }
  0xf9   : > { %2036 = vmatmul.mubr.bf16.vlgmr.msra.gmra.mxu1 %v19602_v62  ;;  %2383 = vmatpush2.bf16.msra.mxu0 %v17782_v56  ;;  %v19744_v62 = vld [vmem:[%s19313_s19 + $0x4e4] ss:$8 sps:$4 sm:$0xff]   ;;  %v19813_v56 = vld [vmem:[%s19313_s19 + $0x490] ss:$8 sps:$4 sm:$0xff]  }
  0xfa   : > { %2059 = vmatpush1.bf16.msra.mxu1 %v17800_v61  ;;  %2384 = vmatprep.subr.bf16.mxu0 %v17787_v59 }
  0xfb   : > { %2060 = vmatprep.subr.bf16.mxu1 %v17805_v5  ;;  %2078 = vmatprep.mubr.bf16.mxu1 %v19270_v0 }
  0xfd   : > { %2385 = vmatpush2.bf16.msra.mxu0 %v17785_v60  ;;  %v17868_v60 = vld [vmem:[%s19313_s19 + $0x304] ss:$8 sps:$4 sm:$0xff]  }
  0xfe   : > { %2061 = vmatpush1.bf16.msra.mxu1 %v17803_v7  ;;  %2386 = vmatprep.subr.bf16.mxu0 %v17790_v63  ;;  %v19820_v63 = vld [vmem:[%s19313_s19 + $0x484] ss:$8 sps:$4 sm:$0xff]  }
  0xff   : > { %2417 = vmatprep.subr.bf16.mxu1 %v17802_v57 }
 0x101   : > { %14654 = vmatmul.mubr.msk.bf16.vlgmr.msra.gmra.mxu1 %vm466_vm0, %v19704_v21  ;;  %2387 = vmatpush2.bf16.msra.mxu0 %v17788_v3  ;;  %v17866_v3 = vld [vmem:[%s19313_s19 + $0x300] ss:$8 sps:$4 sm:$0xff]  }
 0x102   : > { %2418 = vmatpush1.bf16.msra.mxu1 %v17800_v61  ;;  %2388 = vmatprep.subr.bf16.mxu0 %v17793_v9  ;;  %v19825_v9 = vld [vmem:[%s19313_s19 + $0x480] ss:$8 sps:$4 sm:$0xff]   ;;  %v17880_v61 = vld [vmem:[%s19313_s19 + $0x2e4] ss:$8 sps:$4 sm:$0xff]  }
 0x103   : > { %2419 = vmatprep.subr.bf16.mxu1 %v17805_v5  ;;  %2437 = vmatprep.mubr.bf16.mxu1 %v19270_v0  ;;  %v19845_v5 = vld [vmem:[%s19313_s19 + $0x564] ss:$8 sps:$4 sm:$0xff]  }
 0x105   : > { %2389 = vmatpush2.bf16.msra.mxu0 %v17791_v13 }
 0x106   : > { %2420 = vmatpush1.bf16.msra.mxu1 %v17803_v7  ;;  %2390 = vmatprep.subr.bf16.mxu0 %v17796_v33  ;;  %v17874_v33 = vld [vmem:[%s19313_s19 + $0x2f4] ss:$8 sps:$4 sm:$0xff]   ;;  %v17878_v7 = vld [vmem:[%s19313_s19 + $0x2e0] ss:$8 sps:$4 sm:$0xff]  }
 0x107   : > { %2628 = vmatprep.subr.bf16.mxu1 %v17808_v25  ;;  %v19849_v25 = vld [vmem:[%s19313_s19 + $0x560] ss:$8 sps:$4 sm:$0xff]  }
 0x109   : > { %14767 = vmatmul.mubr.msk.bf16.vlgmr.msra.gmra.mxu1 %vm466_vm0, %v19635_v8  ;;  %2391 = vmatpush2.bf16.msra.mxu0 %v17794_v38  ;;  %v17838_v8 = vld [vmem:[%s19313_s19 + $0x254] ss:$8 sps:$4 sm:$0xff]  }
 0x10a   : > { %2629 = vmatpush1.bf16.msra.mxu1 %v17806_v29  ;;  %2392 = vmatprep.subr.bf16.mxu0 %v17799_v50  ;;  %v19832_v38 = vld [vmem:[%s19313_s19 + $0x574] ss:$8 sps:$4 sm:$0xff]   ;;  %v17872_v50 = vld [vmem:[%s19313_s19 + $0x2f0] ss:$8 sps:$4 sm:$0xff]  }
 0x10b   : > { %2630 = vmatprep.subr.bf16.mxu1 %v17811_v34  ;;  %2660 = vmatprep.mubr.bf16.mxu1 %v19722_v1  ;;  %v17886_v34 = vld [vmem:[%s19313_s19 + $0x2d4] ss:$8 sps:$4 sm:$0xff]  }
 0x10d   : > { %2393 = vmatpush2.bf16.msra.mxu0 %v17797_v53  ;;  %v19837_v53 = vld [vmem:[%s19313_s19 + $0x570] ss:$8 sps:$4 sm:$0xff]  }
 0x10e   : > { %2631 = vmatpush1.bf16.msra.mxu1 %v17809_v12  ;;  %2683 = vmatprep.subr.bf16.mxu0 %v17817_v45  ;;  %v19857_v12 = vld [vmem:[%s19313_s19 + $0x554] ss:$8 sps:$4 sm:$0xff]   ;;  %v19861_v45 = vld [vmem:[%s19313_s19 + $0x550] ss:$8 sps:$4 sm:$0xff]  }
 0x10f   : > { %2632 = vmatprep.subr.bf16.mxu1 %v17814_v41  ;;  %v17884_v41 = vld [vmem:[%s19313_s19 + $0x2d0] ss:$8 sps:$4 sm:$0xff]  }
 0x110   : > { %2395 = vmatmul.mubr.bf16.vlgmr.msra.gmra.mxu0 %v19214_v16  ;;  %v19874_v16 = vld [vmem:[%s19313_s19 + $0x534] ss:$8 sps:$4 sm:$0xff]  }
 0x111   : > { %2684 = vmatpush1.bf16.msra.mxu0 %v17815_v22  ;;  %2703 = vmatprep.mubr.bf16.mxu0 %v19270_v0  ;;  %v17892_v22 = vld [vmem:[%s19313_s19 + $0x2c4] ss:$8 sps:$4 sm:$0xff]  }
 0x112   : > { %2633 = vmatpush1.bf16.msra.mxu1 %v17812_v18  ;;  %2685 = vmatprep.subr.bf16.mxu0 %v17823_v30  ;;  %v17890_v30 = vld [vmem:[%s19313_s19 + $0x2c0] ss:$8 sps:$4 sm:$0xff]  }
 0x113   : > { %2634 = vmatprep.subr.bf16.mxu1 %v17820_v26  ;;  %v19867_v26 = vld [vmem:[%s19313_s19 + $0x544] ss:$8 sps:$4 sm:$0xff]  }
 0x115   : > { %2686 = vmatpush1.bf16.msra.mxu0 %v17821_v37 }
 0x116   : > { %2635 = vmatpush1.bf16.msra.mxu1 %v17818_v11  ;;  %2931 = vmatprep.subr.bf16.mxu0 %v19734_v46  ;;  %v19871_v11 = vld [vmem:[%s19313_s19 + $0x540] ss:$8 sps:$4 sm:$0xff]  }
 0x117   : > { %2636 = vmatprep.subr.bf16.mxu1 %v17826_v42  ;;  %v504_v42 = vpop.f32.mrf.mxu0 }
 0x118   : > { %14804 = vmatmul.mubr.msk.bf16.vlgmr.msra.gmra.mxu0 %vm466_vm0, %v19215_v2  ;;  %v19885_v2 = vld [vmem:[%s19313_s19 + $0x590] ss:$8 sps:$4 sm:$0xff]  }
 0x119   : > { %2932 = vmatpush1.bf16.msra.mxu0 %v19739_v54  ;;  %2963 = vmatprep.mubr.bf16.mxu0 %v19216_v17  ;;  %v19815_v59 = vpop.f32.mrf.mxu1  ;;  %v19894_v17 = vld [vmem:[%s19313_s19 + $0x584] ss:$8 sps:$4 sm:$0xff]  }
 0x11a   : > { %2637 = vmatpush1.bf16.msra.mxu1 %v17824_v49  ;;  %2933 = vmatprep.subr.bf16.mxu0 %v19744_v62  ;;  %v19879_v49 = vld [vmem:[%s19313_s19 + $0x594] ss:$8 sps:$4 sm:$0xff]  }
 0x11b   : > { %2638 = vmatprep.subr.bf16.mxu1 %v17832_v58  ;;  %v19827_v13 = vpop.f32.mrf.mxu1  ;;  %v19882_v58 = vld [vmem:[%s19313_s19 + $0x530] ss:$8 sps:$4 sm:$0xff]  }
 0x11d   : > { %2934 = vmatpush1.bf16.msra.mxu0 %v19753_v6  ;;  %v19839_v57 = vpop.f32.mrf.mxu1 }
 0x11e   : > { %2639 = vmatpush1.bf16.msra.mxu1 %v17830_v4  ;;  %2935 = vmatprep.subr.bf16.mxu0 %v19758_v10 }
 0x11f   : > { %2640 = vmatprep.subr.bf16.mxu1 %v17838_v8  ;;  %v19851_v29 = vpop.f32.mrf.mxu1  ;;  %v19888_v8 = vld [vmem:[%s19313_s19 + $0x524] ss:$8 sps:$4 sm:$0xff]  }
 0x121   : > { %2936 = vmatpush1.bf16.msra.mxu0 %v19762_v15  ;;  %v831_v18 = vpop.f32.mrf.mxu1 }
 0x122   : > { %2641 = vmatpush1.bf16.msra.mxu1 %v17836_v14  ;;  %2937 = vmatprep.subr.bf16.mxu0 %v19773_v23  ;;  %v506_v14 = vpop.f32.mrf.mxu0 }
 0x123   : > { %2642 = vmatprep.subr.bf16.mxu1 %v17844_v20  ;;  %v833_v37 = vpop.f32.mrf.mxu1  ;;  %v19897_v20 = vld [vmem:[%s19313_s19 + $0x520] ss:$8 sps:$4 sm:$0xff]  }
 0x125   : > { %2938 = vmatpush1.bf16.msra.mxu0 %v19778_v27  ;;  %v835_v4 = vpop.f32.mrf.mxu1 }
 0x126   : > { %2643 = vmatpush1.bf16.msra.mxu1 %v17842_v24  ;;  %2939 = vmatprep.subr.bf16.mxu0 %v19785_v32  ;;  %v19900_v24 = vld [vmem:[%s19313_s19 + $0x580] ss:$8 sps:$4 sm:$0xff]  }
 0x127   : > { %2644 = vmatprep.subr.bf16.mxu1 %v17850_v31  ;;  %v837_v31 = vpop.f32.mrf.mxu1 }
 0x129   : > { %2940 = vmatpush1.bf16.msra.mxu0 %v19789_v36 }
 0x12a   : > { %2645 = vmatpush2.bf16.msra.mxu1 %v17848_v35  ;;  %2941 = vmatprep.subr.bf16.mxu0 %v19794_v40  ;;  %v19905_v35 = vld [vmem:[%s22359_s1] ss:$12 sps:$4 sm:$0xff]  }
 0x12b   : > { %2646 = vmatprep.subr.bf16.mxu1 %v17856_v39  ;;  %v508_v39 = vpop.f32.mrf.mxu0 }
 0x12d   : > { %2942 = vmatpush1.bf16.msra.mxu0 %v19801_v47 }
 0x12e   : > { %2647 = vmatpush2.bf16.msra.mxu1 %v17854_v44  ;;  %2943 = vmatprep.subr.bf16.mxu0 %v19806_v51  ;;  %v1152_v44 = vpop.f32.mrf.mxu1 }
 0x12f   : > { %2648 = vmatprep.subr.bf16.mxu1 %v17862_v48  ;;  %v19913_v48 = vld [vmem:[%s19313_s19 + $0x514] ss:$8 sps:$4 sm:$0xff]  }
 0x131   : > { %2944 = vmatpush1.bf16.msra.mxu0 %v19813_v56 }
 0x132   : > { %2649 = vmatpush2.bf16.msra.mxu1 %v17860_v55  ;;  %2945 = vmatprep.subr.bf16.mxu0 %v19820_v63  ;;  %v19916_v55 = vld [vmem:[%s19313_s19 + $0x510] ss:$8 sps:$4 sm:$0xff]  }
 0x133   : > { %2650 = vmatprep.subr.bf16.mxu1 %v17868_v60  ;;  %v548_v60 = vadd.f32 %v19768_v19, %v504_v42  ;;  %v552_v19 = vadd.f32 %v19796_v43, %v508_v39 }
 0x135   : > { %2946 = vmatpush1.bf16.msra.mxu0 %v19825_v9 }
 0x136   : > { %2651 = vmatpush2.bf16.msra.mxu1 %v17866_v3  ;;  %2947 = vmatprep.subr.bf16.mxu0 %v19832_v38  ;;  %v510_v3 = vpop.f32.mrf.mxu0 }
 0x137   : > { %2652 = vmatprep.subr.bf16.mxu1 %v17874_v33  ;;  %v1154_v33 = vpop.f32.mrf.mxu1 }
 0x139   : > { %2948 = vmatpush2.bf16.msra.mxu0 %v19837_v53 }
 0x13a   : > { %2653 = vmatpush2.bf16.msra.mxu1 %v17872_v50  ;;  %2949 = vmatprep.subr.bf16.mxu0 %v19845_v5  ;;  %v19925_v50 = vld [vmem:[%s19313_s19 + $0x504] ss:$8 sps:$4 sm:$0xff]  }
 0x13b   : > { %2654 = vmatprep.subr.bf16.mxu1 %v17880_v61  ;;  %v550_v61 = vadd.f32 %v19780_v28, %v506_v14  ;;  %v554_v28 = vadd.f32 %v19808_v52, %v510_v3  ;;  %v1156_v14 = vpop.f32.mrf.mxu1 }
 0x13d   : > { %2950 = vmatpush2.bf16.msra.mxu0 %v19849_v25 }
 0x13e   : > { %2655 = vmatpush2.bf16.msra.mxu1 %v17878_v7  ;;  %2951 = vmatprep.subr.bf16.mxu0 %v19857_v12  ;;  %v789_v7 = vadd.f32 %v19815_v59, %v548_v60  ;;  %v793_v59 = vadd.f32 %v19839_v57, %v552_v19 }
 0x13f   : > { %2656 = vmatprep.subr.bf16.mxu1 %v17886_v34  ;;  %v19929_v34 = vpop.permute.xlu0 %190 }
 0x140   : > { %v832_v42 = vadd.f32 %v831_v18, %v789_v7  ;;  %v19947_v18 = vld [vmem:[%s22359_s1 + $0x1c] ss:$12 sps:$4 sm:$0xff]   ;;  %v836_v52 = vadd.f32 %v835_v4, %v793_v59  ;;  %v17914_v59 = vld [vmem:[%s19313_s19 + $0x3d0] ss:$8 sps:$4 sm:$0xff]  }
 0x141   : > { %2952 = vmatpush2.bf16.msra.mxu0 %v19861_v45 }
 0x142   : > { %2657 = vmatpush2.bf16.msra.mxu1 %v17884_v41  ;;  %2953 = vmatprep.subr.bf16.mxu0 %v19867_v26  ;;  %v19932_v41 = vld [vmem:[%s19313_s19 + $0x500] ss:$8 sps:$4 sm:$0xff]  }
 0x143   : > { %2658 = vmatprep.subr.bf16.mxu1 %v17892_v22 }
 0x145   : > { %2954 = vmatpush2.bf16.msra.mxu0 %v19871_v11 }
 0x146   : > { %2659 = vmatpush2.bf16.msra.mxu1 %v17890_v30  ;;  %2955 = vmatprep.subr.bf16.mxu0 %v19874_v16  ;;  %v791_v30 = vadd.f32 %v19827_v13, %v550_v61 }
 0x147   : > { %2986 = vmatprep.subr.bf16.mxu1 %v19879_v49 }
 0x149   : > { %2661 = vmatmul.mubr.bf16.vlgmr.msra.gmra.mxu1 %v19905_v35  ;;  %2956 = vmatpush2.bf16.msra.mxu0 %v19882_v58 }
 0x14a   : > { %2987 = vmatpush1.bf16.msra.mxu1 %v19885_v2  ;;  %2957 = vmatprep.subr.bf16.mxu0 %v19888_v8 }
 0x14b   : > { %2988 = vmatprep.subr.bf16.mxu1 %v19894_v17  ;;  %3006 = vmatprep.mubr.bf16.mxu1 %v19270_v0 }
 0x14d   : > { %2958 = vmatpush2.bf16.msra.mxu0 %v19897_v20 }
 0x14e   : > { %2989 = vmatpush1.bf16.msra.mxu1 %v19900_v24  ;;  %2959 = vmatprep.subr.bf16.mxu0 %v19913_v48 }
 0x14f   : > { %3290 = vmatprep.subr.bf16.mxu1 %v19734_v46 }
 0x150   : > { %v1109_v22 = vpop.f32.mrf.mxu0 }
 0x151   : > { %14877 = vmatmul.mubr.msk.bf16.vlgmr.msra.gmra.mxu1 %vm466_vm0, %v19704_v21  ;;  %v1153_v46 = vadd.f32 %v1152_v44, %v1109_v22  ;;  %2960 = vmatpush2.bf16.msra.mxu0 %v19916_v55  ;;  %v834_v21 = vadd.f32 %v833_v37, %v791_v30 }
 0x152   : > { %3291 = vmatpush1.bf16.msra.mxu1 %v19739_v54  ;;  %v1111_v60 = vpop.f32.mrf.mxu0  ;;  %2961 = vmatprep.subr.bf16.mxu0 %v19925_v50  ;;  %v795_v54 = vadd.f32 %v19851_v29, %v554_v28 }
 0x153   : > { %3292 = vmatprep.subr.bf16.mxu1 %v19744_v62  ;;  %v1161_v43 = vadd.f32 %v1153_v46, %v832_v42  ;;  %v1155_v13 = vadd.f32 %v1154_v33, %v1111_v60  ;;  %3322 = vmatprep.mubr.bf16.mxu1 %v19947_v18  ;;  %v19955_v62 = vpop.permute.xlu0 %195  ;;  %v1158_v33 = vpop.f32.mrf.mxu1  ;;  %v19220_v60 = vld [vmem:[%s22359_s1 + $0x20] ss:$12 sps:$4 sm:$0xff]  }
 0x154   : > { %v1113_v57 = vpop.f32.mrf.mxu0  ;;  %v838_v37 = vadd.f32 %v837_v31, %v795_v54 }
 0x155   : > { %v1162_v39 = vadd.f32 %v1155_v13, %v834_v21  ;;  %v1165_v44 = vadd.f32 %v1161_v43, %v19929_v34  ;;  %v1157_v3 = vadd.f32 %v1156_v14, %v1113_v57  ;;  %2962 = vmatpush2.bf16.msra.mxu0 %v19932_v41  ;;  %v17950_v21 = vld [vmem:[%s19313_s19 + $0x410] ss:$8 sps:$4 sm:$0xff]   ;;  %v17956_v13 = vld [vmem:[%s19313_s19 + $0x400] ss:$8 sps:$4 sm:$0xff]   ;;  %v17967_v57 = vld [vmem:[%s19313_s19 + $0x614] ss:$8 sps:$4 sm:$0xff]  }
 0x156   : > { %3293 = vmatpush1.bf16.msra.mxu1 %v19753_v6  ;;  %v1115_v61 = vpop.f32.mrf.mxu0  ;;  %3345 = vmatprep.subr.bf16.mxu0 %v19879_v49  ;;  %v19219_v6 = vld [vmem:[%s22359_s1 + $0x30] ss:$12 sps:$4 sm:$0xff]  }
 0x157   : > { %3294 = vmatprep.subr.bf16.mxu1 %v19758_v10  ;;  %v1166_v29 = vadd.f32 %v1162_v39, %v19929_v34  ;;  %v1169_v4 = vmax.f32 %v1165_v44, -1.0  ;;  %v1163_v7 = vadd.f32 %v1157_v3, %v836_v52  ;;  %v1159_v19 = vadd.f32 %v1158_v33, %v1115_v61  ;;  %v17916_v10 = vld [vmem:[%s19313_s19 + $0x3d4] ss:$8 sps:$4 sm:$0xff]   ;;  %v20051_v52 = vld [vmem:[%s22359_s1 + $0x18] ss:$12 sps:$4 sm:$0xff]  }
 0x158   : > { %2964 = vmatmul.mubr.bf16.vlgmr.msra.gmra.mxu0 %v19219_v6  ;;  %v17962_v39 = vld [vmem:[%s19313_s19 + $0x3f0] ss:$8 sps:$4 sm:$0xff]   ;;  %v17973_v33 = vld [vmem:[%s19313_s19 + $0x604] ss:$8 sps:$4 sm:$0xff]   ;;  %v17968_v61 = vld [vmem:[%s19313_s19 + $0x3e0] ss:$8 sps:$4 sm:$0xff]  }
 0x159   : > { %v1170_v31 = vmax.f32 %v1166_v29, -1.0  ;;  %v1173_v49 = vmul.f32 0.5, %v1169_v4  ;;  %v1164_v22 = vadd.f32 %v1159_v19, %v838_v37  ;;  %v1167_v30 = vadd.f32 %v1163_v7, %v19955_v62  ;;  %3346 = vmatpush1.bf16.msra.mxu0 %v19885_v2  ;;  %3365 = vmatprep.mubr.bf16.mxu0 %v19270_v0  ;;  %v17965_v44 = vld [vmem:[%s19313_s19 + $0x610] ss:$8 sps:$4 sm:$0xff]   ;;  %v17970_v37 = vld [vmem:[%s19313_s19 + $0x3e4] ss:$8 sps:$4 sm:$0xff]  }
 0x15a   : > { %3295 = vmatpush1.bf16.msra.mxu1 %v19762_v15  ;;  %3347 = vmatprep.subr.bf16.mxu0 %v19894_v17  ;;  %v17917_v17 = vld [vmem:[%s19313_s19 + $0x3c0] ss:$8 sps:$4 sm:$0xff]   ;;  %v17976_v19 = vld [vmem:[%s19313_s19 + $0x5f4] ss:$8 sps:$4 sm:$0xff]  }
 0x15b   : > { %3296 = vmatprep.subr.bf16.mxu1 %v19773_v23  ;;  %v1174_v42 = vmul.f32 0.5, %v1170_v31  ;;  %1177 = vst [vmem:[%s19963_s9] sm:$0xff] %v1173_v49  ;;  %v1168_v46 = vadd.f32 %v1164_v22, %v19955_v62  ;;  %v1171_v28 = vmax.f32 %v1167_v30, -1.0  ;;  %v17919_v23 = vld [vmem:[%s19313_s19 + $0x3c4] ss:$8 sps:$4 sm:$0xff]   ;;  %v17971_v29 = vld [vmem:[%s19313_s19 + $0x600] ss:$8 sps:$4 sm:$0xff]  }
 0x15c   : > { %v20070_v7 = vld [vmem:[%s22359_s1 + $0x8] ss:$12 sps:$4 sm:$0xff]   ;;  %v20080_v31 = vld [vmem:[%s19313_s19 + $0x6b0] ss:$8 sps:$4 sm:$0xff]   ;;  %v17982_v30 = vld [vmem:[%s19313_s19 + $0x5e4] ss:$8 sps:$4 sm:$0xff]  }
 0x15d   : > { %v1172_v15 = vmax.f32 %v1168_v46, -1.0  ;;  %v1175_v14 = vmul.f32 0.5, %v1171_v28  ;;  %1179 = vst.msk [vmem:[%s19963_s9 + $0x8] sm:$0xff] %vm1178_vm1, %v1174_v42  ;;  %3348 = vmatpush1.bf16.msra.mxu0 %v19900_v24  ;;  %v17925_v24 = vld [vmem:[%s19313_s19 + $0x3a4] ss:$8 sps:$4 sm:$0xff]  }
 0x15e   : > { %3297 = vmatpush1.bf16.msra.mxu1 %v19778_v27  ;;  %3556 = vmatprep.subr.bf16.mxu0 %v17916_v10  ;;  %v17922_v27 = vld [vmem:[%s19313_s19 + $0x3b4] ss:$8 sps:$4 sm:$0xff]   ;;  %v17974_v10 = vld [vmem:[%s19313_s19 + $0x5f0] ss:$8 sps:$4 sm:$0xff]   ;;  %v20093_v42 = vld [vmem:[%s19313_s19 + $0x6a4] ss:$8 sps:$4 sm:$0xff]  }
 0x15f   : > { %3298 = vmatprep.subr.bf16.mxu1 %v19785_v32  ;;  %v1176_v2 = vmul.f32 0.5, %v1172_v15  ;;  %1180 = vst [vmem:[%s19963_s9 + $0x10] sm:$0xff] %v1175_v14  ;;  %v17920_v32 = vld [vmem:[%s19313_s19 + $0x3b0] ss:$8 sps:$4 sm:$0xff]   ;;  %v20076_v6 = vld [vmem:[%s19313_s19 + $0x6b4] ss:$8 sps:$4 sm:$0xff]  }
 0x160   : > { %14990 = vmatmul.mubr.msk.bf16.vlgmr.msra.gmra.mxu0 %vm466_vm0, %v19220_v60  ;;  %v20085_v49 = vld [vmem:[%s22359_s1 + $0x34] ss:$12 sps:$4 sm:$0xff]   ;;  %v17986_v14 = vld [vmem:[%s19313_s19 + $0x5d0] ss:$8 sps:$4 sm:$0xff]  }
 0x161   : > { %1181 = vst.msk [vmem:[%s19963_s9 + $0x18] sm:$0xff] %vm1178_vm1, %v1176_v2  ;;  %3557 = vmatpush1.bf16.msra.mxu0 %v17914_v59  ;;  %3588 = vmatprep.mubr.bf16.mxu0 %v19722_v1  ;;  %v17926_v1 = vld [vmem:[%s19313_s19 + $0x390] ss:$8 sps:$4 sm:$0xff]   ;;  %v17980_v46 = vld [vmem:[%s19313_s19 + $0x5e0] ss:$8 sps:$4 sm:$0xff]  }
 0x162   : > { %3299 = vmatpush1.bf16.msra.mxu1 %v19789_v36  ;;  %3558 = vmatprep.subr.bf16.mxu0 %v17919_v23  ;;  %v17923_v36 = vld [vmem:[%s19313_s19 + $0x3a0] ss:$8 sps:$4 sm:$0xff]   ;;  %v17988_v15 = vld [vmem:[%s19313_s19 + $0x5d4] ss:$8 sps:$4 sm:$0xff]  }
 0x163   : > { %3300 = vmatprep.subr.bf16.mxu1 %v19794_v40  ;;  %v17928_v40 = vld [vmem:[%s19313_s19 + $0x394] ss:$8 sps:$4 sm:$0xff]   ;;  %v20097_v28 = vld [vmem:[%s19313_s19 + $0x6a0] ss:$8 sps:$4 sm:$0xff]  }
 0x164   : > { %v17989_v60 = vld [vmem:[%s19313_s19 + $0x5c0] ss:$8 sps:$4 sm:$0xff]  }
 0x165   : > { %3559 = vmatpush1.bf16.msra.mxu0 %v17917_v17  ;;  %v19224_v17 = vld [vmem:[%s22359_s1 + $0x38] ss:$12 sps:$4 sm:$0xff]  }
 0x166   : > { %3301 = vmatpush1.bf16.msra.mxu1 %v19801_v47  ;;  %3560 = vmatprep.subr.bf16.mxu0 %v17922_v27  ;;  %v17931_v47 = vld [vmem:[%s19313_s19 + $0x384] ss:$8 sps:$4 sm:$0xff]   ;;  %v17994_v27 = vld [vmem:[%s19313_s19 + $0x5b4] ss:$8 sps:$4 sm:$0xff]  }
 0x167   : > { %3302 = vmatprep.subr.bf16.mxu1 %v19806_v51  ;;  %v17929_v51 = vld [vmem:[%s19313_s19 + $0x380] ss:$8 sps:$4 sm:$0xff]  }
 0x169   : > { %3561 = vmatpush1.bf16.msra.mxu0 %v17920_v32  ;;  %v20039_v43 = vpop.f32.mrf.mxu1 }
 0x16a   : > { %3303 = vmatpush1.bf16.msra.mxu1 %v19813_v56  ;;  %3562 = vmatprep.subr.bf16.mxu0 %v17925_v24  ;;  %v17934_v56 = vld [vmem:[%s19313_s19 + $0x374] ss:$8 sps:$4 sm:$0xff]   ;;  %v17992_v24 = vld [vmem:[%s19313_s19 + $0x5b0] ss:$8 sps:$4 sm:$0xff]  }
 0x16b   : > { %3304 = vmatprep.subr.bf16.mxu1 %v19820_v63  ;;  %v17932_v63 = vld [vmem:[%s19313_s19 + $0x370] ss:$8 sps:$4 sm:$0xff]   ;;  %v20046_v54 = vpop.f32.mrf.mxu1 }
 0x16d   : > { %3563 = vmatpush1.bf16.msra.mxu0 %v17923_v36  ;;  %v20059_v3 = vpop.f32.mrf.mxu1  ;;  %v17997_v36 = vld [vmem:[%s19313_s19 + $0x5a4] ss:$8 sps:$4 sm:$0xff]  }
 0x16e   : > { %3305 = vmatpush1.bf16.msra.mxu1 %v19825_v9  ;;  %3564 = vmatprep.subr.bf16.mxu0 %v17928_v40  ;;  %v17937_v9 = vld [vmem:[%s19313_s19 + $0x364] ss:$8 sps:$4 sm:$0xff]  }
 0x16f   : > { %3306 = vmatprep.subr.bf16.mxu1 %v19832_v38  ;;  %v17935_v38 = vld [vmem:[%s19313_s19 + $0x360] ss:$8 sps:$4 sm:$0xff]   ;;  %v20065_v4 = vpop.f32.mrf.mxu1 }
 0x171   : > { %3565 = vmatpush1.bf16.msra.mxu0 %v17926_v1  ;;  %v20088_v22 = vpop.f32.mrf.mxu1  ;;  %v17995_v1 = vld [vmem:[%s19313_s19 + $0x5a0] ss:$8 sps:$4 sm:$0xff]  }
 0x172   : > { %3307 = vmatpush2.bf16.msra.mxu1 %v19837_v53  ;;  %3566 = vmatprep.subr.bf16.mxu0 %v17931_v47  ;;  %v17940_v53 = vld [vmem:[%s19313_s19 + $0x454] ss:$8 sps:$4 sm:$0xff]  }
 0x173   : > { %3308 = vmatprep.subr.bf16.mxu1 %v19845_v5  ;;  %v17938_v5 = vld [vmem:[%s19313_s19 + $0x450] ss:$8 sps:$4 sm:$0xff]   ;;  %v1513_v59 = vpop.f32.mrf.mxu1  ;;  %v20118_v47 = vld [vmem:[%s19313_s19 + $0x694] ss:$8 sps:$4 sm:$0xff]  }
 0x175   : > { %3567 = vmatpush1.bf16.msra.mxu0 %v17929_v51  ;;  %v1515_v23 = vpop.f32.mrf.mxu1 }
 0x176   : > { %3309 = vmatpush2.bf16.msra.mxu1 %v19849_v25  ;;  %3568 = vmatprep.subr.bf16.mxu0 %v17934_v56  ;;  %v17943_v25 = vld [vmem:[%s19313_s19 + $0x444] ss:$8 sps:$4 sm:$0xff]  }
 0x177   : > { %3310 = vmatprep.subr.bf16.mxu1 %v19857_v12  ;;  %v17941_v12 = vld [vmem:[%s19313_s19 + $0x440] ss:$8 sps:$4 sm:$0xff]   ;;  %v1517_v2 = vpop.f32.mrf.mxu1 }
 0x179   : > { %3569 = vmatpush1.bf16.msra.mxu0 %v17932_v63  ;;  %v1777_v32 = vpop.f32.mrf.mxu1  ;;  %v20121_v63 = vld [vmem:[%s19313_s19 + $0x690] ss:$8 sps:$4 sm:$0xff]  }
 0x17a   : > { %3311 = vmatpush2.bf16.msra.mxu1 %v19861_v45  ;;  %3570 = vmatprep.subr.bf16.mxu0 %v17937_v9  ;;  %v17946_v45 = vld [vmem:[%s19313_s19 + $0x434] ss:$8 sps:$4 sm:$0xff]   ;;  %v20125_v9 = vld [vmem:[%s19313_s19 + $0x684] ss:$8 sps:$4 sm:$0xff]  }
 0x17b   : > { %3312 = vmatprep.subr.bf16.mxu1 %v19867_v26  ;;  %v17944_v26 = vld [vmem:[%s19313_s19 + $0x430] ss:$8 sps:$4 sm:$0xff]   ;;  %v1779_v40 = vpop.f32.mrf.mxu1 }
 0x17d   : > { %3571 = vmatpush1.bf16.msra.mxu0 %v17935_v38  ;;  %v1781_v51 = vpop.f32.mrf.mxu1 }
 0x17e   : > { %3313 = vmatpush2.bf16.msra.mxu1 %v19871_v11  ;;  %3572 = vmatprep.subr.bf16.mxu0 %v17940_v53  ;;  %v17949_v11 = vld [vmem:[%s19313_s19 + $0x424] ss:$8 sps:$4 sm:$0xff]   ;;  %v20128_v53 = vld [vmem:[%s19313_s19 + $0x680] ss:$8 sps:$4 sm:$0xff]  }
 0x17f   : > { %3314 = vmatprep.subr.bf16.mxu1 %v19874_v16  ;;  %v17947_v16 = vld [vmem:[%s19313_s19 + $0x420] ss:$8 sps:$4 sm:$0xff]  }
 0x181   : > { %3573 = vmatpush2.bf16.msra.mxu0 %v17938_v5 }
 0x182   : > { %3315 = vmatpush2.bf16.msra.mxu1 %v19882_v58  ;;  %3574 = vmatprep.subr.bf16.mxu0 %v17943_v25  ;;  %v17952_v58 = vld [vmem:[%s19313_s19 + $0x414] ss:$8 sps:$4 sm:$0xff]  }
 0x183   : > { %3316 = vmatprep.subr.bf16.mxu1 %v19888_v8  ;;  %v17955_v8 = vld [vmem:[%s19313_s19 + $0x474] ss:$8 sps:$4 sm:$0xff]  }
 0x185   : > { %3575 = vmatpush2.bf16.msra.mxu0 %v17941_v12  ;;  %v20133_v12 = vld [vmem:[%s19313_s19 + $0x674] ss:$8 sps:$4 sm:$0xff]  }
 0x186   : > { %3317 = vmatpush2.bf16.msra.mxu1 %v19897_v20  ;;  %3576 = vmatprep.subr.bf16.mxu0 %v17946_v45  ;;  %v17953_v20 = vld [vmem:[%s19313_s19 + $0x470] ss:$8 sps:$4 sm:$0xff]   ;;  %v1512_v45 = vadd.f32 %v20088_v22, %v20039_v43 }
 0x187   : > { %3318 = vmatprep.subr.bf16.mxu1 %v19913_v48  ;;  %v17958_v48 = vld [vmem:[%s19313_s19 + $0x404] ss:$8 sps:$4 sm:$0xff]  }
 0x189   : > { %3577 = vmatpush2.bf16.msra.mxu0 %v17944_v26 }
 0x18a   : > { %3319 = vmatpush2.bf16.msra.mxu1 %v19916_v55  ;;  %3578 = vmatprep.subr.bf16.mxu0 %v17949_v11  ;;  %v17961_v55 = vld [vmem:[%s19313_s19 + $0x464] ss:$8 sps:$4 sm:$0xff]   ;;  %v20138_v11 = vld [vmem:[%s19313_s19 + $0x670] ss:$8 sps:$4 sm:$0xff]  }
 0x18b   : > { %3320 = vmatprep.subr.bf16.mxu1 %v19925_v50  ;;  %v17959_v50 = vld [vmem:[%s19313_s19 + $0x460] ss:$8 sps:$4 sm:$0xff]  }
 0x18d   : > { %3579 = vmatpush2.bf16.msra.mxu0 %v17947_v16 }
 0x18e   : > { %3321 = vmatpush2.bf16.msra.mxu1 %v19932_v41  ;;  %3580 = vmatprep.subr.bf16.mxu0 %v17952_v58  ;;  %v17964_v41 = vld [vmem:[%s19313_s19 + $0x3f4] ss:$8 sps:$4 sm:$0xff]   ;;  %v1514_v58 = vadd.f32 %v1513_v59, %v20046_v54 }
 0x18f   : > { %3611 = vmatprep.subr.bf16.mxu1 %v17955_v8 }
 0x190   : > { %v1734_v56 = vpop.f32.mrf.mxu0 }
 0x191   : > { %3323 = vmatmul.mubr.bf16.vlgmr.msra.gmra.mxu1 %v20051_v52  ;;  %3581 = vmatpush2.bf16.msra.mxu0 %v17950_v21  ;;  %v1735_v8 = vadd.f32 %v1734_v56, %v1512_v45  ;;  %v1516_v21 = vadd.f32 %v1515_v23, %v20059_v3  ;;  %v18016_v56 = vld [vmem:[%s19313_s19 + $0x630] ss:$8 sps:$4 sm:$0xff]   ;;  %v18025_v45 = vld [vmem:[%s19313_s19 + $0x4e0] ss:$8 sps:$4 sm:$0xff]  }
 0x192   : > { %3612 = vmatpush1.bf16.msra.mxu1 %v17953_v20  ;;  %3582 = vmatprep.subr.bf16.mxu0 %v17958_v48  ;;  %v1736_v38 = vpop.f32.mrf.mxu0  ;;  %v20145_v48 = vld [vmem:[%s19313_s19 + $0x664] ss:$8 sps:$4 sm:$0xff]  }
 0x193   : > { %3613 = vmatprep.subr.bf16.mxu1 %v17961_v55  ;;  %3631 = vmatprep.mubr.bf16.mxu1 %v19270_v0  ;;  %v1737_v43 = vadd.f32 %v1736_v38, %v1514_v58  ;;  %v18036_v58 = vld [vmem:[%s19313_s19 + $0x4c4] ss:$8 sps:$4 sm:$0xff]  }
 0x194   : > { %v1738_v26 = vpop.f32.mrf.mxu0 }
 0x195   : > { %3583 = vmatpush2.bf16.msra.mxu0 %v17956_v13  ;;  %v20148_v13 = vld [vmem:[%s19313_s19 + $0x660] ss:$8 sps:$4 sm:$0xff]   ;;  %v1739_v54 = vadd.f32 %v1738_v26, %v1516_v21  ;;  %v18028_v26 = vld [vmem:[%s19313_s19 + $0x4d0] ss:$8 sps:$4 sm:$0xff]  }
 0x196   : > { %3614 = vmatpush1.bf16.msra.mxu1 %v17959_v50  ;;  %3584 = vmatprep.subr.bf16.mxu0 %v17964_v41  ;;  %v1740_v55 = vpop.f32.mrf.mxu0  ;;  %v1518_v50 = vadd.f32 %v1517_v2, %v20065_v4  ;;  %v18034_v21 = vld [vmem:[%s19313_s19 + $0x4c0] ss:$8 sps:$4 sm:$0xff]  }
 0x197   : > { %3859 = vmatprep.subr.bf16.mxu1 %v17967_v57 }
 0x199   : > { %15027 = vmatmul.mubr.msk.bf16.vlgmr.msra.gmra.mxu1 %vm466_vm0, %v20070_v7  ;;  %3585 = vmatpush2.bf16.msra.mxu0 %v17962_v39 }
 0x19a   : > { %3860 = vmatpush1.bf16.msra.mxu1 %v17965_v44  ;;  %3586 = vmatprep.subr.bf16.mxu0 %v17970_v37  ;;  %v18012_v37 = vld [vmem:[%s19313_s19 + $0x654] ss:$8 sps:$4 sm:$0xff]  }
 0x19b   : > { %3861 = vmatprep.subr.bf16.mxu1 %v17973_v33  ;;  %3891 = vmatprep.mubr.bf16.mxu1 %v20085_v49 }
 0x19d   : > { %3587 = vmatpush2.bf16.msra.mxu0 %v17968_v61 }
 0x19e   : > { %3862 = vmatpush1.bf16.msra.mxu1 %v17971_v29  ;;  %3914 = vmatprep.subr.bf16.mxu0 %v20076_v6 }
 0x19f   : > { %3863 = vmatprep.subr.bf16.mxu1 %v17976_v19 }
 0x1a0   : > { %3589 = vmatmul.mubr.bf16.vlgmr.msra.gmra.mxu0 %v19905_v35  ;;  %v17991_v35 = vld [vmem:[%s19313_s19 + $0x5c4] ss:$8 sps:$4 sm:$0xff]  }
 0x1a1   : > { %3915 = vmatpush1.bf16.msra.mxu0 %v20080_v31  ;;  %3934 = vmatprep.mubr.bf16.mxu0 %v19270_v0 }
 0x1a2   : > { %3864 = vmatpush1.bf16.msra.mxu1 %v17974_v10  ;;  %3916 = vmatprep.subr.bf16.mxu0 %v20093_v42 }
 0x1a3   : > { %3865 = vmatprep.subr.bf16.mxu1 %v17982_v30 }
 0x1a5   : > { %3917 = vmatpush1.bf16.msra.mxu0 %v20097_v28 }
 0x1a6   : > { %3866 = vmatpush1.bf16.msra.mxu1 %v17980_v46  ;;  %4218 = vmatprep.subr.bf16.mxu0 %v17967_v57  ;;  %v1778_v57 = vadd.f32 %v1777_v32, %v1735_v8  ;;  %v18039_v8 = vld [vmem:[%s19313_s19 + $0x584] ss:$8 sps:$4 sm:$0xff]  }
 0x1a7   : > { %3867 = vmatprep.subr.bf16.mxu1 %v17988_v15 }
 0x1a8   : > { %15100 = vmatmul.mubr.msk.bf16.vlgmr.msra.gmra.mxu0 %vm466_vm0, %v19224_v17 }
 0x1a9   : > { %4219 = vmatpush1.bf16.msra.mxu0 %v17965_v44  ;;  %4250 = vmatprep.mubr.bf16.mxu0 %v19947_v18  ;;  %v1783_v18 = vpop.f32.mrf.mxu1  ;;  %v1741_v44 = vadd.f32 %v1740_v55, %v1518_v50  ;;  %v18040_v55 = vld [vmem:[%s19313_s19 + $0x4b0] ss:$8 sps:$4 sm:$0xff]   ;;  %v20229_v50 = vld [vmem:[%s19313_s19 + $0x724] ss:$8 sps:$4 sm:$0xff]  }
 0x1aa   : > { %3868 = vmatpush1.bf16.msra.mxu1 %v17986_v14  ;;  %4220 = vmatprep.subr.bf16.mxu0 %v17973_v33  ;;  %v1780_v33 = vadd.f32 %v1779_v40, %v1737_v43  ;;  %v18018_v40 = vld [vmem:[%s19313_s19 + $0x634] ss:$8 sps:$4 sm:$0xff]  }
 0x1ab   : > { %3869 = vmatprep.subr.bf16.mxu1 %v17991_v35  ;;  %v1784_v59 = vadd.f32 %v1783_v18, %v1741_v44  ;;  %v20219_v43 = vld [vmem:[%s19313_s19 + $0x734] ss:$8 sps:$4 sm:$0xff]   ;;  %v18052_v44 = vld [vmem:[%s19313_s19 + $0x490] ss:$8 sps:$4 sm:$0xff]  }
 0x1ad   : > { %4221 = vmatpush1.bf16.msra.mxu0 %v17971_v29 }
 0x1ae   : > { %3870 = vmatpush1.bf16.msra.mxu1 %v17989_v60  ;;  %4222 = vmatprep.subr.bf16.mxu0 %v17976_v19  ;;  %v18010_v19 = vld [vmem:[%s19313_s19 + $0x650] ss:$8 sps:$4 sm:$0xff]  }
 0x1af   : > { %3871 = vmatprep.subr.bf16.mxu1 %v17994_v27 }
 0x1b1   : > { %4223 = vmatpush1.bf16.msra.mxu0 %v17974_v10  ;;  %v1782_v10 = vadd.f32 %v1781_v51, %v1739_v54  ;;  %v18046_v54 = vld [vmem:[%s19313_s19 + $0x4a0] ss:$8 sps:$4 sm:$0xff]  }
 0x1b2   : > { %3872 = vmatpush1.bf16.msra.mxu1 %v17992_v24  ;;  %4224 = vmatprep.subr.bf16.mxu0 %v17982_v30 }
 0x1b3   : > { %3873 = vmatprep.subr.bf16.mxu1 %v17997_v36 }
 0x1b5   : > { %4225 = vmatpush1.bf16.msra.mxu0 %v17980_v46 }
 0x1b6   : > { %3874 = vmatpush1.bf16.msra.mxu1 %v17995_v1  ;;  %4226 = vmatprep.subr.bf16.mxu0 %v17988_v15 }
 0x1b7   : > { %3875 = vmatprep.subr.bf16.mxu1 %v20118_v47 }
 0x1b9   : > { %v2037_v5 = vpop.f32.mrf.mxu1  ;;  %4227 = vmatpush1.bf16.msra.mxu0 %v17986_v14  ;;  %v18015_v14 = vld [vmem:[%s19313_s19 + $0x644] ss:$8 sps:$4 sm:$0xff]  }
 0x1ba   : > { %3876 = vmatpush2.bf16.msra.mxu1 %v20121_v63  ;;  %4228 = vmatprep.subr.bf16.mxu0 %v17991_v35 }
 0x1bb   : > { %v2039_v25 = vpop.f32.mrf.mxu1  ;;  %3877 = vmatprep.subr.bf16.mxu1 %v20125_v9 }
 0x1bd   : > { %v2041_v16 = vpop.f32.mrf.mxu1  ;;  %4229 = vmatpush1.bf16.msra.mxu0 %v17989_v60  ;;  %v18013_v60 = vld [vmem:[%s19313_s19 + $0x640] ss:$8 sps:$4 sm:$0xff]  }
 0x1be   : > { %3878 = vmatpush2.bf16.msra.mxu1 %v20128_v53  ;;  %4230 = vmatprep.subr.bf16.mxu0 %v17994_v27 }
 0x1bf   : > { %v2043_v20 = vpop.f32.mrf.mxu1  ;;  %3879 = vmatprep.subr.bf16.mxu1 %v20133_v12 }
 0x1c1   : > { %v2080_v41 = vpop.f32.mrf.mxu1  ;;  %4231 = vmatpush1.bf16.msra.mxu0 %v17992_v24 }
 0x1c2   : > { %v2081_v39 = vadd.f32 %v2080_v41, %v2037_v5  ;;  %3880 = vmatpush2.bf16.msra.mxu1 %v20138_v11  ;;  %4232 = vmatprep.subr.bf16.mxu0 %v17997_v36  ;;  %v18019_v5 = vld [vmem:[%s19313_s19 + $0x620] ss:$8 sps:$4 sm:$0xff]  }
 0x1c3   : > { %v2082_v3 = vpop.f32.mrf.mxu1  ;;  %3881 = vmatprep.subr.bf16.mxu1 %v20145_v48  ;;  %v20236_v41 = vld [vmem:[%s19313_s19 + $0x720] ss:$8 sps:$4 sm:$0xff]  }
 0x1c4   : > { %v2089_v61 = vadd.f32 %v2081_v39, %v1778_v57  ;;  %v2083_v29 = vadd.f32 %v2082_v3, %v2039_v25  ;;  %v18024_v25 = vld [vmem:[%s19313_s19 + $0x4f4] ss:$8 sps:$4 sm:$0xff]   ;;  %v20245_v3 = vld [vmem:[%s19313_s19 + $0x710] ss:$8 sps:$4 sm:$0xff]  }
 0x1c5   : > { %v2084_v4 = vpop.f32.mrf.mxu1  ;;  %4233 = vmatpush1.bf16.msra.mxu0 %v17995_v1  ;;  %v18054_v57 = vld [vmem:[%s19313_s19 + $0x494] ss:$8 sps:$4 sm:$0xff]  }
 0x1c6   : > { %v2093_v22 = vadd.f32 %v2089_v61, %v19929_v34  ;;  %v2090_v30 = vadd.f32 %v2083_v29, %v1780_v33  ;;  %v2085_v46 = vadd.f32 %v2084_v4, %v2041_v16  ;;  %3882 = vmatpush2.bf16.msra.mxu1 %v20148_v13  ;;  %4234 = vmatprep.subr.bf16.mxu0 %v20118_v47  ;;  %v20209_v16 = vld [vmem:[%s22359_s1 + $0x4] ss:$12 sps:$4 sm:$0xff]   ;;  %v20241_v39 = vld [vmem:[%s19313_s19 + $0x714] ss:$8 sps:$4 sm:$0xff]   ;;  %v18058_v33 = vld [vmem:[%s19313_s19 + $0x480] ss:$8 sps:$4 sm:$0xff]  }
 0x1c7   : > { %v2086_v15 = vpop.f32.mrf.mxu1  ;;  %3883 = vmatprep.subr.bf16.mxu1 %v18012_v37  ;;  %v20257_v61 = vld [vmem:[%s19313_s19 + $0x700] ss:$8 sps:$4 sm:$0xff]   ;;  %v18064_v4 = vld [vmem:[%s19313_s19 + $0x570] ss:$8 sps:$4 sm:$0xff]  }
 0x1c8   : > { %v2097_v23 = vmax.f32 %v2093_v22, -1.0  ;;  %v2094_v35 = vadd.f32 %v2090_v30, %v19929_v34  ;;  %v2091_v2 = vadd.f32 %v2085_v46, %v1782_v10  ;;  %v2087_v17 = vadd.f32 %v2086_v15, %v2043_v20  ;;  %v18037_v20 = vld [vmem:[%s19313_s19 + $0x580] ss:$8 sps:$4 sm:$0xff]   ;;  %v20266_v10 = vld [vmem:[%s19313_s19 + $0x6f4] ss:$8 sps:$4 sm:$0xff]  }
 0x1c9   : > { %4235 = vmatpush2.bf16.msra.mxu0 %v20121_v63  ;;  %v18021_v63 = vld [vmem:[%s19313_s19 + $0x624] ss:$8 sps:$4 sm:$0xff]   ;;  %v20270_v22 = vld [vmem:[%s19313_s19 + $0x6f0] ss:$8 sps:$4 sm:$0xff]  }
 0x1ca   : > { %v2101_v27 = vmul.f32 0.5, %v2097_v23  ;;  %v2098_v32 = vmax.f32 %v2094_v35, -1.0  ;;  %v2095_v24 = vadd.f32 %v2091_v2, %v19955_v62  ;;  %v2092_v36 = vadd.f32 %v2087_v17, %v1784_v59  ;;  %3884 = vmatpush2.bf16.msra.mxu1 %v18010_v19  ;;  %4236 = vmatprep.subr.bf16.mxu0 %v20125_v9  ;;  %v18072_v30 = vld [vmem:[%s19313_s19 + $0x564] ss:$8 sps:$4 sm:$0xff]   ;;  %v20281_v23 = vld [vmem:[%s19313_s19 + $0x6e0] ss:$8 sps:$4 sm:$0xff]  }
 0x1cb   : > { %3885 = vmatprep.subr.bf16.mxu1 %v18015_v14  ;;  %v20275_v46 = vld [vmem:[%s19313_s19 + $0x6e4] ss:$8 sps:$4 sm:$0xff]   ;;  %v18078_v17 = vld [vmem:[%s19313_s19 + $0x554] ss:$8 sps:$4 sm:$0xff]  }
 0x1cc   : > { %14655 = vst [vmem:[%s19963_s9 + $0x20] sm:$0xff] %v2101_v27  ;;  %v2102_v1 = vmul.f32 0.5, %v2098_v32  ;;  %v2099_v47 = vmax.f32 %v2095_v24, -1.0  ;;  %v2096_v51 = vadd.f32 %v2092_v36, %v19955_v62  ;;  %v18076_v27 = vld [vmem:[%s19313_s19 + $0x550] ss:$8 sps:$4 sm:$0xff]  }
 0x1cd   : > { %4237 = vmatpush2.bf16.msra.mxu0 %v20128_v53  ;;  %v20184_v53 = vld [vmem:[%s22359_s1 + $0x30] ss:$12 sps:$4 sm:$0xff]  }
 0x1ce   : > { %14656 = vst.msk [vmem:[%s19963_s9 + $0x28] sm:$0xff] %vm1178_vm1, %v2102_v1  ;;  %v2103_v18 = vmul.f32 0.5, %v2099_v47  ;;  %v2100_v38 = vmax.f32 %v2096_v51, -1.0  ;;  %3886 = vmatpush2.bf16.msra.mxu1 %v18013_v60  ;;  %4238 = vmatprep.subr.bf16.mxu0 %v20133_v12  ;;  %v18027_v12 = vld [vmem:[%s19313_s19 + $0x4e4] ss:$8 sps:$4 sm:$0xff]  }
 0x1cf   : > { %3887 = vmatprep.subr.bf16.mxu1 %v18018_v40  ;;  %v20291_v32 = vld [vmem:[%s19313_s19 + $0x6d0] ss:$8 sps:$4 sm:$0xff]   ;;  %v20296_v1 = vld [vmem:[%s19313_s19 + $0x6c4] ss:$8 sps:$4 sm:$0xff]   ;;  %v18082_v51 = vld [vmem:[%s19313_s19 + $0x540] ss:$8 sps:$4 sm:$0xff]  }
 0x1d0   : > { %14657 = vst [vmem:[%s19963_s9 + $0x30] sm:$0xff] %v2103_v18  ;;  %v2104_v9 = vmul.f32 0.5, %v2100_v38  ;;  %v20261_v29 = vpop.f32.mrf.mxu0 }
 0x1d1   : > { %4239 = vmatpush2.bf16.msra.mxu0 %v20138_v11  ;;  %v18031_v11 = vld [vmem:[%s19313_s19 + $0x590] ss:$8 sps:$4 sm:$0xff]  }
 0x1d2   : > { %14658 = vst.msk [vmem:[%s19963_s9 + $0x38] sm:$0xff] %vm1178_vm1, %v2104_v9  ;;  %3888 = vmatpush2.bf16.msra.mxu1 %v18016_v56  ;;  %4240 = vmatprep.subr.bf16.mxu0 %v20145_v48  ;;  %v18042_v48 = vld [vmem:[%s19313_s19 + $0x4b4] ss:$8 sps:$4 sm:$0xff]   ;;  %v2398_v15 = vpop.f32.mrf.mxu0 }
 0x1d3   : > { %3889 = vmatprep.subr.bf16.mxu1 %v18021_v63  ;;  %v20306_v9 = vld [vmem:[%s19313_s19 + $0x7b4] ss:$8 sps:$4 sm:$0xff]  }
 0x1d4   : > { %v2400_v2 = vpop.f32.mrf.mxu0 }
 0x1d5   : > { %4241 = vmatpush2.bf16.msra.mxu0 %v20148_v13  ;;  %v20224_v13 = vld [vmem:[%s19313_s19 + $0x730] ss:$8 sps:$4 sm:$0xff]  }
 0x1d6   : > { %3890 = vmatpush2.bf16.msra.mxu1 %v18019_v5  ;;  %4242 = vmatprep.subr.bf16.mxu0 %v18012_v37  ;;  %v20252_v37 = vld [vmem:[%s19313_s19 + $0x704] ss:$8 sps:$4 sm:$0xff]   ;;  %v2402_v36 = vpop.f32.mrf.mxu0 }
 0x1d7   : > { %4273 = vmatprep.subr.bf16.mxu1 %v20076_v6  ;;  %v18022_v6 = vld [vmem:[%s19313_s19 + $0x4f0] ss:$8 sps:$4 sm:$0xff]  }
 0x1d8   : > { %v2705_v18 = vpop.f32.mrf.mxu0 }
 0x1d9   : > { %3892 = vmatmul.mubr.bf16.vlgmr.msra.gmra.mxu1 %v20184_v53  ;;  %4243 = vmatpush2.bf16.msra.mxu0 %v18010_v19  ;;  %v18066_v19 = vld [vmem:[%s19313_s19 + $0x574] ss:$8 sps:$4 sm:$0xff]  }
 0x1da   : > { %4274 = vmatpush1.bf16.msra.mxu1 %v20080_v31  ;;  %4244 = vmatprep.subr.bf16.mxu0 %v18015_v14  ;;  %v20198_v31 = vld [vmem:[%s22359_s1 + $0x20] ss:$12 sps:$4 sm:$0xff]  }
 0x1db   : > { %4275 = vmatprep.subr.bf16.mxu1 %v20093_v42  ;;  %4293 = vmatprep.mubr.bf16.mxu1 %v19270_v0  ;;  %v18030_v42 = vld [vmem:[%s19313_s19 + $0x4d4] ss:$8 sps:$4 sm:$0xff]   ;;  %v18070_v14 = vld [vmem:[%s19313_s19 + $0x560] ss:$8 sps:$4 sm:$0xff]  }
 0x1dd   : > { %4245 = vmatpush2.bf16.msra.mxu0 %v18013_v60  ;;  %v20286_v60 = vld [vmem:[%s19313_s19 + $0x6d4] ss:$8 sps:$4 sm:$0xff]  }
 0x1de   : > { %4276 = vmatpush1.bf16.msra.mxu1 %v20097_v28  ;;  %4246 = vmatprep.subr.bf16.mxu0 %v18018_v40  ;;  %v18033_v28 = vld [vmem:[%s19313_s19 + $0x594] ss:$8 sps:$4 sm:$0xff]   ;;  %v18084_v40 = vld [vmem:[%s19313_s19 + $0x544] ss:$8 sps:$4 sm:$0xff]  }
 0x1df   : > { %4484 = vmatprep.subr.bf16.mxu1 %v18024_v25  ;;  %v18088_v25 = vld [vmem:[%s19313_s19 + $0x530] ss:$8 sps:$4 sm:$0xff]  }
 0x1e1   : > { %15213 = vmatmul.mubr.msk.bf16.vlgmr.msra.gmra.mxu1 %vm466_vm0, %v20198_v31  ;;  %4247 = vmatpush2.bf16.msra.mxu0 %v18016_v56  ;;  %v20301_v56 = vld [vmem:[%s19313_s19 + $0x6c0] ss:$8 sps:$4 sm:$0xff]  }
 0x1e2   : > { %4485 = vmatpush1.bf16.msra.mxu1 %v18022_v6  ;;  %4248 = vmatprep.subr.bf16.mxu0 %v18021_v63  ;;  %v18090_v63 = vld [vmem:[%s19313_s19 + $0x534] ss:$8 sps:$4 sm:$0xff]   ;;  %v20311_v6 = vld [vmem:[%s19313_s19 + $0x7b0] ss:$8 sps:$4 sm:$0xff]  }
 0x1e3   : > { %4486 = vmatprep.subr.bf16.mxu1 %v18027_v12  ;;  %4516 = vmatprep.mubr.bf16.mxu1 %v20209_v16  ;;  %v2707_v12 = vpop.f32.mrf.mxu0 }
 0x1e5   : > { %4249 = vmatpush2.bf16.msra.mxu0 %v18019_v5 }
 0x1e6   : > { %4487 = vmatpush1.bf16.msra.mxu1 %v18025_v45  ;;  %4539 = vmatprep.subr.bf16.mxu0 %v18033_v28  ;;  %v18096_v45 = vld [vmem:[%s19313_s19 + $0x524] ss:$8 sps:$4 sm:$0xff]  }
 0x1e7   : > { %4488 = vmatprep.subr.bf16.mxu1 %v18030_v42  ;;  %v20316_v42 = vld [vmem:[%s19313_s19 + $0x7a4] ss:$8 sps:$4 sm:$0xff]  }
 0x1e8   : > { %4251 = vmatmul.mubr.bf16.vlgmr.msra.gmra.mxu0 %v20051_v52  ;;  %v18048_v52 = vld [vmem:[%s19313_s19 + $0x4a4] ss:$8 sps:$4 sm:$0xff]  }
 0x1e9   : > { %4540 = vmatpush1.bf16.msra.mxu0 %v18031_v11  ;;  %4559 = vmatprep.mubr.bf16.mxu0 %v19270_v0  ;;  %v20321_v11 = vld [vmem:[%s19313_s19 + $0x7a0] ss:$8 sps:$4 sm:$0xff]  }
 0x1ea   : > { %4489 = vmatpush1.bf16.msra.mxu1 %v18028_v26  ;;  %4541 = vmatprep.subr.bf16.mxu0 %v18039_v8  ;;  %v18094_v26 = vld [vmem:[%s19313_s19 + $0x520] ss:$8 sps:$4 sm:$0xff]  }
 0x1eb   : > { %4490 = vmatprep.subr.bf16.mxu1 %v18036_v58  ;;  %v2709_v58 = vpop.f32.mrf.mxu0 }
 0x1ed   : > { %4542 = vmatpush1.bf16.msra.mxu0 %v18037_v20  ;;  %v20326_v20 = vld [vmem:[%s19313_s19 + $0x794] ss:$8 sps:$4 sm:$0xff]  }
 0x1ee   : > { %4491 = vmatpush1.bf16.msra.mxu1 %v18034_v21  ;;  %4787 = vmatprep.subr.bf16.mxu0 %v20219_v43  ;;  %v18102_v21 = vld [vmem:[%s19313_s19 + $0x514] ss:$8 sps:$4 sm:$0xff]  }
 0x1ef   : > { %4492 = vmatprep.subr.bf16.mxu1 %v18042_v48 }
 0x1f0   : > { %15250 = vmatmul.mubr.msk.bf16.vlgmr.msra.gmra.mxu0 %vm466_vm0, %v20070_v7  ;;  %v18060_v7 = vld [vmem:[%s19313_s19 + $0x484] ss:$8 sps:$4 sm:$0xff]  }
 0x1f1   : > { %4788 = vmatpush1.bf16.msra.mxu0 %v20224_v13  ;;  %4819 = vmatprep.mubr.bf16.mxu0 %v20085_v49  ;;  %v20259_v49 = vpop.f32.mrf.mxu1 }
 0x1f2   : > { %4493 = vmatpush1.bf16.msra.mxu1 %v18040_v55  ;;  %4789 = vmatprep.subr.bf16.mxu0 %v20229_v50  ;;  %v2440_v48 = vadd.f32 %v20259_v49, %v20261_v29 }
 0x1f3   : > { %4494 = vmatprep.subr.bf16.mxu1 %v18048_v52  ;;  %v2441_v59 = vpop.f32.mrf.mxu1 }
 0x1f4   : > { %v2442_v55 = vadd.f32 %v2441_v59, %v2398_v15 }
 0x1f5   : > { %4790 = vmatpush1.bf16.msra.mxu0 %v20236_v41  ;;  %v2443_v35 = vpop.f32.mrf.mxu1 }
 0x1f6   : > { %4495 = vmatpush1.bf16.msra.mxu1 %v18046_v54  ;;  %4791 = vmatprep.subr.bf16.mxu0 %v20241_v39  ;;  %v18100_v54 = vld [vmem:[%s19313_s19 + $0x510] ss:$8 sps:$4 sm:$0xff]  }
 0x1f7   : > { %4496 = vmatprep.subr.bf16.mxu1 %v18054_v57  ;;  %v2445_v24 = vpop.f32.mrf.mxu1  ;;  %v20333_v57 = vld [vmem:[%s19313_s19 + $0x790] ss:$8 sps:$4 sm:$0xff]  }
 0x1f8   : > { %v2446_v29 = vadd.f32 %v2445_v24, %v2402_v36  ;;  %v20350_v24 = vld [vmem:[%s19313_s19 + $0x7d4] ss:$8 sps:$4 sm:$0xff]  }
 0x1f9   : > { %4792 = vmatpush1.bf16.msra.mxu0 %v20245_v3 }
 0x1fa   : > { %4497 = vmatpush1.bf16.msra.mxu1 %v18052_v44  ;;  %4793 = vmatprep.subr.bf16.mxu0 %v20252_v37  ;;  %v2444_v44 = vadd.f32 %v2443_v35, %v2400_v2  ;;  %v18106_v35 = vld [vmem:[%s19313_s19 + $0x500] ss:$8 sps:$4 sm:$0xff]  }
 0x1fb   : > { %4498 = vmatprep.subr.bf16.mxu1 %v18060_v7  ;;  %v2711_v7 = vpop.f32.mrf.mxu0  ;;  %v20343_v2 = vld [vmem:[%s19313_s19 + $0x780] ss:$8 sps:$4 sm:$0xff]  }
 0x1fd   : > { %4794 = vmatpush1.bf16.msra.mxu0 %v20257_v61 }
 0x1fe   : > { %4499 = vmatpush1.bf16.msra.mxu1 %v18058_v33  ;;  %4795 = vmatprep.subr.bf16.mxu0 %v20266_v10 }
 0x1ff   : > { %4500 = vmatprep.subr.bf16.mxu1 %v18066_v19  ;;  %v18108_v19 = vld [vmem:[%s19313_s19 + $0x504] ss:$8 sps:$4 sm:$0xff]  }
 0x201   : > { %4796 = vmatpush1.bf16.msra.mxu0 %v20270_v22 }
 0x202   : > { %4501 = vmatpush2.bf16.msra.mxu1 %v18064_v4  ;;  %4797 = vmatprep.subr.bf16.mxu0 %v20275_v46  ;;  %v20338_v4 = vld [vmem:[%s19313_s19 + $0x784] ss:$8 sps:$4 sm:$0xff]  }
 0x203   : > { %4502 = vmatprep.subr.bf16.mxu1 %v18072_v30 }
 0x205   : > { %4798 = vmatpush1.bf16.msra.mxu0 %v20281_v23 }
 0x206   : > { %4503 = vmatpush2.bf16.msra.mxu1 %v18070_v14  ;;  %4799 = vmatprep.subr.bf16.mxu0 %v20286_v60 }
 0x207   : > { %4504 = vmatprep.subr.bf16.mxu1 %v18078_v17 }
 0x209   : > { %v2662_v47 = vpop.f32.mrf.mxu1  ;;  %4800 = vmatpush1.bf16.msra.mxu0 %v20291_v32 }
 0x20a   : > { %4505 = vmatpush2.bf16.msra.mxu1 %v18076_v27  ;;  %4801 = vmatprep.subr.bf16.mxu0 %v20296_v1  ;;  %v2663_v52 = vadd.f32 %v2662_v47, %v2440_v48  ;;  %v20347_v47 = vld [vmem:[%s19313_s19 + $0x774] ss:$8 sps:$4 sm:$0xff]  }
 0x20b   : > { %v2664_v38 = vpop.f32.mrf.mxu1  ;;  %4506 = vmatprep.subr.bf16.mxu1 %v18084_v40 }
 0x20c   : > { %v2665_v49 = vadd.f32 %v2664_v38, %v2442_v55  ;;  %v2706_v15 = vadd.f32 %v2705_v18, %v2663_v52 }
 0x20d   : > { %v2666_v5 = vpop.f32.mrf.mxu1  ;;  %4802 = vmatpush1.bf16.msra.mxu0 %v20301_v56 }
 0x20e   : > { %4507 = vmatpush2.bf16.msra.mxu1 %v18082_v51  ;;  %4803 = vmatprep.subr.bf16.mxu0 %v20306_v9  ;;  %v2667_v30 = vadd.f32 %v2666_v5, %v2444_v44  ;;  %v2708_v36 = vadd.f32 %v2707_v12, %v2665_v49  ;;  %v20361_v12 = vld [vmem:[%s19313_s19 + $0x764] ss:$8 sps:$4 sm:$0xff]  }
 0x20f   : > { %4508 = vmatprep.subr.bf16.mxu1 %v18090_v63  ;;  %v2668_v28 = vpop.f32.mrf.mxu1 }
 0x210   : > { %v2669_v17 = vadd.f32 %v2668_v28, %v2446_v29  ;;  %v2710_v38 = vadd.f32 %v2709_v58, %v2667_v30  ;;  %v20355_v28 = vld [vmem:[%s19313_s19 + $0x770] ss:$8 sps:$4 sm:$0xff]   ;;  %v18123_v58 = vld [vmem:[%s19313_s19 + $0x7c4] ss:$8 sps:$4 sm:$0xff]   ;;  %v20374_v30 = vld [vmem:[%s19313_s19 + $0x760] ss:$8 sps:$4 sm:$0xff]  }
 0x211   : > { %4804 = vmatpush2.bf16.msra.mxu0 %v20311_v6  ;;  %v3008_v8 = vpop.f32.mrf.mxu1 }
 0x212   : > { %4509 = vmatpush2.bf16.msra.mxu1 %v18088_v25  ;;  %4805 = vmatprep.subr.bf16.mxu0 %v20316_v42 }
 0x213   : > { %4510 = vmatprep.subr.bf16.mxu1 %v18096_v45  ;;  %v3010_v33 = vpop.f32.mrf.mxu1 }
 0x215   : > { %4806 = vmatpush2.bf16.msra.mxu0 %v20321_v11  ;;  %v3012_v27 = vpop.f32.mrf.mxu1 }
 0x216   : > { %4511 = vmatpush2.bf16.msra.mxu1 %v18094_v26  ;;  %4807 = vmatprep.subr.bf16.mxu0 %v20326_v20  ;;  %v18115_v26 = vld [vmem:[%s19313_s19 + $0x7d0] ss:$8 sps:$4 sm:$0xff]  }
 0x217   : > { %4512 = vmatprep.subr.bf16.mxu1 %v18102_v21  ;;  %v3014_v21 = vpop.f32.mrf.mxu1 }
 0x218   : > { %v2965_v59 = vpop.f32.mrf.mxu0 }
 0x219   : > { %v3009_v14 = vadd.f32 %v3008_v8, %v2965_v59  ;;  %4808 = vmatpush2.bf16.msra.mxu0 %v20333_v57  ;;  %v2712_v8 = vadd.f32 %v2711_v7, %v2669_v17  ;;  %v20368_v7 = vld [vmem:[%s22359_s1] ss:$12 sps:$4 sm:$0xff]  }
 0x21a   : > { %4513 = vmatpush2.bf16.msra.mxu1 %v18100_v54  ;;  %v2967_v40 = vpop.f32.mrf.mxu0  ;;  %4809 = vmatprep.subr.bf16.mxu0 %v20338_v4  ;;  %v18121_v59 = vld [vmem:[%s19313_s19 + $0x7c0] ss:$8 sps:$4 sm:$0xff]  }
 0x21b   : > { %4514 = vmatprep.subr.bf16.mxu1 %v18108_v19  ;;  %v3017_v51 = vadd.f32 %v3009_v14, %v2706_v15  ;;  %v3011_v18 = vadd.f32 %v3010_v33, %v2967_v40  ;;  %v20379_v15 = vld [vmem:[%s19313_s19 + $0x754] ss:$8 sps:$4 sm:$0xff]  }
 0x21c   : > { %v2969_v63 = vpop.f32.mrf.mxu0 }
 0x21d   : > { %v3021_v5 = vadd.f32 %v3017_v51, %v19929_v34  ;;  %v3018_v25 = vadd.f32 %v3011_v18, %v2708_v36  ;;  %v3013_v45 = vadd.f32 %v3012_v27, %v2969_v63  ;;  %4810 = vmatpush2.bf16.msra.mxu0 %v20343_v2  ;;  %v20388_v36 = vld [vmem:[%s19313_s19 + $0x750] ss:$8 sps:$4 sm:$0xff]   ;;  %v20393_v51 = vld [vmem:[%s19313_s19 + $0x744] ss:$8 sps:$4 sm:$0xff]   ;;  %v20415_v63 = vld [vmem:[%s22359_s1 + $0x1c] ss:$12 sps:$4 sm:$0xff]  }
 0x21e   : > { %4515 = vmatpush2.bf16.msra.mxu1 %v18106_v35  ;;  %v2971_v48 = vpop.f32.mrf.mxu0  ;;  %4811 = vmatprep.subr.bf16.mxu0 %v20347_v47 }
 0x21f   : > { %4842 = vmatprep.subr.bf16.mxu1 %v20350_v24  ;;  %v3025_v55 = vmax.f32 %v3021_v5, -1.0  ;;  %v3022_v52 = vadd.f32 %v3018_v25, %v19929_v34  ;;  %v3019_v54 = vadd.f32 %v3013_v45, %v2710_v38  ;;  %v3015_v44 = vadd.f32 %v3014_v21, %v2971_v48  ;;  %v20399_v38 = vld [vmem:[%s22359_s1 + $0x38] ss:$12 sps:$4 sm:$0xff]   ;;  %v18183_v21 = vld [vmem:[%s19313_s19 + $0x854] ss:$8 sps:$4 sm:$0xff]  }
 0x220   : > { %v18174_v5 = vld [vmem:[%s19313_s19 + $0x644] ss:$8 sps:$4 sm:$0xff]   ;;  %v18178_v48 = vld [vmem:[%s19313_s19 + $0x630] ss:$8 sps:$4 sm:$0xff]  }
 0x221   : > { %4517 = vmatmul.mubr.bf16.vlgmr.msra.gmra.mxu1 %v20368_v7  ;;  %v3029_v33 = vmul.f32 0.5, %v3025_v55  ;;  %v3026_v19 = vmax.f32 %v3022_v52, -1.0  ;;  %v3023_v49 = vadd.f32 %v3019_v54, %v19955_v62  ;;  %v3020_v29 = vadd.f32 %v3015_v44, %v2712_v8  ;;  %4812 = vmatpush2.bf16.msra.mxu0 %v20355_v28  ;;  %v18177_v25 = vld [vmem:[%s19313_s19 + $0x6a4] ss:$8 sps:$4 sm:$0xff]   ;;  %v18180_v8 = vld [vmem:[%s19313_s19 + $0x634] ss:$8 sps:$4 sm:$0xff]  }
 0x222   : > { %4843 = vmatpush1.bf16.msra.mxu1 %v18115_v26  ;;  %4813 = vmatprep.subr.bf16.mxu0 %v20361_v12  ;;  %v20487_v45 = vld [vmem:[%s22359_s1 + $0x18] ss:$12 sps:$4 sm:$0xff]   ;;  %v20502_v52 = vld [vmem:[%s22359_s1 + $0x8] ss:$12 sps:$4 sm:$0xff]  }
 0x223   : > { %4844 = vmatprep.subr.bf16.mxu1 %v18123_v58  ;;  %14878 = vst [vmem:[%s19963_s9 + $0x40] sm:$0xff] %v3029_v33  ;;  %v3030_v14 = vmul.f32 0.5, %v3026_v19  ;;  %v3027_v35 = vmax.f32 %v3023_v49, -1.0  ;;  %v3024_v17 = vadd.f32 %v3020_v29, %v19955_v62  ;;  %4862 = vmatprep.mubr.bf16.mxu1 %v19270_v0  ;;  %v18189_v55 = vld [vmem:[%s19313_s19 + $0x844] ss:$8 sps:$4 sm:$0xff]   ;;  %v20518_v29 = vpop.f32.mrf.mxu0 }
 0x224   : > { %v18184_v54 = vld [vmem:[%s19313_s19 + $0x620] ss:$8 sps:$4 sm:$0xff]   ;;  %v18192_v33 = vld [vmem:[%s19313_s19 + $0x834] ss:$8 sps:$4 sm:$0xff]  }
 0x225   : > { %14879 = vst.msk [vmem:[%s19963_s9 + $0x48] sm:$0xff] %vm1178_vm1, %v3030_v14  ;;  %v3031_v27 = vmul.f32 0.5, %v3027_v35  ;;  %v3028_v40 = vmax.f32 %v3024_v17, -1.0  ;;  %4814 = vmatpush2.bf16.msra.mxu0 %v20374_v30  ;;  %v18187_v44 = vld [vmem:[%s19313_s19 + $0x840] ss:$8 sps:$4 sm:$0xff]   ;;  %v20529_v35 = vpop.f32.mrf.mxu0 }
 0x226   : > { %4845 = vmatpush1.bf16.msra.mxu1 %v18121_v59  ;;  %4815 = vmatprep.subr.bf16.mxu0 %v20379_v15  ;;  %v20510_v19 = vld [vmem:[%s19313_s19 + $0x8f4] ss:$8 sps:$4 sm:$0xff]   ;;  %v20527_v14 = vld [vmem:[%s19313_s19 + $0x8e4] ss:$8 sps:$4 sm:$0xff]   ;;  %v18196_v17 = vld [vmem:[%s19313_s19 + $0x820] ss:$8 sps:$4 sm:$0xff]  }
 0x227   : > { %5146 = vmatprep.subr.bf16.mxu1 %v20219_v43  ;;  %14880 = vst [vmem:[%s19963_s9 + $0x50] sm:$0xff] %v3031_v27  ;;  %v3032_v18 = vmul.f32 0.5, %v3028_v40  ;;  %v20408_v43 = vld [vmem:[%s19313_s19 + $0x740] ss:$8 sps:$4 sm:$0xff]   ;;  %v18204_v40 = vld [vmem:[%s19313_s19 + $0x814] ss:$8 sps:$4 sm:$0xff]  }
 0x228   : > { %v20515_v49 = vld [vmem:[%s22359_s1 + $0x34] ss:$12 sps:$4 sm:$0xff]  }
 0x229   : > { %15323 = vmatmul.mubr.msk.bf16.vlgmr.msra.gmra.mxu1 %vm466_vm0, %v20399_v38  ;;  %14881 = vst.msk [vmem:[%s19963_s9 + $0x58] sm:$0xff] %vm1178_vm1, %v3032_v18  ;;  %4816 = vmatpush2.bf16.msra.mxu0 %v20388_v36  ;;  %v20535_v27 = vld [vmem:[%s19313_s19 + $0x8e0] ss:$8 sps:$4 sm:$0xff]   ;;  %v18202_v18 = vld [vmem:[%s19313_s19 + $0x810] ss:$8 sps:$4 sm:$0xff]  }
 0x22a   : > { %5147 = vmatpush1.bf16.msra.mxu1 %v20224_v13  ;;  %4817 = vmatprep.subr.bf16.mxu0 %v20393_v51  ;;  %v18132_v13 = vld [vmem:[%s19313_s19 + $0x614] ss:$8 sps:$4 sm:$0xff]  }
 0x22b   : > { %5148 = vmatprep.subr.bf16.mxu1 %v20229_v50  ;;  %5178 = vmatprep.mubr.bf16.mxu1 %v20415_v63  ;;  %v18130_v50 = vld [vmem:[%s19313_s19 + $0x610] ss:$8 sps:$4 sm:$0xff]  }
 0x22d   : > { %4818 = vmatpush2.bf16.msra.mxu0 %v20408_v43 }
 0x22e   : > { %5149 = vmatpush1.bf16.msra.mxu1 %v20236_v41  ;;  %5201 = vmatprep.subr.bf16.mxu0 %v20350_v24  ;;  %v18133_v41 = vld [vmem:[%s19313_s19 + $0x600] ss:$8 sps:$4 sm:$0xff]   ;;  %v18169_v24 = vld [vmem:[%s19313_s19 + $0x6b0] ss:$8 sps:$4 sm:$0xff]  }
 0x22f   : > { %5150 = vmatprep.subr.bf16.mxu1 %v20241_v39  ;;  %v18138_v39 = vld [vmem:[%s19313_s19 + $0x5f4] ss:$8 sps:$4 sm:$0xff]  }
 0x230   : > { %4820 = vmatmul.mubr.bf16.vlgmr.msra.gmra.mxu0 %v20184_v53  ;;  %v18135_v53 = vld [vmem:[%s19313_s19 + $0x604] ss:$8 sps:$4 sm:$0xff]  }
 0x231   : > { %5202 = vmatpush1.bf16.msra.mxu0 %v18115_v26  ;;  %5221 = vmatprep.mubr.bf16.mxu0 %v19270_v0  ;;  %v18175_v26 = vld [vmem:[%s19313_s19 + $0x6a0] ss:$8 sps:$4 sm:$0xff]  }
 0x232   : > { %5151 = vmatpush1.bf16.msra.mxu1 %v20245_v3  ;;  %5203 = vmatprep.subr.bf16.mxu0 %v18123_v58  ;;  %v18136_v3 = vld [vmem:[%s19313_s19 + $0x5f0] ss:$8 sps:$4 sm:$0xff]   ;;  %v18186_v58 = vld [vmem:[%s19313_s19 + $0x624] ss:$8 sps:$4 sm:$0xff]  }
 0x233   : > { %5152 = vmatprep.subr.bf16.mxu1 %v20252_v37  ;;  %v18139_v37 = vld [vmem:[%s19313_s19 + $0x5e0] ss:$8 sps:$4 sm:$0xff]  }
 0x235   : > { %5204 = vmatpush1.bf16.msra.mxu0 %v18121_v59  ;;  %v20522_v59 = vld [vmem:[%s19313_s19 + $0x8f0] ss:$8 sps:$4 sm:$0xff]  }
 0x236   : > { %5153 = vmatpush1.bf16.msra.mxu1 %v20257_v61  ;;  %5412 = vmatprep.subr.bf16.mxu0 %v18132_v13  ;;  %v18142_v61 = vld [vmem:[%s19313_s19 + $0x5d0] ss:$8 sps:$4 sm:$0xff]  }
 0x237   : > { %5154 = vmatprep.subr.bf16.mxu1 %v20266_v10  ;;  %v18147_v10 = vld [vmem:[%s19313_s19 + $0x5c4] ss:$8 sps:$4 sm:$0xff]  }
 0x238   : > { %15436 = vmatmul.mubr.msk.bf16.vlgmr.msra.gmra.mxu0 %vm466_vm0, %v20198_v31  ;;  %v18141_v31 = vld [vmem:[%s19313_s19 + $0x5e4] ss:$8 sps:$4 sm:$0xff]  }
 0x239   : > { %5413 = vmatpush1.bf16.msra.mxu0 %v18130_v50  ;;  %5444 = vmatprep.mubr.bf16.mxu0 %v20209_v16  ;;  %v18144_v16 = vld [vmem:[%s19313_s19 + $0x5d4] ss:$8 sps:$4 sm:$0xff]  }
 0x23a   : > { %5155 = vmatpush1.bf16.msra.mxu1 %v20270_v22  ;;  %5414 = vmatprep.subr.bf16.mxu0 %v18135_v53  ;;  %v18145_v22 = vld [vmem:[%s19313_s19 + $0x5c0] ss:$8 sps:$4 sm:$0xff]  }
 0x23b   : > { %5156 = vmatprep.subr.bf16.mxu1 %v20275_v46  ;;  %v18150_v46 = vld [vmem:[%s19313_s19 + $0x5b4] ss:$8 sps:$4 sm:$0xff]   ;;  %v18205_v53 = vld [vmem:[%s19313_s19 + $0x800] ss:$8 sps:$4 sm:$0xff]  }
 0x23d   : > { %5415 = vmatpush1.bf16.msra.mxu0 %v18133_v41 }
 0x23e   : > { %5157 = vmatpush1.bf16.msra.mxu1 %v20281_v23  ;;  %5416 = vmatprep.subr.bf16.mxu0 %v18138_v39  ;;  %v18148_v23 = vld [vmem:[%s19313_s19 + $0x5b0] ss:$8 sps:$4 sm:$0xff]   ;;  %v18210_v39 = vld [vmem:[%s19313_s19 + $0x7f4] ss:$8 sps:$4 sm:$0xff]  }
 0x23f   : > { %5158 = vmatprep.subr.bf16.mxu1 %v20286_v60  ;;  %v18153_v60 = vld [vmem:[%s19313_s19 + $0x5a4] ss:$8 sps:$4 sm:$0xff]  }
 0x241   : > { %5417 = vmatpush1.bf16.msra.mxu0 %v18136_v3 }
 0x242   : > { %5159 = vmatpush1.bf16.msra.mxu1 %v20291_v32  ;;  %5418 = vmatprep.subr.bf16.mxu0 %v18141_v31  ;;  %v18151_v32 = vld [vmem:[%s19313_s19 + $0x5a0] ss:$8 sps:$4 sm:$0xff]   ;;  %v18208_v31 = vld [vmem:[%s19313_s19 + $0x7f0] ss:$8 sps:$4 sm:$0xff]  }
 0x243   : > { %5160 = vmatprep.subr.bf16.mxu1 %v20296_v1  ;;  %v18156_v1 = vld [vmem:[%s19313_s19 + $0x694] ss:$8 sps:$4 sm:$0xff]  }
 0x245   : > { %5419 = vmatpush1.bf16.msra.mxu0 %v18139_v37 }
 0x246   : > { %5161 = vmatpush1.bf16.msra.mxu1 %v20301_v56  ;;  %5420 = vmatprep.subr.bf16.mxu0 %v18144_v16  ;;  %v18154_v56 = vld [vmem:[%s19313_s19 + $0x690] ss:$8 sps:$4 sm:$0xff]   ;;  %v18213_v16 = vld [vmem:[%s19313_s19 + $0x7e4] ss:$8 sps:$4 sm:$0xff]  }
 0x247   : > { %5162 = vmatprep.subr.bf16.mxu1 %v20306_v9  ;;  %v18159_v9 = vld [vmem:[%s19313_s19 + $0x684] ss:$8 sps:$4 sm:$0xff]  }
 0x249   : > { %5421 = vmatpush1.bf16.msra.mxu0 %v18142_v61 }
 0x24a   : > { %5163 = vmatpush2.bf16.msra.mxu1 %v20311_v6  ;;  %5422 = vmatprep.subr.bf16.mxu0 %v18147_v10  ;;  %v18157_v6 = vld [vmem:[%s19313_s19 + $0x680] ss:$8 sps:$4 sm:$0xff]  }
 0x24b   : > { %5164 = vmatprep.subr.bf16.mxu1 %v20316_v42  ;;  %v18162_v42 = vld [vmem:[%s19313_s19 + $0x674] ss:$8 sps:$4 sm:$0xff]   ;;  %v18211_v10 = vld [vmem:[%s19313_s19 + $0x7e0] ss:$8 sps:$4 sm:$0xff]  }
 0x24d   : > { %5423 = vmatpush1.bf16.msra.mxu0 %v18145_v22 }
 0x24e   : > { %5165 = vmatpush2.bf16.msra.mxu1 %v20321_v11  ;;  %5424 = vmatprep.subr.bf16.mxu0 %v18150_v46  ;;  %v18160_v11 = vld [vmem:[%s19313_s19 + $0x670] ss:$8 sps:$4 sm:$0xff]  }
 0x24f   : > { %5166 = vmatprep.subr.bf16.mxu1 %v20326_v20  ;;  %v18165_v20 = vld [vmem:[%s19313_s19 + $0x664] ss:$8 sps:$4 sm:$0xff]  }
 0x251   : > { %5425 = vmatpush1.bf16.msra.mxu0 %v18148_v23  ;;  %v18216_v23 = vld [vmem:[%s19313_s19 + $0x8d4] ss:$8 sps:$4 sm:$0xff]  }
 0x252   : > { %5167 = vmatpush2.bf16.msra.mxu1 %v20333_v57  ;;  %5426 = vmatprep.subr.bf16.mxu0 %v18153_v60  ;;  %v18163_v57 = vld [vmem:[%s19313_s19 + $0x660] ss:$8 sps:$4 sm:$0xff]   ;;  %v20553_v60 = vld [vmem:[%s19313_s19 + $0x8d0] ss:$8 sps:$4 sm:$0xff]  }
 0x253   : > { %5168 = vmatprep.subr.bf16.mxu1 %v20338_v4  ;;  %v18168_v4 = vld [vmem:[%s19313_s19 + $0x654] ss:$8 sps:$4 sm:$0xff]  }
 0x255   : > { %5427 = vmatpush1.bf16.msra.mxu0 %v18151_v32 }
 0x256   : > { %5169 = vmatpush2.bf16.msra.mxu1 %v20343_v2  ;;  %5428 = vmatprep.subr.bf16.mxu0 %v18156_v1  ;;  %v18171_v2 = vld [vmem:[%s19313_s19 + $0x6b4] ss:$8 sps:$4 sm:$0xff]  }
 0x257   : > { %5170 = vmatprep.subr.bf16.mxu1 %v20347_v47  ;;  %v18166_v47 = vld [vmem:[%s19313_s19 + $0x650] ss:$8 sps:$4 sm:$0xff]  }
 0x259   : > { %5429 = vmatpush2.bf16.msra.mxu0 %v18154_v56  ;;  %v20556_v56 = vld [vmem:[%s19313_s19 + $0x8c4] ss:$8 sps:$4 sm:$0xff]  }
 0x25a   : > { %5171 = vmatpush2.bf16.msra.mxu1 %v20355_v28  ;;  %5430 = vmatprep.subr.bf16.mxu0 %v18159_v9  ;;  %v18172_v28 = vld [vmem:[%s19313_s19 + $0x640] ss:$8 sps:$4 sm:$0xff]  }
 0x25b   : > { %5172 = vmatprep.subr.bf16.mxu1 %v20361_v12  ;;  %v18181_v12 = vld [vmem:[%s19313_s19 + $0x850] ss:$8 sps:$4 sm:$0xff]   ;;  %v20560_v9 = vld [vmem:[%s19313_s19 + $0x8c0] ss:$8 sps:$4 sm:$0xff]  }
 0x25d   : > { %5431 = vmatpush2.bf16.msra.mxu0 %v18157_v6 }
 0x25e   : > { %5173 = vmatpush2.bf16.msra.mxu1 %v20374_v30  ;;  %5432 = vmatprep.subr.bf16.mxu0 %v18162_v42  ;;  %v18190_v30 = vld [vmem:[%s19313_s19 + $0x830] ss:$8 sps:$4 sm:$0xff]  }
 0x25f   : > { %5174 = vmatprep.subr.bf16.mxu1 %v20379_v15  ;;  %v18198_v15 = vld [vmem:[%s19313_s19 + $0x824] ss:$8 sps:$4 sm:$0xff]  }
 0x261   : > { %5433 = vmatpush2.bf16.msra.mxu0 %v18160_v11  ;;  %v20564_v11 = vld [vmem:[%s19313_s19 + $0x8b4] ss:$8 sps:$4 sm:$0xff]  }
 0x262   : > { %5175 = vmatpush2.bf16.msra.mxu1 %v20388_v36  ;;  %5434 = vmatprep.subr.bf16.mxu0 %v18165_v20  ;;  %v3371_v36 = vpop.f32.mrf.mxu0 }
 0x263   : > { %5176 = vmatprep.subr.bf16.mxu1 %v20393_v51  ;;  %v3324_v51 = vpop.f32.mrf.mxu1 }
 0x264   : > { %v3373_v13 = vpop.f32.mrf.mxu0  ;;  %v3368_v20 = vadd.f32 %v20518_v29, %v3324_v51 }
 0x265   : > { %5435 = vmatpush2.bf16.msra.mxu0 %v18163_v57  ;;  %v3326_v50 = vpop.f32.mrf.mxu1 }
 0x266   : > { %5177 = vmatpush2.bf16.msra.mxu1 %v20408_v43  ;;  %5436 = vmatprep.subr.bf16.mxu0 %v18168_v4  ;;  %v18207_v43 = vld [vmem:[%s19313_s19 + $0x804] ss:$8 sps:$4 sm:$0xff]   ;;  %v3590_v41 = vpop.f32.mrf.mxu0  ;;  %v3370_v57 = vadd.f32 %v20529_v35, %v3326_v50 }
 0x267   : > { %5467 = vmatprep.subr.bf16.mxu1 %v18171_v2  ;;  %v3328_v3 = vpop.f32.mrf.mxu1  ;;  %v3591_v4 = vadd.f32 %v3590_v41, %v3368_v20  ;;  %v20570_v2 = vld [vmem:[%s19313_s19 + $0x8b0] ss:$8 sps:$4 sm:$0xff]  }
 0x268   : > { %v3592_v37 = vpop.f32.mrf.mxu0 }
 0x269   : > { %5179 = vmatmul.mubr.bf16.vlgmr.msra.gmra.mxu1 %v20487_v45  ;;  %5437 = vmatpush2.bf16.msra.mxu0 %v18166_v47  ;;  %v3330_v61 = vpop.f32.mrf.mxu1  ;;  %v3372_v47 = vadd.f32 %v3371_v36, %v3328_v3 }
 0x26a   : > { %5468 = vmatpush1.bf16.msra.mxu1 %v18169_v24  ;;  %5438 = vmatprep.subr.bf16.mxu0 %v18174_v5  ;;  %v3594_v46 = vpop.f32.mrf.mxu0 }
 0x26b   : > { %5469 = vmatprep.subr.bf16.mxu1 %v18177_v25  ;;  %5487 = vmatprep.mubr.bf16.mxu1 %v19270_v0  ;;  %v3633_v22 = vpop.f32.mrf.mxu1  ;;  %v20574_v25 = vld [vmem:[%s19313_s19 + $0x8a4] ss:$8 sps:$4 sm:$0xff]  }
 0x26c   : > { %v3596_v1 = vpop.f32.mrf.mxu0 }
 0x26d   : > { %5439 = vmatpush2.bf16.msra.mxu0 %v18172_v28  ;;  %v3635_v32 = vpop.f32.mrf.mxu1  ;;  %v3593_v28 = vadd.f32 %v3592_v37, %v3370_v57  ;;  %v18235_v57 = vld [vmem:[%s19313_s19 + $0x860] ss:$8 sps:$4 sm:$0xff]  }
 0x26e   : > { %5470 = vmatpush1.bf16.msra.mxu1 %v18175_v26  ;;  %5440 = vmatprep.subr.bf16.mxu0 %v18180_v8  ;;  %v3936_v42 = vpop.f32.mrf.mxu0  ;;  %v3374_v26 = vadd.f32 %v3373_v13, %v3330_v61  ;;  %v3595_v8 = vadd.f32 %v3594_v46, %v3372_v47  ;;  %v18234_v46 = vld [vmem:[%s19313_s19 + $0x874] ss:$8 sps:$4 sm:$0xff]   ;;  %v20630_v47 = vld [vmem:[%s22359_s1 + $0x4] ss:$12 sps:$4 sm:$0xff]  }
 0x26f   : > { %5715 = vmatprep.subr.bf16.mxu1 %v18183_v21  ;;  %v3637_v6 = vpop.f32.mrf.mxu1  ;;  %v3636_v29 = vadd.f32 %v3635_v32, %v3593_v28  ;;  %v18255_v28 = vld [vmem:[%s19313_s19 + $0x7c4] ss:$8 sps:$4 sm:$0xff]  }
 0x270   : > { %v3938_v5 = vpop.f32.mrf.mxu0  ;;  %v3638_v35 = vadd.f32 %v3637_v6, %v3595_v8  ;;  %v18253_v8 = vld [vmem:[%s19313_s19 + $0x7c0] ss:$8 sps:$4 sm:$0xff]  }
 0x271   : > { %15473 = vmatmul.mubr.msk.bf16.vlgmr.msra.gmra.mxu1 %vm466_vm0, %v20502_v52  ;;  %5441 = vmatpush2.bf16.msra.mxu0 %v18178_v48  ;;  %v3639_v24 = vpop.f32.mrf.mxu1  ;;  %v3634_v48 = vadd.f32 %v3633_v22, %v3591_v4  ;;  %v18229_v22 = vld [vmem:[%s19313_s19 + $0x880] ss:$8 sps:$4 sm:$0xff]   ;;  %v18243_v4 = vld [vmem:[%s19313_s19 + $0x724] ss:$8 sps:$4 sm:$0xff]  }
 0x272   : > { %5716 = vmatpush1.bf16.msra.mxu1 %v18181_v12  ;;  %5442 = vmatprep.subr.bf16.mxu0 %v18186_v58  ;;  %v18223_v58 = vld [vmem:[%s19313_s19 + $0x8a0] ss:$8 sps:$4 sm:$0xff]  }
 0x273   : > { %5717 = vmatprep.subr.bf16.mxu1 %v18189_v55  ;;  %5747 = vmatprep.mubr.bf16.mxu1 %v20515_v49 }
 0x275   : > { %5443 = vmatpush2.bf16.msra.mxu0 %v18184_v54  ;;  %v3940_v54 = vpop.f32.mrf.mxu0 }
 0x276   : > { %5718 = vmatpush1.bf16.msra.mxu1 %v18187_v44  ;;  %5770 = vmatprep.subr.bf16.mxu0 %v20510_v19 }
 0x277   : > { %5719 = vmatprep.subr.bf16.mxu1 %v18192_v33  ;;  %v3942_v13 = vpop.f32.mrf.mxu0 }
 0x278   : > { %5445 = vmatmul.mubr.bf16.vlgmr.msra.gmra.mxu0 %v20368_v7 }
 0x279   : > { %5771 = vmatpush1.bf16.msra.mxu0 %v20522_v59  ;;  %5790 = vmatprep.mubr.bf16.mxu0 %v19270_v0 }
 0x27a   : > { %5720 = vmatpush1.bf16.msra.mxu1 %v18190_v30  ;;  %5772 = vmatprep.subr.bf16.mxu0 %v20527_v14 }
 0x27b   : > { %5721 = vmatprep.subr.bf16.mxu1 %v18198_v15 }
 0x27d   : > { %5773 = vmatpush1.bf16.msra.mxu0 %v20535_v27 }
 0x27e   : > { %5722 = vmatpush1.bf16.msra.mxu1 %v18196_v17  ;;  %6074 = vmatprep.subr.bf16.mxu0 %v18183_v21 }
 0x27f   : > { %5723 = vmatprep.subr.bf16.mxu1 %v18204_v40 }
 0x280   : > { %15546 = vmatmul.mubr.msk.bf16.vlgmr.msra.gmra.mxu0 %vm466_vm0, %v20399_v38 }
 0x281   : > { %6075 = vmatpush1.bf16.msra.mxu0 %v18181_v12  ;;  %6106 = vmatprep.mubr.bf16.mxu0 %v20415_v63 }
 0x282   : > { %5724 = vmatpush1.bf16.msra.mxu1 %v18202_v18  ;;  %6076 = vmatprep.subr.bf16.mxu0 %v18189_v55  ;;  %v3597_v55 = vadd.f32 %v3596_v1, %v3374_v26  ;;  %v18250_v26 = vld [vmem:[%s19313_s19 + $0x700] ss:$8 sps:$4 sm:$0xff]  }
 0x283   : > { %5725 = vmatprep.subr.bf16.mxu1 %v18207_v43 }
 0x285   : > { %6077 = vmatpush1.bf16.msra.mxu0 %v18187_v44 }
 0x286   : > { %5726 = vmatpush1.bf16.msra.mxu1 %v18205_v53  ;;  %6078 = vmatprep.subr.bf16.mxu0 %v18192_v33  ;;  %v18228_v33 = vld [vmem:[%s19313_s19 + $0x894] ss:$8 sps:$4 sm:$0xff]  }
 0x287   : > { %5727 = vmatprep.subr.bf16.mxu1 %v18210_v39 }
 0x289   : > { %6079 = vmatpush1.bf16.msra.mxu0 %v18190_v30 }
 0x28a   : > { %5728 = vmatpush1.bf16.msra.mxu1 %v18208_v31  ;;  %6080 = vmatprep.subr.bf16.mxu0 %v18198_v15 }
 0x28b   : > { %5729 = vmatprep.subr.bf16.mxu1 %v18213_v16 }
 0x28d   : > { %6081 = vmatpush1.bf16.msra.mxu0 %v18196_v17 }
 0x28e   : > { %5730 = vmatpush1.bf16.msra.mxu1 %v18211_v10  ;;  %6082 = vmatprep.subr.bf16.mxu0 %v18204_v40 }
 0x28f   : > { %5731 = vmatprep.subr.bf16.mxu1 %v18216_v23 }
 0x291   : > { %6083 = vmatpush1.bf16.msra.mxu0 %v18202_v18  ;;  %v18226_v18 = vld [vmem:[%s19313_s19 + $0x890] ss:$8 sps:$4 sm:$0xff]  }
 0x292   : > { %5732 = vmatpush2.bf16.msra.mxu1 %v20553_v60  ;;  %6084 = vmatprep.subr.bf16.mxu0 %v18207_v43  ;;  %v3640_v43 = vadd.f32 %v3639_v24, %v3597_v55  ;;  %v18244_v24 = vld [vmem:[%s19313_s19 + $0x710] ss:$8 sps:$4 sm:$0xff]   ;;  %v18264_v55 = vld [vmem:[%s19313_s19 + $0x6e4] ss:$8 sps:$4 sm:$0xff]  }
 0x293   : > { %5733 = vmatprep.subr.bf16.mxu1 %v20556_v56 }
 0x295   : > { %6085 = vmatpush1.bf16.msra.mxu0 %v18205_v53  ;;  %v18231_v53 = vld [vmem:[%s19313_s19 + $0x884] ss:$8 sps:$4 sm:$0xff]  }
 0x296   : > { %5734 = vmatpush2.bf16.msra.mxu1 %v20560_v9  ;;  %6086 = vmatprep.subr.bf16.mxu0 %v18210_v39 }
 0x297   : > { %5735 = vmatprep.subr.bf16.mxu1 %v20564_v11 }
 0x299   : > { %v3893_v21 = vpop.f32.mrf.mxu1  ;;  %6087 = vmatpush1.bf16.msra.mxu0 %v18208_v31 }
 0x29a   : > { %v3937_v12 = vadd.f32 %v3936_v42, %v3893_v21  ;;  %5736 = vmatpush2.bf16.msra.mxu1 %v20570_v2  ;;  %6088 = vmatprep.subr.bf16.mxu0 %v18213_v16  ;;  %v18258_v21 = vld [vmem:[%s19313_s19 + $0x6f4] ss:$8 sps:$4 sm:$0xff]  }
 0x29b   : > { %v3895_v44 = vpop.f32.mrf.mxu1  ;;  %5737 = vmatprep.subr.bf16.mxu1 %v20574_v25 }
 0x29c   : > { %v3945_v30 = vadd.f32 %v3937_v12, %v3634_v48  ;;  %v3939_v15 = vadd.f32 %v3938_v5, %v3895_v44  ;;  %v18247_v5 = vld [vmem:[%s19313_s19 + $0x7d0] ss:$8 sps:$4 sm:$0xff]   ;;  %v20642_v48 = vld [vmem:[%s19313_s19 + $0x974] ss:$8 sps:$4 sm:$0xff]   ;;  %v18262_v44 = vld [vmem:[%s19313_s19 + $0x6e0] ss:$8 sps:$4 sm:$0xff]  }
 0x29d   : > { %v3897_v17 = vpop.f32.mrf.mxu1  ;;  %6089 = vmatpush1.bf16.msra.mxu0 %v18211_v10  ;;  %v18256_v12 = vld [vmem:[%s19313_s19 + $0x6f0] ss:$8 sps:$4 sm:$0xff]  }
 0x29e   : > { %v3949_v40 = vadd.f32 %v3945_v30, %v19929_v34  ;;  %v3946_v36 = vadd.f32 %v3939_v15, %v3636_v29  ;;  %v3941_v51 = vadd.f32 %v3940_v54, %v3897_v17  ;;  %5738 = vmatpush2.bf16.msra.mxu1 %v18223_v58  ;;  %6090 = vmatprep.subr.bf16.mxu0 %v18216_v23  ;;  %v20652_v54 = vld [vmem:[%s19313_s19 + $0x964] ss:$8 sps:$4 sm:$0xff]   ;;  %v18270_v29 = vld [vmem:[%s19313_s19 + $0x6d4] ss:$8 sps:$4 sm:$0xff]   ;;  %v18268_v15 = vld [vmem:[%s19313_s19 + $0x6d0] ss:$8 sps:$4 sm:$0xff]  }
 0x29f   : > { %v3899_v50 = vpop.f32.mrf.mxu1  ;;  %5739 = vmatprep.subr.bf16.mxu1 %v18228_v33  ;;  %v20664_v30 = vld [vmem:[%s19313_s19 + $0x954] ss:$8 sps:$4 sm:$0xff]   ;;  %v18276_v17 = vld [vmem:[%s19313_s19 + $0x6c4] ss:$8 sps:$4 sm:$0xff]  }
 0x2a0   : > { %v3953_v41 = vmax.f32 %v3949_v40, -1.0  ;;  %v3950_v39 = vadd.f32 %v3946_v36, %v19929_v34  ;;  %v3947_v3 = vadd.f32 %v3941_v51, %v3638_v35  ;;  %v3943_v31 = vadd.f32 %v3942_v13, %v3899_v50  ;;  %v20670_v35 = vld [vmem:[%s19313_s19 + $0x950] ss:$8 sps:$4 sm:$0xff]   ;;  %v20675_v40 = vld [vmem:[%s19313_s19 + $0x944] ss:$8 sps:$4 sm:$0xff]  }
 0x2a1   : > { %6091 = vmatpush2.bf16.msra.mxu0 %v20553_v60  ;;  %v18232_v60 = vld [vmem:[%s19313_s19 + $0x870] ss:$8 sps:$4 sm:$0xff]   ;;  %v18274_v36 = vld [vmem:[%s19313_s19 + $0x6c0] ss:$8 sps:$4 sm:$0xff]   ;;  %v18282_v13 = vld [vmem:[%s19313_s19 + $0x7b4] ss:$8 sps:$4 sm:$0xff]  }
 0x2a2   : > { %v3957_v37 = vmul.f32 0.5, %v3953_v41  ;;  %v3954_v16 = vmax.f32 %v3950_v39, -1.0  ;;  %v3951_v61 = vadd.f32 %v3947_v3, %v19955_v62  ;;  %v3948_v10 = vadd.f32 %v3943_v31, %v3640_v43  ;;  %5740 = vmatpush2.bf16.msra.mxu1 %v18226_v18  ;;  %6092 = vmatprep.subr.bf16.mxu0 %v20556_v56  ;;  %v18237_v56 = vld [vmem:[%s19313_s19 + $0x864] ss:$8 sps:$4 sm:$0xff]   ;;  %v20680_v51 = vld [vmem:[%s19313_s19 + $0x940] ss:$8 sps:$4 sm:$0xff]  }
 0x2a3   : > { %5741 = vmatprep.subr.bf16.mxu1 %v18231_v53  ;;  %v20689_v50 = vld [vmem:[%s19313_s19 + $0x934] ss:$8 sps:$4 sm:$0xff]   ;;  %v20694_v41 = vld [vmem:[%s19313_s19 + $0x930] ss:$8 sps:$4 sm:$0xff]   ;;  %v18288_v31 = vld [vmem:[%s19313_s19 + $0x7a4] ss:$8 sps:$4 sm:$0xff]  }
 0x2a4   : > { %15101 = vst [vmem:[%s19963_s9 + $0x60] sm:$0xff] %v3957_v37  ;;  %v3958_v23 = vmul.f32 0.5, %v3954_v16  ;;  %v3955_v32 = vmax.f32 %v3951_v61, -1.0  ;;  %v3952_v1 = vadd.f32 %v3948_v10, %v19955_v62  ;;  %v20699_v37 = vld [vmem:[%s19313_s19 + $0x924] ss:$8 sps:$4 sm:$0xff]  }
 0x2a5   : > { %6093 = vmatpush2.bf16.msra.mxu0 %v20560_v9  ;;  %v20607_v9 = vld [vmem:[%s22359_s1 + $0x30] ss:$12 sps:$4 sm:$0xff]   ;;  %v18286_v16 = vld [vmem:[%s19313_s19 + $0x7a0] ss:$8 sps:$4 sm:$0xff]  }
 0x2a6   : > { %15102 = vst.msk [vmem:[%s19963_s9 + $0x68] sm:$0xff] %vm1178_vm1, %v3958_v23  ;;  %v3959_v6 = vmul.f32 0.5, %v3955_v32  ;;  %v3956_v42 = vmax.f32 %v3952_v1, -1.0  ;;  %5742 = vmatpush2.bf16.msra.mxu1 %v18229_v22  ;;  %6094 = vmatprep.subr.bf16.mxu0 %v20564_v11  ;;  %v18240_v11 = vld [vmem:[%s19313_s19 + $0x734] ss:$8 sps:$4 sm:$0xff]  }
 0x2a7   : > { %5743 = vmatprep.subr.bf16.mxu1 %v18234_v46  ;;  %v20704_v61 = vld [vmem:[%s19313_s19 + $0x920] ss:$8 sps:$4 sm:$0xff]   ;;  %v20709_v23 = vld [vmem:[%s19313_s19 + $0x914] ss:$8 sps:$4 sm:$0xff]   ;;  %v18292_v32 = vld [vmem:[%s19313_s19 + $0x790] ss:$8 sps:$4 sm:$0xff]  }
 0x2a8   : > { %15103 = vst [vmem:[%s19963_s9 + $0x70] sm:$0xff] %v3959_v6  ;;  %v3960_v20 = vmul.f32 0.5, %v3956_v42  ;;  %v20684_v43 = vpop.f32.mrf.mxu0  ;;  %v20714_v1 = vld [vmem:[%s19313_s19 + $0x910] ss:$8 sps:$4 sm:$0xff]  }
 0x2a9   : > { %6095 = vmatpush2.bf16.msra.mxu0 %v20570_v2  ;;  %v18249_v2 = vld [vmem:[%s19313_s19 + $0x7d4] ss:$8 sps:$4 sm:$0xff]  }
 0x2aa   : > { %15104 = vst.msk [vmem:[%s19963_s9 + $0x78] sm:$0xff] %vm1178_vm1, %v3960_v20  ;;  %5744 = vmatpush2.bf16.msra.mxu1 %v18232_v60  ;;  %6096 = vmatprep.subr.bf16.mxu0 %v20574_v25  ;;  %v18252_v25 = vld [vmem:[%s19313_s19 + $0x704] ss:$8 sps:$4 sm:$0xff]   ;;  %v4254_v3 = vpop.f32.mrf.mxu0 }
 0x2ab   : > { %5745 = vmatprep.subr.bf16.mxu1 %v18237_v56 }
 0x2ad   : > { %6097 = vmatpush2.bf16.msra.mxu0 %v18223_v58  ;;  %v20647_v58 = vld [vmem:[%s19313_s19 + $0x970] ss:$8 sps:$4 sm:$0xff]  }
 0x2ae   : > { %5746 = vmatpush2.bf16.msra.mxu1 %v18235_v57  ;;  %6098 = vmatprep.subr.bf16.mxu0 %v18228_v33  ;;  %v20659_v33 = vld [vmem:[%s19313_s19 + $0x960] ss:$8 sps:$4 sm:$0xff]  }
 0x2af   : > { %6129 = vmatprep.subr.bf16.mxu1 %v20510_v19  ;;  %v18238_v19 = vld [vmem:[%s19313_s19 + $0x730] ss:$8 sps:$4 sm:$0xff]  }
 0x2b1   : > { %5748 = vmatmul.mubr.bf16.vlgmr.msra.gmra.mxu1 %v20607_v9  ;;  %6099 = vmatpush2.bf16.msra.mxu0 %v18226_v18  ;;  %v20682_v18 = vpop.f32.mrf.mxu1 }
 0x2b2   : > { %6130 = vmatpush1.bf16.msra.mxu1 %v20522_v59  ;;  %6100 = vmatprep.subr.bf16.mxu0 %v18231_v53  ;;  %v20620_v59 = vld [vmem:[%s22359_s1 + $0x20] ss:$12 sps:$4 sm:$0xff]   ;;  %v18280_v53 = vld [vmem:[%s19313_s19 + $0x7b0] ss:$8 sps:$4 sm:$0xff]  }
 0x2b3   : > { %6131 = vmatprep.subr.bf16.mxu1 %v20527_v14  ;;  %6149 = vmatprep.mubr.bf16.mxu1 %v19270_v0  ;;  %v18241_v14 = vld [vmem:[%s19313_s19 + $0x720] ss:$8 sps:$4 sm:$0xff]   ;;  %v4297_v39 = vpop.f32.mrf.mxu1 }
 0x2b5   : > { %6101 = vmatpush2.bf16.msra.mxu0 %v18229_v22  ;;  %v4299_v10 = vpop.f32.mrf.mxu1  ;;  %v4256_v22 = vpop.f32.mrf.mxu0 }
 0x2b6   : > { %6132 = vmatpush1.bf16.msra.mxu1 %v20535_v27  ;;  %6102 = vmatprep.subr.bf16.mxu0 %v18234_v46  ;;  %v18246_v27 = vld [vmem:[%s19313_s19 + $0x714] ss:$8 sps:$4 sm:$0xff]  }
 0x2b7   : > { %6340 = vmatprep.subr.bf16.mxu1 %v18240_v11  ;;  %v18294_v46 = vld [vmem:[%s19313_s19 + $0x794] ss:$8 sps:$4 sm:$0xff]   ;;  %v4301_v6 = vpop.f32.mrf.mxu1  ;;  %v4258_v42 = vpop.f32.mrf.mxu0  ;;  %v20724_v11 = vld [vmem:[%s19313_s19 + $0x900] ss:$8 sps:$4 sm:$0xff]  }
 0x2b9   : > { %15659 = vmatmul.mubr.msk.bf16.vlgmr.msra.gmra.mxu1 %vm466_vm0, %v20620_v59  ;;  %6103 = vmatpush2.bf16.msra.mxu0 %v18232_v60  ;;  %v18300_v60 = vld [vmem:[%s19313_s19 + $0x784] ss:$8 sps:$4 sm:$0xff]  }
 0x2ba   : > { %6341 = vmatpush1.bf16.msra.mxu1 %v18238_v19  ;;  %6104 = vmatprep.subr.bf16.mxu0 %v18237_v56  ;;  %v20719_v56 = vld [vmem:[%s19313_s19 + $0x904] ss:$8 sps:$4 sm:$0xff]   ;;  %v4561_v19 = vpop.f32.mrf.mxu0 }
 0x2bb   : > { %6342 = vmatprep.subr.bf16.mxu1 %v18243_v4  ;;  %6372 = vmatprep.mubr.bf16.mxu1 %v20630_v47 }
 0x2bd   : > { %6105 = vmatpush2.bf16.msra.mxu0 %v18235_v57  ;;  %v18298_v57 = vld [vmem:[%s19313_s19 + $0x780] ss:$8 sps:$4 sm:$0xff]  }
 0x2be   : > { %6343 = vmatpush1.bf16.msra.mxu1 %v18241_v14  ;;  %6395 = vmatprep.subr.bf16.mxu0 %v18249_v2  ;;  %v18306_v14 = vld [vmem:[%s19313_s19 + $0x774] ss:$8 sps:$4 sm:$0xff]  }
 0x2bf   : > { %6344 = vmatprep.subr.bf16.mxu1 %v18246_v27  ;;  %v20729_v27 = vld [vmem:[%s19313_s19 + $0x9f4] ss:$8 sps:$4 sm:$0xff]  }
 0x2c0   : > { %6107 = vmatmul.mubr.bf16.vlgmr.msra.gmra.mxu0 %v20487_v45 }
 0x2c1   : > { %6396 = vmatpush1.bf16.msra.mxu0 %v18247_v5  ;;  %6415 = vmatprep.mubr.bf16.mxu0 %v19270_v0  ;;  %v20734_v5 = vld [vmem:[%s19313_s19 + $0x9f0] ss:$8 sps:$4 sm:$0xff]  }
 0x2c2   : > { %6345 = vmatpush1.bf16.msra.mxu1 %v18244_v24  ;;  %6397 = vmatprep.subr.bf16.mxu0 %v18255_v28  ;;  %v18304_v24 = vld [vmem:[%s19313_s19 + $0x770] ss:$8 sps:$4 sm:$0xff]   ;;  %v18312_v28 = vld [vmem:[%s19313_s19 + $0x764] ss:$8 sps:$4 sm:$0xff]  }
 0x2c3   : > { %6346 = vmatprep.subr.bf16.mxu1 %v18252_v25  ;;  %v4563_v25 = vpop.f32.mrf.mxu0 }
 0x2c5   : > { %6398 = vmatpush1.bf16.msra.mxu0 %v18253_v8 }
 0x2c6   : > { %6347 = vmatpush1.bf16.msra.mxu1 %v18250_v26  ;;  %6643 = vmatprep.subr.bf16.mxu0 %v20642_v48  ;;  %v20739_v26 = vld [vmem:[%s19313_s19 + $0x9e4] ss:$8 sps:$4 sm:$0xff]  }
 0x2c7   : > { %6348 = vmatprep.subr.bf16.mxu1 %v18258_v21  ;;  %v18310_v21 = vld [vmem:[%s19313_s19 + $0x760] ss:$8 sps:$4 sm:$0xff]  }
 0x2c8   : > { %15696 = vmatmul.mubr.msk.bf16.vlgmr.msra.gmra.mxu0 %vm466_vm0, %v20502_v52 }
 0x2c9   : > { %6644 = vmatpush1.bf16.msra.mxu0 %v20647_v58  ;;  %6675 = vmatprep.mubr.bf16.mxu0 %v20515_v49 }
 0x2ca   : > { %6349 = vmatpush1.bf16.msra.mxu1 %v18256_v12  ;;  %6645 = vmatprep.subr.bf16.mxu0 %v20652_v54  ;;  %v20744_v12 = vld [vmem:[%s19313_s19 + $0x9e0] ss:$8 sps:$4 sm:$0xff]  }
 0x2cb   : > { %6350 = vmatprep.subr.bf16.mxu1 %v18264_v55  ;;  %v4565_v55 = vpop.f32.mrf.mxu0 }
 0x2cd   : > { %6646 = vmatpush1.bf16.msra.mxu0 %v20659_v33 }
 0x2ce   : > { %6351 = vmatpush1.bf16.msra.mxu1 %v18262_v44  ;;  %6647 = vmatprep.subr.bf16.mxu0 %v20664_v30 }
 0x2cf   : > { %6352 = vmatprep.subr.bf16.mxu1 %v18270_v29  ;;  %v18318_v29 = vld [vmem:[%s19313_s19 + $0x754] ss:$8 sps:$4 sm:$0xff]  }
 0x2d1   : > { %6648 = vmatpush1.bf16.msra.mxu0 %v20670_v35 }
 0x2d2   : > { %6353 = vmatpush1.bf16.msra.mxu1 %v18268_v15  ;;  %6649 = vmatprep.subr.bf16.mxu0 %v20675_v40  ;;  %v20749_v15 = vld [vmem:[%s19313_s19 + $0x9d4] ss:$8 sps:$4 sm:$0xff]  }
 0x2d3   : > { %6354 = vmatprep.subr.bf16.mxu1 %v18276_v17  ;;  %v4296_v17 = vadd.f32 %v20682_v18, %v20684_v43  ;;  %v4302_v43 = vadd.f32 %v4301_v6, %v4258_v42  ;;  %v18333_v6 = vld [vmem:[%s19313_s19 + $0xa14] ss:$8 sps:$4 sm:$0xff]  }
 0x2d5   : > { %6650 = vmatpush1.bf16.msra.mxu0 %v20680_v51 }
 0x2d6   : > { %6355 = vmatpush1.bf16.msra.mxu1 %v18274_v36  ;;  %6651 = vmatprep.subr.bf16.mxu0 %v20689_v50  ;;  %v4298_v36 = vadd.f32 %v4297_v39, %v4254_v3 }
 0x2d7   : > { %6356 = vmatprep.subr.bf16.mxu1 %v18282_v13 }
 0x2d9   : > { %6652 = vmatpush1.bf16.msra.mxu0 %v20694_v41 }
 0x2da   : > { %6357 = vmatpush2.bf16.msra.mxu1 %v18280_v53  ;;  %6653 = vmatprep.subr.bf16.mxu0 %v20699_v37  ;;  %v18316_v53 = vld [vmem:[%s19313_s19 + $0x750] ss:$8 sps:$4 sm:$0xff]  }
 0x2db   : > { %6358 = vmatprep.subr.bf16.mxu1 %v18288_v31  ;;  %v20756_v31 = vld [vmem:[%s19313_s19 + $0x9d0] ss:$8 sps:$4 sm:$0xff]  }
 0x2dd   : > { %6654 = vmatpush1.bf16.msra.mxu0 %v20704_v61 }
 0x2de   : > { %6359 = vmatpush2.bf16.msra.mxu1 %v18286_v16  ;;  %6655 = vmatprep.subr.bf16.mxu0 %v20709_v23  ;;  %v4300_v16 = vadd.f32 %v4299_v10, %v4256_v22  ;;  %v18322_v10 = vld [vmem:[%s19313_s19 + $0x740] ss:$8 sps:$4 sm:$0xff]  }
 0x2df   : > { %6360 = vmatprep.subr.bf16.mxu1 %v18294_v46  ;;  %v4567_v46 = vpop.f32.mrf.mxu0  ;;  %v20766_v22 = vld [vmem:[%s19313_s19 + $0x9c0] ss:$8 sps:$4 sm:$0xff]  }
 0x2e1   : > { %v4518_v20 = vpop.f32.mrf.mxu1  ;;  %6656 = vmatpush1.bf16.msra.mxu0 %v20714_v1 }
 0x2e2   : > { %6361 = vmatpush2.bf16.msra.mxu1 %v18292_v32  ;;  %6657 = vmatprep.subr.bf16.mxu0 %v20719_v56  ;;  %v4519_v13 = vadd.f32 %v4518_v20, %v4296_v17 }
 0x2e3   : > { %v4520_v4 = vpop.f32.mrf.mxu1  ;;  %6362 = vmatprep.subr.bf16.mxu1 %v18300_v60  ;;  %v18324_v60 = vld [vmem:[%s19313_s19 + $0x744] ss:$8 sps:$4 sm:$0xff]  }
 0x2e4   : > { %v4521_v18 = vadd.f32 %v4520_v4, %v4298_v36  ;;  %v4562_v20 = vadd.f32 %v4561_v19, %v4519_v13  ;;  %v20770_v4 = vld [vmem:[%s19313_s19 + $0x9b4] ss:$8 sps:$4 sm:$0xff]   ;;  %v20776_v13 = vld [vmem:[%s19313_s19 + $0x9b0] ss:$8 sps:$4 sm:$0xff]  }
 0x2e5   : > { %v4522_v2 = vpop.f32.mrf.mxu1  ;;  %6658 = vmatpush1.bf16.msra.mxu0 %v20724_v11 }
 0x2e6   : > { %6363 = vmatpush2.bf16.msra.mxu1 %v18298_v57  ;;  %6659 = vmatprep.subr.bf16.mxu0 %v20729_v27  ;;  %v20761_v57 = vld [vmem:[%s19313_s19 + $0x9c4] ss:$8 sps:$4 sm:$0xff]   ;;  %v4523_v39 = vadd.f32 %v4522_v2, %v4300_v16  ;;  %v4564_v42 = vadd.f32 %v4563_v25, %v4521_v18 }
 0x2e7   : > { %6364 = vmatprep.subr.bf16.mxu1 %v18306_v14  ;;  %v4524_v8 = vpop.f32.mrf.mxu1  ;;  %v20781_v25 = vld [vmem:[%s19313_s19 + $0x9a4] ss:$8 sps:$4 sm:$0xff]  }
 0x2e9   : > { %6660 = vmatpush2.bf16.msra.mxu0 %v20734_v5  ;;  %v4864_v44 = vpop.f32.mrf.mxu1 }
 0x2ea   : > { %6365 = vmatpush2.bf16.msra.mxu1 %v18304_v24  ;;  %6661 = vmatprep.subr.bf16.mxu0 %v20739_v26  ;;  %v4525_v24 = vadd.f32 %v4524_v8, %v4302_v43 }
 0x2eb   : > { %6366 = vmatprep.subr.bf16.mxu1 %v18312_v28  ;;  %v4866_v32 = vpop.f32.mrf.mxu1 }
 0x2ec   : > { %v4568_v16 = vadd.f32 %v4567_v46, %v4525_v24  ;;  %v20789_v24 = vld [vmem:[%s19313_s19 + $0x9a0] ss:$8 sps:$4 sm:$0xff]  }
 0x2ed   : > { %6662 = vmatpush2.bf16.msra.mxu0 %v20744_v12  ;;  %v4868_v28 = vpop.f32.mrf.mxu1 }
 0x2ee   : > { %6367 = vmatpush2.bf16.msra.mxu1 %v18310_v21  ;;  %6663 = vmatprep.subr.bf16.mxu0 %v20749_v15 }
 0x2ef   : > { %6368 = vmatprep.subr.bf16.mxu1 %v18318_v29 }
 0x2f0   : > { %v4821_v3 = vpop.f32.mrf.mxu0 }
 0x2f1   : > { %v4865_v14 = vadd.f32 %v4864_v44, %v4821_v3  ;;  %6664 = vmatpush2.bf16.msra.mxu0 %v20756_v31  ;;  %v4566_v44 = vadd.f32 %v4565_v55, %v4523_v39  ;;  %v18339_v55 = vld [vmem:[%s19313_s19 + $0xa04] ss:$8 sps:$4 sm:$0xff]  }
 0x2f2   : > { %6369 = vmatpush2.bf16.msra.mxu1 %v18316_v53  ;;  %v4823_v21 = vpop.f32.mrf.mxu0  ;;  %6665 = vmatprep.subr.bf16.mxu0 %v20761_v57  ;;  %v18331_v53 = vld [vmem:[%s19313_s19 + $0xa10] ss:$8 sps:$4 sm:$0xff]  }
 0x2f3   : > { %6370 = vmatprep.subr.bf16.mxu1 %v18324_v60  ;;  %v4873_v19 = vadd.f32 %v4865_v14, %v4562_v20  ;;  %v4867_v2 = vadd.f32 %v4866_v32, %v4823_v21  ;;  %v4870_v60 = vpop.f32.mrf.mxu1  ;;  %v20794_v21 = vld [vmem:[%s19313_s19 + $0x994] ss:$8 sps:$4 sm:$0xff]  }
 0x2f4   : > { %v4825_v29 = vpop.f32.mrf.mxu0 }
 0x2f5   : > { %v4877_v17 = vadd.f32 %v4873_v19, %v19929_v34  ;;  %v4874_v8 = vadd.f32 %v4867_v2, %v4564_v42  ;;  %v4869_v36 = vadd.f32 %v4868_v28, %v4825_v29  ;;  %6666 = vmatpush2.bf16.msra.mxu0 %v20766_v22  ;;  %v18337_v28 = vld [vmem:[%s19313_s19 + $0xa00] ss:$8 sps:$4 sm:$0xff]   ;;  %v20803_v29 = vld [vmem:[%s19313_s19 + $0x990] ss:$8 sps:$4 sm:$0xff]  }
 0x2f6   : > { %6371 = vmatpush2.bf16.msra.mxu1 %v18322_v10  ;;  %v4827_v43 = vpop.f32.mrf.mxu0  ;;  %6667 = vmatprep.subr.bf16.mxu0 %v20770_v4 }
 0x2f7   : > { %6698 = vmatprep.subr.bf16.mxu1 %v18333_v6  ;;  %v4881_v32 = vmax.f32 %v4877_v17, -1.0  ;;  %v4878_v18 = vadd.f32 %v4874_v8, %v19929_v34  ;;  %v4875_v39 = vadd.f32 %v4869_v36, %v4566_v44  ;;  %v4871_v3 = vadd.f32 %v4870_v60, %v4827_v43  ;;  %v20808_v17 = vld [vmem:[%s19313_s19 + $0x984] ss:$8 sps:$4 sm:$0xff]   ;;  %v20818_v36 = vld [vmem:[%s19313_s19 + $0x980] ss:$8 sps:$4 sm:$0xff]  }
 0x2f8   : > { %v18391_v60 = vld [vmem:[%s19313_s19 + $0x8e0] ss:$8 sps:$4 sm:$0xff]   ;;  %v18396_v43 = vld [vmem:[%s19313_s19 + $0x874] ss:$8 sps:$4 sm:$0xff]  }
 0x2f9   : > { %6373 = vmatmul.mubr.bf16.vlgmr.msra.gmra.mxu1 %v20368_v7  ;;  %v4885_v46 = vmul.f32 0.5, %v4881_v32  ;;  %v4882_v20 = vmax.f32 %v4878_v18, -1.0  ;;  %v4879_v14 = vadd.f32 %v4875_v39, %v19955_v62  ;;  %v4876_v10 = vadd.f32 %v4871_v3, %v4568_v16  ;;  %6668 = vmatpush2.bf16.msra.mxu0 %v20776_v13  ;;  %v18388_v16 = vld [vmem:[%s19313_s19 + $0x880] ss:$8 sps:$4 sm:$0xff]   ;;  %v18402_v32 = vld [vmem:[%s19313_s19 + $0x864] ss:$8 sps:$4 sm:$0xff]  }
 0x2fa   : > { %6699 = vmatpush1.bf16.msra.mxu1 %v18331_v53  ;;  %6669 = vmatprep.subr.bf16.mxu0 %v20781_v25  ;;  %v18405_v18 = vld [vmem:[%s19313_s19 + $0xa84] ss:$8 sps:$4 sm:$0xff]   ;;  %v18400_v39 = vld [vmem:[%s19313_s19 + $0x860] ss:$8 sps:$4 sm:$0xff]  }
 0x2fb   : > { %6700 = vmatprep.subr.bf16.mxu1 %v18339_v55  ;;  %15324 = vst [vmem:[%s19963_s9 + $0x80] sm:$0xff] %v4885_v46  ;;  %v4886_v7 = vmul.f32 0.5, %v4882_v20  ;;  %v4883_v42 = vmax.f32 %v4879_v14, -1.0  ;;  %v4880_v19 = vadd.f32 %v4876_v10, %v19955_v62  ;;  %6718 = vmatprep.mubr.bf16.mxu1 %v19270_v0  ;;  %v18403_v3 = vld [vmem:[%s19313_s19 + $0xa80] ss:$8 sps:$4 sm:$0xff]   ;;  %v20907_v14 = vpop.f32.mrf.mxu0 }
 0x2fc   : > { %v18408_v46 = vld [vmem:[%s19313_s19 + $0xa74] ss:$8 sps:$4 sm:$0xff]   ;;  %v20911_v10 = vld [vmem:[%s19313_s19 + $0xb30] ss:$8 sps:$4 sm:$0xff]  }
 0x2fd   : > { %15325 = vst.msk [vmem:[%s19963_s9 + $0x88] sm:$0xff] %vm1178_vm1, %v4886_v7  ;;  %v4887_v2 = vmul.f32 0.5, %v4883_v42  ;;  %v4884_v44 = vmax.f32 %v4880_v19, -1.0  ;;  %6670 = vmatpush2.bf16.msra.mxu0 %v20789_v24  ;;  %v20904_v20 = vld [vmem:[%s19313_s19 + $0xb34] ss:$8 sps:$4 sm:$0xff]  }
 0x2fe   : > { %6701 = vmatpush1.bf16.msra.mxu1 %v18337_v28  ;;  %6671 = vmatprep.subr.bf16.mxu0 %v20794_v21  ;;  %v18412_v7 = vld [vmem:[%s19313_s19 + $0xa60] ss:$8 sps:$4 sm:$0xff]   ;;  %v18420_v19 = vld [vmem:[%s19313_s19 + $0xa54] ss:$8 sps:$4 sm:$0xff]  }
 0x2ff   : > { %7002 = vmatprep.subr.bf16.mxu1 %v20642_v48  ;;  %15326 = vst [vmem:[%s19963_s9 + $0x90] sm:$0xff] %v4887_v2  ;;  %v4888_v8 = vmul.f32 0.5, %v4884_v44  ;;  %v18351_v48 = vld [vmem:[%s19313_s19 + $0x844] ss:$8 sps:$4 sm:$0xff]   ;;  %v20929_v42 = vld [vmem:[%s19313_s19 + $0xb20] ss:$8 sps:$4 sm:$0xff]  }
 0x301   : > { %15769 = vmatmul.mubr.msk.bf16.vlgmr.msra.gmra.mxu1 %vm466_vm0, %v20399_v38  ;;  %15327 = vst.msk [vmem:[%s19963_s9 + $0x98] sm:$0xff] %vm1178_vm1, %v4888_v8  ;;  %6672 = vmatpush2.bf16.msra.mxu0 %v20803_v29  ;;  %v18348_v38 = vld [vmem:[%s19313_s19 + $0x854] ss:$8 sps:$4 sm:$0xff]  }
 0x302   : > { %7003 = vmatpush1.bf16.msra.mxu1 %v20647_v58  ;;  %6673 = vmatprep.subr.bf16.mxu0 %v20808_v17  ;;  %v18349_v58 = vld [vmem:[%s19313_s19 + $0x840] ss:$8 sps:$4 sm:$0xff]  }
 0x303   : > { %7004 = vmatprep.subr.bf16.mxu1 %v20652_v54  ;;  %7034 = vmatprep.mubr.bf16.mxu1 %v20415_v63  ;;  %v18346_v63 = vld [vmem:[%s19313_s19 + $0x850] ss:$8 sps:$4 sm:$0xff]   ;;  %v18354_v54 = vld [vmem:[%s19313_s19 + $0x834] ss:$8 sps:$4 sm:$0xff]  }
 0x305   : > { %6674 = vmatpush2.bf16.msra.mxu0 %v20818_v36 }
 0x306   : > { %7005 = vmatpush1.bf16.msra.mxu1 %v20659_v33  ;;  %7057 = vmatprep.subr.bf16.mxu0 %v18333_v6  ;;  %v18352_v33 = vld [vmem:[%s19313_s19 + $0x830] ss:$8 sps:$4 sm:$0xff]  }
 0x307   : > { %7006 = vmatprep.subr.bf16.mxu1 %v20664_v30  ;;  %v18357_v30 = vld [vmem:[%s19313_s19 + $0x824] ss:$8 sps:$4 sm:$0xff]   ;;  %v18385_v6 = vld [vmem:[%s19313_s19 + $0x8f0] ss:$8 sps:$4 sm:$0xff]  }
 0x308   : > { %6676 = vmatmul.mubr.bf16.vlgmr.msra.gmra.mxu0 %v20607_v9 }
 0x309   : > { %7058 = vmatpush1.bf16.msra.mxu0 %v18331_v53  ;;  %7077 = vmatprep.mubr.bf16.mxu0 %v19270_v0  ;;  %v18393_v53 = vld [vmem:[%s19313_s19 + $0x8e4] ss:$8 sps:$4 sm:$0xff]  }
 0x30a   : > { %7007 = vmatpush1.bf16.msra.mxu1 %v20670_v35  ;;  %7059 = vmatprep.subr.bf16.mxu0 %v18339_v55  ;;  %v18355_v35 = vld [vmem:[%s19313_s19 + $0x820] ss:$8 sps:$4 sm:$0xff]   ;;  %v18394_v55 = vld [vmem:[%s19313_s19 + $0x870] ss:$8 sps:$4 sm:$0xff]  }
 0x30b   : > { %7008 = vmatprep.subr.bf16.mxu1 %v20675_v40  ;;  %v18360_v40 = vld [vmem:[%s19313_s19 + $0x814] ss:$8 sps:$4 sm:$0xff]  }
 0x30d   : > { %7060 = vmatpush1.bf16.msra.mxu0 %v18337_v28  ;;  %v20916_v28 = vld [vmem:[%s19313_s19 + $0xb24] ss:$8 sps:$4 sm:$0xff]  }
 0x30e   : > { %7009 = vmatpush1.bf16.msra.mxu1 %v20680_v51  ;;  %7268 = vmatprep.subr.bf16.mxu0 %v18348_v38  ;;  %v18358_v51 = vld [vmem:[%s19313_s19 + $0x810] ss:$8 sps:$4 sm:$0xff]  }
 0x30f   : > { %7010 = vmatprep.subr.bf16.mxu1 %v20689_v50  ;;  %v18363_v50 = vld [vmem:[%s19313_s19 + $0x804] ss:$8 sps:$4 sm:$0xff]  }
 0x310   : > { %15882 = vmatmul.mubr.msk.bf16.vlgmr.msra.gmra.mxu0 %vm466_vm0, %v20620_v59  ;;  %v20940_v38 = vld [vmem:[%s22359_s1 + $0x38] ss:$12 sps:$4 sm:$0xff]  }
 0x311   : > { %7269 = vmatpush1.bf16.msra.mxu0 %v18346_v63  ;;  %7300 = vmatprep.mubr.bf16.mxu0 %v20630_v47  ;;  %v18421_v63 = vld [vmem:[%s19313_s19 + $0xa40] ss:$8 sps:$4 sm:$0xff]  }
 0x312   : > { %7011 = vmatpush1.bf16.msra.mxu1 %v20694_v41  ;;  %7270 = vmatprep.subr.bf16.mxu0 %v18351_v48  ;;  %v18361_v41 = vld [vmem:[%s19313_s19 + $0x800] ss:$8 sps:$4 sm:$0xff]  }
 0x313   : > { %7012 = vmatprep.subr.bf16.mxu1 %v20699_v37  ;;  %v18366_v37 = vld [vmem:[%s19313_s19 + $0x7f4] ss:$8 sps:$4 sm:$0xff]  }
 0x315   : > { %7271 = vmatpush1.bf16.msra.mxu0 %v18349_v58  ;;  %v18426_v58 = vld [vmem:[%s19313_s19 + $0xa34] ss:$8 sps:$4 sm:$0xff]  }
 0x316   : > { %7013 = vmatpush1.bf16.msra.mxu1 %v20704_v61  ;;  %7272 = vmatprep.subr.bf16.mxu0 %v18354_v54  ;;  %v18364_v61 = vld [vmem:[%s19313_s19 + $0x7f0] ss:$8 sps:$4 sm:$0xff]   ;;  %v20949_v54 = vld [vmem:[%s22359_s1 + $0x1c] ss:$12 sps:$4 sm:$0xff]  }
 0x317   : > { %7014 = vmatprep.subr.bf16.mxu1 %v20709_v23  ;;  %v18369_v23 = vld [vmem:[%s19313_s19 + $0x7e4] ss:$8 sps:$4 sm:$0xff]  }
 0x319   : > { %7273 = vmatpush1.bf16.msra.mxu0 %v18352_v33 }
 0x31a   : > { %7015 = vmatpush1.bf16.msra.mxu1 %v20714_v1  ;;  %7274 = vmatprep.subr.bf16.mxu0 %v18357_v30  ;;  %v18367_v1 = vld [vmem:[%s19313_s19 + $0x7e0] ss:$8 sps:$4 sm:$0xff]   ;;  %v18424_v30 = vld [vmem:[%s19313_s19 + $0xa30] ss:$8 sps:$4 sm:$0xff]  }
 0x31b   : > { %7016 = vmatprep.subr.bf16.mxu1 %v20719_v56  ;;  %v18372_v56 = vld [vmem:[%s19313_s19 + $0x8d4] ss:$8 sps:$4 sm:$0xff]  }
 0x31d   : > { %7275 = vmatpush1.bf16.msra.mxu0 %v18355_v35 }
 0x31e   : > { %7017 = vmatpush1.bf16.msra.mxu1 %v20724_v11  ;;  %7276 = vmatprep.subr.bf16.mxu0 %v18360_v40  ;;  %v18370_v11 = vld [vmem:[%s19313_s19 + $0x8d0] ss:$8 sps:$4 sm:$0xff]   ;;  %v18429_v40 = vld [vmem:[%s19313_s19 + $0xa24] ss:$8 sps:$4 sm:$0xff]  }
 0x31f   : > { %7018 = vmatprep.subr.bf16.mxu1 %v20729_v27  ;;  %v18375_v27 = vld [vmem:[%s19313_s19 + $0x8c4] ss:$8 sps:$4 sm:$0xff]  }
 0x321   : > { %7277 = vmatpush1.bf16.msra.mxu0 %v18358_v51 }
 0x322   : > { %7019 = vmatpush2.bf16.msra.mxu1 %v20734_v5  ;;  %7278 = vmatprep.subr.bf16.mxu0 %v18363_v50  ;;  %v18373_v5 = vld [vmem:[%s19313_s19 + $0x8c0] ss:$8 sps:$4 sm:$0xff]  }
 0x323   : > { %7020 = vmatprep.subr.bf16.mxu1 %v20739_v26  ;;  %v18378_v26 = vld [vmem:[%s19313_s19 + $0x8b4] ss:$8 sps:$4 sm:$0xff]   ;;  %v18427_v50 = vld [vmem:[%s19313_s19 + $0xa20] ss:$8 sps:$4 sm:$0xff]  }
 0x325   : > { %7279 = vmatpush1.bf16.msra.mxu0 %v18361_v41 }
 0x326   : > { %7021 = vmatpush2.bf16.msra.mxu1 %v20744_v12  ;;  %7280 = vmatprep.subr.bf16.mxu0 %v18366_v37  ;;  %v18376_v12 = vld [vmem:[%s19313_s19 + $0x8b0] ss:$8 sps:$4 sm:$0xff]  }
 0x327   : > { %7022 = vmatprep.subr.bf16.mxu1 %v20749_v15  ;;  %v18381_v15 = vld [vmem:[%s19313_s19 + $0x8a4] ss:$8 sps:$4 sm:$0xff]  }
 0x329   : > { %7281 = vmatpush1.bf16.msra.mxu0 %v18364_v61  ;;  %v5180_v44 = vpop.f32.mrf.mxu1  ;;  %v18432_v61 = vld [vmem:[%s19313_s19 + $0xb14] ss:$8 sps:$4 sm:$0xff]  }
 0x32a   : > { %7023 = vmatpush2.bf16.msra.mxu1 %v20756_v31  ;;  %7282 = vmatprep.subr.bf16.mxu0 %v18369_v23  ;;  %v18379_v31 = vld [vmem:[%s19313_s19 + $0x8a0] ss:$8 sps:$4 sm:$0xff]   ;;  %v20957_v23 = vld [vmem:[%s19313_s19 + $0xb10] ss:$8 sps:$4 sm:$0xff]  }
 0x32b   : > { %7024 = vmatprep.subr.bf16.mxu1 %v20761_v57  ;;  %v18384_v57 = vld [vmem:[%s19313_s19 + $0x894] ss:$8 sps:$4 sm:$0xff]  }
 0x32d   : > { %7283 = vmatpush1.bf16.msra.mxu0 %v18367_v1 }
 0x32e   : > { %7025 = vmatpush2.bf16.msra.mxu1 %v20766_v22  ;;  %7284 = vmatprep.subr.bf16.mxu0 %v18372_v56  ;;  %v18387_v22 = vld [vmem:[%s19313_s19 + $0x8f4] ss:$8 sps:$4 sm:$0xff]  }
 0x32f   : > { %7026 = vmatprep.subr.bf16.mxu1 %v20770_v4  ;;  %v18382_v4 = vld [vmem:[%s19313_s19 + $0x890] ss:$8 sps:$4 sm:$0xff]  }
 0x331   : > { %7285 = vmatpush2.bf16.msra.mxu0 %v18370_v11  ;;  %v20960_v11 = vld [vmem:[%s19313_s19 + $0xb04] ss:$8 sps:$4 sm:$0xff]  }
 0x332   : > { %7027 = vmatpush2.bf16.msra.mxu1 %v20776_v13  ;;  %7286 = vmatprep.subr.bf16.mxu0 %v18375_v27  ;;  %v18390_v13 = vld [vmem:[%s19313_s19 + $0x884] ss:$8 sps:$4 sm:$0xff]   ;;  %v20964_v27 = vld [vmem:[%s19313_s19 + $0xb00] ss:$8 sps:$4 sm:$0xff]  }
 0x333   : > { %7028 = vmatprep.subr.bf16.mxu1 %v20781_v25  ;;  %v18399_v25 = vld [vmem:[%s19313_s19 + $0xa94] ss:$8 sps:$4 sm:$0xff]  }
 0x335   : > { %7287 = vmatpush2.bf16.msra.mxu0 %v18373_v5 }
 0x336   : > { %7029 = vmatpush2.bf16.msra.mxu1 %v20789_v24  ;;  %7288 = vmatprep.subr.bf16.mxu0 %v18378_v26  ;;  %v18414_v24 = vld [vmem:[%s19313_s19 + $0xa64] ss:$8 sps:$4 sm:$0xff]  }
 0x337   : > { %7030 = vmatprep.subr.bf16.mxu1 %v20794_v21  ;;  %v20918_v21 = vpop.f32.mrf.mxu0 }
 0x339   : > { %7289 = vmatpush2.bf16.msra.mxu0 %v18376_v12  ;;  %v5227_v2 = vpop.f32.mrf.mxu0  ;;  %v20968_v12 = vld [vmem:[%s19313_s19 + $0xaf4] ss:$8 sps:$4 sm:$0xff]  }
 0x33a   : > { %7031 = vmatpush2.bf16.msra.mxu1 %v20803_v29  ;;  %7290 = vmatprep.subr.bf16.mxu0 %v18381_v15  ;;  %v18418_v29 = vld [vmem:[%s19313_s19 + $0xa50] ss:$8 sps:$4 sm:$0xff]   ;;  %v5224_v15 = vadd.f32 %v20907_v14, %v5180_v44 }
 0x33b   : > { %7032 = vmatprep.subr.bf16.mxu1 %v20808_v17  ;;  %v18423_v17 = vld [vmem:[%s19313_s19 + $0xa44] ss:$8 sps:$4 sm:$0xff]   ;;  %v5229_v8 = vpop.f32.mrf.mxu0 }
 0x33d   : > { %7291 = vmatpush2.bf16.msra.mxu0 %v18379_v31  ;;  %v5446_v48 = vpop.f32.mrf.mxu0 }
 0x33e   : > { %7033 = vmatpush2.bf16.msra.mxu1 %v20818_v36  ;;  %7292 = vmatprep.subr.bf16.mxu0 %v18384_v57  ;;  %v5182_v36 = vpop.f32.mrf.mxu1  ;;  %v5447_v57 = vadd.f32 %v5446_v48, %v5224_v15 }
 0x33f   : > { %7323 = vmatprep.subr.bf16.mxu1 %v18387_v22  ;;  %v5448_v35 = vpop.f32.mrf.mxu0  ;;  %v5226_v31 = vadd.f32 %v20918_v21, %v5182_v36  ;;  %v20974_v22 = vld [vmem:[%s19313_s19 + $0xaf0] ss:$8 sps:$4 sm:$0xff]  }
 0x340   : > { %v5184_v33 = vpop.f32.mrf.mxu1 }
 0x341   : > { %7035 = vmatmul.mubr.bf16.vlgmr.msra.gmra.mxu1 %v20487_v45  ;;  %7293 = vmatpush2.bf16.msra.mxu0 %v18382_v4  ;;  %v18397_v45 = vld [vmem:[%s19313_s19 + $0xa90] ss:$8 sps:$4 sm:$0xff]   ;;  %v5450_v37 = vpop.f32.mrf.mxu0  ;;  %v5228_v4 = vadd.f32 %v5227_v2, %v5184_v33 }
 0x342   : > { %7324 = vmatpush1.bf16.msra.mxu1 %v18385_v6  ;;  %7294 = vmatprep.subr.bf16.mxu0 %v18390_v13  ;;  %v5186_v51 = vpop.f32.mrf.mxu1 }
 0x343   : > { %7325 = vmatprep.subr.bf16.mxu1 %v18393_v53  ;;  %7343 = vmatprep.mubr.bf16.mxu1 %v19270_v0  ;;  %v5452_v56 = vpop.f32.mrf.mxu0  ;;  %v20978_v53 = vld [vmem:[%s19313_s19 + $0xae4] ss:$8 sps:$4 sm:$0xff]  }
 0x344   : > { %v5489_v41 = vpop.f32.mrf.mxu1 }
 0x345   : > { %7295 = vmatpush2.bf16.msra.mxu0 %v18388_v16  ;;  %v5792_v26 = vpop.f32.mrf.mxu0  ;;  %v5449_v16 = vadd.f32 %v5448_v35, %v5226_v31  ;;  %v18451_v31 = vld [vmem:[%s19313_s19 + $0xaa0] ss:$8 sps:$4 sm:$0xff]  }
 0x346   : > { %7326 = vmatpush1.bf16.msra.mxu1 %v18391_v60  ;;  %7296 = vmatprep.subr.bf16.mxu0 %v18396_v43  ;;  %v5491_v1 = vpop.f32.mrf.mxu1  ;;  %v5230_v60 = vadd.f32 %v5229_v8, %v5186_v51  ;;  %v5451_v43 = vadd.f32 %v5450_v37, %v5228_v4  ;;  %v18450_v37 = vld [vmem:[%s19313_s19 + $0xab4] ss:$8 sps:$4 sm:$0xff]   ;;  %v21029_v4 = vld [vmem:[%s22359_s1 + $0x18] ss:$12 sps:$4 sm:$0xff]  }
 0x347   : > { %7571 = vmatprep.subr.bf16.mxu1 %v18399_v25  ;;  %v5794_v13 = vpop.f32.mrf.mxu0  ;;  %v5492_v14 = vadd.f32 %v5491_v1, %v5449_v16  ;;  %v18472_v16 = vld [vmem:[%s19313_s19 + $0x930] ss:$8 sps:$4 sm:$0xff]  }
 0x348   : > { %v5493_v5 = vpop.f32.mrf.mxu1 }
 0x349   : > { %15919 = vmatmul.mubr.msk.bf16.vlgmr.msra.gmra.mxu1 %vm466_vm0, %v20502_v52  ;;  %7297 = vmatpush2.bf16.msra.mxu0 %v18394_v55  ;;  %v18406_v52 = vld [vmem:[%s19313_s19 + $0xa70] ss:$8 sps:$4 sm:$0xff]   ;;  %v5490_v55 = vadd.f32 %v5489_v41, %v5447_v57  ;;  %v5494_v21 = vadd.f32 %v5493_v5, %v5451_v43  ;;  %v18445_v41 = vld [vmem:[%s19313_s19 + $0xac0] ss:$8 sps:$4 sm:$0xff]   ;;  %v18480_v43 = vld [vmem:[%s19313_s19 + $0x924] ss:$8 sps:$4 sm:$0xff]  }
 0x34a   : > { %7572 = vmatpush1.bf16.msra.mxu1 %v18397_v45  ;;  %7298 = vmatprep.subr.bf16.mxu0 %v18402_v32  ;;  %v5495_v6 = vpop.f32.mrf.mxu1  ;;  %v18439_v32 = vld [vmem:[%s19313_s19 + $0xae0] ss:$8 sps:$4 sm:$0xff]   ;;  %v18463_v57 = vld [vmem:[%s19313_s19 + $0xa10] ss:$8 sps:$4 sm:$0xff]  }
 0x34b   : > { %7573 = vmatprep.subr.bf16.mxu1 %v18405_v18  ;;  %7603 = vmatprep.mubr.bf16.mxu1 %v20515_v49  ;;  %v20923_v49 = vld [vmem:[%s22359_s1] ss:$12 sps:$4 sm:$0xff]  }
 0x34d   : > { %7299 = vmatpush2.bf16.msra.mxu0 %v18400_v39  ;;  %v5796_v39 = vpop.f32.mrf.mxu0 }
 0x34e   : > { %7574 = vmatpush1.bf16.msra.mxu1 %v18403_v3  ;;  %7626 = vmatprep.subr.bf16.mxu0 %v20904_v20 }
 0x34f   : > { %7575 = vmatprep.subr.bf16.mxu1 %v18408_v46  ;;  %v5798_v8 = vpop.f32.mrf.mxu0 }
 0x350   : > { %7301 = vmatmul.mubr.bf16.vlgmr.msra.gmra.mxu0 %v20923_v49 }
 0x351   : > { %7627 = vmatpush1.bf16.msra.mxu0 %v20911_v10  ;;  %7646 = vmatprep.mubr.bf16.mxu0 %v19270_v0 }
 0x352   : > { %7576 = vmatpush1.bf16.msra.mxu1 %v18406_v52  ;;  %7628 = vmatprep.subr.bf16.mxu0 %v20916_v28 }
 0x353   : > { %7577 = vmatprep.subr.bf16.mxu1 %v18414_v24 }
 0x355   : > { %7629 = vmatpush1.bf16.msra.mxu0 %v20929_v42 }
 0x356   : > { %7578 = vmatpush1.bf16.msra.mxu1 %v18412_v7  ;;  %7930 = vmatprep.subr.bf16.mxu0 %v18399_v25 }
 0x357   : > { %7579 = vmatprep.subr.bf16.mxu1 %v18420_v19 }
 0x358   : > { %15992 = vmatmul.mubr.msk.bf16.vlgmr.msra.gmra.mxu0 %vm466_vm0, %v20940_v38 }
 0x359   : > { %7931 = vmatpush1.bf16.msra.mxu0 %v18397_v45  ;;  %7962 = vmatprep.mubr.bf16.mxu0 %v20949_v54 }
 0x35a   : > { %7580 = vmatpush1.bf16.msra.mxu1 %v18418_v29  ;;  %7932 = vmatprep.subr.bf16.mxu0 %v18405_v18  ;;  %v5453_v18 = vadd.f32 %v5452_v56, %v5230_v60  ;;  %v21041_v60 = vld [vmem:[%s19313_s19 + $0xbb0] ss:$8 sps:$4 sm:$0xff]  }
 0x35b   : > { %7581 = vmatprep.subr.bf16.mxu1 %v18423_v17 }
 0x35d   : > { %7933 = vmatpush1.bf16.msra.mxu0 %v18403_v3 }
 0x35e   : > { %7582 = vmatpush1.bf16.msra.mxu1 %v18421_v63  ;;  %7934 = vmatprep.subr.bf16.mxu0 %v18408_v46  ;;  %v18444_v46 = vld [vmem:[%s19313_s19 + $0xad4] ss:$8 sps:$4 sm:$0xff]  }
 0x35f   : > { %7583 = vmatprep.subr.bf16.mxu1 %v18426_v58 }
 0x361   : > { %7935 = vmatpush1.bf16.msra.mxu0 %v18406_v52 }
 0x362   : > { %7584 = vmatpush1.bf16.msra.mxu1 %v18424_v30  ;;  %7936 = vmatprep.subr.bf16.mxu0 %v18414_v24 }
 0x363   : > { %7585 = vmatprep.subr.bf16.mxu1 %v18429_v40 }
 0x365   : > { %7937 = vmatpush1.bf16.msra.mxu0 %v18412_v7 }
 0x366   : > { %7586 = vmatpush1.bf16.msra.mxu1 %v18427_v50  ;;  %7938 = vmatprep.subr.bf16.mxu0 %v18420_v19 }
 0x367   : > { %7587 = vmatprep.subr.bf16.mxu1 %v18432_v61 }
 0x369   : > { %7939 = vmatpush1.bf16.msra.mxu0 %v18418_v29  ;;  %v18442_v29 = vld [vmem:[%s19313_s19 + $0xad0] ss:$8 sps:$4 sm:$0xff]  }
 0x36a   : > { %7588 = vmatpush2.bf16.msra.mxu1 %v20957_v23  ;;  %7940 = vmatprep.subr.bf16.mxu0 %v18423_v17  ;;  %v5496_v17 = vadd.f32 %v5495_v6, %v5453_v18  ;;  %v18469_v6 = vld [vmem:[%s19313_s19 + $0xa00] ss:$8 sps:$4 sm:$0xff]   ;;  %v18486_v18 = vld [vmem:[%s19313_s19 + $0x914] ss:$8 sps:$4 sm:$0xff]  }
 0x36b   : > { %7589 = vmatprep.subr.bf16.mxu1 %v20960_v11 }
 0x36d   : > { %7941 = vmatpush1.bf16.msra.mxu0 %v18421_v63  ;;  %v18447_v63 = vld [vmem:[%s19313_s19 + $0xac4] ss:$8 sps:$4 sm:$0xff]  }
 0x36e   : > { %7590 = vmatpush2.bf16.msra.mxu1 %v20964_v27  ;;  %7942 = vmatprep.subr.bf16.mxu0 %v18426_v58 }
 0x36f   : > { %7591 = vmatprep.subr.bf16.mxu1 %v20968_v12 }
 0x371   : > { %v5749_v25 = vpop.f32.mrf.mxu1  ;;  %7943 = vmatpush1.bf16.msra.mxu0 %v18424_v30 }
 0x372   : > { %v5793_v45 = vadd.f32 %v5792_v26, %v5749_v25  ;;  %7592 = vmatpush2.bf16.msra.mxu1 %v20974_v22  ;;  %7944 = vmatprep.subr.bf16.mxu0 %v18429_v40  ;;  %v21046_v25 = vld [vmem:[%s19313_s19 + $0xba4] ss:$8 sps:$4 sm:$0xff]  }
 0x373   : > { %v5751_v3 = vpop.f32.mrf.mxu1  ;;  %7593 = vmatprep.subr.bf16.mxu1 %v20978_v53 }
 0x374   : > { %v5801_v52 = vadd.f32 %v5793_v45, %v5490_v55  ;;  %v5795_v24 = vadd.f32 %v5794_v13, %v5751_v3  ;;  %v18474_v13 = vld [vmem:[%s19313_s19 + $0x934] ss:$8 sps:$4 sm:$0xff]   ;;  %v18478_v45 = vld [vmem:[%s19313_s19 + $0x920] ss:$8 sps:$4 sm:$0xff]  }
 0x375   : > { %v5753_v7 = vpop.f32.mrf.mxu1  ;;  %7945 = vmatpush1.bf16.msra.mxu0 %v18427_v50  ;;  %v21051_v55 = vld [vmem:[%s22359_s1 + $0x8] ss:$12 sps:$4 sm:$0xff]  }
 0x376   : > { %v5805_v19 = vadd.f32 %v5801_v52, %v19929_v34  ;;  %v5802_v2 = vadd.f32 %v5795_v24, %v5492_v14  ;;  %v5797_v44 = vadd.f32 %v5796_v39, %v5753_v7  ;;  %7594 = vmatpush2.bf16.msra.mxu1 %v18439_v32  ;;  %7946 = vmatprep.subr.bf16.mxu0 %v18432_v61  ;;  %v21063_v39 = vld [vmem:[%s19313_s19 + $0xb94] ss:$8 sps:$4 sm:$0xff]   ;;  %v21074_v14 = vld [vmem:[%s19313_s19 + $0xb90] ss:$8 sps:$4 sm:$0xff]   ;;  %v18492_v52 = vld [vmem:[%s19313_s19 + $0x904] ss:$8 sps:$4 sm:$0xff]  }
 0x377   : > { %v5755_v36 = vpop.f32.mrf.mxu1  ;;  %7595 = vmatprep.subr.bf16.mxu1 %v18444_v46  ;;  %v21068_v3 = vld [vmem:[%s22359_s1 + $0x34] ss:$12 sps:$4 sm:$0xff]   ;;  %v21079_v24 = vld [vmem:[%s19313_s19 + $0xb84] ss:$8 sps:$4 sm:$0xff]  }
 0x378   : > { %v5809_v48 = vmax.f32 %v5805_v19, -1.0  ;;  %v5806_v58 = vadd.f32 %v5802_v2, %v19929_v34  ;;  %v5803_v33 = vadd.f32 %v5797_v44, %v5494_v21  ;;  %v5799_v30 = vadd.f32 %v5798_v8, %v5755_v36  ;;  %v18490_v21 = vld [vmem:[%s19313_s19 + $0x900] ss:$8 sps:$4 sm:$0xff]   ;;  %v18498_v44 = vld [vmem:[%s19313_s19 + $0x9f4] ss:$8 sps:$4 sm:$0xff]  }
 0x379   : > { %7947 = vmatpush2.bf16.msra.mxu0 %v20957_v23  ;;  %v18448_v23 = vld [vmem:[%s19313_s19 + $0xab0] ss:$8 sps:$4 sm:$0xff]   ;;  %v21084_v7 = vld [vmem:[%s19313_s19 + $0xb80] ss:$8 sps:$4 sm:$0xff]   ;;  %v21086_v19 = vpop.f32.mrf.mxu1 }
 0x37a   : > { %v5813_v35 = vmul.f32 0.5, %v5809_v48  ;;  %v5810_v40 = vmax.f32 %v5806_v58, -1.0  ;;  %v5807_v51 = vadd.f32 %v5803_v33, %v19955_v62  ;;  %v5804_v50 = vadd.f32 %v5799_v30, %v5496_v17  ;;  %7596 = vmatpush2.bf16.msra.mxu1 %v18442_v29  ;;  %7948 = vmatprep.subr.bf16.mxu0 %v20960_v11  ;;  %v18453_v11 = vld [vmem:[%s19313_s19 + $0xaa4] ss:$8 sps:$4 sm:$0xff]   ;;  %v18496_v17 = vld [vmem:[%s19313_s19 + $0x9f0] ss:$8 sps:$4 sm:$0xff]  }
 0x37b   : > { %7597 = vmatprep.subr.bf16.mxu1 %v18447_v63  ;;  %v21098_v8 = vld [vmem:[%s19313_s19 + $0xb70] ss:$8 sps:$4 sm:$0xff]   ;;  %v6153_v36 = vpop.f32.mrf.mxu1  ;;  %v18504_v48 = vld [vmem:[%s19313_s19 + $0x9e4] ss:$8 sps:$4 sm:$0xff]   ;;  %v18502_v33 = vld [vmem:[%s19313_s19 + $0x9e0] ss:$8 sps:$4 sm:$0xff]  }
 0x37c   : > { %15547 = vst [vmem:[%s19963_s9 + $0xa0] sm:$0xff] %v5813_v35  ;;  %v5814_v61 = vmul.f32 0.5, %v5810_v40  ;;  %v5811_v1 = vmax.f32 %v5807_v51, -1.0  ;;  %v5808_v56 = vadd.f32 %v5804_v50, %v19955_v62  ;;  %v21103_v58 = vld [vmem:[%s19313_s19 + $0xb64] ss:$8 sps:$4 sm:$0xff]  }
 0x37d   : > { %7949 = vmatpush2.bf16.msra.mxu0 %v20964_v27  ;;  %v18456_v27 = vld [vmem:[%s19313_s19 + $0x974] ss:$8 sps:$4 sm:$0xff]   ;;  %v21108_v30 = vld [vmem:[%s19313_s19 + $0xb60] ss:$8 sps:$4 sm:$0xff]   ;;  %v6155_v35 = vpop.f32.mrf.mxu1 }
 0x37e   : > { %15548 = vst.msk [vmem:[%s19963_s9 + $0xa8] sm:$0xff] %vm1178_vm1, %v5814_v61  ;;  %v5815_v5 = vmul.f32 0.5, %v5811_v1  ;;  %v5812_v26 = vmax.f32 %v5808_v56, -1.0  ;;  %7598 = vmatpush2.bf16.msra.mxu1 %v18445_v41  ;;  %7950 = vmatprep.subr.bf16.mxu0 %v20968_v12  ;;  %v18454_v12 = vld [vmem:[%s19313_s19 + $0x970] ss:$8 sps:$4 sm:$0xff]  }
 0x37f   : > { %7599 = vmatprep.subr.bf16.mxu1 %v18450_v37  ;;  %v18510_v51 = vld [vmem:[%s19313_s19 + $0x9d4] ss:$8 sps:$4 sm:$0xff]   ;;  %v6157_v61 = vpop.f32.mrf.mxu1  ;;  %v18516_v56 = vld [vmem:[%s19313_s19 + $0x9c4] ss:$8 sps:$4 sm:$0xff]  }
 0x380   : > { %15549 = vst [vmem:[%s19963_s9 + $0xb0] sm:$0xff] %v5815_v5  ;;  %v5816_v15 = vmul.f32 0.5, %v5812_v26  ;;  %v21088_v2 = vpop.f32.mrf.mxu0  ;;  %v21113_v50 = vld [vmem:[%s19313_s19 + $0xb54] ss:$8 sps:$4 sm:$0xff]   ;;  %v21123_v5 = vld [vmem:[%s19313_s19 + $0xb44] ss:$8 sps:$4 sm:$0xff]  }
 0x381   : > { %7951 = vmatpush2.bf16.msra.mxu0 %v20974_v22  ;;  %v18471_v22 = vld [vmem:[%s19313_s19 + $0xa04] ss:$8 sps:$4 sm:$0xff]  }
 0x382   : > { %15550 = vst.msk [vmem:[%s19963_s9 + $0xb8] sm:$0xff] %vm1178_vm1, %v5816_v15  ;;  %7600 = vmatpush2.bf16.msra.mxu1 %v18448_v23  ;;  %7952 = vmatprep.subr.bf16.mxu0 %v20978_v53  ;;  %v21036_v53 = vld [vmem:[%s19313_s19 + $0xbb4] ss:$8 sps:$4 sm:$0xff]  }
 0x383   : > { %7601 = vmatprep.subr.bf16.mxu1 %v18453_v11 }
 0x385   : > { %7953 = vmatpush2.bf16.msra.mxu0 %v18439_v32  ;;  %v21058_v32 = vld [vmem:[%s19313_s19 + $0xba0] ss:$8 sps:$4 sm:$0xff]  }
 0x386   : > { %7602 = vmatpush2.bf16.msra.mxu1 %v18451_v31  ;;  %7954 = vmatprep.subr.bf16.mxu0 %v18444_v46  ;;  %v18484_v46 = vld [vmem:[%s19313_s19 + $0x910] ss:$8 sps:$4 sm:$0xff]  }
 0x387   : > { %7985 = vmatprep.subr.bf16.mxu1 %v20904_v20  ;;  %v18457_v20 = vld [vmem:[%s19313_s19 + $0x960] ss:$8 sps:$4 sm:$0xff]  }
 0x389   : > { %7604 = vmatmul.mubr.bf16.vlgmr.msra.gmra.mxu1 %v20607_v9  ;;  %7955 = vmatpush2.bf16.msra.mxu0 %v18442_v29  ;;  %v18459_v9 = vld [vmem:[%s19313_s19 + $0x964] ss:$8 sps:$4 sm:$0xff]   ;;  %v21093_v29 = vld [vmem:[%s19313_s19 + $0xb74] ss:$8 sps:$4 sm:$0xff]  }
 0x38a   : > { %7986 = vmatpush1.bf16.msra.mxu1 %v20911_v10  ;;  %7956 = vmatprep.subr.bf16.mxu0 %v18447_v63  ;;  %v18462_v10 = vld [vmem:[%s19313_s19 + $0x954] ss:$8 sps:$4 sm:$0xff]   ;;  %v6110_v63 = vpop.f32.mrf.mxu0 }
 0x38b   : > { %7987 = vmatprep.subr.bf16.mxu1 %v20916_v28  ;;  %8005 = vmatprep.mubr.bf16.mxu1 %v19270_v0  ;;  %v18465_v28 = vld [vmem:[%s19313_s19 + $0xa14] ss:$8 sps:$4 sm:$0xff]  }
 0x38c   : > { %v6112_v40 = vpop.f32.mrf.mxu0 }
 0x38d   : > { %7957 = vmatpush2.bf16.msra.mxu0 %v18445_v41  ;;  %v18508_v41 = vld [vmem:[%s19313_s19 + $0x9d0] ss:$8 sps:$4 sm:$0xff]  }
 0x38e   : > { %7988 = vmatpush1.bf16.msra.mxu1 %v20929_v42  ;;  %7958 = vmatprep.subr.bf16.mxu0 %v18450_v37  ;;  %v18460_v42 = vld [vmem:[%s19313_s19 + $0x950] ss:$8 sps:$4 sm:$0xff]   ;;  %v6114_v1 = vpop.f32.mrf.mxu0 }
 0x38f   : > { %8196 = vmatprep.subr.bf16.mxu1 %v18456_v27  ;;  %v21118_v37 = vld [vmem:[%s19313_s19 + $0xb50] ss:$8 sps:$4 sm:$0xff]   ;;  %v18522_v27 = vld [vmem:[%s19313_s19 + $0x9b4] ss:$8 sps:$4 sm:$0xff]  }
 0x390   : > { %v6417_v15 = vpop.f32.mrf.mxu0 }
 0x391   : > { %16105 = vmatmul.mubr.msk.bf16.vlgmr.msra.gmra.mxu1 %vm466_vm0, %v20620_v59  ;;  %7959 = vmatpush2.bf16.msra.mxu0 %v18448_v23  ;;  %v18468_v59 = vld [vmem:[%s19313_s19 + $0x944] ss:$8 sps:$4 sm:$0xff]   ;;  %v18514_v23 = vld [vmem:[%s19313_s19 + $0x9c0] ss:$8 sps:$4 sm:$0xff]  }
 0x392   : > { %8197 = vmatpush1.bf16.msra.mxu1 %v18454_v12  ;;  %7960 = vmatprep.subr.bf16.mxu0 %v18453_v11  ;;  %v21128_v11 = vld [vmem:[%s19313_s19 + $0xb40] ss:$8 sps:$4 sm:$0xff]   ;;  %v21133_v12 = vld [vmem:[%s19313_s19 + $0xc34] ss:$8 sps:$4 sm:$0xff]  }
 0x393   : > { %8198 = vmatprep.subr.bf16.mxu1 %v18459_v9  ;;  %8228 = vmatprep.mubr.bf16.mxu1 %v20630_v47  ;;  %v18466_v47 = vld [vmem:[%s19313_s19 + $0x940] ss:$8 sps:$4 sm:$0xff]  }
 0x395   : > { %7961 = vmatpush2.bf16.msra.mxu0 %v18451_v31 }
 0x396   : > { %8199 = vmatpush1.bf16.msra.mxu1 %v18457_v20  ;;  %8251 = vmatprep.subr.bf16.mxu0 %v18465_v28  ;;  %v18520_v20 = vld [vmem:[%s19313_s19 + $0x9b0] ss:$8 sps:$4 sm:$0xff]   ;;  %v6419_v28 = vpop.f32.mrf.mxu0 }
 0x397   : > { %8200 = vmatprep.subr.bf16.mxu1 %v18462_v10  ;;  %v21138_v10 = vld [vmem:[%s19313_s19 + $0xc30] ss:$8 sps:$4 sm:$0xff]  }
 0x398   : > { %7963 = vmatmul.mubr.bf16.vlgmr.msra.gmra.mxu0 %v21029_v4 }
 0x399   : > { %8252 = vmatpush1.bf16.msra.mxu0 %v18463_v57  ;;  %8271 = vmatprep.mubr.bf16.mxu0 %v19270_v0  ;;  %v21143_v57 = vld [vmem:[%s19313_s19 + $0xc24] ss:$8 sps:$4 sm:$0xff]  }
 0x39a   : > { %8201 = vmatpush1.bf16.msra.mxu1 %v18460_v42  ;;  %8253 = vmatprep.subr.bf16.mxu0 %v18471_v22  ;;  %v18528_v42 = vld [vmem:[%s19313_s19 + $0x9a4] ss:$8 sps:$4 sm:$0xff]   ;;  %v18526_v22 = vld [vmem:[%s19313_s19 + $0x9a0] ss:$8 sps:$4 sm:$0xff]  }
 0x39b   : > { %8202 = vmatprep.subr.bf16.mxu1 %v18468_v59 }
 0x39d   : > { %8254 = vmatpush1.bf16.msra.mxu0 %v18469_v6  ;;  %v6421_v6 = vpop.f32.mrf.mxu0 }
 0x39e   : > { %8203 = vmatpush1.bf16.msra.mxu1 %v18466_v47  ;;  %8499 = vmatprep.subr.bf16.mxu0 %v21036_v53  ;;  %v21148_v47 = vld [vmem:[%s19313_s19 + $0xc20] ss:$8 sps:$4 sm:$0xff]  }
 0x39f   : > { %8204 = vmatprep.subr.bf16.mxu1 %v18474_v13 }
 0x3a0   : > { %16142 = vmatmul.mubr.msk.bf16.vlgmr.msra.gmra.mxu0 %vm466_vm0, %v21051_v55 }
 0x3a1   : > { %8500 = vmatpush1.bf16.msra.mxu0 %v21041_v60  ;;  %8531 = vmatprep.mubr.bf16.mxu0 %v21068_v3 }
 0x3a2   : > { %8205 = vmatpush1.bf16.msra.mxu1 %v18472_v16  ;;  %8501 = vmatprep.subr.bf16.mxu0 %v21046_v25  ;;  %v18534_v16 = vld [vmem:[%s19313_s19 + $0x994] ss:$8 sps:$4 sm:$0xff]  }
 0x3a3   : > { %8206 = vmatprep.subr.bf16.mxu1 %v18480_v43  ;;  %v21153_v43 = vld [vmem:[%s19313_s19 + $0xc14] ss:$8 sps:$4 sm:$0xff]  }
 0x3a5   : > { %8502 = vmatpush1.bf16.msra.mxu0 %v21058_v32 }
 0x3a6   : > { %8207 = vmatpush1.bf16.msra.mxu1 %v18478_v45  ;;  %8503 = vmatprep.subr.bf16.mxu0 %v21063_v39  ;;  %v6152_v45 = vadd.f32 %v21086_v19, %v21088_v2  ;;  %v6158_v2 = vadd.f32 %v6157_v61, %v6114_v1  ;;  %v18549_v61 = vld [vmem:[%s19313_s19 + $0xc54] ss:$8 sps:$4 sm:$0xff]  }
 0x3a7   : > { %8208 = vmatprep.subr.bf16.mxu1 %v18486_v18  ;;  %v6154_v18 = vadd.f32 %v6153_v36, %v6110_v63 }
 0x3a9   : > { %8504 = vmatpush1.bf16.msra.mxu0 %v21074_v14 }
 0x3aa   : > { %8209 = vmatpush1.bf16.msra.mxu1 %v18484_v46  ;;  %8505 = vmatprep.subr.bf16.mxu0 %v21079_v24 }
 0x3ab   : > { %8210 = vmatprep.subr.bf16.mxu1 %v18492_v52  ;;  %v18532_v52 = vld [vmem:[%s19313_s19 + $0x990] ss:$8 sps:$4 sm:$0xff]  }
 0x3ad   : > { %8506 = vmatpush1.bf16.msra.mxu0 %v21084_v7 }
 0x3ae   : > { %8211 = vmatpush1.bf16.msra.mxu1 %v18490_v21  ;;  %8507 = vmatprep.subr.bf16.mxu0 %v21093_v29  ;;  %v21160_v21 = vld [vmem:[%s19313_s19 + $0xc10] ss:$8 sps:$4 sm:$0xff]  }
 0x3af   : > { %8212 = vmatprep.subr.bf16.mxu1 %v18498_v44  ;;  %v6156_v44 = vadd.f32 %v6155_v35, %v6112_v40  ;;  %v18538_v35 = vld [vmem:[%s19313_s19 + $0x980] ss:$8 sps:$4 sm:$0xff]  }
 0x3b0   : > { %v21170_v40 = vld [vmem:[%s19313_s19 + $0xc00] ss:$8 sps:$4 sm:$0xff]  }
 0x3b1   : > { %8508 = vmatpush1.bf16.msra.mxu0 %v21098_v8 }
 0x3b2   : > { %8213 = vmatpush2.bf16.msra.mxu1 %v18496_v17  ;;  %8509 = vmatprep.subr.bf16.mxu0 %v21103_v58  ;;  %v6423_v17 = vpop.f32.mrf.mxu0 }
 0x3b3   : > { %8214 = vmatprep.subr.bf16.mxu1 %v18504_v48 }
 0x3b5   : > { %8510 = vmatpush1.bf16.msra.mxu0 %v21108_v30 }
 0x3b6   : > { %8215 = vmatpush2.bf16.msra.mxu1 %v18502_v33  ;;  %8511 = vmatprep.subr.bf16.mxu0 %v21113_v50  ;;  %v18540_v33 = vld [vmem:[%s19313_s19 + $0x984] ss:$8 sps:$4 sm:$0xff]  }
 0x3b7   : > { %8216 = vmatprep.subr.bf16.mxu1 %v18510_v51  ;;  %v21165_v51 = vld [vmem:[%s19313_s19 + $0xc04] ss:$8 sps:$4 sm:$0xff]  }
 0x3b9   : > { %v6374_v26 = vpop.f32.mrf.mxu1  ;;  %8512 = vmatpush1.bf16.msra.mxu0 %v21118_v37 }
 0x3ba   : > { %8217 = vmatpush2.bf16.msra.mxu1 %v18508_v41  ;;  %8513 = vmatprep.subr.bf16.mxu0 %v21123_v5  ;;  %v6375_v46 = vadd.f32 %v6374_v26, %v6152_v45  ;;  %v18547_v45 = vld [vmem:[%s19313_s19 + $0xc50] ss:$8 sps:$4 sm:$0xff]  }
 0x3bb   : > { %v6376_v31 = vpop.f32.mrf.mxu1  ;;  %8218 = vmatprep.subr.bf16.mxu1 %v18516_v56 }
 0x3bc   : > { %v6377_v19 = vadd.f32 %v6376_v31, %v6154_v18  ;;  %v6418_v41 = vadd.f32 %v6417_v15, %v6375_v46  ;;  %v21174_v31 = vld [vmem:[%s19313_s19 + $0xbf4] ss:$8 sps:$4 sm:$0xff]  }
 0x3bd   : > { %v6378_v9 = vpop.f32.mrf.mxu1  ;;  %8514 = vmatpush1.bf16.msra.mxu0 %v21128_v11 }
 0x3be   : > { %8219 = vmatpush2.bf16.msra.mxu1 %v18514_v23  ;;  %8515 = vmatprep.subr.bf16.mxu0 %v21133_v12  ;;  %v6379_v36 = vadd.f32 %v6378_v9, %v6156_v44  ;;  %v6420_v1 = vadd.f32 %v6419_v28, %v6377_v19  ;;  %v21185_v28 = vld [vmem:[%s19313_s19 + $0xbe4] ss:$8 sps:$4 sm:$0xff]  }
 0x3bf   : > { %8220 = vmatprep.subr.bf16.mxu1 %v18522_v27  ;;  %v6380_v59 = vpop.f32.mrf.mxu1 }
 0x3c0   : > { %v6381_v26 = vadd.f32 %v6380_v59, %v6158_v2 }
 0x3c1   : > { %8516 = vmatpush2.bf16.msra.mxu0 %v21138_v10  ;;  %v6720_v13 = vpop.f32.mrf.mxu1 }
 0x3c2   : > { %8221 = vmatpush2.bf16.msra.mxu1 %v18520_v20  ;;  %8517 = vmatprep.subr.bf16.mxu0 %v21143_v57  ;;  %v6422_v20 = vadd.f32 %v6421_v6, %v6379_v36  ;;  %v6424_v18 = vadd.f32 %v6423_v17, %v6381_v26  ;;  %v18555_v6 = vld [vmem:[%s19313_s19 + $0xc44] ss:$8 sps:$4 sm:$0xff]  }
 0x3c3   : > { %8222 = vmatprep.subr.bf16.mxu1 %v18528_v42  ;;  %v6722_v48 = vpop.f32.mrf.mxu1 }
 0x3c5   : > { %8518 = vmatpush2.bf16.msra.mxu0 %v21148_v47  ;;  %v6724_v23 = vpop.f32.mrf.mxu1 }
 0x3c6   : > { %8223 = vmatpush2.bf16.msra.mxu1 %v18526_v22  ;;  %8519 = vmatprep.subr.bf16.mxu0 %v21153_v43 }
 0x3c7   : > { %8224 = vmatprep.subr.bf16.mxu1 %v18534_v16  ;;  %v21180_v16 = vld [vmem:[%s19313_s19 + $0xbf0] ss:$8 sps:$4 sm:$0xff]   ;;  %v6726_v46 = vpop.f32.mrf.mxu1 }
 0x3c8   : > { %v6677_v63 = vpop.f32.mrf.mxu0 }
 0x3c9   : > { %v6721_v56 = vadd.f32 %v6720_v13, %v6677_v63  ;;  %8520 = vmatpush2.bf16.msra.mxu0 %v21160_v21 }
 0x3ca   : > { %8225 = vmatpush2.bf16.msra.mxu1 %v18532_v52  ;;  %v6679_v27 = vpop.f32.mrf.mxu0  ;;  %8521 = vmatprep.subr.bf16.mxu0 %v21165_v51 }
 0x3cb   : > { %8226 = vmatprep.subr.bf16.mxu1 %v18540_v33  ;;  %v6729_v15 = vadd.f32 %v6721_v56, %v6418_v41  ;;  %v6723_v9 = vadd.f32 %v6722_v48, %v6679_v27  ;;  %v21193_v41 = vld [vmem:[%s19313_s19 + $0xbe0] ss:$8 sps:$4 sm:$0xff]  }
 0x3cc   : > { %v6681_v42 = vpop.f32.mrf.mxu0  ;;  %v18553_v56 = vld [vmem:[%s19313_s19 + $0xc40] ss:$8 sps:$4 sm:$0xff]  }
 0x3cd   : > { %v6733_v22 = vadd.f32 %v6729_v15, %v19929_v34  ;;  %v6730_v59 = vadd.f32 %v6723_v9, %v6420_v1  ;;  %v6725_v13 = vadd.f32 %v6724_v23, %v6681_v42  ;;  %8522 = vmatpush2.bf16.msra.mxu0 %v21170_v40  ;;  %v21207_v9 = vld [vmem:[%s19313_s19 + $0xbd0] ss:$8 sps:$4 sm:$0xff]  }
 0x3ce   : > { %8227 = vmatpush2.bf16.msra.mxu1 %v18538_v35  ;;  %v6683_v52 = vpop.f32.mrf.mxu0  ;;  %8523 = vmatprep.subr.bf16.mxu0 %v21174_v31  ;;  %v21198_v35 = vld [vmem:[%s19313_s19 + $0xbd4] ss:$8 sps:$4 sm:$0xff]  }
 0x3cf   : > { %8554 = vmatprep.subr.bf16.mxu1 %v18549_v61  ;;  %v6737_v44 = vmax.f32 %v6733_v22, -1.0  ;;  %v6734_v48 = vadd.f32 %v6730_v59, %v19929_v34  ;;  %v6731_v33 = vadd.f32 %v6725_v13, %v6422_v20  ;;  %v6727_v19 = vadd.f32 %v6726_v46, %v6683_v52  ;;  %v21212_v20 = vld [vmem:[%s19313_s19 + $0xbc4] ss:$8 sps:$4 sm:$0xff]   ;;  %v21222_v22 = vld [vmem:[%s19313_s19 + $0xbc0] ss:$8 sps:$4 sm:$0xff]  }
 0x3d0   : > { %v18595_v59 = vld [vmem:[%s19313_s19 + $0xae0] ss:$8 sps:$4 sm:$0xff]   ;;  %v18600_v13 = vld [vmem:[%s19313_s19 + $0xad4] ss:$8 sps:$4 sm:$0xff]   ;;  %v18606_v46 = vld [vmem:[%s19313_s19 + $0xac4] ss:$8 sps:$4 sm:$0xff]  }
 0x3d1   : > { %8229 = vmatmul.mubr.bf16.vlgmr.msra.gmra.mxu1 %v20923_v49  ;;  %v6741_v17 = vmul.f32 0.5, %v6737_v44  ;;  %v6738_v2 = vmax.f32 %v6734_v48, -1.0  ;;  %v6735_v36 = vadd.f32 %v6731_v33, %v19955_v62  ;;  %v6732_v63 = vadd.f32 %v6727_v19, %v6424_v18  ;;  %8524 = vmatpush2.bf16.msra.mxu0 %v21180_v16  ;;  %v18601_v18 = vld [vmem:[%s19313_s19 + $0xb30] ss:$8 sps:$4 sm:$0xff]   ;;  %v18609_v52 = vld [vmem:[%s19313_s19 + $0xb24] ss:$8 sps:$4 sm:$0xff]  }
 0x3d2   : > { %8555 = vmatpush1.bf16.msra.mxu1 %v18547_v45  ;;  %8525 = vmatprep.subr.bf16.mxu0 %v21185_v28  ;;  %v18612_v44 = vld [vmem:[%s19313_s19 + $0xab4] ss:$8 sps:$4 sm:$0xff]   ;;  %v18610_v33 = vld [vmem:[%s19313_s19 + $0xab0] ss:$8 sps:$4 sm:$0xff]  }
 0x3d3   : > { %8556 = vmatprep.subr.bf16.mxu1 %v18555_v6  ;;  %15770 = vst [vmem:[%s19963_s9 + $0xc0] sm:$0xff] %v6741_v17  ;;  %v6742_v26 = vmul.f32 0.5, %v6738_v2  ;;  %v6739_v23 = vmax.f32 %v6735_v36, -1.0  ;;  %v6736_v27 = vadd.f32 %v6732_v63, %v19955_v62  ;;  %8574 = vmatprep.mubr.bf16.mxu1 %v19270_v0  ;;  %v18615_v48 = vld [vmem:[%s19313_s19 + $0xcd4] ss:$8 sps:$4 sm:$0xff]  }
 0x3d4   : > { %v18613_v19 = vld [vmem:[%s19313_s19 + $0xcd0] ss:$8 sps:$4 sm:$0xff]   ;;  %v18618_v17 = vld [vmem:[%s19313_s19 + $0xaa4] ss:$8 sps:$4 sm:$0xff]   ;;  %v18616_v36 = vld [vmem:[%s19313_s19 + $0xaa0] ss:$8 sps:$4 sm:$0xff]  }
 0x3d5   : > { %15771 = vst.msk [vmem:[%s19963_s9 + $0xc8] sm:$0xff] %vm1178_vm1, %v6742_v26  ;;  %v6743_v1 = vmul.f32 0.5, %v6739_v23  ;;  %v6740_v15 = vmax.f32 %v6736_v27, -1.0  ;;  %8526 = vmatpush2.bf16.msra.mxu0 %v21193_v41  ;;  %v18621_v2 = vld [vmem:[%s19313_s19 + $0xcc4] ss:$8 sps:$4 sm:$0xff]  }
 0x3d6   : > { %8557 = vmatpush1.bf16.msra.mxu1 %v18553_v56  ;;  %8527 = vmatprep.subr.bf16.mxu0 %v21198_v35  ;;  %v18619_v63 = vld [vmem:[%s19313_s19 + $0xcc0] ss:$8 sps:$4 sm:$0xff]   ;;  %v18622_v26 = vld [vmem:[%s19313_s19 + $0xcb0] ss:$8 sps:$4 sm:$0xff]   ;;  %v18630_v27 = vld [vmem:[%s19313_s19 + $0xca4] ss:$8 sps:$4 sm:$0xff]  }
 0x3d7   : > { %8858 = vmatprep.subr.bf16.mxu1 %v21036_v53  ;;  %15772 = vst [vmem:[%s19963_s9 + $0xd0] sm:$0xff] %v6743_v1  ;;  %v6744_v42 = vmul.f32 0.5, %v6740_v15  ;;  %v21233_v53 = vld [vmem:[%s22359_s1 + $0x30] ss:$12 sps:$4 sm:$0xff]   ;;  %v21335_v1 = vld [vmem:[%s19313_s19 + $0xd64] ss:$8 sps:$4 sm:$0xff]  }
 0x3d8   : > { %v21330_v23 = vld [vmem:[%s19313_s19 + $0xd70] ss:$8 sps:$4 sm:$0xff]  }
 0x3d9   : > { %16215 = vmatmul.mubr.msk.bf16.vlgmr.msra.gmra.mxu1 %vm466_vm0, %v20940_v38  ;;  %15773 = vst.msk [vmem:[%s19963_s9 + $0xd8] sm:$0xff] %vm1178_vm1, %v6744_v42  ;;  %8528 = vmatpush2.bf16.msra.mxu0 %v21207_v9  ;;  %v18636_v42 = vld [vmem:[%s19313_s19 + $0xc94] ss:$8 sps:$4 sm:$0xff]  }
 0x3da   : > { %8859 = vmatpush1.bf16.msra.mxu1 %v21041_v60  ;;  %8529 = vmatprep.subr.bf16.mxu0 %v21212_v20  ;;  %v18564_v60 = vld [vmem:[%s19313_s19 + $0xa94] ss:$8 sps:$4 sm:$0xff]  }
 0x3db   : > { %8860 = vmatprep.subr.bf16.mxu1 %v21046_v25  ;;  %8890 = vmatprep.mubr.bf16.mxu1 %v20949_v54  ;;  %v18562_v25 = vld [vmem:[%s19313_s19 + $0xa90] ss:$8 sps:$4 sm:$0xff]  }
 0x3dd   : > { %8530 = vmatpush2.bf16.msra.mxu0 %v21222_v22 }
 0x3de   : > { %8861 = vmatpush1.bf16.msra.mxu1 %v21058_v32  ;;  %8913 = vmatprep.subr.bf16.mxu0 %v18549_v61  ;;  %v18567_v32 = vld [vmem:[%s19313_s19 + $0xa84] ss:$8 sps:$4 sm:$0xff]   ;;  %v18576_v61 = vld [vmem:[%s19313_s19 + $0xa54] ss:$8 sps:$4 sm:$0xff]  }
 0x3df   : > { %8862 = vmatprep.subr.bf16.mxu1 %v21063_v39  ;;  %v21247_v39 = vld [vmem:[%s22359_s1 + $0x20] ss:$12 sps:$4 sm:$0xff]  }
 0x3e0   : > { %8532 = vmatmul.mubr.bf16.vlgmr.msra.gmra.mxu0 %v21233_v53 }
 0x3e1   : > { %8914 = vmatpush1.bf16.msra.mxu0 %v18547_v45  ;;  %8933 = vmatprep.mubr.bf16.mxu0 %v19270_v0  ;;  %v18598_v45 = vld [vmem:[%s19313_s19 + $0xad0] ss:$8 sps:$4 sm:$0xff]  }
 0x3e2   : > { %8863 = vmatpush1.bf16.msra.mxu1 %v21074_v14  ;;  %8915 = vmatprep.subr.bf16.mxu0 %v18555_v6  ;;  %v18565_v14 = vld [vmem:[%s19313_s19 + $0xa80] ss:$8 sps:$4 sm:$0xff]  }
 0x3e3   : > { %8864 = vmatprep.subr.bf16.mxu1 %v21079_v24  ;;  %v18570_v24 = vld [vmem:[%s19313_s19 + $0xa74] ss:$8 sps:$4 sm:$0xff]   ;;  %v18607_v6 = vld [vmem:[%s19313_s19 + $0xb20] ss:$8 sps:$4 sm:$0xff]  }
 0x3e5   : > { %8916 = vmatpush1.bf16.msra.mxu0 %v18553_v56  ;;  %v21323_v56 = vld [vmem:[%s19313_s19 + $0xd74] ss:$8 sps:$4 sm:$0xff]  }
 0x3e6   : > { %8865 = vmatpush1.bf16.msra.mxu1 %v21084_v7  ;;  %9124 = vmatprep.subr.bf16.mxu0 %v18564_v60  ;;  %v21258_v7 = vld [vmem:[%s22359_s1 + $0x4] ss:$12 sps:$4 sm:$0xff]  }
 0x3e7   : > { %8866 = vmatprep.subr.bf16.mxu1 %v21093_v29  ;;  %v18568_v29 = vld [vmem:[%s19313_s19 + $0xa70] ss:$8 sps:$4 sm:$0xff]  }
 0x3e8   : > { %16328 = vmatmul.mubr.msk.bf16.vlgmr.msra.gmra.mxu0 %vm466_vm0, %v21247_v39 }
 0x3e9   : > { %9125 = vmatpush1.bf16.msra.mxu0 %v18562_v25  ;;  %9156 = vmatprep.mubr.bf16.mxu0 %v21258_v7  ;;  %v18639_v25 = vld [vmem:[%s19313_s19 + $0xc84] ss:$8 sps:$4 sm:$0xff]  }
 0x3ea   : > { %8867 = vmatpush1.bf16.msra.mxu1 %v21098_v8  ;;  %9126 = vmatprep.subr.bf16.mxu0 %v18567_v32  ;;  %v18573_v8 = vld [vmem:[%s19313_s19 + $0xa64] ss:$8 sps:$4 sm:$0xff]  }
 0x3eb   : > { %8868 = vmatprep.subr.bf16.mxu1 %v21103_v58  ;;  %v18571_v58 = vld [vmem:[%s19313_s19 + $0xa60] ss:$8 sps:$4 sm:$0xff]  }
 0x3ed   : > { %9127 = vmatpush1.bf16.msra.mxu0 %v18565_v14 }
 0x3ee   : > { %8869 = vmatpush1.bf16.msra.mxu1 %v21108_v30  ;;  %9128 = vmatprep.subr.bf16.mxu0 %v18570_v24  ;;  %v18574_v30 = vld [vmem:[%s19313_s19 + $0xa50] ss:$8 sps:$4 sm:$0xff]   ;;  %v18637_v24 = vld [vmem:[%s19313_s19 + $0xc80] ss:$8 sps:$4 sm:$0xff]  }
 0x3ef   : > { %8870 = vmatprep.subr.bf16.mxu1 %v21113_v50  ;;  %v18579_v50 = vld [vmem:[%s19313_s19 + $0xa44] ss:$8 sps:$4 sm:$0xff]  }
 0x3f1   : > { %9129 = vmatpush1.bf16.msra.mxu0 %v18568_v29 }
 0x3f2   : > { %8871 = vmatpush1.bf16.msra.mxu1 %v21118_v37  ;;  %9130 = vmatprep.subr.bf16.mxu0 %v18573_v8  ;;  %v18577_v37 = vld [vmem:[%s19313_s19 + $0xa40] ss:$8 sps:$4 sm:$0xff]   ;;  %v18642_v8 = vld [vmem:[%s19313_s19 + $0xc74] ss:$8 sps:$4 sm:$0xff]  }
 0x3f3   : > { %8872 = vmatprep.subr.bf16.mxu1 %v21123_v5  ;;  %v18582_v5 = vld [vmem:[%s19313_s19 + $0xa34] ss:$8 sps:$4 sm:$0xff]  }
 0x3f5   : > { %9131 = vmatpush1.bf16.msra.mxu0 %v18571_v58 }
 0x3f6   : > { %8873 = vmatpush1.bf16.msra.mxu1 %v21128_v11  ;;  %9132 = vmatprep.subr.bf16.mxu0 %v18576_v61  ;;  %v18580_v11 = vld [vmem:[%s19313_s19 + $0xa30] ss:$8 sps:$4 sm:$0xff]  }
 0x3f7   : > { %8874 = vmatprep.subr.bf16.mxu1 %v21133_v12  ;;  %v18585_v12 = vld [vmem:[%s19313_s19 + $0xa24] ss:$8 sps:$4 sm:$0xff]   ;;  %v18640_v61 = vld [vmem:[%s19313_s19 + $0xc70] ss:$8 sps:$4 sm:$0xff]  }
 0x3f9   : > { %9133 = vmatpush1.bf16.msra.mxu0 %v18574_v30 }
 0x3fa   : > { %8875 = vmatpush2.bf16.msra.mxu1 %v21138_v10  ;;  %9134 = vmatprep.subr.bf16.mxu0 %v18579_v50  ;;  %v18583_v10 = vld [vmem:[%s19313_s19 + $0xa20] ss:$8 sps:$4 sm:$0xff]  }
 0x3fb   : > { %8876 = vmatprep.subr.bf16.mxu1 %v21143_v57  ;;  %v18588_v57 = vld [vmem:[%s19313_s19 + $0xb14] ss:$8 sps:$4 sm:$0xff]  }
 0x3fd   : > { %9135 = vmatpush1.bf16.msra.mxu0 %v18577_v37  ;;  %v18643_v37 = vld [vmem:[%s19313_s19 + $0xc60] ss:$8 sps:$4 sm:$0xff]  }
 0x3fe   : > { %8877 = vmatpush2.bf16.msra.mxu1 %v21148_v47  ;;  %9136 = vmatprep.subr.bf16.mxu0 %v18582_v5  ;;  %v18586_v47 = vld [vmem:[%s19313_s19 + $0xb10] ss:$8 sps:$4 sm:$0xff]  }
 0x3ff   : > { %8878 = vmatprep.subr.bf16.mxu1 %v21153_v43  ;;  %v18591_v43 = vld [vmem:[%s19313_s19 + $0xb04] ss:$8 sps:$4 sm:$0xff]  }
 0x401   : > { %9137 = vmatpush1.bf16.msra.mxu0 %v18580_v11  ;;  %v7036_v60 = vpop.f32.mrf.mxu1 }
 0x402   : > { %8879 = vmatpush2.bf16.msra.mxu1 %v21160_v21  ;;  %9138 = vmatprep.subr.bf16.mxu0 %v18585_v12  ;;  %v18589_v21 = vld [vmem:[%s19313_s19 + $0xb00] ss:$8 sps:$4 sm:$0xff]   ;;  %v21361_v12 = vld [vmem:[%s19313_s19 + $0xd50] ss:$8 sps:$4 sm:$0xff]  }
 0x403   : > { %8880 = vmatprep.subr.bf16.mxu1 %v21165_v51  ;;  %v18594_v51 = vld [vmem:[%s19313_s19 + $0xaf4] ss:$8 sps:$4 sm:$0xff]   ;;  %v7038_v14 = vpop.f32.mrf.mxu1 }
 0x405   : > { %9139 = vmatpush1.bf16.msra.mxu0 %v18583_v10  ;;  %v7040_v58 = vpop.f32.mrf.mxu1 }
 0x406   : > { %8881 = vmatpush2.bf16.msra.mxu1 %v21170_v40  ;;  %9140 = vmatprep.subr.bf16.mxu0 %v18588_v57  ;;  %v18592_v40 = vld [vmem:[%s19313_s19 + $0xaf0] ss:$8 sps:$4 sm:$0xff]  }
 0x407   : > { %8882 = vmatprep.subr.bf16.mxu1 %v21174_v31  ;;  %v18597_v31 = vld [vmem:[%s19313_s19 + $0xae4] ss:$8 sps:$4 sm:$0xff]   ;;  %v7042_v50 = vpop.f32.mrf.mxu1 }
 0x409   : > { %9141 = vmatpush2.bf16.msra.mxu0 %v18586_v47  ;;  %v7345_v5 = vpop.f32.mrf.mxu1  ;;  %v21364_v47 = vld [vmem:[%s19313_s19 + $0xd44] ss:$8 sps:$4 sm:$0xff]  }
 0x40a   : > { %8883 = vmatpush2.bf16.msra.mxu1 %v21180_v16  ;;  %9142 = vmatprep.subr.bf16.mxu0 %v18591_v43  ;;  %v18603_v16 = vld [vmem:[%s19313_s19 + $0xb34] ss:$8 sps:$4 sm:$0xff]   ;;  %v21368_v43 = vld [vmem:[%s19313_s19 + $0xd40] ss:$8 sps:$4 sm:$0xff]  }
 0x40b   : > { %8884 = vmatprep.subr.bf16.mxu1 %v21185_v28  ;;  %v18604_v28 = vld [vmem:[%s19313_s19 + $0xac0] ss:$8 sps:$4 sm:$0xff]   ;;  %v7347_v10 = vpop.f32.mrf.mxu1 }
 0x40d   : > { %9143 = vmatpush2.bf16.msra.mxu0 %v18589_v21  ;;  %v7349_v21 = vpop.f32.mrf.mxu1 }
 0x40e   : > { %8885 = vmatpush2.bf16.msra.mxu1 %v21193_v41  ;;  %9144 = vmatprep.subr.bf16.mxu0 %v18594_v51  ;;  %v18624_v41 = vld [vmem:[%s19313_s19 + $0xcb4] ss:$8 sps:$4 sm:$0xff]  }
 0x40f   : > { %8886 = vmatprep.subr.bf16.mxu1 %v21198_v35  ;;  %v21326_v35 = vpop.f32.mrf.mxu0 }
 0x411   : > { %9145 = vmatpush2.bf16.msra.mxu0 %v18592_v40  ;;  %v21337_v15 = vpop.f32.mrf.mxu0  ;;  %v21372_v40 = vld [vmem:[%s19313_s19 + $0xd34] ss:$8 sps:$4 sm:$0xff]  }
 0x412   : > { %8887 = vmatpush2.bf16.msra.mxu1 %v21207_v9  ;;  %9146 = vmatprep.subr.bf16.mxu0 %v18597_v31  ;;  %v18628_v9 = vld [vmem:[%s19313_s19 + $0xca0] ss:$8 sps:$4 sm:$0xff]   ;;  %v7080_v31 = vadd.f32 %v21326_v35, %v7036_v60 }
 0x413   : > { %8888 = vmatprep.subr.bf16.mxu1 %v21212_v20  ;;  %v21343_v20 = vld [vmem:[%s19313_s19 + $0xd60] ss:$8 sps:$4 sm:$0xff]  }
 0x415   : > { %9147 = vmatpush2.bf16.msra.mxu0 %v18595_v59  ;;  %v7082_v59 = vadd.f32 %v21337_v15, %v7038_v14 }
 0x416   : > { %8889 = vmatpush2.bf16.msra.mxu1 %v21222_v22  ;;  %9148 = vmatprep.subr.bf16.mxu0 %v18600_v13  ;;  %v7083_v22 = vpop.f32.mrf.mxu0 }
 0x417   : > { %9179 = vmatprep.subr.bf16.mxu1 %v18603_v16  ;;  %v21378_v16 = vld [vmem:[%s19313_s19 + $0xd30] ss:$8 sps:$4 sm:$0xff]  }
 0x418   : > { %v7085_v32 = vpop.f32.mrf.mxu0 }
 0x419   : > { %8891 = vmatmul.mubr.bf16.vlgmr.msra.gmra.mxu1 %v21029_v4  ;;  %9149 = vmatpush2.bf16.msra.mxu0 %v18598_v45  ;;  %v7084_v45 = vadd.f32 %v7083_v22, %v7040_v58 }
 0x41a   : > { %9180 = vmatpush1.bf16.msra.mxu1 %v18601_v18  ;;  %9150 = vmatprep.subr.bf16.mxu0 %v18606_v46  ;;  %v7302_v29 = vpop.f32.mrf.mxu0  ;;  %v7351_v18 = vpop.f32.mrf.mxu1 }
 0x41b   : > { %9181 = vmatprep.subr.bf16.mxu1 %v18609_v52  ;;  %9199 = vmatprep.mubr.bf16.mxu1 %v19270_v0  ;;  %v7303_v13 = vadd.f32 %v7302_v29, %v7080_v31  ;;  %v21382_v52 = vld [vmem:[%s19313_s19 + $0xd24] ss:$8 sps:$4 sm:$0xff]  }
 0x41c   : > { %v7304_v30 = vpop.f32.mrf.mxu0 }
 0x41d   : > { %9151 = vmatpush2.bf16.msra.mxu0 %v18604_v28  ;;  %v7305_v28 = vadd.f32 %v7304_v30, %v7082_v59  ;;  %v18667_v59 = vld [vmem:[%s19313_s19 + $0xce0] ss:$8 sps:$4 sm:$0xff]  }
 0x41e   : > { %9182 = vmatpush1.bf16.msra.mxu1 %v18607_v6  ;;  %9152 = vmatprep.subr.bf16.mxu0 %v18612_v44  ;;  %v7306_v11 = vpop.f32.mrf.mxu0  ;;  %v7086_v6 = vadd.f32 %v7085_v32, %v7042_v50 }
 0x41f   : > { %9427 = vmatprep.subr.bf16.mxu1 %v18615_v48  ;;  %v7307_v44 = vadd.f32 %v7306_v11, %v7084_v45  ;;  %v7348_v35 = vadd.f32 %v7347_v10, %v7305_v28  ;;  %v18666_v11 = vld [vmem:[%s19313_s19 + $0xcf4] ss:$8 sps:$4 sm:$0xff]   ;;  %v18684_v45 = vld [vmem:[%s19313_s19 + $0xb84] ss:$8 sps:$4 sm:$0xff]  }
 0x420   : > { %v7308_v57 = vpop.f32.mrf.mxu0  ;;  %v18690_v28 = vld [vmem:[%s19313_s19 + $0xb74] ss:$8 sps:$4 sm:$0xff]  }
 0x421   : > { %16365 = vmatmul.mubr.msk.bf16.vlgmr.msra.gmra.mxu1 %vm466_vm0, %v21051_v55  ;;  %9153 = vmatpush2.bf16.msra.mxu0 %v18610_v33  ;;  %v7346_v33 = vadd.f32 %v7345_v5, %v7303_v13  ;;  %v7350_v15 = vadd.f32 %v7349_v21, %v7307_v44  ;;  %v18661_v5 = vld [vmem:[%s19313_s19 + $0xd00] ss:$8 sps:$4 sm:$0xff]   ;;  %v18676_v13 = vld [vmem:[%s19313_s19 + $0xb90] ss:$8 sps:$4 sm:$0xff]  }
 0x422   : > { %9428 = vmatpush1.bf16.msra.mxu1 %v18613_v19  ;;  %9154 = vmatprep.subr.bf16.mxu0 %v18618_v17  ;;  %v7648_v51 = vpop.f32.mrf.mxu0  ;;  %v18655_v17 = vld [vmem:[%s19313_s19 + $0xd20] ss:$8 sps:$4 sm:$0xff]   ;;  %v21440_v44 = vld [vmem:[%s19313_s19 + $0xdf0] ss:$8 sps:$4 sm:$0xff]  }
 0x423   : > { %9429 = vmatprep.subr.bf16.mxu1 %v18621_v2  ;;  %9459 = vmatprep.mubr.bf16.mxu1 %v21068_v3 }
 0x424   : > { %v7650_v46 = vpop.f32.mrf.mxu0 }
 0x425   : > { %9155 = vmatpush2.bf16.msra.mxu0 %v18616_v36 }
 0x426   : > { %9430 = vmatpush1.bf16.msra.mxu1 %v18619_v63  ;;  %9482 = vmatprep.subr.bf16.mxu0 %v21323_v56  ;;  %v7652_v36 = vpop.f32.mrf.mxu0 }
 0x427   : > { %9431 = vmatprep.subr.bf16.mxu1 %v18624_v41 }
 0x428   : > { %9157 = vmatmul.mubr.bf16.vlgmr.msra.gmra.mxu0 %v20923_v49  ;;  %v18634_v49 = vld [vmem:[%s19313_s19 + $0xc90] ss:$8 sps:$4 sm:$0xff]   ;;  %v7654_v32 = vpop.f32.mrf.mxu0 }
 0x429   : > { %9483 = vmatpush1.bf16.msra.mxu0 %v21330_v23  ;;  %9502 = vmatprep.mubr.bf16.mxu0 %v19270_v0 }
 0x42a   : > { %9432 = vmatpush1.bf16.msra.mxu1 %v18622_v26  ;;  %9484 = vmatprep.subr.bf16.mxu0 %v21335_v1 }
 0x42b   : > { %9433 = vmatprep.subr.bf16.mxu1 %v18630_v27 }
 0x42d   : > { %9485 = vmatpush1.bf16.msra.mxu0 %v21343_v20 }
 0x42e   : > { %9434 = vmatpush1.bf16.msra.mxu1 %v18628_v9  ;;  %9786 = vmatprep.subr.bf16.mxu0 %v18615_v48 }
 0x42f   : > { %9435 = vmatprep.subr.bf16.mxu1 %v18636_v42 }
 0x430   : > { %16438 = vmatmul.mubr.msk.bf16.vlgmr.msra.gmra.mxu0 %vm466_vm0, %v20940_v38  ;;  %v18645_v38 = vld [vmem:[%s19313_s19 + $0xc64] ss:$8 sps:$4 sm:$0xff]  }
 0x431   : > { %9787 = vmatpush1.bf16.msra.mxu0 %v18613_v19  ;;  %9818 = vmatprep.mubr.bf16.mxu0 %v20949_v54  ;;  %v18648_v54 = vld [vmem:[%s19313_s19 + $0xd54] ss:$8 sps:$4 sm:$0xff]  }
 0x432   : > { %9436 = vmatpush1.bf16.msra.mxu1 %v18634_v49  ;;  %9788 = vmatprep.subr.bf16.mxu0 %v18621_v2  ;;  %v7309_v2 = vadd.f32 %v7308_v57, %v7086_v6  ;;  %v21435_v6 = vld [vmem:[%s19313_s19 + $0xdf4] ss:$8 sps:$4 sm:$0xff]  }
 0x433   : > { %9437 = vmatprep.subr.bf16.mxu1 %v18639_v25 }
 0x435   : > { %9789 = vmatpush1.bf16.msra.mxu0 %v18619_v63 }
 0x436   : > { %9438 = vmatpush1.bf16.msra.mxu1 %v18637_v24  ;;  %9790 = vmatprep.subr.bf16.mxu0 %v18624_v41  ;;  %v18660_v41 = vld [vmem:[%s19313_s19 + $0xd14] ss:$8 sps:$4 sm:$0xff]  }
 0x437   : > { %9439 = vmatprep.subr.bf16.mxu1 %v18642_v8 }
 0x439   : > { %9791 = vmatpush1.bf16.msra.mxu0 %v18622_v26 }
 0x43a   : > { %9440 = vmatpush1.bf16.msra.mxu1 %v18640_v61  ;;  %9792 = vmatprep.subr.bf16.mxu0 %v18630_v27 }
 0x43b   : > { %9441 = vmatprep.subr.bf16.mxu1 %v18645_v38 }
 0x43d   : > { %9793 = vmatpush1.bf16.msra.mxu0 %v18628_v9 }
 0x43e   : > { %9442 = vmatpush1.bf16.msra.mxu1 %v18643_v37  ;;  %9794 = vmatprep.subr.bf16.mxu0 %v18636_v42 }
 0x43f   : > { %9443 = vmatprep.subr.bf16.mxu1 %v18648_v54 }
 0x441   : > { %9795 = vmatpush1.bf16.msra.mxu0 %v18634_v49  ;;  %v18658_v49 = vld [vmem:[%s19313_s19 + $0xd10] ss:$8 sps:$4 sm:$0xff]  }
 0x442   : > { %9444 = vmatpush2.bf16.msra.mxu1 %v21361_v12  ;;  %9796 = vmatprep.subr.bf16.mxu0 %v18639_v25  ;;  %v7352_v25 = vadd.f32 %v7351_v18, %v7309_v2  ;;  %v18687_v18 = vld [vmem:[%s19313_s19 + $0xc44] ss:$8 sps:$4 sm:$0xff]   ;;  %v18702_v2 = vld [vmem:[%s19313_s19 + $0xb54] ss:$8 sps:$4 sm:$0xff]  }
 0x443   : > { %9445 = vmatprep.subr.bf16.mxu1 %v21364_v47 }
 0x445   : > { %9797 = vmatpush1.bf16.msra.mxu0 %v18637_v24  ;;  %v18663_v24 = vld [vmem:[%s19313_s19 + $0xd04] ss:$8 sps:$4 sm:$0xff]  }
 0x446   : > { %9446 = vmatpush2.bf16.msra.mxu1 %v21368_v43  ;;  %9798 = vmatprep.subr.bf16.mxu0 %v18642_v8 }
 0x447   : > { %9447 = vmatprep.subr.bf16.mxu1 %v21372_v40 }
 0x449   : > { %v7605_v48 = vpop.f32.mrf.mxu1  ;;  %9799 = vmatpush1.bf16.msra.mxu0 %v18640_v61 }
 0x44a   : > { %v7649_v19 = vadd.f32 %v7648_v51, %v7605_v48  ;;  %9448 = vmatpush2.bf16.msra.mxu1 %v21378_v16  ;;  %9800 = vmatprep.subr.bf16.mxu0 %v18645_v38  ;;  %v18696_v48 = vld [vmem:[%s19313_s19 + $0xb64] ss:$8 sps:$4 sm:$0xff]  }
 0x44b   : > { %v7607_v63 = vpop.f32.mrf.mxu1  ;;  %9449 = vmatprep.subr.bf16.mxu1 %v21382_v52 }
 0x44c   : > { %v7657_v26 = vadd.f32 %v7649_v19, %v7346_v33  ;;  %v7651_v27 = vadd.f32 %v7650_v46, %v7607_v63  ;;  %v18682_v46 = vld [vmem:[%s19313_s19 + $0xb80] ss:$8 sps:$4 sm:$0xff]   ;;  %v21445_v33 = vld [vmem:[%s19313_s19 + $0xde4] ss:$8 sps:$4 sm:$0xff]   ;;  %v21463_v63 = vld [vmem:[%s19313_s19 + $0xdd0] ss:$8 sps:$4 sm:$0xff]  }
 0x44d   : > { %v7609_v9 = vpop.f32.mrf.mxu1  ;;  %9801 = vmatpush1.bf16.msra.mxu0 %v18643_v37  ;;  %v18694_v19 = vld [vmem:[%s19313_s19 + $0xb60] ss:$8 sps:$4 sm:$0xff]  }
 0x44e   : > { %v7661_v42 = vadd.f32 %v7657_v26, %v19929_v34  ;;  %v7658_v22 = vadd.f32 %v7651_v27, %v7348_v35  ;;  %v7653_v60 = vadd.f32 %v7652_v36, %v7609_v9  ;;  %9450 = vmatpush2.bf16.msra.mxu1 %v18655_v17  ;;  %9802 = vmatprep.subr.bf16.mxu0 %v18648_v54  ;;  %v21457_v36 = vld [vmem:[%s19313_s19 + $0xdd4] ss:$8 sps:$4 sm:$0xff]   ;;  %v21468_v35 = vld [vmem:[%s19313_s19 + $0xdc4] ss:$8 sps:$4 sm:$0xff]   ;;  %v21473_v26 = vld [vmem:[%s19313_s19 + $0xdc0] ss:$8 sps:$4 sm:$0xff]  }
 0x44f   : > { %v7611_v14 = vpop.f32.mrf.mxu1  ;;  %9451 = vmatprep.subr.bf16.mxu1 %v18660_v41  ;;  %v18714_v9 = vld [vmem:[%s19313_s19 + $0xc34] ss:$8 sps:$4 sm:$0xff]  }
 0x450   : > { %v7665_v29 = vmax.f32 %v7661_v42, -1.0  ;;  %v7662_v8 = vadd.f32 %v7658_v22, %v19929_v34  ;;  %v7659_v58 = vadd.f32 %v7653_v60, %v7350_v15  ;;  %v7655_v61 = vadd.f32 %v7654_v32, %v7611_v14  ;;  %v21482_v42 = vld [vmem:[%s19313_s19 + $0xdb4] ss:$8 sps:$4 sm:$0xff]   ;;  %v18712_v22 = vld [vmem:[%s19313_s19 + $0xc30] ss:$8 sps:$4 sm:$0xff]  }
 0x451   : > { %9803 = vmatpush2.bf16.msra.mxu0 %v21361_v12  ;;  %v18664_v12 = vld [vmem:[%s19313_s19 + $0xcf0] ss:$8 sps:$4 sm:$0xff]   ;;  %v21475_v27 = vpop.f32.mrf.mxu1  ;;  %v18720_v32 = vld [vmem:[%s19313_s19 + $0xc24] ss:$8 sps:$4 sm:$0xff]  }
 0x452   : > { %v7669_v30 = vmul.f32 0.5, %v7665_v29  ;;  %v7666_v38 = vmax.f32 %v7662_v8, -1.0  ;;  %v7663_v50 = vadd.f32 %v7659_v58, %v19955_v62  ;;  %v7660_v37 = vadd.f32 %v7655_v61, %v7352_v25  ;;  %9452 = vmatpush2.bf16.msra.mxu1 %v18658_v49  ;;  %9804 = vmatprep.subr.bf16.mxu0 %v21364_v47  ;;  %v18669_v47 = vld [vmem:[%s19313_s19 + $0xce4] ss:$8 sps:$4 sm:$0xff]   ;;  %v21487_v60 = vld [vmem:[%s19313_s19 + $0xdb0] ss:$8 sps:$4 sm:$0xff]  }
 0x453   : > { %9453 = vmatprep.subr.bf16.mxu1 %v18663_v24  ;;  %v21492_v14 = vld [vmem:[%s19313_s19 + $0xda4] ss:$8 sps:$4 sm:$0xff]   ;;  %v21497_v29 = vld [vmem:[%s19313_s19 + $0xda0] ss:$8 sps:$4 sm:$0xff]   ;;  %v18726_v61 = vld [vmem:[%s19313_s19 + $0xc14] ss:$8 sps:$4 sm:$0xff]  }
 0x454   : > { %15993 = vst [vmem:[%s19963_s9 + $0xe0] sm:$0xff] %v7669_v30  ;;  %v7670_v54 = vmul.f32 0.5, %v7666_v38  ;;  %v7667_v10 = vmax.f32 %v7663_v50, -1.0  ;;  %v7664_v57 = vadd.f32 %v7660_v37, %v19955_v62  ;;  %v21502_v30 = vld [vmem:[%s19313_s19 + $0xd94] ss:$8 sps:$4 sm:$0xff]  }
 0x455   : > { %9805 = vmatpush2.bf16.msra.mxu0 %v21368_v43  ;;  %v18672_v43 = vld [vmem:[%s19313_s19 + $0xbb4] ss:$8 sps:$4 sm:$0xff]   ;;  %v18724_v38 = vld [vmem:[%s19313_s19 + $0xc10] ss:$8 sps:$4 sm:$0xff]  }
 0x456   : > { %15994 = vst.msk [vmem:[%s19963_s9 + $0xe8] sm:$0xff] %vm1178_vm1, %v7670_v54  ;;  %v7671_v21 = vmul.f32 0.5, %v7667_v10  ;;  %v7668_v51 = vmax.f32 %v7664_v57, -1.0  ;;  %9454 = vmatpush2.bf16.msra.mxu1 %v18661_v5  ;;  %9806 = vmatprep.subr.bf16.mxu0 %v21372_v40  ;;  %v18670_v40 = vld [vmem:[%s19313_s19 + $0xbb0] ss:$8 sps:$4 sm:$0xff]  }
 0x457   : > { %9455 = vmatprep.subr.bf16.mxu1 %v18666_v11  ;;  %v21507_v50 = vld [vmem:[%s19313_s19 + $0xd90] ss:$8 sps:$4 sm:$0xff]   ;;  %v21512_v54 = vld [vmem:[%s19313_s19 + $0xd84] ss:$8 sps:$4 sm:$0xff]   ;;  %v18730_v57 = vld [vmem:[%s19313_s19 + $0xc00] ss:$8 sps:$4 sm:$0xff]  }
 0x458   : > { %15995 = vst [vmem:[%s19963_s9 + $0xf0] sm:$0xff] %v7671_v21  ;;  %v7672_v31 = vmul.f32 0.5, %v7668_v51  ;;  %v21477_v15 = vpop.f32.mrf.mxu0  ;;  %v21517_v21 = vld [vmem:[%s19313_s19 + $0xd80] ss:$8 sps:$4 sm:$0xff]  }
 0x459   : > { %9807 = vmatpush2.bf16.msra.mxu0 %v21378_v16  ;;  %v18679_v16 = vld [vmem:[%s19313_s19 + $0xc50] ss:$8 sps:$4 sm:$0xff]  }
 0x45a   : > { %15996 = vst.msk [vmem:[%s19963_s9 + $0xf8] sm:$0xff] %vm1178_vm1, %v7672_v31  ;;  %9456 = vmatpush2.bf16.msra.mxu1 %v18664_v12  ;;  %9808 = vmatprep.subr.bf16.mxu0 %v21382_v52  ;;  %v18685_v52 = vld [vmem:[%s19313_s19 + $0xc40] ss:$8 sps:$4 sm:$0xff]   ;;  %v7966_v25 = vpop.f32.mrf.mxu0  ;;  %v21522_v31 = vld [vmem:[%s19313_s19 + $0xe74] ss:$8 sps:$4 sm:$0xff]  }
 0x45b   : > { %9457 = vmatprep.subr.bf16.mxu1 %v18669_v47 }
 0x45c   : > { %v7968_v58 = vpop.f32.mrf.mxu0 }
 0x45d   : > { %9809 = vmatpush2.bf16.msra.mxu0 %v18655_v17  ;;  %v21452_v17 = vld [vmem:[%s19313_s19 + $0xde0] ss:$8 sps:$4 sm:$0xff]  }
 0x45e   : > { %9458 = vmatpush2.bf16.msra.mxu1 %v18667_v59  ;;  %9810 = vmatprep.subr.bf16.mxu0 %v18660_v41  ;;  %v18708_v41 = vld [vmem:[%s19313_s19 + $0xb44] ss:$8 sps:$4 sm:$0xff]  }
 0x45f   : > { %9841 = vmatprep.subr.bf16.mxu1 %v21323_v56  ;;  %v18675_v56 = vld [vmem:[%s19313_s19 + $0xba4] ss:$8 sps:$4 sm:$0xff]  }
 0x461   : > { %9460 = vmatmul.mubr.bf16.vlgmr.msra.gmra.mxu1 %v21233_v53  ;;  %9811 = vmatpush2.bf16.msra.mxu0 %v18658_v49  ;;  %v8009_v49 = vpop.f32.mrf.mxu1 }
 0x462   : > { %9842 = vmatpush1.bf16.msra.mxu1 %v21330_v23  ;;  %9812 = vmatprep.subr.bf16.mxu0 %v18663_v24  ;;  %v18673_v23 = vld [vmem:[%s19313_s19 + $0xba0] ss:$8 sps:$4 sm:$0xff]  }
 0x463   : > { %9843 = vmatprep.subr.bf16.mxu1 %v21335_v1  ;;  %9861 = vmatprep.mubr.bf16.mxu1 %v19270_v0  ;;  %v18678_v1 = vld [vmem:[%s19313_s19 + $0xb94] ss:$8 sps:$4 sm:$0xff]   ;;  %v18718_v24 = vld [vmem:[%s19313_s19 + $0xc20] ss:$8 sps:$4 sm:$0xff]   ;;  %v8011_v8 = vpop.f32.mrf.mxu1 }
 0x465   : > { %9813 = vmatpush2.bf16.msra.mxu0 %v18661_v5  ;;  %v8013_v37 = vpop.f32.mrf.mxu1  ;;  %v7970_v5 = vpop.f32.mrf.mxu0 }
 0x466   : > { %9844 = vmatpush1.bf16.msra.mxu1 %v21343_v20  ;;  %9814 = vmatprep.subr.bf16.mxu0 %v18666_v11  ;;  %v18681_v20 = vld [vmem:[%s19313_s19 + $0xc54] ss:$8 sps:$4 sm:$0xff]   ;;  %v18732_v11 = vld [vmem:[%s19313_s19 + $0xc04] ss:$8 sps:$4 sm:$0xff]  }
 0x467   : > { %10052 = vmatprep.subr.bf16.mxu1 %v18672_v43  ;;  %v8273_v51 = vpop.f32.mrf.mxu0  ;;  %v18736_v43 = vld [vmem:[%s19313_s19 + $0xbf0] ss:$8 sps:$4 sm:$0xff]  }
 0x469   : > { %16551 = vmatmul.mubr.msk.bf16.vlgmr.msra.gmra.mxu1 %vm466_vm0, %v21247_v39  ;;  %9815 = vmatpush2.bf16.msra.mxu0 %v18664_v12 }
 0x46a   : > { %10053 = vmatpush1.bf16.msra.mxu1 %v18670_v40  ;;  %9816 = vmatprep.subr.bf16.mxu0 %v18669_v47  ;;  %v18738_v47 = vld [vmem:[%s19313_s19 + $0xbf4] ss:$8 sps:$4 sm:$0xff]   ;;  %v21527_v40 = vld [vmem:[%s19313_s19 + $0xe70] ss:$8 sps:$4 sm:$0xff]  }
 0x46b   : > { %10054 = vmatprep.subr.bf16.mxu1 %v18675_v56  ;;  %10084 = vmatprep.mubr.bf16.mxu1 %v21258_v7  ;;  %v8275_v56 = vpop.f32.mrf.mxu0 }
 0x46d   : > { %9817 = vmatpush2.bf16.msra.mxu0 %v18667_v59 }
 0x46e   : > { %10055 = vmatpush1.bf16.msra.mxu1 %v18673_v23  ;;  %10107 = vmatprep.subr.bf16.mxu0 %v18681_v20  ;;  %v18744_v23 = vld [vmem:[%s19313_s19 + $0xbe4] ss:$8 sps:$4 sm:$0xff]  }
 0x46f   : > { %10056 = vmatprep.subr.bf16.mxu1 %v18678_v1  ;;  %v21532_v1 = vld [vmem:[%s19313_s19 + $0xe64] ss:$8 sps:$4 sm:$0xff]  }
 0x470   : > { %9819 = vmatmul.mubr.bf16.vlgmr.msra.gmra.mxu0 %v21029_v4  ;;  %v18688_v4 = vld [vmem:[%s19313_s19 + $0xb70] ss:$8 sps:$4 sm:$0xff]  }
 0x471   : > { %10108 = vmatpush1.bf16.msra.mxu0 %v18679_v16  ;;  %10127 = vmatprep.mubr.bf16.mxu0 %v19270_v0  ;;  %v21537_v16 = vld [vmem:[%s19313_s19 + $0xe60] ss:$8 sps:$4 sm:$0xff]  }
 0x472   : > { %10057 = vmatpush1.bf16.msra.mxu1 %v18676_v13  ;;  %10109 = vmatprep.subr.bf16.mxu0 %v18687_v18  ;;  %v18742_v13 = vld [vmem:[%s19313_s19 + $0xbe0] ss:$8 sps:$4 sm:$0xff]  }
 0x473   : > { %10058 = vmatprep.subr.bf16.mxu1 %v18684_v45  ;;  %v8277_v45 = vpop.f32.mrf.mxu0 }
 0x475   : > { %10110 = vmatpush1.bf16.msra.mxu0 %v18685_v52  ;;  %v21542_v52 = vld [vmem:[%s19313_s19 + $0xe54] ss:$8 sps:$4 sm:$0xff]  }
 0x476   : > { %10059 = vmatpush1.bf16.msra.mxu1 %v18682_v46  ;;  %10355 = vmatprep.subr.bf16.mxu0 %v21435_v6  ;;  %v18750_v46 = vld [vmem:[%s19313_s19 + $0xbd4] ss:$8 sps:$4 sm:$0xff]  }
 0x477   : > { %10060 = vmatprep.subr.bf16.mxu1 %v18690_v28  ;;  %v8008_v28 = vadd.f32 %v21475_v27, %v21477_v15  ;;  %v8014_v15 = vadd.f32 %v8013_v37, %v7970_v5  ;;  %v21566_v37 = vld [vmem:[%s19313_s19 + $0xe94] ss:$8 sps:$4 sm:$0xff]  }
 0x478   : > { %16588 = vmatmul.mubr.msk.bf16.vlgmr.msra.gmra.mxu0 %vm466_vm0, %v21051_v55  ;;  %v18700_v55 = vld [vmem:[%s19313_s19 + $0xb50] ss:$8 sps:$4 sm:$0xff]  }
 0x479   : > { %10356 = vmatpush1.bf16.msra.mxu0 %v21440_v44  ;;  %10387 = vmatprep.mubr.bf16.mxu0 %v21068_v3  ;;  %v18706_v3 = vld [vmem:[%s19313_s19 + $0xb40] ss:$8 sps:$4 sm:$0xff]  }
 0x47a   : > { %10061 = vmatpush1.bf16.msra.mxu1 %v18688_v4  ;;  %10357 = vmatprep.subr.bf16.mxu0 %v21445_v33  ;;  %v8010_v4 = vadd.f32 %v8009_v49, %v7966_v25 }
 0x47b   : > { %10062 = vmatprep.subr.bf16.mxu1 %v18696_v48 }
 0x47d   : > { %10358 = vmatpush1.bf16.msra.mxu0 %v21452_v17 }
 0x47e   : > { %10063 = vmatpush1.bf16.msra.mxu1 %v18694_v19  ;;  %10359 = vmatprep.subr.bf16.mxu0 %v21457_v36  ;;  %v18748_v19 = vld [vmem:[%s19313_s19 + $0xbd0] ss:$8 sps:$4 sm:$0xff]  }
 0x47f   : > { %10064 = vmatprep.subr.bf16.mxu1 %v18702_v2  ;;  %v21549_v2 = vld [vmem:[%s19313_s19 + $0xe50] ss:$8 sps:$4 sm:$0xff]  }
 0x481   : > { %10360 = vmatpush1.bf16.msra.mxu0 %v21463_v63 }
 0x482   : > { %10065 = vmatpush1.bf16.msra.mxu1 %v18700_v55  ;;  %10361 = vmatprep.subr.bf16.mxu0 %v21468_v35  ;;  %v8012_v55 = vadd.f32 %v8011_v8, %v7968_v58  ;;  %v18754_v8 = vld [vmem:[%s19313_s19 + $0xbc0] ss:$8 sps:$4 sm:$0xff]  }
 0x483   : > { %10066 = vmatprep.subr.bf16.mxu1 %v18708_v41  ;;  %v8279_v41 = vpop.f32.mrf.mxu0  ;;  %v21559_v58 = vld [vmem:[%s19313_s19 + $0xe40] ss:$8 sps:$4 sm:$0xff]  }
 0x485   : > { %10362 = vmatpush1.bf16.msra.mxu0 %v21473_v26 }
 0x486   : > { %10067 = vmatpush1.bf16.msra.mxu1 %v18706_v3  ;;  %10363 = vmatprep.subr.bf16.mxu0 %v21482_v42 }
 0x487   : > { %10068 = vmatprep.subr.bf16.mxu1 %v18714_v9  ;;  %v18756_v9 = vld [vmem:[%s19313_s19 + $0xbc4] ss:$8 sps:$4 sm:$0xff]  }
 0x489   : > { %10364 = vmatpush1.bf16.msra.mxu0 %v21487_v60 }
 0x48a   : > { %10069 = vmatpush2.bf16.msra.mxu1 %v18712_v22  ;;  %10365 = vmatprep.subr.bf16.mxu0 %v21492_v14  ;;  %v21554_v22 = vld [vmem:[%s19313_s19 + $0xe44] ss:$8 sps:$4 sm:$0xff]  }
 0x48b   : > { %10070 = vmatprep.subr.bf16.mxu1 %v18720_v32 }
 0x48d   : > { %10366 = vmatpush1.bf16.msra.mxu0 %v21497_v29 }
 0x48e   : > { %10071 = vmatpush2.bf16.msra.mxu1 %v18718_v24  ;;  %10367 = vmatprep.subr.bf16.mxu0 %v21502_v30 }
 0x48f   : > { %10072 = vmatprep.subr.bf16.mxu1 %v18726_v61 }
 0x491   : > { %v8230_v10 = vpop.f32.mrf.mxu1  ;;  %10368 = vmatpush1.bf16.msra.mxu0 %v21507_v50 }
 0x492   : > { %10073 = vmatpush2.bf16.msra.mxu1 %v18724_v38  ;;  %10369 = vmatprep.subr.bf16.mxu0 %v21512_v54  ;;  %v8231_v48 = vadd.f32 %v8230_v10, %v8008_v28  ;;  %v21563_v10 = vld [vmem:[%s19313_s19 + $0xe34] ss:$8 sps:$4 sm:$0xff]  }
 0x493   : > { %v8232_v12 = vpop.f32.mrf.mxu1  ;;  %10074 = vmatprep.subr.bf16.mxu1 %v18732_v11 }
 0x494   : > { %v8233_v27 = vadd.f32 %v8232_v12, %v8010_v4  ;;  %v8274_v32 = vadd.f32 %v8273_v51, %v8231_v48 }
 0x495   : > { %v8234_v59 = vpop.f32.mrf.mxu1  ;;  %10370 = vmatpush1.bf16.msra.mxu0 %v21517_v21 }
 0x496   : > { %10075 = vmatpush2.bf16.msra.mxu1 %v18730_v57  ;;  %10371 = vmatprep.subr.bf16.mxu0 %v21522_v31  ;;  %v8235_v49 = vadd.f32 %v8234_v59, %v8012_v55  ;;  %v8276_v5 = vadd.f32 %v8275_v56, %v8233_v27  ;;  %v21577_v56 = vld [vmem:[%s19313_s19 + $0xe24] ss:$8 sps:$4 sm:$0xff]  }
 0x497   : > { %10076 = vmatprep.subr.bf16.mxu1 %v18738_v47  ;;  %v8236_v20 = vpop.f32.mrf.mxu1 }
 0x498   : > { %v8237_v61 = vadd.f32 %v8236_v20, %v8014_v15  ;;  %v8278_v12 = vadd.f32 %v8277_v45, %v8235_v49  ;;  %v21571_v20 = vld [vmem:[%s19313_s19 + $0xe30] ss:$8 sps:$4 sm:$0xff]   ;;  %v18771_v45 = vld [vmem:[%s19313_s19 + $0xe84] ss:$8 sps:$4 sm:$0xff]   ;;  %v21590_v49 = vld [vmem:[%s19313_s19 + $0xe20] ss:$8 sps:$4 sm:$0xff]  }
 0x499   : > { %10372 = vmatpush2.bf16.msra.mxu0 %v21527_v40  ;;  %v8576_v18 = vpop.f32.mrf.mxu1 }
 0x49a   : > { %10077 = vmatpush2.bf16.msra.mxu1 %v18736_v43  ;;  %10373 = vmatprep.subr.bf16.mxu0 %v21532_v1 }
 0x49b   : > { %10078 = vmatprep.subr.bf16.mxu1 %v18744_v23  ;;  %v8578_v3 = vpop.f32.mrf.mxu1 }
 0x49d   : > { %10374 = vmatpush2.bf16.msra.mxu0 %v21537_v16  ;;  %v8580_v38 = vpop.f32.mrf.mxu1 }
 0x49e   : > { %10079 = vmatpush2.bf16.msra.mxu1 %v18742_v13  ;;  %10375 = vmatprep.subr.bf16.mxu0 %v21542_v52  ;;  %v18763_v13 = vld [vmem:[%s19313_s19 + $0xe90] ss:$8 sps:$4 sm:$0xff]  }
 0x49f   : > { %10080 = vmatprep.subr.bf16.mxu1 %v18750_v46  ;;  %v8582_v46 = vpop.f32.mrf.mxu1 }
 0x4a0   : > { %v8533_v25 = vpop.f32.mrf.mxu0 }
 0x4a1   : > { %v8577_v24 = vadd.f32 %v8576_v18, %v8533_v25  ;;  %10376 = vmatpush2.bf16.msra.mxu0 %v21549_v2  ;;  %v8280_v18 = vadd.f32 %v8279_v41, %v8237_v61  ;;  %v21584_v41 = vld [vmem:[%s22359_s1] ss:$12 sps:$4 sm:$0xff]  }
 0x4a2   : > { %10081 = vmatpush2.bf16.msra.mxu1 %v18748_v19  ;;  %v8535_v11 = vpop.f32.mrf.mxu0  ;;  %10377 = vmatprep.subr.bf16.mxu0 %v21554_v22  ;;  %v18769_v25 = vld [vmem:[%s19313_s19 + $0xe80] ss:$8 sps:$4 sm:$0xff]  }
 0x4a3   : > { %10082 = vmatprep.subr.bf16.mxu1 %v18756_v9  ;;  %v8585_v57 = vadd.f32 %v8577_v24, %v8274_v32  ;;  %v8579_v51 = vadd.f32 %v8578_v3, %v8535_v11  ;;  %v21595_v32 = vld [vmem:[%s19313_s19 + $0xe14] ss:$8 sps:$4 sm:$0xff]  }
 0x4a4   : > { %v8537_v47 = vpop.f32.mrf.mxu0 }
 0x4a5   : > { %v8589_v59 = vadd.f32 %v8585_v57, %v19929_v34  ;;  %v8586_v43 = vadd.f32 %v8579_v51, %v8276_v5  ;;  %v8581_v23 = vadd.f32 %v8580_v38, %v8537_v47  ;;  %10378 = vmatpush2.bf16.msra.mxu0 %v21559_v58  ;;  %v21604_v5 = vld [vmem:[%s19313_s19 + $0xe10] ss:$8 sps:$4 sm:$0xff]   ;;  %v21609_v57 = vld [vmem:[%s19313_s19 + $0xe04] ss:$8 sps:$4 sm:$0xff]   ;;  %v21631_v47 = vld [vmem:[%s22359_s1 + $0x1c] ss:$12 sps:$4 sm:$0xff]  }
 0x4a6   : > { %10083 = vmatpush2.bf16.msra.mxu1 %v18754_v8  ;;  %v8539_v28 = vpop.f32.mrf.mxu0  ;;  %10379 = vmatprep.subr.bf16.mxu0 %v21563_v10 }
 0x4a7   : > { %10410 = vmatprep.subr.bf16.mxu1 %v21566_v37  ;;  %v8593_v4 = vmax.f32 %v8589_v59, -1.0  ;;  %v8590_v48 = vadd.f32 %v8586_v43, %v19929_v34  ;;  %v8587_v19 = vadd.f32 %v8581_v23, %v8278_v12  ;;  %v8583_v55 = vadd.f32 %v8582_v46, %v8539_v28  ;;  %v21615_v12 = vld [vmem:[%s22359_s1 + $0x38] ss:$12 sps:$4 sm:$0xff]   ;;  %v18831_v46 = vld [vmem:[%s19313_s19 + $0xf14] ss:$8 sps:$4 sm:$0xff]  }
 0x4a8   : > { %v18822_v59 = vld [vmem:[%s19313_s19 + $0xd04] ss:$8 sps:$4 sm:$0xff]   ;;  %v18826_v28 = vld [vmem:[%s19313_s19 + $0xcf0] ss:$8 sps:$4 sm:$0xff]  }
 0x4a9   : > { %10085 = vmatmul.mubr.bf16.vlgmr.msra.gmra.mxu1 %v21584_v41  ;;  %v8597_v3 = vmul.f32 0.5, %v8593_v4  ;;  %v8594_v9 = vmax.f32 %v8590_v48, -1.0  ;;  %v8591_v27 = vadd.f32 %v8587_v19, %v19955_v62  ;;  %v8588_v15 = vadd.f32 %v8583_v55, %v8280_v18  ;;  %10380 = vmatpush2.bf16.msra.mxu0 %v21571_v20  ;;  %v18825_v43 = vld [vmem:[%s19313_s19 + $0xd64] ss:$8 sps:$4 sm:$0xff]   ;;  %v18828_v18 = vld [vmem:[%s19313_s19 + $0xcf4] ss:$8 sps:$4 sm:$0xff]  }
 0x4aa   : > { %10411 = vmatpush1.bf16.msra.mxu1 %v18763_v13  ;;  %10381 = vmatprep.subr.bf16.mxu0 %v21577_v56  ;;  %v21703_v23 = vld [vmem:[%s22359_s1 + $0x18] ss:$12 sps:$4 sm:$0xff]   ;;  %v21718_v48 = vld [vmem:[%s22359_s1 + $0x8] ss:$12 sps:$4 sm:$0xff]  }
 0x4ab   : > { %10412 = vmatprep.subr.bf16.mxu1 %v18771_v45  ;;  %16216 = vst [vmem:[%s19963_s9 + $0x100] sm:$0xff] %v8597_v3  ;;  %v8598_v24 = vmul.f32 0.5, %v8594_v9  ;;  %v8595_v8 = vmax.f32 %v8591_v27, -1.0  ;;  %v8592_v61 = vadd.f32 %v8588_v15, %v19955_v62  ;;  %10430 = vmatprep.mubr.bf16.mxu1 %v19270_v0  ;;  %v18837_v4 = vld [vmem:[%s19313_s19 + $0xf04] ss:$8 sps:$4 sm:$0xff]   ;;  %v21734_v15 = vpop.f32.mrf.mxu0 }
 0x4ac   : > { %v18832_v19 = vld [vmem:[%s19313_s19 + $0xce0] ss:$8 sps:$4 sm:$0xff]   ;;  %v18840_v3 = vld [vmem:[%s19313_s19 + $0xef4] ss:$8 sps:$4 sm:$0xff]  }
 0x4ad   : > { %16217 = vst.msk [vmem:[%s19963_s9 + $0x108] sm:$0xff] %vm1178_vm1, %v8598_v24  ;;  %v8599_v38 = vmul.f32 0.5, %v8595_v8  ;;  %v8596_v11 = vmax.f32 %v8592_v61, -1.0  ;;  %10382 = vmatpush2.bf16.msra.mxu0 %v21590_v49  ;;  %v18835_v55 = vld [vmem:[%s19313_s19 + $0xf00] ss:$8 sps:$4 sm:$0xff]   ;;  %v21745_v8 = vpop.f32.mrf.mxu0 }
 0x4ae   : > { %10413 = vmatpush1.bf16.msra.mxu1 %v18769_v25  ;;  %10383 = vmatprep.subr.bf16.mxu0 %v21595_v32  ;;  %v21726_v9 = vld [vmem:[%s19313_s19 + $0xfb4] ss:$8 sps:$4 sm:$0xff]   ;;  %v21743_v24 = vld [vmem:[%s19313_s19 + $0xfa4] ss:$8 sps:$4 sm:$0xff]   ;;  %v18844_v61 = vld [vmem:[%s19313_s19 + $0xee0] ss:$8 sps:$4 sm:$0xff]  }
 0x4af   : > { %10714 = vmatprep.subr.bf16.mxu1 %v21435_v6  ;;  %16218 = vst [vmem:[%s19963_s9 + $0x110] sm:$0xff] %v8599_v38  ;;  %v8600_v51 = vmul.f32 0.5, %v8596_v11  ;;  %v21624_v6 = vld [vmem:[%s19313_s19 + $0xe00] ss:$8 sps:$4 sm:$0xff]   ;;  %v18852_v11 = vld [vmem:[%s19313_s19 + $0xed4] ss:$8 sps:$4 sm:$0xff]  }
 0x4b0   : > { %v21731_v27 = vld [vmem:[%s22359_s1 + $0x34] ss:$12 sps:$4 sm:$0xff]  }
 0x4b1   : > { %16661 = vmatmul.mubr.msk.bf16.vlgmr.msra.gmra.mxu1 %vm466_vm0, %v21615_v12  ;;  %16219 = vst.msk [vmem:[%s19963_s9 + $0x118] sm:$0xff] %vm1178_vm1, %v8600_v51  ;;  %10384 = vmatpush2.bf16.msra.mxu0 %v21604_v5  ;;  %v21751_v38 = vld [vmem:[%s19313_s19 + $0xfa0] ss:$8 sps:$4 sm:$0xff]   ;;  %v18850_v51 = vld [vmem:[%s19313_s19 + $0xed0] ss:$8 sps:$4 sm:$0xff]  }
 0x4b2   : > { %10715 = vmatpush1.bf16.msra.mxu1 %v21440_v44  ;;  %10385 = vmatprep.subr.bf16.mxu0 %v21609_v57  ;;  %v18780_v44 = vld [vmem:[%s19313_s19 + $0xcd4] ss:$8 sps:$4 sm:$0xff]  }
 0x4b3   : > { %10716 = vmatprep.subr.bf16.mxu1 %v21445_v33  ;;  %10746 = vmatprep.mubr.bf16.mxu1 %v21631_v47  ;;  %v18778_v33 = vld [vmem:[%s19313_s19 + $0xcd0] ss:$8 sps:$4 sm:$0xff]  }
 0x4b5   : > { %10386 = vmatpush2.bf16.msra.mxu0 %v21624_v6 }
 0x4b6   : > { %10717 = vmatpush1.bf16.msra.mxu1 %v21452_v17  ;;  %10769 = vmatprep.subr.bf16.mxu0 %v21566_v37  ;;  %v18781_v17 = vld [vmem:[%s19313_s19 + $0xcc0] ss:$8 sps:$4 sm:$0xff]   ;;  %v18817_v37 = vld [vmem:[%s19313_s19 + $0xd70] ss:$8 sps:$4 sm:$0xff]  }
 0x4b7   : > { %10718 = vmatprep.subr.bf16.mxu1 %v21457_v36  ;;  %v18786_v36 = vld [vmem:[%s19313_s19 + $0xcb4] ss:$8 sps:$4 sm:$0xff]  }
 0x4b8   : > { %10388 = vmatmul.mubr.bf16.vlgmr.msra.gmra.mxu0 %v21233_v53  ;;  %v18783_v53 = vld [vmem:[%s19313_s19 + $0xcc4] ss:$8 sps:$4 sm:$0xff]  }
 0x4b9   : > { %10770 = vmatpush1.bf16.msra.mxu0 %v18763_v13  ;;  %10789 = vmatprep.mubr.bf16.mxu0 %v19270_v0  ;;  %v18823_v13 = vld [vmem:[%s19313_s19 + $0xd60] ss:$8 sps:$4 sm:$0xff]  }
 0x4ba   : > { %10719 = vmatpush1.bf16.msra.mxu1 %v21463_v63  ;;  %10771 = vmatprep.subr.bf16.mxu0 %v18771_v45  ;;  %v18784_v63 = vld [vmem:[%s19313_s19 + $0xcb0] ss:$8 sps:$4 sm:$0xff]   ;;  %v18834_v45 = vld [vmem:[%s19313_s19 + $0xce4] ss:$8 sps:$4 sm:$0xff]  }
 0x4bb   : > { %10720 = vmatprep.subr.bf16.mxu1 %v21468_v35  ;;  %v18787_v35 = vld [vmem:[%s19313_s19 + $0xca0] ss:$8 sps:$4 sm:$0xff]  }
 0x4bd   : > { %10772 = vmatpush1.bf16.msra.mxu0 %v18769_v25  ;;  %v21738_v25 = vld [vmem:[%s19313_s19 + $0xfb0] ss:$8 sps:$4 sm:$0xff]  }
 0x4be   : > { %10721 = vmatpush1.bf16.msra.mxu1 %v21473_v26  ;;  %10980 = vmatprep.subr.bf16.mxu0 %v18780_v44  ;;  %v18790_v26 = vld [vmem:[%s19313_s19 + $0xc90] ss:$8 sps:$4 sm:$0xff]  }
 0x4bf   : > { %10722 = vmatprep.subr.bf16.mxu1 %v21482_v42  ;;  %v18795_v42 = vld [vmem:[%s19313_s19 + $0xc84] ss:$8 sps:$4 sm:$0xff]  }
 0x4c0   : > { %16774 = vmatmul.mubr.msk.bf16.vlgmr.msra.gmra.mxu0 %vm466_vm0, %v21247_v39  ;;  %v18789_v39 = vld [vmem:[%s19313_s19 + $0xca4] ss:$8 sps:$4 sm:$0xff]  }
 0x4c1   : > { %10981 = vmatpush1.bf16.msra.mxu0 %v18778_v33  ;;  %11012 = vmatprep.mubr.bf16.mxu0 %v21258_v7  ;;  %v18792_v7 = vld [vmem:[%s19313_s19 + $0xc94] ss:$8 sps:$4 sm:$0xff]  }
 0x4c2   : > { %10723 = vmatpush1.bf16.msra.mxu1 %v21487_v60  ;;  %10982 = vmatprep.subr.bf16.mxu0 %v18783_v53  ;;  %v18793_v60 = vld [vmem:[%s19313_s19 + $0xc80] ss:$8 sps:$4 sm:$0xff]  }
 0x4c3   : > { %10724 = vmatprep.subr.bf16.mxu1 %v21492_v14  ;;  %v18798_v14 = vld [vmem:[%s19313_s19 + $0xc74] ss:$8 sps:$4 sm:$0xff]   ;;  %v18853_v53 = vld [vmem:[%s19313_s19 + $0xec0] ss:$8 sps:$4 sm:$0xff]  }
 0x4c5   : > { %10983 = vmatpush1.bf16.msra.mxu0 %v18781_v17 }
 0x4c6   : > { %10725 = vmatpush1.bf16.msra.mxu1 %v21497_v29  ;;  %10984 = vmatprep.subr.bf16.mxu0 %v18786_v36  ;;  %v18796_v29 = vld [vmem:[%s19313_s19 + $0xc70] ss:$8 sps:$4 sm:$0xff]   ;;  %v18858_v36 = vld [vmem:[%s19313_s19 + $0xeb4] ss:$8 sps:$4 sm:$0xff]  }
 0x4c7   : > { %10726 = vmatprep.subr.bf16.mxu1 %v21502_v30  ;;  %v18801_v30 = vld [vmem:[%s19313_s19 + $0xc64] ss:$8 sps:$4 sm:$0xff]  }
 0x4c9   : > { %10985 = vmatpush1.bf16.msra.mxu0 %v18784_v63 }
 0x4ca   : > { %10727 = vmatpush1.bf16.msra.mxu1 %v21507_v50  ;;  %10986 = vmatprep.subr.bf16.mxu0 %v18789_v39  ;;  %v18799_v50 = vld [vmem:[%s19313_s19 + $0xc60] ss:$8 sps:$4 sm:$0xff]   ;;  %v18856_v39 = vld [vmem:[%s19313_s19 + $0xeb0] ss:$8 sps:$4 sm:$0xff]  }
 0x4cb   : > { %10728 = vmatprep.subr.bf16.mxu1 %v21512_v54  ;;  %v18804_v54 = vld [vmem:[%s19313_s19 + $0xd54] ss:$8 sps:$4 sm:$0xff]  }
 0x4cd   : > { %10987 = vmatpush1.bf16.msra.mxu0 %v18787_v35 }
 0x4ce   : > { %10729 = vmatpush1.bf16.msra.mxu1 %v21517_v21  ;;  %10988 = vmatprep.subr.bf16.mxu0 %v18792_v7  ;;  %v18802_v21 = vld [vmem:[%s19313_s19 + $0xd50] ss:$8 sps:$4 sm:$0xff]   ;;  %v18861_v7 = vld [vmem:[%s19313_s19 + $0xea4] ss:$8 sps:$4 sm:$0xff]  }
 0x4cf   : > { %10730 = vmatprep.subr.bf16.mxu1 %v21522_v31  ;;  %v18807_v31 = vld [vmem:[%s19313_s19 + $0xd44] ss:$8 sps:$4 sm:$0xff]  }
 0x4d1   : > { %10989 = vmatpush1.bf16.msra.mxu0 %v18790_v26 }
 0x4d2   : > { %10731 = vmatpush2.bf16.msra.mxu1 %v21527_v40  ;;  %10990 = vmatprep.subr.bf16.mxu0 %v18795_v42  ;;  %v18805_v40 = vld [vmem:[%s19313_s19 + $0xd40] ss:$8 sps:$4 sm:$0xff]  }
 0x4d3   : > { %10732 = vmatprep.subr.bf16.mxu1 %v21532_v1  ;;  %v18810_v1 = vld [vmem:[%s19313_s19 + $0xd34] ss:$8 sps:$4 sm:$0xff]   ;;  %v18859_v42 = vld [vmem:[%s19313_s19 + $0xea0] ss:$8 sps:$4 sm:$0xff]  }
 0x4d5   : > { %10991 = vmatpush1.bf16.msra.mxu0 %v18793_v60 }
 0x4d6   : > { %10733 = vmatpush2.bf16.msra.mxu1 %v21537_v16  ;;  %10992 = vmatprep.subr.bf16.mxu0 %v18798_v14  ;;  %v18808_v16 = vld [vmem:[%s19313_s19 + $0xd30] ss:$8 sps:$4 sm:$0xff]  }
 0x4d7   : > { %10734 = vmatprep.subr.bf16.mxu1 %v21542_v52  ;;  %v18813_v52 = vld [vmem:[%s19313_s19 + $0xd24] ss:$8 sps:$4 sm:$0xff]  }
 0x4d9   : > { %10993 = vmatpush1.bf16.msra.mxu0 %v18796_v29  ;;  %v18864_v29 = vld [vmem:[%s19313_s19 + $0xf94] ss:$8 sps:$4 sm:$0xff]  }
 0x4da   : > { %10735 = vmatpush2.bf16.msra.mxu1 %v21549_v2  ;;  %10994 = vmatprep.subr.bf16.mxu0 %v18801_v30  ;;  %v18811_v2 = vld [vmem:[%s19313_s19 + $0xd20] ss:$8 sps:$4 sm:$0xff]   ;;  %v21769_v30 = vld [vmem:[%s19313_s19 + $0xf90] ss:$8 sps:$4 sm:$0xff]  }
 0x4db   : > { %10736 = vmatprep.subr.bf16.mxu1 %v21554_v22  ;;  %v18816_v22 = vld [vmem:[%s19313_s19 + $0xd14] ss:$8 sps:$4 sm:$0xff]  }
 0x4dd   : > { %10995 = vmatpush1.bf16.msra.mxu0 %v18799_v50 }
 0x4de   : > { %10737 = vmatpush2.bf16.msra.mxu1 %v21559_v58  ;;  %10996 = vmatprep.subr.bf16.mxu0 %v18804_v54  ;;  %v18819_v58 = vld [vmem:[%s19313_s19 + $0xd74] ss:$8 sps:$4 sm:$0xff]  }
 0x4df   : > { %10738 = vmatprep.subr.bf16.mxu1 %v21563_v10  ;;  %v18814_v10 = vld [vmem:[%s19313_s19 + $0xd10] ss:$8 sps:$4 sm:$0xff]  }
 0x4e1   : > { %10997 = vmatpush2.bf16.msra.mxu0 %v18802_v21  ;;  %v21772_v21 = vld [vmem:[%s19313_s19 + $0xf84] ss:$8 sps:$4 sm:$0xff]  }
 0x4e2   : > { %10739 = vmatpush2.bf16.msra.mxu1 %v21571_v20  ;;  %10998 = vmatprep.subr.bf16.mxu0 %v18807_v31  ;;  %v18820_v20 = vld [vmem:[%s19313_s19 + $0xd00] ss:$8 sps:$4 sm:$0xff]  }
 0x4e3   : > { %10740 = vmatprep.subr.bf16.mxu1 %v21577_v56  ;;  %v18829_v56 = vld [vmem:[%s19313_s19 + $0xf10] ss:$8 sps:$4 sm:$0xff]   ;;  %v21776_v31 = vld [vmem:[%s19313_s19 + $0xf80] ss:$8 sps:$4 sm:$0xff]  }
 0x4e5   : > { %10999 = vmatpush2.bf16.msra.mxu0 %v18805_v40 }
 0x4e6   : > { %10741 = vmatpush2.bf16.msra.mxu1 %v21590_v49  ;;  %11000 = vmatprep.subr.bf16.mxu0 %v18810_v1  ;;  %v18838_v49 = vld [vmem:[%s19313_s19 + $0xef0] ss:$8 sps:$4 sm:$0xff]  }
 0x4e7   : > { %10742 = vmatprep.subr.bf16.mxu1 %v21595_v32  ;;  %v18846_v32 = vld [vmem:[%s19313_s19 + $0xee4] ss:$8 sps:$4 sm:$0xff]  }
 0x4e9   : > { %11001 = vmatpush2.bf16.msra.mxu0 %v18808_v16  ;;  %v21780_v16 = vld [vmem:[%s19313_s19 + $0xf74] ss:$8 sps:$4 sm:$0xff]  }
 0x4ea   : > { %10743 = vmatpush2.bf16.msra.mxu1 %v21604_v5  ;;  %11002 = vmatprep.subr.bf16.mxu0 %v18813_v52  ;;  %v8939_v5 = vpop.f32.mrf.mxu0 }
 0x4eb   : > { %10744 = vmatprep.subr.bf16.mxu1 %v21609_v57  ;;  %v8892_v57 = vpop.f32.mrf.mxu1 }
 0x4ec   : > { %v8941_v44 = vpop.f32.mrf.mxu0  ;;  %v8936_v52 = vadd.f32 %v21734_v15, %v8892_v57 }
 0x4ed   : > { %11003 = vmatpush2.bf16.msra.mxu0 %v18811_v2  ;;  %v8894_v33 = vpop.f32.mrf.mxu1 }
 0x4ee   : > { %10745 = vmatpush2.bf16.msra.mxu1 %v21624_v6  ;;  %11004 = vmatprep.subr.bf16.mxu0 %v18816_v22  ;;  %v18855_v6 = vld [vmem:[%s19313_s19 + $0xec4] ss:$8 sps:$4 sm:$0xff]   ;;  %v9158_v17 = vpop.f32.mrf.mxu0  ;;  %v8938_v2 = vadd.f32 %v21745_v8, %v8894_v33 }
 0x4ef   : > { %11035 = vmatprep.subr.bf16.mxu1 %v18819_v58  ;;  %v8896_v63 = vpop.f32.mrf.mxu1  ;;  %v9159_v22 = vadd.f32 %v9158_v17, %v8936_v52  ;;  %v21786_v58 = vld [vmem:[%s19313_s19 + $0xf70] ss:$8 sps:$4 sm:$0xff]  }
 0x4f0   : > { %v9160_v35 = vpop.f32.mrf.mxu0 }
 0x4f1   : > { %10747 = vmatmul.mubr.bf16.vlgmr.msra.gmra.mxu1 %v21703_v23  ;;  %11005 = vmatpush2.bf16.msra.mxu0 %v18814_v10  ;;  %v8898_v26 = vpop.f32.mrf.mxu1  ;;  %v8940_v10 = vadd.f32 %v8939_v5, %v8896_v63 }
 0x4f2   : > { %11036 = vmatpush1.bf16.msra.mxu1 %v18817_v37  ;;  %11006 = vmatprep.subr.bf16.mxu0 %v18822_v59  ;;  %v9162_v14 = vpop.f32.mrf.mxu0 }
 0x4f3   : > { %11037 = vmatprep.subr.bf16.mxu1 %v18825_v43  ;;  %11055 = vmatprep.mubr.bf16.mxu1 %v19270_v0  ;;  %v9201_v60 = vpop.f32.mrf.mxu1  ;;  %v21790_v43 = vld [vmem:[%s19313_s19 + $0xf64] ss:$8 sps:$4 sm:$0xff]  }
 0x4f4   : > { %v9164_v54 = vpop.f32.mrf.mxu0 }
 0x4f5   : > { %11007 = vmatpush2.bf16.msra.mxu0 %v18820_v20  ;;  %v9203_v50 = vpop.f32.mrf.mxu1  ;;  %v9161_v20 = vadd.f32 %v9160_v35, %v8938_v2  ;;  %v18883_v2 = vld [vmem:[%s19313_s19 + $0xf20] ss:$8 sps:$4 sm:$0xff]  }
 0x4f6   : > { %11038 = vmatpush1.bf16.msra.mxu1 %v18823_v13  ;;  %11008 = vmatprep.subr.bf16.mxu0 %v18828_v18  ;;  %v9504_v1 = vpop.f32.mrf.mxu0  ;;  %v8942_v13 = vadd.f32 %v8941_v44, %v8898_v26  ;;  %v9163_v18 = vadd.f32 %v9162_v14, %v8940_v10  ;;  %v18882_v14 = vld [vmem:[%s19313_s19 + $0xf34] ss:$8 sps:$4 sm:$0xff]   ;;  %v21846_v10 = vld [vmem:[%s22359_s1 + $0x4] ss:$12 sps:$4 sm:$0xff]  }
 0x4f7   : > { %11283 = vmatprep.subr.bf16.mxu1 %v18831_v46  ;;  %v9205_v40 = vpop.f32.mrf.mxu1  ;;  %v9204_v15 = vadd.f32 %v9203_v50, %v9161_v20  ;;  %v18903_v20 = vld [vmem:[%s19313_s19 + $0xe84] ss:$8 sps:$4 sm:$0xff]  }
 0x4f8   : > { %v9506_v59 = vpop.f32.mrf.mxu0  ;;  %v9206_v8 = vadd.f32 %v9205_v40, %v9163_v18  ;;  %v18901_v18 = vld [vmem:[%s19313_s19 + $0xe80] ss:$8 sps:$4 sm:$0xff]  }
 0x4f9   : > { %16811 = vmatmul.mubr.msk.bf16.vlgmr.msra.gmra.mxu1 %vm466_vm0, %v21718_v48  ;;  %11009 = vmatpush2.bf16.msra.mxu0 %v18826_v28  ;;  %v9207_v37 = vpop.f32.mrf.mxu1  ;;  %v9202_v28 = vadd.f32 %v9201_v60, %v9159_v22  ;;  %v18877_v60 = vld [vmem:[%s19313_s19 + $0xf40] ss:$8 sps:$4 sm:$0xff]   ;;  %v18891_v22 = vld [vmem:[%s19313_s19 + $0xde4] ss:$8 sps:$4 sm:$0xff]  }
 0x4fa   : > { %11284 = vmatpush1.bf16.msra.mxu1 %v18829_v56  ;;  %11010 = vmatprep.subr.bf16.mxu0 %v18834_v45  ;;  %v18871_v45 = vld [vmem:[%s19313_s19 + $0xf60] ss:$8 sps:$4 sm:$0xff]  }
 0x4fb   : > { %11285 = vmatprep.subr.bf16.mxu1 %v18837_v4  ;;  %11315 = vmatprep.mubr.bf16.mxu1 %v21731_v27 }
 0x4fd   : > { %11011 = vmatpush2.bf16.msra.mxu0 %v18832_v19  ;;  %v9508_v19 = vpop.f32.mrf.mxu0 }
 0x4fe   : > { %11286 = vmatpush1.bf16.msra.mxu1 %v18835_v55  ;;  %11338 = vmatprep.subr.bf16.mxu0 %v21726_v9 }
 0x4ff   : > { %11287 = vmatprep.subr.bf16.mxu1 %v18840_v3  ;;  %v9510_v44 = vpop.f32.mrf.mxu0 }
 0x500   : > { %11013 = vmatmul.mubr.bf16.vlgmr.msra.gmra.mxu0 %v21584_v41 }
 0x501   : > { %11339 = vmatpush1.bf16.msra.mxu0 %v21738_v25  ;;  %11358 = vmatprep.mubr.bf16.mxu0 %v19270_v0 }
 0x502   : > { %11288 = vmatpush1.bf16.msra.mxu1 %v18838_v49  ;;  %11340 = vmatprep.subr.bf16.mxu0 %v21743_v24 }
 0x503   : > { %11289 = vmatprep.subr.bf16.mxu1 %v18846_v32 }
 0x505   : > { %11341 = vmatpush1.bf16.msra.mxu0 %v21751_v38 }
 0x506   : > { %11290 = vmatpush1.bf16.msra.mxu1 %v18844_v61  ;;  %11642 = vmatprep.subr.bf16.mxu0 %v18831_v46 }
 0x507   : > { %11291 = vmatprep.subr.bf16.mxu1 %v18852_v11 }
 0x508   : > { %16884 = vmatmul.mubr.msk.bf16.vlgmr.msra.gmra.mxu0 %vm466_vm0, %v21615_v12 }
 0x509   : > { %11643 = vmatpush1.bf16.msra.mxu0 %v18829_v56  ;;  %11674 = vmatprep.mubr.bf16.mxu0 %v21631_v47 }
 0x50a   : > { %11292 = vmatpush1.bf16.msra.mxu1 %v18850_v51  ;;  %11644 = vmatprep.subr.bf16.mxu0 %v18837_v4  ;;  %v9165_v4 = vadd.f32 %v9164_v54, %v8942_v13  ;;  %v18898_v13 = vld [vmem:[%s19313_s19 + $0xdc0] ss:$8 sps:$4 sm:$0xff]  }
 0x50b   : > { %11293 = vmatprep.subr.bf16.mxu1 %v18855_v6 }
 0x50d   : > { %11645 = vmatpush1.bf16.msra.mxu0 %v18835_v55 }
 0x50e   : > { %11294 = vmatpush1.bf16.msra.mxu1 %v18853_v53  ;;  %11646 = vmatprep.subr.bf16.mxu0 %v18840_v3  ;;  %v18876_v3 = vld [vmem:[%s19313_s19 + $0xf54] ss:$8 sps:$4 sm:$0xff]  }
 0x50f   : > { %11295 = vmatprep.subr.bf16.mxu1 %v18858_v36 }
 0x511   : > { %11647 = vmatpush1.bf16.msra.mxu0 %v18838_v49 }
 0x512   : > { %11296 = vmatpush1.bf16.msra.mxu1 %v18856_v39  ;;  %11648 = vmatprep.subr.bf16.mxu0 %v18846_v32 }
 0x513   : > { %11297 = vmatprep.subr.bf16.mxu1 %v18861_v7 }
 0x515   : > { %11649 = vmatpush1.bf16.msra.mxu0 %v18844_v61 }
 0x516   : > { %11298 = vmatpush1.bf16.msra.mxu1 %v18859_v42  ;;  %11650 = vmatprep.subr.bf16.mxu0 %v18852_v11 }
 0x517   : > { %11299 = vmatprep.subr.bf16.mxu1 %v18864_v29 }
 0x519   : > { %11651 = vmatpush1.bf16.msra.mxu0 %v18850_v51  ;;  %v18874_v51 = vld [vmem:[%s19313_s19 + $0xf50] ss:$8 sps:$4 sm:$0xff]  }
 0x51a   : > { %11300 = vmatpush2.bf16.msra.mxu1 %v21769_v30  ;;  %11652 = vmatprep.subr.bf16.mxu0 %v18855_v6  ;;  %v9208_v6 = vadd.f32 %v9207_v37, %v9165_v4  ;;  %v18892_v37 = vld [vmem:[%s19313_s19 + $0xdd0] ss:$8 sps:$4 sm:$0xff]   ;;  %v18912_v4 = vld [vmem:[%s19313_s19 + $0xda4] ss:$8 sps:$4 sm:$0xff]  }
 0x51b   : > { %11301 = vmatprep.subr.bf16.mxu1 %v21772_v21 }
 0x51d   : > { %11653 = vmatpush1.bf16.msra.mxu0 %v18853_v53  ;;  %v18879_v53 = vld [vmem:[%s19313_s19 + $0xf44] ss:$8 sps:$4 sm:$0xff]  }
 0x51e   : > { %11302 = vmatpush2.bf16.msra.mxu1 %v21776_v31  ;;  %11654 = vmatprep.subr.bf16.mxu0 %v18858_v36 }
 0x51f   : > { %11303 = vmatprep.subr.bf16.mxu1 %v21780_v16 }
 0x521   : > { %v9461_v46 = vpop.f32.mrf.mxu1  ;;  %11655 = vmatpush1.bf16.msra.mxu0 %v18856_v39 }
 0x522   : > { %v9505_v56 = vadd.f32 %v9504_v1, %v9461_v46  ;;  %11304 = vmatpush2.bf16.msra.mxu1 %v21786_v58  ;;  %11656 = vmatprep.subr.bf16.mxu0 %v18861_v7  ;;  %v18906_v46 = vld [vmem:[%s19313_s19 + $0xdb4] ss:$8 sps:$4 sm:$0xff]  }
 0x523   : > { %v9463_v55 = vpop.f32.mrf.mxu1  ;;  %11305 = vmatprep.subr.bf16.mxu1 %v21790_v43 }
 0x524   : > { %v9513_v49 = vadd.f32 %v9505_v56, %v9202_v28  ;;  %v9507_v32 = vadd.f32 %v9506_v59, %v9463_v55  ;;  %v18895_v59 = vld [vmem:[%s19313_s19 + $0xe90] ss:$8 sps:$4 sm:$0xff]   ;;  %v21858_v28 = vld [vmem:[%s19313_s19 + $0x1034] ss:$8 sps:$4 sm:$0xff]   ;;  %v18910_v55 = vld [vmem:[%s19313_s19 + $0xda0] ss:$8 sps:$4 sm:$0xff]  }
 0x525   : > { %v9465_v61 = vpop.f32.mrf.mxu1  ;;  %11657 = vmatpush1.bf16.msra.mxu0 %v18859_v42  ;;  %v18904_v56 = vld [vmem:[%s19313_s19 + $0xdb0] ss:$8 sps:$4 sm:$0xff]  }
 0x526   : > { %v9517_v11 = vadd.f32 %v9513_v49, %v19929_v34  ;;  %v9514_v5 = vadd.f32 %v9507_v32, %v9204_v15  ;;  %v9509_v57 = vadd.f32 %v9508_v19, %v9465_v61  ;;  %11306 = vmatpush2.bf16.msra.mxu1 %v18871_v45  ;;  %11658 = vmatprep.subr.bf16.mxu0 %v18864_v29  ;;  %v21868_v19 = vld [vmem:[%s19313_s19 + $0x1024] ss:$8 sps:$4 sm:$0xff]   ;;  %v18918_v15 = vld [vmem:[%s19313_s19 + $0xd94] ss:$8 sps:$4 sm:$0xff]   ;;  %v18916_v32 = vld [vmem:[%s19313_s19 + $0xd90] ss:$8 sps:$4 sm:$0xff]  }
 0x527   : > { %v9467_v33 = vpop.f32.mrf.mxu1  ;;  %11307 = vmatprep.subr.bf16.mxu1 %v18876_v3  ;;  %v21880_v49 = vld [vmem:[%s19313_s19 + $0x1014] ss:$8 sps:$4 sm:$0xff]   ;;  %v18924_v61 = vld [vmem:[%s19313_s19 + $0xd84] ss:$8 sps:$4 sm:$0xff]  }
 0x528   : > { %v9521_v17 = vmax.f32 %v9517_v11, -1.0  ;;  %v9518_v36 = vadd.f32 %v9514_v5, %v19929_v34  ;;  %v9515_v63 = vadd.f32 %v9509_v57, %v9206_v8  ;;  %v9511_v39 = vadd.f32 %v9510_v44, %v9467_v33  ;;  %v21886_v8 = vld [vmem:[%s19313_s19 + $0x1010] ss:$8 sps:$4 sm:$0xff]   ;;  %v21891_v11 = vld [vmem:[%s19313_s19 + $0x1004] ss:$8 sps:$4 sm:$0xff]  }
 0x529   : > { %11659 = vmatpush2.bf16.msra.mxu0 %v21769_v30  ;;  %v18880_v30 = vld [vmem:[%s19313_s19 + $0xf30] ss:$8 sps:$4 sm:$0xff]   ;;  %v18922_v5 = vld [vmem:[%s19313_s19 + $0xd80] ss:$8 sps:$4 sm:$0xff]   ;;  %v18930_v44 = vld [vmem:[%s19313_s19 + $0xe74] ss:$8 sps:$4 sm:$0xff]  }
 0x52a   : > { %v9525_v35 = vmul.f32 0.5, %v9521_v17  ;;  %v9522_v7 = vmax.f32 %v9518_v36, -1.0  ;;  %v9519_v26 = vadd.f32 %v9515_v63, %v19955_v62  ;;  %v9516_v42 = vadd.f32 %v9511_v39, %v9208_v6  ;;  %11308 = vmatpush2.bf16.msra.mxu1 %v18874_v51  ;;  %11660 = vmatprep.subr.bf16.mxu0 %v21772_v21  ;;  %v18885_v21 = vld [vmem:[%s19313_s19 + $0xf24] ss:$8 sps:$4 sm:$0xff]   ;;  %v21896_v57 = vld [vmem:[%s19313_s19 + $0x1000] ss:$8 sps:$4 sm:$0xff]  }
 0x52b   : > { %11309 = vmatprep.subr.bf16.mxu1 %v18879_v53  ;;  %v21905_v33 = vld [vmem:[%s19313_s19 + $0xff4] ss:$8 sps:$4 sm:$0xff]   ;;  %v21910_v17 = vld [vmem:[%s19313_s19 + $0xff0] ss:$8 sps:$4 sm:$0xff]   ;;  %v18936_v39 = vld [vmem:[%s19313_s19 + $0xe64] ss:$8 sps:$4 sm:$0xff]  }
 0x52c   : > { %16439 = vst [vmem:[%s19963_s9 + $0x120] sm:$0xff] %v9525_v35  ;;  %v9526_v29 = vmul.f32 0.5, %v9522_v7  ;;  %v9523_v50 = vmax.f32 %v9519_v26, -1.0  ;;  %v9520_v54 = vadd.f32 %v9516_v42, %v19955_v62  ;;  %v21915_v35 = vld [vmem:[%s19313_s19 + $0xfe4] ss:$8 sps:$4 sm:$0xff]  }
 0x52d   : > { %11661 = vmatpush2.bf16.msra.mxu0 %v21776_v31  ;;  %v21823_v31 = vld [vmem:[%s22359_s1 + $0x30] ss:$12 sps:$4 sm:$0xff]   ;;  %v18934_v7 = vld [vmem:[%s19313_s19 + $0xe60] ss:$8 sps:$4 sm:$0xff]  }
 0x52e   : > { %16440 = vst.msk [vmem:[%s19963_s9 + $0x128] sm:$0xff] %vm1178_vm1, %v9526_v29  ;;  %v9527_v40 = vmul.f32 0.5, %v9523_v50  ;;  %v9524_v1 = vmax.f32 %v9520_v54, -1.0  ;;  %11310 = vmatpush2.bf16.msra.mxu1 %v18877_v60  ;;  %11662 = vmatprep.subr.bf16.mxu0 %v21780_v16  ;;  %v18888_v16 = vld [vmem:[%s19313_s19 + $0xdf4] ss:$8 sps:$4 sm:$0xff]  }
 0x52f   : > { %11311 = vmatprep.subr.bf16.mxu1 %v18882_v14  ;;  %v21920_v26 = vld [vmem:[%s19313_s19 + $0xfe0] ss:$8 sps:$4 sm:$0xff]   ;;  %v21925_v29 = vld [vmem:[%s19313_s19 + $0xfd4] ss:$8 sps:$4 sm:$0xff]   ;;  %v18940_v50 = vld [vmem:[%s19313_s19 + $0xe50] ss:$8 sps:$4 sm:$0xff]  }
 0x530   : > { %16441 = vst [vmem:[%s19963_s9 + $0x130] sm:$0xff] %v9527_v40  ;;  %v9528_v52 = vmul.f32 0.5, %v9524_v1  ;;  %v21900_v6 = vpop.f32.mrf.mxu0  ;;  %v21930_v54 = vld [vmem:[%s19313_s19 + $0xfd0] ss:$8 sps:$4 sm:$0xff]  }
 0x531   : > { %11663 = vmatpush2.bf16.msra.mxu0 %v21786_v58  ;;  %v18897_v58 = vld [vmem:[%s19313_s19 + $0xe94] ss:$8 sps:$4 sm:$0xff]  }
 0x532   : > { %16442 = vst.msk [vmem:[%s19963_s9 + $0x138] sm:$0xff] %vm1178_vm1, %v9528_v52  ;;  %11312 = vmatpush2.bf16.msra.mxu1 %v18880_v30  ;;  %11664 = vmatprep.subr.bf16.mxu0 %v21790_v43  ;;  %v18900_v43 = vld [vmem:[%s19313_s19 + $0xdc4] ss:$8 sps:$4 sm:$0xff]   ;;  %v9822_v63 = vpop.f32.mrf.mxu0 }
 0x533   : > { %11313 = vmatprep.subr.bf16.mxu1 %v18885_v21 }
 0x535   : > { %11665 = vmatpush2.bf16.msra.mxu0 %v18871_v45  ;;  %v21863_v45 = vld [vmem:[%s19313_s19 + $0x1030] ss:$8 sps:$4 sm:$0xff]  }
 0x536   : > { %11314 = vmatpush2.bf16.msra.mxu1 %v18883_v2  ;;  %11666 = vmatprep.subr.bf16.mxu0 %v18876_v3  ;;  %v21875_v3 = vld [vmem:[%s19313_s19 + $0x1020] ss:$8 sps:$4 sm:$0xff]  }
 0x537   : > { %11697 = vmatprep.subr.bf16.mxu1 %v21726_v9  ;;  %v18886_v9 = vld [vmem:[%s19313_s19 + $0xdf0] ss:$8 sps:$4 sm:$0xff]  }
 0x539   : > { %11316 = vmatmul.mubr.bf16.vlgmr.msra.gmra.mxu1 %v21823_v31  ;;  %11667 = vmatpush2.bf16.msra.mxu0 %v18874_v51  ;;  %v21898_v51 = vpop.f32.mrf.mxu1 }
 0x53a   : > { %11698 = vmatpush1.bf16.msra.mxu1 %v21738_v25  ;;  %11668 = vmatprep.subr.bf16.mxu0 %v18879_v53  ;;  %v21836_v25 = vld [vmem:[%s22359_s1 + $0x20] ss:$12 sps:$4 sm:$0xff]   ;;  %v18928_v53 = vld [vmem:[%s19313_s19 + $0xe70] ss:$8 sps:$4 sm:$0xff]  }
 0x53b   : > { %11699 = vmatprep.subr.bf16.mxu1 %v21743_v24  ;;  %11717 = vmatprep.mubr.bf16.mxu1 %v19270_v0  ;;  %v18889_v24 = vld [vmem:[%s19313_s19 + $0xde0] ss:$8 sps:$4 sm:$0xff]   ;;  %v9865_v36 = vpop.f32.mrf.mxu1 }
 0x53d   : > { %11669 = vmatpush2.bf16.msra.mxu0 %v18877_v60  ;;  %v9867_v42 = vpop.f32.mrf.mxu1  ;;  %v9824_v60 = vpop.f32.mrf.mxu0 }
 0x53e   : > { %11700 = vmatpush1.bf16.msra.mxu1 %v21751_v38  ;;  %11670 = vmatprep.subr.bf16.mxu0 %v18882_v14  ;;  %v18894_v38 = vld [vmem:[%s19313_s19 + $0xdd4] ss:$8 sps:$4 sm:$0xff]  }
 0x53f   : > { %11908 = vmatprep.subr.bf16.mxu1 %v18888_v16  ;;  %v18942_v14 = vld [vmem:[%s19313_s19 + $0xe54] ss:$8 sps:$4 sm:$0xff]   ;;  %v9869_v40 = vpop.f32.mrf.mxu1  ;;  %v9826_v1 = vpop.f32.mrf.mxu0  ;;  %v21940_v16 = vld [vmem:[%s19313_s19 + $0xfc0] ss:$8 sps:$4 sm:$0xff]  }
 0x541   : > { %16997 = vmatmul.mubr.msk.bf16.vlgmr.msra.gmra.mxu1 %vm466_vm0, %v21836_v25  ;;  %11671 = vmatpush2.bf16.msra.mxu0 %v18880_v30  ;;  %v18948_v30 = vld [vmem:[%s19313_s19 + $0xe44] ss:$8 sps:$4 sm:$0xff]  }
 0x542   : > { %11909 = vmatpush1.bf16.msra.mxu1 %v18886_v9  ;;  %11672 = vmatprep.subr.bf16.mxu0 %v18885_v21  ;;  %v21935_v21 = vld [vmem:[%s19313_s19 + $0xfc4] ss:$8 sps:$4 sm:$0xff]   ;;  %v10129_v9 = vpop.f32.mrf.mxu0 }
 0x543   : > { %11910 = vmatprep.subr.bf16.mxu1 %v18891_v22  ;;  %11940 = vmatprep.mubr.bf16.mxu1 %v21846_v10 }
 0x545   : > { %11673 = vmatpush2.bf16.msra.mxu0 %v18883_v2  ;;  %v18946_v2 = vld [vmem:[%s19313_s19 + $0xe40] ss:$8 sps:$4 sm:$0xff]  }
 0x546   : > { %11911 = vmatpush1.bf16.msra.mxu1 %v18889_v24  ;;  %11963 = vmatprep.subr.bf16.mxu0 %v18897_v58  ;;  %v18954_v24 = vld [vmem:[%s19313_s19 + $0xe34] ss:$8 sps:$4 sm:$0xff]  }
 0x547   : > { %11912 = vmatprep.subr.bf16.mxu1 %v18894_v38  ;;  %v21945_v38 = vld [vmem:[%s19313_s19 + $0x10b4] ss:$8 sps:$4 sm:$0xff]  }
 0x548   : > { %11675 = vmatmul.mubr.bf16.vlgmr.msra.gmra.mxu0 %v21703_v23 }
 0x549   : > { %11964 = vmatpush1.bf16.msra.mxu0 %v18895_v59  ;;  %11983 = vmatprep.mubr.bf16.mxu0 %v19270_v0  ;;  %v21950_v59 = vld [vmem:[%s19313_s19 + $0x10b0] ss:$8 sps:$4 sm:$0xff]  }
 0x54a   : > { %11913 = vmatpush1.bf16.msra.mxu1 %v18892_v37  ;;  %11965 = vmatprep.subr.bf16.mxu0 %v18903_v20  ;;  %v18952_v37 = vld [vmem:[%s19313_s19 + $0xe30] ss:$8 sps:$4 sm:$0xff]   ;;  %v18960_v20 = vld [vmem:[%s19313_s19 + $0xe24] ss:$8 sps:$4 sm:$0xff]  }
 0x54b   : > { %11914 = vmatprep.subr.bf16.mxu1 %v18900_v43  ;;  %v10131_v43 = vpop.f32.mrf.mxu0 }
 0x54d   : > { %11966 = vmatpush1.bf16.msra.mxu0 %v18901_v18 }
 0x54e   : > { %11915 = vmatpush1.bf16.msra.mxu1 %v18898_v13  ;;  %12211 = vmatprep.subr.bf16.mxu0 %v21858_v28  ;;  %v21955_v13 = vld [vmem:[%s19313_s19 + $0x10a4] ss:$8 sps:$4 sm:$0xff]  }
 0x54f   : > { %11916 = vmatprep.subr.bf16.mxu1 %v18906_v46  ;;  %v18958_v46 = vld [vmem:[%s19313_s19 + $0xe20] ss:$8 sps:$4 sm:$0xff]  }
 0x550   : > { %17034 = vmatmul.mubr.msk.bf16.vlgmr.msra.gmra.mxu0 %vm466_vm0, %v21718_v48 }
 0x551   : > { %12212 = vmatpush1.bf16.msra.mxu0 %v21863_v45  ;;  %12243 = vmatprep.mubr.bf16.mxu0 %v21731_v27 }
 0x552   : > { %11917 = vmatpush1.bf16.msra.mxu1 %v18904_v56  ;;  %12213 = vmatprep.subr.bf16.mxu0 %v21868_v19  ;;  %v21960_v56 = vld [vmem:[%s19313_s19 + $0x10a0] ss:$8 sps:$4 sm:$0xff]  }
 0x553   : > { %11918 = vmatprep.subr.bf16.mxu1 %v18912_v4  ;;  %v10133_v4 = vpop.f32.mrf.mxu0 }
 0x555   : > { %12214 = vmatpush1.bf16.msra.mxu0 %v21875_v3 }
 0x556   : > { %11919 = vmatpush1.bf16.msra.mxu1 %v18910_v55  ;;  %12215 = vmatprep.subr.bf16.mxu0 %v21880_v49 }
 0x557   : > { %11920 = vmatprep.subr.bf16.mxu1 %v18918_v15  ;;  %v18966_v15 = vld [vmem:[%s19313_s19 + $0xe14] ss:$8 sps:$4 sm:$0xff]  }
 0x559   : > { %12216 = vmatpush1.bf16.msra.mxu0 %v21886_v8 }
 0x55a   : > { %11921 = vmatpush1.bf16.msra.mxu1 %v18916_v32  ;;  %12217 = vmatprep.subr.bf16.mxu0 %v21891_v11  ;;  %v21965_v32 = vld [vmem:[%s19313_s19 + $0x1094] ss:$8 sps:$4 sm:$0xff]  }
 0x55b   : > { %11922 = vmatprep.subr.bf16.mxu1 %v18924_v61  ;;  %v9864_v61 = vadd.f32 %v21898_v51, %v21900_v6  ;;  %v9870_v6 = vadd.f32 %v9869_v40, %v9826_v1  ;;  %v18981_v40 = vld [vmem:[%s19313_s19 + $0x10d4] ss:$8 sps:$4 sm:$0xff]  }
 0x55d   : > { %12218 = vmatpush1.bf16.msra.mxu0 %v21896_v57 }
 0x55e   : > { %11923 = vmatpush1.bf16.msra.mxu1 %v18922_v5  ;;  %12219 = vmatprep.subr.bf16.mxu0 %v21905_v33  ;;  %v9866_v5 = vadd.f32 %v9865_v36, %v9822_v63 }
 0x55f   : > { %11924 = vmatprep.subr.bf16.mxu1 %v18930_v44 }
 0x561   : > { %12220 = vmatpush1.bf16.msra.mxu0 %v21910_v17 }
 0x562   : > { %11925 = vmatpush2.bf16.msra.mxu1 %v18928_v53  ;;  %12221 = vmatprep.subr.bf16.mxu0 %v21915_v35  ;;  %v18964_v53 = vld [vmem:[%s19313_s19 + $0xe10] ss:$8 sps:$4 sm:$0xff]  }
 0x563   : > { %11926 = vmatprep.subr.bf16.mxu1 %v18936_v39  ;;  %v21972_v39 = vld [vmem:[%s19313_s19 + $0x1090] ss:$8 sps:$4 sm:$0xff]  }
 0x565   : > { %12222 = vmatpush1.bf16.msra.mxu0 %v21920_v26 }
 0x566   : > { %11927 = vmatpush2.bf16.msra.mxu1 %v18934_v7  ;;  %12223 = vmatprep.subr.bf16.mxu0 %v21925_v29  ;;  %v9868_v7 = vadd.f32 %v9867_v42, %v9824_v60  ;;  %v18970_v42 = vld [vmem:[%s19313_s19 + $0xe00] ss:$8 sps:$4 sm:$0xff]  }
 0x567   : > { %11928 = vmatprep.subr.bf16.mxu1 %v18942_v14  ;;  %v10135_v14 = vpop.f32.mrf.mxu0  ;;  %v21982_v60 = vld [vmem:[%s19313_s19 + $0x1080] ss:$8 sps:$4 sm:$0xff]  }
 0x569   : > { %v10086_v52 = vpop.f32.mrf.mxu1  ;;  %12224 = vmatpush1.bf16.msra.mxu0 %v21930_v54 }
 0x56a   : > { %11929 = vmatpush2.bf16.msra.mxu1 %v18940_v50  ;;  %12225 = vmatprep.subr.bf16.mxu0 %v21935_v21  ;;  %v10087_v44 = vadd.f32 %v10086_v52, %v9864_v61 }
 0x56b   : > { %v10088_v22 = vpop.f32.mrf.mxu1  ;;  %11930 = vmatprep.subr.bf16.mxu1 %v18948_v30  ;;  %v18972_v30 = vld [vmem:[%s19313_s19 + $0xe04] ss:$8 sps:$4 sm:$0xff]  }
 0x56c   : > { %v10089_v51 = vadd.f32 %v10088_v22, %v9866_v5  ;;  %v10130_v52 = vadd.f32 %v10129_v9, %v10087_v44  ;;  %v21986_v22 = vld [vmem:[%s19313_s19 + $0x1074] ss:$8 sps:$4 sm:$0xff]   ;;  %v21992_v44 = vld [vmem:[%s19313_s19 + $0x1070] ss:$8 sps:$4 sm:$0xff]  }
 0x56d   : > { %v10090_v58 = vpop.f32.mrf.mxu1  ;;  %12226 = vmatpush1.bf16.msra.mxu0 %v21940_v16 }
 0x56e   : > { %11931 = vmatpush2.bf16.msra.mxu1 %v18946_v2  ;;  %12227 = vmatprep.subr.bf16.mxu0 %v21945_v38  ;;  %v21977_v2 = vld [vmem:[%s19313_s19 + $0x1084] ss:$8 sps:$4 sm:$0xff]   ;;  %v10091_v36 = vadd.f32 %v10090_v58, %v9868_v7  ;;  %v10132_v1 = vadd.f32 %v10131_v43, %v10089_v51 }
 0x56f   : > { %11932 = vmatprep.subr.bf16.mxu1 %v18954_v24  ;;  %v10092_v18 = vpop.f32.mrf.mxu1  ;;  %v21997_v43 = vld [vmem:[%s19313_s19 + $0x1064] ss:$8 sps:$4 sm:$0xff]  }
 0x571   : > { %12228 = vmatpush2.bf16.msra.mxu0 %v21950_v59  ;;  %v10432_v55 = vpop.f32.mrf.mxu1 }
 0x572   : > { %11933 = vmatpush2.bf16.msra.mxu1 %v18952_v37  ;;  %12229 = vmatprep.subr.bf16.mxu0 %v21955_v13  ;;  %v10093_v37 = vadd.f32 %v10092_v18, %v9870_v6 }
 0x573   : > { %11934 = vmatprep.subr.bf16.mxu1 %v18960_v20  ;;  %v10434_v50 = vpop.f32.mrf.mxu1 }
 0x574   : > { %v10136_v7 = vadd.f32 %v10135_v14, %v10093_v37  ;;  %v22005_v37 = vld [vmem:[%s19313_s19 + $0x1060] ss:$8 sps:$4 sm:$0xff]  }
 0x575   : > { %12230 = vmatpush2.bf16.msra.mxu0 %v21960_v56  ;;  %v10436_v20 = vpop.f32.mrf.mxu1 }
 0x576   : > { %11935 = vmatpush2.bf16.msra.mxu1 %v18958_v46  ;;  %12231 = vmatprep.subr.bf16.mxu0 %v21965_v32 }
 0x577   : > { %11936 = vmatprep.subr.bf16.mxu1 %v18966_v15 }
 0x578   : > { %v10389_v63 = vpop.f32.mrf.mxu0 }
 0x579   : > { %v10433_v24 = vadd.f32 %v10432_v55, %v10389_v63  ;;  %12232 = vmatpush2.bf16.msra.mxu0 %v21972_v39  ;;  %v10134_v55 = vadd.f32 %v10133_v4, %v10091_v36  ;;  %v18987_v4 = vld [vmem:[%s19313_s19 + $0x10c4] ss:$8 sps:$4 sm:$0xff]  }
 0x57a   : > { %11937 = vmatpush2.bf16.msra.mxu1 %v18964_v53  ;;  %v10391_v46 = vpop.f32.mrf.mxu0  ;;  %12233 = vmatprep.subr.bf16.mxu0 %v21977_v2  ;;  %v18979_v53 = vld [vmem:[%s19313_s19 + $0x10d0] ss:$8 sps:$4 sm:$0xff]  }
 0x57b   : > { %11938 = vmatprep.subr.bf16.mxu1 %v18972_v30  ;;  %v10441_v9 = vadd.f32 %v10433_v24, %v10130_v52  ;;  %v10435_v58 = vadd.f32 %v10434_v50, %v10391_v46  ;;  %v10438_v30 = vpop.f32.mrf.mxu1  ;;  %v22010_v46 = vld [vmem:[%s19313_s19 + $0x1054] ss:$8 sps:$4 sm:$0xff]  }
 0x57c   : > { %v10393_v15 = vpop.f32.mrf.mxu0 }
 0x57d   : > { %v10445_v61 = vadd.f32 %v10441_v9, %v19929_v34  ;;  %v10442_v18 = vadd.f32 %v10435_v58, %v10132_v1  ;;  %v10437_v5 = vadd.f32 %v10436_v20, %v10393_v15  ;;  %12234 = vmatpush2.bf16.msra.mxu0 %v21982_v60  ;;  %v18985_v20 = vld [vmem:[%s19313_s19 + $0x10c0] ss:$8 sps:$4 sm:$0xff]   ;;  %v22019_v15 = vld [vmem:[%s19313_s19 + $0x1050] ss:$8 sps:$4 sm:$0xff]  }
 0x57e   : > { %11939 = vmatpush2.bf16.msra.mxu1 %v18970_v42  ;;  %v10395_v6 = vpop.f32.mrf.mxu0  ;;  %12235 = vmatprep.subr.bf16.mxu0 %v21986_v22 }
 0x57f   : > { %12266 = vmatprep.subr.bf16.mxu1 %v18981_v40  ;;  %v10449_v50 = vmax.f32 %v10445_v61, -1.0  ;;  %v10446_v51 = vadd.f32 %v10442_v18, %v19929_v34  ;;  %v10443_v36 = vadd.f32 %v10437_v5, %v10134_v55  ;;  %v10439_v63 = vadd.f32 %v10438_v30, %v10395_v6  ;;  %v22024_v61 = vld [vmem:[%s19313_s19 + $0x1044] ss:$8 sps:$4 sm:$0xff]   ;;  %v22034_v5 = vld [vmem:[%s19313_s19 + $0x1040] ss:$8 sps:$4 sm:$0xff]  }
 0x580   : > { %v19039_v30 = vld [vmem:[%s19313_s19 + $0xfa0] ss:$8 sps:$4 sm:$0xff]   ;;  %v19044_v6 = vld [vmem:[%s19313_s19 + $0xf34] ss:$8 sps:$4 sm:$0xff]  }
 0x581   : > { %11941 = vmatmul.mubr.bf16.vlgmr.msra.gmra.mxu1 %v21584_v41  ;;  %v10453_v14 = vmul.f32 0.5, %v10449_v50  ;;  %v10450_v52 = vmax.f32 %v10446_v51, -1.0  ;;  %v10447_v24 = vadd.f32 %v10443_v36, %v19955_v62  ;;  %v10444_v42 = vadd.f32 %v10439_v63, %v10136_v7  ;;  %12236 = vmatpush2.bf16.msra.mxu0 %v21992_v44  ;;  %v19036_v7 = vld [vmem:[%s19313_s19 + $0xf40] ss:$8 sps:$4 sm:$0xff]   ;;  %v19050_v50 = vld [vmem:[%s19313_s19 + $0xf24] ss:$8 sps:$4 sm:$0xff]  }
 0x582   : > { %12267 = vmatpush1.bf16.msra.mxu1 %v18979_v53  ;;  %12237 = vmatprep.subr.bf16.mxu0 %v21997_v43  ;;  %v19053_v51 = vld [vmem:[%s19313_s19 + $0x1144] ss:$8 sps:$4 sm:$0xff]   ;;  %v19048_v36 = vld [vmem:[%s19313_s19 + $0xf20] ss:$8 sps:$4 sm:$0xff]  }
 0x583   : > { %12268 = vmatprep.subr.bf16.mxu1 %v18987_v4  ;;  %16662 = vst [vmem:[%s19963_s9 + $0x140] sm:$0xff] %v10453_v14  ;;  %v10454_v41 = vmul.f32 0.5, %v10450_v52  ;;  %v10451_v1 = vmax.f32 %v10447_v24, -1.0  ;;  %v10448_v9 = vadd.f32 %v10444_v42, %v19955_v62  ;;  %12286 = vmatprep.mubr.bf16.mxu1 %v19270_v0  ;;  %v19051_v63 = vld [vmem:[%s19313_s19 + $0x1140] ss:$8 sps:$4 sm:$0xff]   ;;  %v22123_v24 = vpop.f32.mrf.mxu0 }
 0x584   : > { %v19056_v14 = vld [vmem:[%s19313_s19 + $0x1134] ss:$8 sps:$4 sm:$0xff]   ;;  %v22127_v42 = vld [vmem:[%s19313_s19 + $0x11f0] ss:$8 sps:$4 sm:$0xff]  }
 0x585   : > { %16663 = vst.msk [vmem:[%s19963_s9 + $0x148] sm:$0xff] %vm1178_vm1, %v10454_v41  ;;  %v10455_v58 = vmul.f32 0.5, %v10451_v1  ;;  %v10452_v55 = vmax.f32 %v10448_v9, -1.0  ;;  %12238 = vmatpush2.bf16.msra.mxu0 %v22005_v37  ;;  %v22120_v52 = vld [vmem:[%s19313_s19 + $0x11f4] ss:$8 sps:$4 sm:$0xff]  }
 0x586   : > { %12269 = vmatpush1.bf16.msra.mxu1 %v18985_v20  ;;  %12239 = vmatprep.subr.bf16.mxu0 %v22010_v46  ;;  %v19060_v41 = vld [vmem:[%s19313_s19 + $0x1120] ss:$8 sps:$4 sm:$0xff]   ;;  %v19068_v9 = vld [vmem:[%s19313_s19 + $0x1114] ss:$8 sps:$4 sm:$0xff]  }
 0x587   : > { %12570 = vmatprep.subr.bf16.mxu1 %v21858_v28  ;;  %16664 = vst [vmem:[%s19963_s9 + $0x150] sm:$0xff] %v10455_v58  ;;  %v10456_v18 = vmul.f32 0.5, %v10452_v55  ;;  %v18999_v28 = vld [vmem:[%s19313_s19 + $0xf04] ss:$8 sps:$4 sm:$0xff]   ;;  %v22145_v1 = vld [vmem:[%s19313_s19 + $0x11e0] ss:$8 sps:$4 sm:$0xff]  }
 0x589   : > { %17107 = vmatmul.mubr.msk.bf16.vlgmr.msra.gmra.mxu1 %vm466_vm0, %v21615_v12  ;;  %16665 = vst.msk [vmem:[%s19963_s9 + $0x158] sm:$0xff] %vm1178_vm1, %v10456_v18  ;;  %12240 = vmatpush2.bf16.msra.mxu0 %v22019_v15  ;;  %v18996_v12 = vld [vmem:[%s19313_s19 + $0xf14] ss:$8 sps:$4 sm:$0xff]  }
 0x58a   : > { %12571 = vmatpush1.bf16.msra.mxu1 %v21863_v45  ;;  %12241 = vmatprep.subr.bf16.mxu0 %v22024_v61  ;;  %v18997_v45 = vld [vmem:[%s19313_s19 + $0xf00] ss:$8 sps:$4 sm:$0xff]  }
 0x58b   : > { %12572 = vmatprep.subr.bf16.mxu1 %v21868_v19  ;;  %12602 = vmatprep.mubr.bf16.mxu1 %v21631_v47  ;;  %v18994_v47 = vld [vmem:[%s19313_s19 + $0xf10] ss:$8 sps:$4 sm:$0xff]   ;;  %v19002_v19 = vld [vmem:[%s19313_s19 + $0xef4] ss:$8 sps:$4 sm:$0xff]  }
 0x58d   : > { %12242 = vmatpush2.bf16.msra.mxu0 %v22034_v5 }
 0x58e   : > { %12573 = vmatpush1.bf16.msra.mxu1 %v21875_v3  ;;  %12625 = vmatprep.subr.bf16.mxu0 %v18981_v40  ;;  %v19000_v3 = vld [vmem:[%s19313_s19 + $0xef0] ss:$8 sps:$4 sm:$0xff]  }
 0x58f   : > { %12574 = vmatprep.subr.bf16.mxu1 %v21880_v49  ;;  %v19005_v49 = vld [vmem:[%s19313_s19 + $0xee4] ss:$8 sps:$4 sm:$0xff]   ;;  %v19033_v40 = vld [vmem:[%s19313_s19 + $0xfb0] ss:$8 sps:$4 sm:$0xff]  }
 0x590   : > { %12244 = vmatmul.mubr.bf16.vlgmr.msra.gmra.mxu0 %v21823_v31 }
 0x591   : > { %12626 = vmatpush1.bf16.msra.mxu0 %v18979_v53  ;;  %12645 = vmatprep.mubr.bf16.mxu0 %v19270_v0  ;;  %v19041_v53 = vld [vmem:[%s19313_s19 + $0xfa4] ss:$8 sps:$4 sm:$0xff]  }
 0x592   : > { %12575 = vmatpush1.bf16.msra.mxu1 %v21886_v8  ;;  %12627 = vmatprep.subr.bf16.mxu0 %v18987_v4  ;;  %v19003_v8 = vld [vmem:[%s19313_s19 + $0xee0] ss:$8 sps:$4 sm:$0xff]   ;;  %v19042_v4 = vld [vmem:[%s19313_s19 + $0xf30] ss:$8 sps:$4 sm:$0xff]  }
 0x593   : > { %12576 = vmatprep.subr.bf16.mxu1 %v21891_v11  ;;  %v19008_v11 = vld [vmem:[%s19313_s19 + $0xed4] ss:$8 sps:$4 sm:$0xff]  }
 0x595   : > { %12628 = vmatpush1.bf16.msra.mxu0 %v18985_v20  ;;  %v22132_v20 = vld [vmem:[%s19313_s19 + $0x11e4] ss:$8 sps:$4 sm:$0xff]  }
 0x596   : > { %12577 = vmatpush1.bf16.msra.mxu1 %v21896_v57  ;;  %12836 = vmatprep.subr.bf16.mxu0 %v18996_v12  ;;  %v19006_v57 = vld [vmem:[%s19313_s19 + $0xed0] ss:$8 sps:$4 sm:$0xff]  }
 0x597   : > { %12578 = vmatprep.subr.bf16.mxu1 %v21905_v33  ;;  %v19011_v33 = vld [vmem:[%s19313_s19 + $0xec4] ss:$8 sps:$4 sm:$0xff]  }
 0x598   : > { %17220 = vmatmul.mubr.msk.bf16.vlgmr.msra.gmra.mxu0 %vm466_vm0, %v21836_v25  ;;  %v22156_v12 = vld [vmem:[%s22359_s1 + $0x38] ss:$12 sps:$4 sm:$0xff]  }
 0x599   : > { %12837 = vmatpush1.bf16.msra.mxu0 %v18994_v47  ;;  %12868 = vmatprep.mubr.bf16.mxu0 %v21846_v10  ;;  %v19069_v47 = vld [vmem:[%s19313_s19 + $0x1100] ss:$8 sps:$4 sm:$0xff]  }
 0x59a   : > { %12579 = vmatpush1.bf16.msra.mxu1 %v21910_v17  ;;  %12838 = vmatprep.subr.bf16.mxu0 %v18999_v28  ;;  %v19009_v17 = vld [vmem:[%s19313_s19 + $0xec0] ss:$8 sps:$4 sm:$0xff]  }
 0x59b   : > { %12580 = vmatprep.subr.bf16.mxu1 %v21915_v35  ;;  %v19014_v35 = vld [vmem:[%s19313_s19 + $0xeb4] ss:$8 sps:$4 sm:$0xff]  }
 0x59d   : > { %12839 = vmatpush1.bf16.msra.mxu0 %v18997_v45  ;;  %v19074_v45 = vld [vmem:[%s19313_s19 + $0x10f4] ss:$8 sps:$4 sm:$0xff]  }
 0x59e   : > { %12581 = vmatpush1.bf16.msra.mxu1 %v21920_v26  ;;  %12840 = vmatprep.subr.bf16.mxu0 %v19002_v19  ;;  %v19012_v26 = vld [vmem:[%s19313_s19 + $0xeb0] ss:$8 sps:$4 sm:$0xff]   ;;  %v19257_v19 = vld [vmem:[%s22359_s1 + $0x1c] ss:$12 sps:$4 sm:$0xff]  }
 0x59f   : > { %12582 = vmatprep.subr.bf16.mxu1 %v21925_v29  ;;  %v19017_v29 = vld [vmem:[%s19313_s19 + $0xea4] ss:$8 sps:$4 sm:$0xff]  }
 0x5a1   : > { %12841 = vmatpush1.bf16.msra.mxu0 %v19000_v3 }
 0x5a2   : > { %12583 = vmatpush1.bf16.msra.mxu1 %v21930_v54  ;;  %12842 = vmatprep.subr.bf16.mxu0 %v19005_v49  ;;  %v19015_v54 = vld [vmem:[%s19313_s19 + $0xea0] ss:$8 sps:$4 sm:$0xff]   ;;  %v19072_v49 = vld [vmem:[%s19313_s19 + $0x10f0] ss:$8 sps:$4 sm:$0xff]  }
 0x5a3   : > { %12584 = vmatprep.subr.bf16.mxu1 %v21935_v21  ;;  %v19020_v21 = vld [vmem:[%s19313_s19 + $0xf94] ss:$8 sps:$4 sm:$0xff]  }
 0x5a5   : > { %12843 = vmatpush1.bf16.msra.mxu0 %v19003_v8 }
 0x5a6   : > { %12585 = vmatpush1.bf16.msra.mxu1 %v21940_v16  ;;  %12844 = vmatprep.subr.bf16.mxu0 %v19008_v11  ;;  %v19018_v16 = vld [vmem:[%s19313_s19 + $0xf90] ss:$8 sps:$4 sm:$0xff]   ;;  %v19077_v11 = vld [vmem:[%s19313_s19 + $0x10e4] ss:$8 sps:$4 sm:$0xff]  }
 0x5a7   : > { %12586 = vmatprep.subr.bf16.mxu1 %v21945_v38  ;;  %v19023_v38 = vld [vmem:[%s19313_s19 + $0xf84] ss:$8 sps:$4 sm:$0xff]  }
 0x5a9   : > { %12845 = vmatpush1.bf16.msra.mxu0 %v19006_v57 }
 0x5aa   : > { %12587 = vmatpush2.bf16.msra.mxu1 %v21950_v59  ;;  %12846 = vmatprep.subr.bf16.mxu0 %v19011_v33  ;;  %v19021_v59 = vld [vmem:[%s19313_s19 + $0xf80] ss:$8 sps:$4 sm:$0xff]  }
 0x5ab   : > { %12588 = vmatprep.subr.bf16.mxu1 %v21955_v13  ;;  %v19026_v13 = vld [vmem:[%s19313_s19 + $0xf74] ss:$8 sps:$4 sm:$0xff]   ;;  %v19075_v33 = vld [vmem:[%s19313_s19 + $0x10e0] ss:$8 sps:$4 sm:$0xff]  }
 0x5ad   : > { %12847 = vmatpush1.bf16.msra.mxu0 %v19009_v17 }
 0x5ae   : > { %12589 = vmatpush2.bf16.msra.mxu1 %v21960_v56  ;;  %12848 = vmatprep.subr.bf16.mxu0 %v19014_v35  ;;  %v19024_v56 = vld [vmem:[%s19313_s19 + $0xf70] ss:$8 sps:$4 sm:$0xff]  }
 0x5af   : > { %12590 = vmatprep.subr.bf16.mxu1 %v21965_v32  ;;  %v19029_v32 = vld [vmem:[%s19313_s19 + $0xf64] ss:$8 sps:$4 sm:$0xff]  }
 0x5b1   : > { %12849 = vmatpush1.bf16.msra.mxu0 %v19012_v26  ;;  %v10748_v55 = vpop.f32.mrf.mxu1  ;;  %v19080_v26 = vld [vmem:[%s19313_s19 + $0x11d4] ss:$8 sps:$4 sm:$0xff]  }
 0x5b2   : > { %12591 = vmatpush2.bf16.msra.mxu1 %v21972_v39  ;;  %12850 = vmatprep.subr.bf16.mxu0 %v19017_v29  ;;  %v19027_v39 = vld [vmem:[%s19313_s19 + $0xf60] ss:$8 sps:$4 sm:$0xff]   ;;  %v22170_v29 = vld [vmem:[%s19313_s19 + $0x11d0] ss:$8 sps:$4 sm:$0xff]  }
 0x5b3   : > { %12592 = vmatprep.subr.bf16.mxu1 %v21977_v2  ;;  %v19032_v2 = vld [vmem:[%s19313_s19 + $0xf54] ss:$8 sps:$4 sm:$0xff]  }
 0x5b5   : > { %12851 = vmatpush1.bf16.msra.mxu0 %v19015_v54 }
 0x5b6   : > { %12593 = vmatpush2.bf16.msra.mxu1 %v21982_v60  ;;  %12852 = vmatprep.subr.bf16.mxu0 %v19020_v21  ;;  %v19035_v60 = vld [vmem:[%s19313_s19 + $0xfb4] ss:$8 sps:$4 sm:$0xff]  }
 0x5b7   : > { %12594 = vmatprep.subr.bf16.mxu1 %v21986_v22  ;;  %v19030_v22 = vld [vmem:[%s19313_s19 + $0xf50] ss:$8 sps:$4 sm:$0xff]  }
 0x5b9   : > { %12853 = vmatpush2.bf16.msra.mxu0 %v19018_v16  ;;  %v22173_v16 = vld [vmem:[%s19313_s19 + $0x11c4] ss:$8 sps:$4 sm:$0xff]  }
 0x5ba   : > { %12595 = vmatpush2.bf16.msra.mxu1 %v21992_v44  ;;  %12854 = vmatprep.subr.bf16.mxu0 %v19023_v38  ;;  %v19038_v44 = vld [vmem:[%s19313_s19 + $0xf44] ss:$8 sps:$4 sm:$0xff]   ;;  %v22177_v38 = vld [vmem:[%s19313_s19 + $0x11c0] ss:$8 sps:$4 sm:$0xff]  }
 0x5bb   : > { %12596 = vmatprep.subr.bf16.mxu1 %v21997_v43  ;;  %v19047_v43 = vld [vmem:[%s19313_s19 + $0x1154] ss:$8 sps:$4 sm:$0xff]  }
 0x5bd   : > { %12855 = vmatpush2.bf16.msra.mxu0 %v19021_v59 }
 0x5be   : > { %12597 = vmatpush2.bf16.msra.mxu1 %v22005_v37  ;;  %12856 = vmatprep.subr.bf16.mxu0 %v19026_v13  ;;  %v19062_v37 = vld [vmem:[%s19313_s19 + $0x1124] ss:$8 sps:$4 sm:$0xff]  }
 0x5bf   : > { %12598 = vmatprep.subr.bf16.mxu1 %v22010_v46  ;;  %v22134_v46 = vpop.f32.mrf.mxu0 }
 0x5c1   : > { %12857 = vmatpush2.bf16.msra.mxu0 %v19024_v56  ;;  %v10795_v58 = vpop.f32.mrf.mxu0  ;;  %v22181_v56 = vld [vmem:[%s19313_s19 + $0x11b4] ss:$8 sps:$4 sm:$0xff]  }
 0x5c2   : > { %12599 = vmatpush2.bf16.msra.mxu1 %v22019_v15  ;;  %12858 = vmatprep.subr.bf16.mxu0 %v19029_v32  ;;  %v19066_v15 = vld [vmem:[%s19313_s19 + $0x1110] ss:$8 sps:$4 sm:$0xff]   ;;  %v10792_v32 = vadd.f32 %v22123_v24, %v10748_v55 }
 0x5c3   : > { %12600 = vmatprep.subr.bf16.mxu1 %v22024_v61  ;;  %v19071_v61 = vld [vmem:[%s19313_s19 + $0x1104] ss:$8 sps:$4 sm:$0xff]   ;;  %v10797_v18 = vpop.f32.mrf.mxu0 }
 0x5c5   : > { %12859 = vmatpush2.bf16.msra.mxu0 %v19027_v39  ;;  %v11014_v28 = vpop.f32.mrf.mxu0 }
 0x5c6   : > { %12601 = vmatpush2.bf16.msra.mxu1 %v22034_v5  ;;  %12860 = vmatprep.subr.bf16.mxu0 %v19032_v2  ;;  %v10750_v5 = vpop.f32.mrf.mxu1  ;;  %v11015_v2 = vadd.f32 %v11014_v28, %v10792_v32  ;;  %v19099_v32 = vld [vmem:[%s19313_s19 + $0x1160] ss:$8 sps:$4 sm:$0xff]  }
 0x5c7   : > { %12891 = vmatprep.subr.bf16.mxu1 %v19035_v60  ;;  %v11016_v8 = vpop.f32.mrf.mxu0  ;;  %v10794_v39 = vadd.f32 %v22134_v46, %v10750_v5  ;;  %v22187_v60 = vld [vmem:[%s19313_s19 + $0x11b0] ss:$8 sps:$4 sm:$0xff]  }
 0x5c8   : > { %v10752_v3 = vpop.f32.mrf.mxu1 }
 0x5c9   : > { %12603 = vmatmul.mubr.bf16.vlgmr.msra.gmra.mxu1 %v21703_v23  ;;  %12861 = vmatpush2.bf16.msra.mxu0 %v19030_v22  ;;  %v19045_v23 = vld [vmem:[%s19313_s19 + $0x1150] ss:$8 sps:$4 sm:$0xff]   ;;  %v11018_v35 = vpop.f32.mrf.mxu0  ;;  %v10796_v22 = vadd.f32 %v10795_v58, %v10752_v3 }
 0x5ca   : > { %12892 = vmatpush1.bf16.msra.mxu1 %v19033_v40  ;;  %12862 = vmatprep.subr.bf16.mxu0 %v19038_v44  ;;  %v10754_v57 = vpop.f32.mrf.mxu1 }
 0x5cb   : > { %12893 = vmatprep.subr.bf16.mxu1 %v19041_v53  ;;  %12911 = vmatprep.mubr.bf16.mxu1 %v19270_v0  ;;  %v11020_v21 = vpop.f32.mrf.mxu0  ;;  %v22191_v53 = vld [vmem:[%s19313_s19 + $0x11a4] ss:$8 sps:$4 sm:$0xff]  }
 0x5cc   : > { %v11057_v17 = vpop.f32.mrf.mxu1 }
 0x5cd   : > { %12863 = vmatpush2.bf16.msra.mxu0 %v19036_v7  ;;  %v11360_v13 = vpop.f32.mrf.mxu0  ;;  %v11017_v7 = vadd.f32 %v11016_v8, %v10794_v39  ;;  %v19111_v39 = vld [vmem:[%s19313_s19 + $0x10d0] ss:$8 sps:$4 sm:$0xff]  }
 0x5ce   : > { %12894 = vmatpush1.bf16.msra.mxu1 %v19039_v30  ;;  %12864 = vmatprep.subr.bf16.mxu0 %v19044_v6  ;;  %v11059_v54 = vpop.f32.mrf.mxu1  ;;  %v10798_v30 = vadd.f32 %v10797_v18, %v10754_v57  ;;  %v11019_v6 = vadd.f32 %v11018_v35, %v10796_v22  ;;  %v19117_v22 = vld [vmem:[%s19313_s19 + $0x10c0] ss:$8 sps:$4 sm:$0xff]  }
 0x5cf   : > { %13139 = vmatprep.subr.bf16.mxu1 %v19047_v43  ;;  %v11362_v44 = vpop.f32.mrf.mxu0  ;;  %v11060_v24 = vadd.f32 %v11059_v54, %v11017_v7  ;;  %v19123_v7 = vld [vmem:[%s19313_s19 + $0x1270] ss:$8 sps:$4 sm:$0xff]  }
 0x5d0   : > { %v11061_v59 = vpop.f32.mrf.mxu1 }
 0x5d1   : > { %17257 = vmatmul.mubr.msk.bf16.vlgmr.msra.gmra.mxu1 %vm466_vm0, %v21718_v48  ;;  %12865 = vmatpush2.bf16.msra.mxu0 %v19042_v4  ;;  %v19054_v48 = vld [vmem:[%s19313_s19 + $0x1130] ss:$8 sps:$4 sm:$0xff]   ;;  %v11058_v4 = vadd.f32 %v11057_v17, %v11015_v2  ;;  %v11062_v46 = vadd.f32 %v11061_v59, %v11019_v6  ;;  %v19098_v17 = vld [vmem:[%s19313_s19 + $0x1174] ss:$8 sps:$4 sm:$0xff]   ;;  %v19119_v2 = vld [vmem:[%s19313_s19 + $0x10c4] ss:$8 sps:$4 sm:$0xff]  }
 0x5d2   : > { %13140 = vmatpush1.bf16.msra.mxu1 %v19045_v23  ;;  %12866 = vmatprep.subr.bf16.mxu0 %v19050_v50  ;;  %v11063_v40 = vpop.f32.mrf.mxu1  ;;  %v19087_v50 = vld [vmem:[%s19313_s19 + $0x11a0] ss:$8 sps:$4 sm:$0xff]   ;;  %v19131_v6 = vld [vmem:[%s19313_s19 + $0x1264] ss:$8 sps:$4 sm:$0xff]  }
 0x5d3   : > { %13141 = vmatprep.subr.bf16.mxu1 %v19053_v51  ;;  %13171 = vmatprep.mubr.bf16.mxu1 %v21731_v27  ;;  %v22139_v27 = vld [vmem:[%s22359_s1] ss:$12 sps:$4 sm:$0xff]  }
 0x5d5   : > { %12867 = vmatpush2.bf16.msra.mxu0 %v19048_v36  ;;  %v11364_v36 = vpop.f32.mrf.mxu0 }
 0x5d6   : > { %13142 = vmatpush1.bf16.msra.mxu1 %v19051_v63  ;;  %13194 = vmatprep.subr.bf16.mxu0 %v22120_v52 }
 0x5d7   : > { %13143 = vmatprep.subr.bf16.mxu1 %v19056_v14  ;;  %v11366_v18 = vpop.f32.mrf.mxu0 }
 0x5d8   : > { %12869 = vmatmul.mubr.bf16.vlgmr.msra.gmra.mxu0 %v22139_v27 }
 0x5d9   : > { %13195 = vmatpush1.bf16.msra.mxu0 %v22127_v42  ;;  %13214 = vmatprep.mubr.bf16.mxu0 %v19270_v0 }
 0x5da   : > { %13144 = vmatpush1.bf16.msra.mxu1 %v19054_v48  ;;  %13196 = vmatprep.subr.bf16.mxu0 %v22132_v20 }
 0x5db   : > { %13145 = vmatprep.subr.bf16.mxu1 %v19062_v37 }
 0x5dd   : > { %13197 = vmatpush1.bf16.msra.mxu0 %v22145_v1 }
 0x5de   : > { %13146 = vmatpush1.bf16.msra.mxu1 %v19060_v41  ;;  %13498 = vmatprep.subr.bf16.mxu0 %v19047_v43 }
 0x5df   : > { %13147 = vmatprep.subr.bf16.mxu1 %v19068_v9 }
 0x5e0   : > { %17330 = vmatmul.mubr.msk.bf16.vlgmr.msra.gmra.mxu0 %vm466_vm0, %v22156_v12 }
 0x5e1   : > { %13499 = vmatpush1.bf16.msra.mxu0 %v19045_v23  ;;  %13530 = vmatprep.mubr.bf16.mxu0 %v19257_v19 }
 0x5e2   : > { %13148 = vmatpush1.bf16.msra.mxu1 %v19066_v15  ;;  %13500 = vmatprep.subr.bf16.mxu0 %v19053_v51  ;;  %v11021_v51 = vadd.f32 %v11020_v21, %v10798_v30  ;;  %v19128_v30 = vld [vmem:[%s19313_s19 + $0xfe4] ss:$8 sps:$4 sm:$0xff]  }
 0x5e3   : > { %13149 = vmatprep.subr.bf16.mxu1 %v19071_v61 }
 0x5e5   : > { %13501 = vmatpush1.bf16.msra.mxu0 %v19051_v63 }
 0x5e6   : > { %13150 = vmatpush1.bf16.msra.mxu1 %v19069_v47  ;;  %13502 = vmatprep.subr.bf16.mxu0 %v19056_v14  ;;  %v19092_v14 = vld [vmem:[%s19313_s19 + $0x1194] ss:$8 sps:$4 sm:$0xff]  }
 0x5e7   : > { %13151 = vmatprep.subr.bf16.mxu1 %v19074_v45 }
 0x5e9   : > { %13503 = vmatpush1.bf16.msra.mxu0 %v19054_v48 }
 0x5ea   : > { %13152 = vmatpush1.bf16.msra.mxu1 %v19072_v49  ;;  %13504 = vmatprep.subr.bf16.mxu0 %v19062_v37 }
 0x5eb   : > { %13153 = vmatprep.subr.bf16.mxu1 %v19077_v11 }
 0x5ed   : > { %13505 = vmatpush1.bf16.msra.mxu0 %v19060_v41 }
 0x5ee   : > { %13154 = vmatpush1.bf16.msra.mxu1 %v19075_v33  ;;  %13506 = vmatprep.subr.bf16.mxu0 %v19068_v9 }
 0x5ef   : > { %13155 = vmatprep.subr.bf16.mxu1 %v19080_v26 }
 0x5f1   : > { %13507 = vmatpush1.bf16.msra.mxu0 %v19066_v15  ;;  %v19090_v15 = vld [vmem:[%s19313_s19 + $0x1190] ss:$8 sps:$4 sm:$0xff]  }
 0x5f2   : > { %13156 = vmatpush2.bf16.msra.mxu1 %v22170_v29  ;;  %13508 = vmatprep.subr.bf16.mxu0 %v19071_v61  ;;  %v11064_v61 = vadd.f32 %v11063_v40, %v11021_v51  ;;  %v19122_v40 = vld [vmem:[%s19313_s19 + $0xff4] ss:$8 sps:$4 sm:$0xff]  }
 0x5f3   : > { %13157 = vmatprep.subr.bf16.mxu1 %v22173_v16  ;;  %v19137_v51 = vld [vmem:[%s19313_s19 + $0x1254] ss:$8 sps:$4 sm:$0xff]  }
 0x5f5   : > { %13509 = vmatpush1.bf16.msra.mxu0 %v19069_v47  ;;  %v19095_v47 = vld [vmem:[%s19313_s19 + $0x1184] ss:$8 sps:$4 sm:$0xff]  }
 0x5f6   : > { %13158 = vmatpush2.bf16.msra.mxu1 %v22177_v38  ;;  %13510 = vmatprep.subr.bf16.mxu0 %v19074_v45 }
 0x5f7   : > { %13159 = vmatprep.subr.bf16.mxu1 %v22181_v56 }
 0x5f9   : > { %v11317_v43 = vpop.f32.mrf.mxu1  ;;  %13511 = vmatpush1.bf16.msra.mxu0 %v19072_v49 }
 0x5fa   : > { %v11361_v23 = vadd.f32 %v11360_v13, %v11317_v43  ;;  %13160 = vmatpush2.bf16.msra.mxu1 %v22187_v60  ;;  %13512 = vmatprep.subr.bf16.mxu0 %v19077_v11  ;;  %v19259_v43 = vld [vmem:[%s22359_s1 + $0x8] ss:$12 sps:$4 sm:$0xff]  }
 0x5fb   : > { %v11319_v63 = vpop.f32.mrf.mxu1  ;;  %13161 = vmatprep.subr.bf16.mxu1 %v22191_v53 }
 0x5fc   : > { %v11369_v48 = vadd.f32 %v11361_v23, %v11058_v4  ;;  %v11363_v37 = vadd.f32 %v11362_v44, %v11319_v63  ;;  %v19125_v44 = vld [vmem:[%s19313_s19 + $0x1274] ss:$8 sps:$4 sm:$0xff]   ;;  %v19126_v4 = vld [vmem:[%s19313_s19 + $0xfe0] ss:$8 sps:$4 sm:$0xff]   ;;  %v19132_v63 = vld [vmem:[%s19313_s19 + $0xfd0] ss:$8 sps:$4 sm:$0xff]  }
 0x5fd   : > { %v11321_v41 = vpop.f32.mrf.mxu1  ;;  %13513 = vmatpush1.bf16.msra.mxu0 %v19075_v33  ;;  %v19093_v33 = vld [vmem:[%s19313_s19 + $0x1180] ss:$8 sps:$4 sm:$0xff]  }
 0x5fe   : > { %v11373_v9 = vadd.f32 %v11369_v48, %v19929_v34  ;;  %v11370_v58 = vadd.f32 %v11363_v37, %v11060_v24  ;;  %v11365_v55 = vadd.f32 %v11364_v36, %v11321_v41  ;;  %13162 = vmatpush2.bf16.msra.mxu1 %v19087_v50  ;;  %13514 = vmatprep.subr.bf16.mxu0 %v19080_v26  ;;  %v19129_v23 = vld [vmem:[%s19313_s19 + $0x1260] ss:$8 sps:$4 sm:$0xff]   ;;  %v19140_v24 = vld [vmem:[%s19313_s19 + $0xfc4] ss:$8 sps:$4 sm:$0xff]  }
 0x5ff   : > { %v11323_v5 = vpop.f32.mrf.mxu1  ;;  %13163 = vmatprep.subr.bf16.mxu1 %v19092_v14  ;;  %v19260_v36 = vld [vmem:[%s22359_s1 + $0x34] ss:$12 sps:$4 sm:$0xff]   ;;  %v19143_v48 = vld [vmem:[%s19313_s19 + $0x1244] ss:$8 sps:$4 sm:$0xff]  }
 0x600   : > { %v11377_v28 = vmax.f32 %v11373_v9, -1.0  ;;  %v11374_v45 = vadd.f32 %v11370_v58, %v19929_v34  ;;  %v11371_v19 = vadd.f32 %v11365_v55, %v11062_v46  ;;  %v11367_v3 = vadd.f32 %v11366_v18, %v11323_v5  ;;  %v19138_v37 = vld [vmem:[%s19313_s19 + $0xfc0] ss:$8 sps:$4 sm:$0xff]   ;;  %v19146_v58 = vld [vmem:[%s19313_s19 + $0x10b4] ss:$8 sps:$4 sm:$0xff]  }
 0x601   : > { %13515 = vmatpush2.bf16.msra.mxu0 %v22170_v29  ;;  %v19096_v29 = vld [vmem:[%s19313_s19 + $0x1170] ss:$8 sps:$4 sm:$0xff]   ;;  %v19141_v46 = vld [vmem:[%s19313_s19 + $0x1240] ss:$8 sps:$4 sm:$0xff]   ;;  %v22268_v41 = vpop.f32.mrf.mxu1  ;;  %v19149_v55 = vld [vmem:[%s19313_s19 + $0x1234] ss:$8 sps:$4 sm:$0xff]  }
 0x602   : > { %v11381_v49 = vmul.f32 0.5, %v11377_v28  ;;  %v11378_v8 = vmax.f32 %v11374_v45, -1.0  ;;  %v11375_v11 = vadd.f32 %v11371_v19, %v19955_v62  ;;  %v11372_v57 = vadd.f32 %v11367_v3, %v11064_v61  ;;  %13164 = vmatpush2.bf16.msra.mxu1 %v19090_v15  ;;  %13516 = vmatprep.subr.bf16.mxu0 %v22173_v16  ;;  %v19101_v16 = vld [vmem:[%s19313_s19 + $0x1164] ss:$8 sps:$4 sm:$0xff]   ;;  %v19147_v61 = vld [vmem:[%s19313_s19 + $0x1230] ss:$8 sps:$4 sm:$0xff]  }
 0x603   : > { %13165 = vmatprep.subr.bf16.mxu1 %v19095_v47  ;;  %v11721_v18 = vpop.f32.mrf.mxu1  ;;  %v19155_v28 = vld [vmem:[%s19313_s19 + $0x1224] ss:$8 sps:$4 sm:$0xff]   ;;  %v19150_v45 = vld [vmem:[%s19313_s19 + $0x10a0] ss:$8 sps:$4 sm:$0xff]  }
 0x604   : > { %16885 = vst [vmem:[%s19963_s9 + $0x160] sm:$0xff] %v11381_v49  ;;  %v11382_v35 = vmul.f32 0.5, %v11378_v8  ;;  %v11379_v26 = vmax.f32 %v11375_v11, -1.0  ;;  %v11376_v54 = vadd.f32 %v11372_v57, %v19955_v62  ;;  %v19153_v19 = vld [vmem:[%s19313_s19 + $0x1220] ss:$8 sps:$4 sm:$0xff]  }
 0x605   : > { %13517 = vmatpush2.bf16.msra.mxu0 %v22177_v38  ;;  %v19104_v38 = vld [vmem:[%s19313_s19 + $0x1034] ss:$8 sps:$4 sm:$0xff]   ;;  %v11723_v3 = vpop.f32.mrf.mxu1  ;;  %v19156_v57 = vld [vmem:[%s19313_s19 + $0x1090] ss:$8 sps:$4 sm:$0xff]  }
 0x606   : > { %16886 = vst.msk [vmem:[%s19963_s9 + $0x168] sm:$0xff] %vm1178_vm1, %v11382_v35  ;;  %v11383_v21 = vmul.f32 0.5, %v11379_v26  ;;  %v11380_v59 = vmax.f32 %v11376_v54, -1.0  ;;  %13166 = vmatpush2.bf16.msra.mxu1 %v19093_v33  ;;  %13518 = vmatprep.subr.bf16.mxu0 %v22181_v56  ;;  %v19102_v56 = vld [vmem:[%s19313_s19 + $0x1030] ss:$8 sps:$4 sm:$0xff]  }
 0x607   : > { %13167 = vmatprep.subr.bf16.mxu1 %v19098_v17  ;;  %v19158_v8 = vld [vmem:[%s19313_s19 + $0x1094] ss:$8 sps:$4 sm:$0xff]   ;;  %v19164_v26 = vld [vmem:[%s19313_s19 + $0x1084] ss:$8 sps:$4 sm:$0xff]  }
 0x608   : > { %16887 = vst [vmem:[%s19963_s9 + $0x170] sm:$0xff] %v11383_v21  ;;  %v11384_v13 = vmul.f32 0.5, %v11380_v59  ;;  %v22270_v9 = vpop.f32.mrf.mxu0  ;;  %v19161_v11 = vld [vmem:[%s19313_s19 + $0x1214] ss:$8 sps:$4 sm:$0xff]   ;;  %v19167_v54 = vld [vmem:[%s19313_s19 + $0x1204] ss:$8 sps:$4 sm:$0xff]  }
 0x609   : > { %13519 = vmatpush2.bf16.msra.mxu0 %v22187_v60  ;;  %v19258_v60 = vld [vmem:[%s22359_s1 + $0x18] ss:$12 sps:$4 sm:$0xff]   ;;  %v19162_v59 = vld [vmem:[%s19313_s19 + $0x1080] ss:$8 sps:$4 sm:$0xff]  }
 0x60a   : > { %16888 = vst.msk [vmem:[%s19963_s9 + $0x178] sm:$0xff] %vm1178_vm1, %v11384_v13  ;;  %13168 = vmatpush2.bf16.msra.mxu1 %v19096_v29  ;;  %13520 = vmatprep.subr.bf16.mxu0 %v22191_v53  ;;  %v19120_v53 = vld [vmem:[%s19313_s19 + $0xff0] ss:$8 sps:$4 sm:$0xff]   ;;  %v11678_v5 = vpop.f32.mrf.mxu0 }
 0x60b   : > { %13169 = vmatprep.subr.bf16.mxu1 %v19101_v16 }
 0x60c   : > { %v11680_v49 = vpop.f32.mrf.mxu0 }
 0x60d   : > { %13521 = vmatpush2.bf16.msra.mxu0 %v19087_v50  ;;  %v19134_v50 = vld [vmem:[%s19313_s19 + $0xfd4] ss:$8 sps:$4 sm:$0xff]  }
 0x60e   : > { %13170 = vmatpush2.bf16.msra.mxu1 %v19099_v32  ;;  %13522 = vmatprep.subr.bf16.mxu0 %v19092_v14  ;;  %v19135_v14 = vld [vmem:[%s19313_s19 + $0x1250] ss:$8 sps:$4 sm:$0xff]   ;;  %v11682_v35 = vpop.f32.mrf.mxu0 }
 0x60f   : > { %13553 = vmatprep.subr.bf16.mxu1 %v22120_v52  ;;  %v19105_v52 = vld [vmem:[%s19313_s19 + $0x1020] ss:$8 sps:$4 sm:$0xff]  }
 0x611   : > { %13172 = vmatmul.mubr.bf16.vlgmr.msra.gmra.mxu1 %v21823_v31  ;;  %13523 = vmatpush2.bf16.msra.mxu0 %v19090_v15  ;;  %v19107_v31 = vld [vmem:[%s19313_s19 + $0x1024] ss:$8 sps:$4 sm:$0xff]   ;;  %v19144_v15 = vld [vmem:[%s19313_s19 + $0x10b0] ss:$8 sps:$4 sm:$0xff]  }
 0x612   : > { %13554 = vmatpush1.bf16.msra.mxu1 %v22127_v42  ;;  %13524 = vmatprep.subr.bf16.mxu0 %v19095_v47  ;;  %v19110_v42 = vld [vmem:[%s19313_s19 + $0x1014] ss:$8 sps:$4 sm:$0xff]   ;;  %v19152_v47 = vld [vmem:[%s19313_s19 + $0x10a4] ss:$8 sps:$4 sm:$0xff]  }
 0x613   : > { %13555 = vmatprep.subr.bf16.mxu1 %v22132_v20  ;;  %13573 = vmatprep.mubr.bf16.mxu1 %v19270_v0  ;;  %v19113_v20 = vld [vmem:[%s19313_s19 + $0x10d4] ss:$8 sps:$4 sm:$0xff]  }
 0x615   : > { %13525 = vmatpush2.bf16.msra.mxu0 %v19093_v33  ;;  %v19159_v33 = vld [vmem:[%s19313_s19 + $0x1210] ss:$8 sps:$4 sm:$0xff]  }
 0x616   : > { %13556 = vmatpush1.bf16.msra.mxu1 %v22145_v1  ;;  %13526 = vmatprep.subr.bf16.mxu0 %v19098_v17  ;;  %v19108_v1 = vld [vmem:[%s19313_s19 + $0x1010] ss:$8 sps:$4 sm:$0xff]   ;;  %v11725_v17 = vpop.f32.mrf.mxu1 }
 0x617   : > { %13764 = vmatprep.subr.bf16.mxu1 %v19104_v38  ;;  %v19173_v38 = vld [vmem:[%s19313_s19 + $0x12f4] ss:$8 sps:$4 sm:$0xff]  }
 0x619   : > { %17443 = vmatmul.mubr.msk.bf16.vlgmr.msra.gmra.mxu1 %vm466_vm0, %v21836_v25  ;;  %13527 = vmatpush2.bf16.msra.mxu0 %v19096_v29  ;;  %v19116_v25 = vld [vmem:[%s19313_s19 + $0x1004] ss:$8 sps:$4 sm:$0xff]   ;;  %v19165_v29 = vld [vmem:[%s19313_s19 + $0x1200] ss:$8 sps:$4 sm:$0xff]  }
 0x61a   : > { %13765 = vmatpush1.bf16.msra.mxu1 %v19102_v56  ;;  %13528 = vmatprep.subr.bf16.mxu0 %v19101_v16  ;;  %v11985_v16 = vpop.f32.mrf.mxu0 }
 0x61b   : > { %13766 = vmatprep.subr.bf16.mxu1 %v19107_v31  ;;  %13796 = vmatprep.mubr.bf16.mxu1 %v21846_v10  ;;  %v19114_v10 = vld [vmem:[%s19313_s19 + $0x1000] ss:$8 sps:$4 sm:$0xff]   ;;  %v19168_v31 = vld [vmem:[%s19313_s19 + $0x1070] ss:$8 sps:$4 sm:$0xff]  }
 0x61d   : > { %13529 = vmatpush2.bf16.msra.mxu0 %v19099_v32  ;;  %v19170_v32 = vld [vmem:[%s19313_s19 + $0x1074] ss:$8 sps:$4 sm:$0xff]  }
 0x61e   : > { %13767 = vmatpush1.bf16.msra.mxu1 %v19105_v52  ;;  %13819 = vmatprep.subr.bf16.mxu0 %v19113_v20  ;;  %v19171_v52 = vld [vmem:[%s19313_s19 + $0x12f0] ss:$8 sps:$4 sm:$0xff]   ;;  %v19176_v20 = vld [vmem:[%s19313_s19 + $0x1064] ss:$8 sps:$4 sm:$0xff]  }
 0x61f   : > { %13768 = vmatprep.subr.bf16.mxu1 %v19110_v42  ;;  %v11987_v42 = vpop.f32.mrf.mxu0 }
 0x620   : > { %13531 = vmatmul.mubr.bf16.vlgmr.msra.gmra.mxu0 %v19258_v60 }
 0x621   : > { %13820 = vmatpush1.bf16.msra.mxu0 %v19111_v39  ;;  %13839 = vmatprep.mubr.bf16.mxu0 %v19270_v0  ;;  %v11989_v60 = vpop.f32.mrf.mxu0 }
 0x622   : > { %13769 = vmatpush1.bf16.msra.mxu1 %v19108_v1  ;;  %13821 = vmatprep.subr.bf16.mxu0 %v19119_v2  ;;  %v19179_v1 = vld [vmem:[%s19313_s19 + $0x12e4] ss:$8 sps:$4 sm:$0xff]   ;;  %v19177_v2 = vld [vmem:[%s19313_s19 + $0x12e0] ss:$8 sps:$4 sm:$0xff]  }
 0x623   : > { %13770 = vmatprep.subr.bf16.mxu1 %v19116_v25  ;;  %v19174_v25 = vld [vmem:[%s19313_s19 + $0x1060] ss:$8 sps:$4 sm:$0xff]  }
 0x625   : > { %13822 = vmatpush1.bf16.msra.mxu0 %v19117_v22  ;;  %v19182_v22 = vld [vmem:[%s19313_s19 + $0x1054] ss:$8 sps:$4 sm:$0xff]  }
 0x626   : > { %13771 = vmatpush1.bf16.msra.mxu1 %v19114_v10  ;;  %14067 = vmatprep.subr.bf16.mxu0 %v19125_v44  ;;  %v11720_v44 = vadd.f32 %v22268_v41, %v22270_v9  ;;  %v19189_v41 = vld [vmem:[%s19313_s19 + $0x12c0] ss:$8 sps:$4 sm:$0xff]  }
 0x627   : > { %13772 = vmatprep.subr.bf16.mxu1 %v19122_v40  ;;  %v19185_v40 = vld [vmem:[%s19313_s19 + $0x12d4] ss:$8 sps:$4 sm:$0xff]  }
 0x628   : > { %17480 = vmatmul.mubr.msk.bf16.vlgmr.msra.gmra.mxu0 %vm466_vm0, %v19259_v43  ;;  %v11724_v43 = vadd.f32 %v11723_v3, %v11680_v49 }
 0x629   : > { %14068 = vmatpush1.bf16.msra.mxu0 %v19123_v7  ;;  %14099 = vmatprep.mubr.bf16.mxu0 %v19260_v36 }
 0x62a   : > { %13773 = vmatpush1.bf16.msra.mxu1 %v19120_v53  ;;  %14069 = vmatprep.subr.bf16.mxu0 %v19131_v6  ;;  %v11722_v53 = vadd.f32 %v11721_v18, %v11678_v5  ;;  %v19183_v6 = vld [vmem:[%s19313_s19 + $0x12d0] ss:$8 sps:$4 sm:$0xff]  }
 0x62b   : > { %13774 = vmatprep.subr.bf16.mxu1 %v19128_v30  ;;  %v19180_v30 = vld [vmem:[%s19313_s19 + $0x1050] ss:$8 sps:$4 sm:$0xff]  }
 0x62d   : > { %14070 = vmatpush1.bf16.msra.mxu0 %v19129_v23 }
 0x62e   : > { %13775 = vmatpush1.bf16.msra.mxu1 %v19126_v4  ;;  %14071 = vmatprep.subr.bf16.mxu0 %v19137_v51  ;;  %v11991_v4 = vpop.f32.mrf.mxu0  ;;  %v19191_v51 = vld [vmem:[%s19313_s19 + $0x12c4] ss:$8 sps:$4 sm:$0xff]  }
 0x62f   : > { %13776 = vmatprep.subr.bf16.mxu1 %v19134_v50  ;;  %v19188_v50 = vld [vmem:[%s19313_s19 + $0x1044] ss:$8 sps:$4 sm:$0xff]  }
 0x631   : > { %14072 = vmatpush1.bf16.msra.mxu0 %v19135_v14 }
 0x632   : > { %13777 = vmatpush1.bf16.msra.mxu1 %v19132_v63  ;;  %14073 = vmatprep.subr.bf16.mxu0 %v19143_v48  ;;  %v11726_v63 = vadd.f32 %v11725_v17, %v11682_v35  ;;  %v19200_v35 = vld [vmem:[%s19313_s19 + $0x12a4] ss:$8 sps:$4 sm:$0xff]  }
 0x633   : > { %13778 = vmatprep.subr.bf16.mxu1 %v19140_v24 }
 0x635   : > { %14074 = vmatpush1.bf16.msra.mxu0 %v19141_v46  ;;  %v19186_v46 = vld [vmem:[%s19313_s19 + $0x1040] ss:$8 sps:$4 sm:$0xff]  }
 0x636   : > { %13779 = vmatpush1.bf16.msra.mxu1 %v19138_v37  ;;  %14075 = vmatprep.subr.bf16.mxu0 %v19149_v55 }
 0x637   : > { %13780 = vmatprep.subr.bf16.mxu1 %v19146_v58 }
 0x639   : > { %14076 = vmatpush1.bf16.msra.mxu0 %v19147_v61  ;;  %v19197_v61 = vld [vmem:[%s19313_s19 + $0x1314] ss:$8 sps:$4 sm:$0xff]  }
 0x63a   : > { %13781 = vmatpush2.bf16.msra.mxu1 %v19144_v15  ;;  %14077 = vmatprep.subr.bf16.mxu0 %v19155_v28  ;;  %v19194_v15 = vld [vmem:[%s19313_s19 + $0x12b4] ss:$8 sps:$4 sm:$0xff]  }
 0x63b   : > { %13782 = vmatprep.subr.bf16.mxu1 %v19152_v47 }
 0x63d   : > { %14078 = vmatpush1.bf16.msra.mxu0 %v19153_v19 }
 0x63e   : > { %13783 = vmatpush2.bf16.msra.mxu1 %v19150_v45  ;;  %14079 = vmatprep.subr.bf16.mxu0 %v19161_v11  ;;  %v19195_v11 = vld [vmem:[%s19313_s19 + $0x1310] ss:$8 sps:$4 sm:$0xff]  }
 0x63f   : > { %13784 = vmatprep.subr.bf16.mxu1 %v19158_v8  ;;  %v19192_v8 = vld [vmem:[%s19313_s19 + $0x12b0] ss:$8 sps:$4 sm:$0xff]  }
 0x641   : > { %v11942_v21 = vpop.f32.mrf.mxu1  ;;  %14080 = vmatpush1.bf16.msra.mxu0 %v19159_v33 }
 0x642   : > { %13785 = vmatpush2.bf16.msra.mxu1 %v19156_v57  ;;  %14081 = vmatprep.subr.bf16.mxu0 %v19167_v54  ;;  %v11943_v7 = vadd.f32 %v11942_v21, %v11720_v44 }
 0x643   : > { %v11944_v13 = vpop.f32.mrf.mxu1  ;;  %13786 = vmatprep.subr.bf16.mxu1 %v19164_v26  ;;  %v19203_v26 = vld [vmem:[%s19313_s19 + $0x1304] ss:$8 sps:$4 sm:$0xff]  }
 0x644   : > { %v11945_v36 = vadd.f32 %v11944_v13, %v11722_v53  ;;  %v11986_v48 = vadd.f32 %v11985_v16, %v11943_v7 }
 0x645   : > { %v11946_v56 = vpop.f32.mrf.mxu1  ;;  %14082 = vmatpush1.bf16.msra.mxu0 %v19165_v29 }
 0x646   : > { %13787 = vmatpush2.bf16.msra.mxu1 %v19162_v59  ;;  %14083 = vmatprep.subr.bf16.mxu0 %v19173_v38  ;;  %v11947_v14 = vadd.f32 %v11946_v56, %v11724_v43  ;;  %v11988_v18 = vadd.f32 %v11987_v42, %v11945_v36  ;;  %v19198_v56 = vld [vmem:[%s19313_s19 + $0x12a0] ss:$8 sps:$4 sm:$0xff]  }
 0x647   : > { %13788 = vmatprep.subr.bf16.mxu1 %v19170_v32  ;;  %v11948_v39 = vpop.f32.mrf.mxu1 }
 0x648   : > { %v11949_v9 = vadd.f32 %v11948_v39, %v11726_v63  ;;  %v11990_v28 = vadd.f32 %v11989_v60, %v11947_v14 }
 0x649   : > { %14084 = vmatpush2.bf16.msra.mxu0 %v19171_v52  ;;  %v12288_v10 = vpop.f32.mrf.mxu1  ;;  %v19206_v52 = vld [vmem:[%s19313_s19 + $0x1294] ss:$8 sps:$4 sm:$0xff]  }
 0x64a   : > { %13789 = vmatpush2.bf16.msra.mxu1 %v19168_v31  ;;  %14085 = vmatprep.subr.bf16.mxu0 %v19179_v1  ;;  %v11992_v57 = vadd.f32 %v11991_v4, %v11949_v9  ;;  %v19201_v31 = vld [vmem:[%s19313_s19 + $0x1300] ss:$8 sps:$4 sm:$0xff]  }
 0x64b   : > { %13790 = vmatprep.subr.bf16.mxu1 %v19176_v20  ;;  %v12290_v23 = vpop.f32.mrf.mxu1 }
 0x64d   : > { %14086 = vmatpush2.bf16.msra.mxu0 %v19177_v2  ;;  %v12292_v58 = vpop.f32.mrf.mxu1  ;;  %v19209_v2 = vld [vmem:[%s19313_s19 + $0x1284] ss:$8 sps:$4 sm:$0xff]  }
 0x64e   : > { %13791 = vmatpush2.bf16.msra.mxu1 %v19174_v25  ;;  %14087 = vmatprep.subr.bf16.mxu0 %v19185_v40  ;;  %v19204_v25 = vld [vmem:[%s19313_s19 + $0x1290] ss:$8 sps:$4 sm:$0xff]  }
 0x64f   : > { %13792 = vmatprep.subr.bf16.mxu1 %v19182_v22  ;;  %v12294_v33 = vpop.f32.mrf.mxu1 }
 0x650   : > { %v12245_v24 = vpop.f32.mrf.mxu0 }
 0x651   : > { %v12289_v37 = vadd.f32 %v12288_v10, %v12245_v24  ;;  %14088 = vmatpush2.bf16.msra.mxu0 %v19183_v6  ;;  %v19207_v10 = vld [vmem:[%s19313_s19 + $0x1280] ss:$8 sps:$4 sm:$0xff]  }
 0x652   : > { %13793 = vmatpush2.bf16.msra.mxu1 %v19180_v30  ;;  %v12247_v55 = vpop.f32.mrf.mxu0  ;;  %14089 = vmatprep.subr.bf16.mxu0 %v19191_v51 }
 0x653   : > { %13794 = vmatprep.subr.bf16.mxu1 %v19188_v50  ;;  %v12297_v5 = vadd.f32 %v12289_v37, %v11986_v48  ;;  %v12291_v47 = vadd.f32 %v12290_v23, %v12247_v55 }
 0x654   : > { %v12249_v45 = vpop.f32.mrf.mxu0 }
 0x655   : > { %v12301_v19 = vadd.f32 %v12297_v5, %v19929_v34  ;;  %v12298_v3 = vadd.f32 %v12291_v47, %v11988_v18  ;;  %v12293_v49 = vadd.f32 %v12292_v58, %v12249_v45  ;;  %14090 = vmatpush2.bf16.msra.mxu0 %v19189_v41 }
 0x656   : > { %13795 = vmatpush2.bf16.msra.mxu1 %v19186_v46  ;;  %v12251_v17 = vpop.f32.mrf.mxu0  ;;  %14091 = vmatprep.subr.bf16.mxu0 %v19194_v15 }
 0x657   : > { %14122 = vmatprep.subr.bf16.mxu1 %v19197_v61  ;;  %v12305_v54 = vmax.f32 %v12301_v19, -1.0  ;;  %v12302_v21 = vadd.f32 %v12298_v3, %v19929_v34  ;;  %v12299_v59 = vadd.f32 %v12293_v49, %v11990_v28  ;;  %v12295_v29 = vadd.f32 %v12294_v33, %v12251_v17 }
 0x658   : > { %v12647_v22 = vpop.f32.mrf.mxu0 }
 0x659   : > { %13797 = vmatmul.mubr.bf16.vlgmr.msra.gmra.mxu1 %v22139_v27  ;;  %v12309_v16 = vmul.f32 0.5, %v12305_v54  ;;  %v12306_v13 = vmax.f32 %v12302_v21, -1.0  ;;  %v12303_v32 = vadd.f32 %v12299_v59, %v19955_v62  ;;  %v12300_v38 = vadd.f32 %v12295_v29, %v11992_v57  ;;  %14092 = vmatpush2.bf16.msra.mxu0 %v19192_v8 }
 0x65a   : > { %14123 = vmatpush1.bf16.msra.mxu1 %v19195_v11  ;;  %14093 = vmatprep.subr.bf16.mxu0 %v19200_v35  ;;  %v12649_v40 = vpop.f32.mrf.mxu0 }
 0x65b   : > { %14124 = vmatprep.subr.bf16.mxu1 %v19203_v26  ;;  %17108 = vst [vmem:[%s19963_s9 + $0x180] sm:$0xff] %v12309_v16  ;;  %v12310_v42 = vmul.f32 0.5, %v12306_v13  ;;  %v12307_v27 = vmax.f32 %v12303_v32, -1.0  ;;  %v12304_v20 = vadd.f32 %v12300_v38, %v19955_v62  ;;  %14142 = vmatprep.mubr.bf16.mxu1 %v19270_v0  ;;  %v19261_v0 = vld [vmem:[%s22359_s1 + $0x30] ss:$12 sps:$4 sm:$0xff]  }
 0x65c   : > { %v12651_v44 = vpop.f32.mrf.mxu0 }
 0x65d   : > { %17109 = vst.msk [vmem:[%s19963_s9 + $0x188] sm:$0xff] %vm1178_vm1, %v12310_v42  ;;  %v12311_v1 = vmul.f32 0.5, %v12307_v27  ;;  %v12308_v39 = vmax.f32 %v12304_v20, -1.0  ;;  %14094 = vmatpush2.bf16.msra.mxu0 %v19198_v56 }
 0x65e   : > { %14125 = vmatpush1.bf16.msra.mxu1 %v19201_v31  ;;  %14095 = vmatprep.subr.bf16.mxu0 %v19206_v52  ;;  %v12653_v7 = vpop.f32.mrf.mxu0 }
 0x65f   : > { %17110 = vst [vmem:[%s19963_s9 + $0x190] sm:$0xff] %v12311_v1  ;;  %v12312_v60 = vmul.f32 0.5, %v12308_v39 }
 0x661   : > { %17553 = vmatmul.mubr.msk.bf16.vlgmr.msra.gmra.mxu1 %vm466_vm0, %v22156_v12  ;;  %17111 = vst.msk [vmem:[%s19963_s9 + $0x198] sm:$0xff] %vm1178_vm1, %v12312_v60  ;;  %14096 = vmatpush2.bf16.msra.mxu0 %v19204_v25 }
 0x662   : > { %14097 = vmatprep.subr.bf16.mxu0 %v19209_v2 }
 0x665   : > { %14098 = vmatpush2.bf16.msra.mxu0 %v19207_v10 }
 0x668   : > { %14100 = vmatmul.mubr.bf16.vlgmr.msra.gmra.mxu0 %v19261_v0 }
 0x689   : > { %v12604_v53 = vpop.f32.mrf.mxu1 }
 0x68a   : > { %v12648_v24 = vadd.f32 %v12647_v22, %v12604_v53 }
 0x68b   : > { %v12606_v30 = vpop.f32.mrf.mxu1 }
 0x68c   : > { %v12650_v48 = vadd.f32 %v12649_v40, %v12606_v30 }
 0x68d   : > { %v12608_v43 = vpop.f32.mrf.mxu1 }
 0x68e   : > { %v12652_v9 = vadd.f32 %v12651_v44, %v12608_v43 }
 0x68f   : > { %v12610_v4 = vpop.f32.mrf.mxu1 }
 0x690   : > { %v12654_v55 = vadd.f32 %v12653_v7, %v12610_v4 }
 0x691   : > { %v12913_v23 = vpop.f32.mrf.mxu1 }
 0x693   : > { %v12915_v51 = vpop.f32.mrf.mxu1 }
 0x695   : > { %v12917_v63 = vpop.f32.mrf.mxu1 }
 0x697   : > { %v12919_v46 = vpop.f32.mrf.mxu1 }
 0x698   : > { %v12870_v6 = vpop.f32.mrf.mxu0 }
 0x699   : > { %v12871_v37 = vadd.f32 %v12870_v6, %v12648_v24 }
 0x69a   : > { %v12872_v12 = vpop.f32.mrf.mxu0 }
 0x69b   : > { %v12873_v58 = vadd.f32 %v12872_v12, %v12650_v48  ;;  %v12914_v61 = vadd.f32 %v12913_v23, %v12871_v37 }
 0x69c   : > { %v12874_v50 = vpop.f32.mrf.mxu0 }
 0x69d   : > { %v12875_v18 = vadd.f32 %v12874_v50, %v12652_v9  ;;  %v12916_v19 = vadd.f32 %v12915_v51, %v12873_v58 }
 0x69e   : > { %v12876_v36 = vpop.f32.mrf.mxu0 }
 0x69f   : > { %v12877_v47 = vadd.f32 %v12876_v36, %v12654_v55  ;;  %v12918_v11 = vadd.f32 %v12917_v63, %v12875_v18 }
 0x6a0   : > { %v13216_v14 = vpop.f32.mrf.mxu0 }
 0x6a1   : > { %v12920_v35 = vadd.f32 %v12919_v46, %v12877_v47 }
 0x6a2   : > { %v13218_v41 = vpop.f32.mrf.mxu0 }
 0x6a4   : > { %v13220_v28 = vpop.f32.mrf.mxu0 }
 0x6a6   : > { %v13222_v26 = vpop.f32.mrf.mxu0 }
 0x6d1   : > { %v13173_v15 = vpop.f32.mrf.mxu1 }
 0x6d2   : > { %v13217_v5 = vadd.f32 %v13216_v14, %v13173_v15 }
 0x6d3   : > { %v13175_v45 = vpop.f32.mrf.mxu1 }
 0x6d4   : > { %v13225_v3 = vadd.f32 %v13217_v5, %v12914_v61  ;;  %v13219_v49 = vadd.f32 %v13218_v41, %v13175_v45 }
 0x6d5   : > { %v13177_v8 = vpop.f32.mrf.mxu1 }
 0x6d6   : > { %v13229_v57 = vadd.f32 %v13225_v3, %v19929_v34  ;;  %v13226_v33 = vadd.f32 %v13219_v49, %v12916_v19  ;;  %v13221_v17 = vadd.f32 %v13220_v28, %v13177_v8 }
 0x6d7   : > { %v13179_v54 = vpop.f32.mrf.mxu1 }
 0x6d8   : > { %v13233_v21 = vmax.f32 %v13229_v57, -1.0  ;;  %v13230_v59 = vadd.f32 %v13226_v33, %v19929_v34  ;;  %v13227_v29 = vadd.f32 %v13221_v17, %v12918_v11  ;;  %v13223_v16 = vadd.f32 %v13222_v26, %v13179_v54 }
 0x6d9   : > { %v13575_v39 = vpop.f32.mrf.mxu1 }
 0x6da   : > { %v13237_v13 = vmul.f32 0.5, %v13233_v21  ;;  %v13234_v32 = vmax.f32 %v13230_v59, -1.0  ;;  %v13231_v38 = vadd.f32 %v13227_v29, %v19955_v62  ;;  %v13228_v56 = vadd.f32 %v13223_v16, %v12920_v35 }
 0x6db   : > { %v13577_v2 = vpop.f32.mrf.mxu1 }
 0x6dc   : > { %17331 = vst [vmem:[%s19963_s9 + $0x1a0] sm:$0xff] %v13237_v13  ;;  %v13238_v31 = vmul.f32 0.5, %v13234_v32  ;;  %v13235_v52 = vmax.f32 %v13231_v38, -1.0  ;;  %v13232_v42 = vadd.f32 %v13228_v56, %v19955_v62 }
 0x6dd   : > { %v13579_v10 = vpop.f32.mrf.mxu1 }
 0x6de   : > { %17332 = vst.msk [vmem:[%s19963_s9 + $0x1a8] sm:$0xff] %vm1178_vm1, %v13238_v31  ;;  %v13239_v27 = vmul.f32 0.5, %v13235_v52  ;;  %v13236_v20 = vmax.f32 %v13232_v42, -1.0 }
 0x6df   : > { %v13581_v22 = vpop.f32.mrf.mxu1 }
 0x6e0   : > { %17333 = vst [vmem:[%s19963_s9 + $0x1b0] sm:$0xff] %v13239_v27  ;;  %v13240_v1 = vmul.f32 0.5, %v13236_v20  ;;  %v13532_v25 = vpop.f32.mrf.mxu0 }
 0x6e1   : > { %v13576_v23 = vadd.f32 %v13575_v39, %v13532_v25 }
 0x6e2   : > { %17334 = vst.msk [vmem:[%s19963_s9 + $0x1b8] sm:$0xff] %vm1178_vm1, %v13240_v1  ;;  %v13534_v60 = vpop.f32.mrf.mxu0 }
 0x6e3   : > { %v13578_v50 = vadd.f32 %v13577_v2, %v13534_v60 }
 0x6e4   : > { %v13536_v0 = vpop.f32.mrf.mxu0 }
 0x6e5   : > { %v13580_v14 = vadd.f32 %v13579_v10, %v13536_v0 }
 0x6e6   : > { %v13538_v40 = vpop.f32.mrf.mxu0 }
 0x6e7   : > { %v13582_v48 = vadd.f32 %v13581_v22, %v13538_v40 }
 0x6e8   : > { %v13841_v53 = vpop.f32.mrf.mxu0 }
 0x6ea   : > { %v13843_v6 = vpop.f32.mrf.mxu0 }
 0x6ec   : > { %v13845_v12 = vpop.f32.mrf.mxu0 }
 0x6ee   : > { %v13847_v36 = vpop.f32.mrf.mxu0 }
 0x719   : > { %v13798_v44 = vpop.f32.mrf.mxu1 }
 0x71a   : > { %v13799_v51 = vadd.f32 %v13798_v44, %v13576_v23 }
 0x71b   : > { %v13800_v7 = vpop.f32.mrf.mxu1 }
 0x71c   : > { %v13801_v24 = vadd.f32 %v13800_v7, %v13578_v50  ;;  %v13842_v46 = vadd.f32 %v13841_v53, %v13799_v51 }
 0x71d   : > { %v13802_v30 = vpop.f32.mrf.mxu1 }
 0x71e   : > { %v13803_v41 = vadd.f32 %v13802_v30, %v13580_v14  ;;  %v13844_v61 = vadd.f32 %v13843_v6, %v13801_v24 }
 0x71f   : > { %v13804_v43 = vpop.f32.mrf.mxu1 }
 0x720   : > { %v13805_v58 = vadd.f32 %v13804_v43, %v13582_v48  ;;  %v13846_v28 = vadd.f32 %v13845_v12, %v13803_v41 }
 0x721   : > { %v14144_v4 = vpop.f32.mrf.mxu1 }
 0x722   : > { %v13848_v49 = vadd.f32 %v13847_v36, %v13805_v58 }
 0x723   : > { %v14146_v63 = vpop.f32.mrf.mxu1 }
 0x725   : > { %v14148_v55 = vpop.f32.mrf.mxu1 }
 0x727   : > { %v14150_v8 = vpop.f32.mrf.mxu1 }
 0x728   : > { %v14101_v37 = vpop.f32.mrf.mxu0 }
 0x729   : > { %v14145_v9 = vadd.f32 %v14144_v4, %v14101_v37 }
 0x72a   : > { %v14103_v15 = vpop.f32.mrf.mxu0 }
 0x72b   : > { %v14153_v18 = vadd.f32 %v14145_v9, %v13842_v46  ;;  %v14147_v5 = vadd.f32 %v14146_v63, %v14103_v15 }
 0x72c   : > { %v14105_v47 = vpop.f32.mrf.mxu0 }
 0x72d   : > { %v14157_v45 = vadd.f32 %v14153_v18, %v19929_v34  ;;  %v14154_v19 = vadd.f32 %v14147_v5, %v13844_v61  ;;  %v14149_v3 = vadd.f32 %v14148_v55, %v14105_v47 }
 0x72e   : > { %v14107_v11 = vpop.f32.mrf.mxu0 }
 0x72f   : > { %v14161_v57 = vmax.f32 %v14157_v45, -1.0  ;;  %v14158_v33 = vadd.f32 %v14154_v19, %v19929_v34  ;;  %v14155_v17 = vadd.f32 %v14149_v3, %v13846_v28  ;;  %v14151_v35 = vadd.f32 %v14150_v8, %v14107_v11 }
 0x731   : > { %v14165_v26 = vmul.f32 0.5, %v14161_v57  ;;  %v14162_v54 = vmax.f32 %v14158_v33, -1.0  ;;  %v14159_v21 = vadd.f32 %v14155_v17, %v19955_v62  ;;  %v14156_v59 = vadd.f32 %v14151_v35, %v13848_v49 }
 0x733   : > { %17554 = vst [vmem:[%s19963_s9 + $0x1c0] sm:$0xff] %v14165_v26  ;;  %v14166_v29 = vmul.f32 0.5, %v14162_v54  ;;  %v14163_v16 = vmax.f32 %v14159_v21, -1.0  ;;  %v14160_v13 = vadd.f32 %v14156_v59, %v19955_v62 }
 0x735   : > { %17555 = vst.msk [vmem:[%s19963_s9 + $0x1c8] sm:$0xff] %vm1178_vm1, %v14166_v29  ;;  %v14167_v32 = vmul.f32 0.5, %v14163_v16  ;;  %v14164_v38 = vmax.f32 %v14160_v13, -1.0 }
 0x737   : > { %17556 = vst [vmem:[%s19963_s9 + $0x1d0] sm:$0xff] %v14167_v32  ;;  %v14168_v56 = vmul.f32 0.5, %v14164_v38 }
 0x739   : > { %17557 = vst.msk [vmem:[%s19963_s9 + $0x1d8] sm:$0xff] %vm1178_vm1, %v14168_v56 }
 0x73a PF: > { %s13_s12 = sadd.s32 1, %s19268_s12  }
 0x73b   : > { %p10_p4 = scmp.ge.s32.totalorder %s13_s12, 4  }
 0x73d   :  { %12 = sbr.rel (!%p10_p4) target bundleno = 1 (0x1), region = 94 }

</bundles_post_ra>
